<compile_context>
chip_gen: v7x
topology: tpu7x:2x2x1
jax: 0.10.0
libtpu: 0.0.40
codegen_flags: <defaults>
</compile_context>

<pallas_src>
import numpy as np

import jax
import jax.numpy as jnp
from jax.experimental import pallas as pl
from jax.experimental.pallas import tpu as pltpu

_BN_EPS = 1e-5
_G = 6  # arrays per fused layer group: Srow, Wlane, gamma, beta, fold, spread


# ------------------------------ the kernel ----------------------------------

def _generator1_kernel(*refs):
    """Whole Generator1 forward (encoder + 5 res blocks + decoder) in VMEM."""
    x_ref, o_ref = refs[0], refs[-1]
    prm = refs[1:-1]

    def group(i):
        return prm[i * _G:(i + 1) * _G]

    def bn_relu(y, gamma, beta, fold, spread):
        # Training-mode BatchNorm (biased variance, two-pass) + ReLU on a
        # lane-dense tile y:(N*Ho, Wo*C).  fold:(Wo*C, C), spread:(C, Wo*C)
        # fold/spread are 0/1 matrices that reduce / broadcast across the Wo
        # lane blocks so per-channel statistics are exact.
        c = fold.shape[1]
        inv = 1.0 / float(y.shape[0] * (y.shape[1] // c))
        mean_c = jnp.dot(jnp.sum(y, axis=0, keepdims=True), fold,
                         preferred_element_type=jnp.float32) * inv          # (1, C)
        mean_l = jnp.dot(mean_c, spread, preferred_element_type=jnp.float32)  # (1, L)
        d = y - mean_l
        var_c = jnp.dot(jnp.sum(d * d, axis=0, keepdims=True), fold,
                        preferred_element_type=jnp.float32) * inv            # (1, C)
        scale_c = gamma * jax.lax.rsqrt(var_c + _BN_EPS)
        shift_c = beta - mean_c * scale_c
        scale_l = jnp.dot(scale_c, spread, preferred_element_type=jnp.float32)
        shift_l = jnp.dot(shift_c, spread, preferred_element_type=jnp.float32)
        return jnp.maximum(y * scale_l + shift_l, 0.0)

    def conv(x, srow_ref, wlane_at, gamma, beta, fold, spread):
        # Generic conv / transposed-conv:  y = sum_kh (Srow[kh] @ x) @ Wlane[kh]
        # bf16 MXU operands, f32 accumulation, BN+ReLU epilogue in f32.
        xb = x.astype(jnp.bfloat16)
        acc = None
        for kh in range(srow_ref.shape[0]):
            rows = jnp.dot(srow_ref[kh], xb, preferred_element_type=jnp.float32)
            t = jnp.dot(rows.astype(jnp.bfloat16), wlane_at(kh),
                        preferred_element_type=jnp.float32)
            acc = t if acc is None else acc + t
        return bn_relu(acc, gamma, beta, fold, spread)

    def layer(x, gi):
        s, w, g, b, f, sp = group(gi)
        return conv(x, s, lambda kh: w[kh], g[...], b[...], f[...], sp[...])

    # ---------------- encoder ----------------
    x = layer(x_ref[...], 0)          # conv1 : (N*16, 16*8)
    x = layer(x, 1)                   # conv2 : (N*8,  8*16)
    x = layer(x, 2)                   # conv3 : (N*4,  4*32)

    # ---------------- residual trunk (all resident in VMEM) ----------------
    sr, wr, gr, br, fr, spr = group(3)
    fold_r, spread_r = fr[...], spr[...]

    def rconv(inp, i):
        return conv(inp, sr, lambda kh: wr[i, kh], gr[i], br[i], fold_r, spread_r)

    temp = rconv(x, 0)                # rb1 conv1 (no residual add, per reference)
    x = x + rconv(temp, 1)            # rb1 conv2
    temp = x + rconv(x, 2)            # rb2 conv1
    x = x + rconv(temp, 3)            # rb2 conv2
    temp = x + rconv(x, 4)            # rb3 conv1
    x = x + rconv(temp, 5)            # rb3 conv2
    x = x + rconv(x, 6)               # rb4 conv2 (consumes x; rb4 conv1 is dead)
    temp = x + rconv(x, 7)            # rb5 conv1
    x = x + rconv(temp, 8)            # rb5 conv2

    # ---------------- decoder ----------------
    x = layer(x, 4)                   # deconv1 : (N*8,  8*16)
    x = layer(x, 5)                   # deconv2 : (N*16, 16*8)
    x = layer(x, 6)                   # deconv3 : (N*16, 16*3)

    o_ref[...] = x


# -------------------- host-side layer-plan construction ---------------------
# Pure numpy, executed once at init.  These encode exactly the PyTorch
# Conv2d / ConvTranspose2d index arithmetic (stride, padding, kernel flip).

def _conv_plan(w_oihw, hi, wi, stride, pad, n):
    w = np.asarray(w_oihw, np.float32)
    co, ci, kh_n, kw_n = w.shape
    ho = (hi + 2 * pad - kh_n) // stride + 1
    wo = (wi + 2 * pad - kw_n) // stride + 1
    srow = np.zeros((kh_n, n * ho, n * hi), np.float32)
    for kh in range(kh_n):
        for b in range(n):
            for oi in range(ho):
                ii = oi * stride + kh - pad
                if 0 <= ii < hi:
                    srow[kh, b * ho + oi, b * hi + ii] = 1.0
    wt = np.transpose(w, (2, 3, 1, 0))                      # (KH, KW, Ci, Co)
    wlane = np.zeros((kh_n, wi * ci, wo * co), np.float32)
    for kh in range(kh_n):
        for oj in range(wo):
            for kw in range(kw_n):
                ij = oj * stride + kw - pad
                if 0 <= ij < wi:
                    wlane[kh, ij * ci:(ij + 1) * ci, oj * co:(oj + 1) * co] = wt[kh, kw]
    return srow, wlane, ho, wo, co


def _deconv_plan(w_iohw, hi, wi, stride, pad, n):
    w = np.asarray(w_iohw, np.float32)
    ci, co, kh_n, kw_n = w.shape
    ho = (hi - 1) * stride - 2 * pad + kh_n
    wo = (wi - 1) * stride - 2 * pad + kw_n
    srow = np.zeros((kh_n, n * ho, n * hi), np.float32)
    for kh in range(kh_n):
        for b in range(n):
            for ii in range(hi):
                oi = ii * stride + kh - pad
                if 0 <= oi < ho:
                    srow[kh, b * ho + oi, b * hi + ii] = 1.0
    wt = np.transpose(w, (2, 3, 0, 1))                      # (KH, KW, Ci, Co)
    wlane = np.zeros((kh_n, wi * ci, wo * co), np.float32)
    for kh in range(kh_n):
        for ij in range(wi):
            for kw in range(kw_n):
                oj = ij * stride + kw - pad
                if 0 <= oj < wo:
                    wlane[kh, ij * ci:(ij + 1) * ci, oj * co:(oj + 1) * co] = wt[kh, kw]
    return srow, wlane, ho, wo, co


def _fold_spread(wo, co):
    fold = np.tile(np.eye(co, dtype=np.float32), (wo, 1))   # (Wo*Co, Co)
    return fold, np.ascontiguousarray(fold.T)               # (Co, Wo*Co)


def _layer_group(srow, wlane, gamma, beta, wo, co):
    fold, spread = _fold_spread(wo, co)
    return [
        jnp.asarray(srow, jnp.bfloat16),   # 0/1 entries: exact in bf16
        jnp.asarray(wlane, jnp.bfloat16),  # bf16 MXU operands (review item)
        jnp.asarray(gamma, jnp.float32).reshape(1, co),
        jnp.asarray(beta, jnp.float32).reshape(1, co),
        jnp.asarray(fold, jnp.float32),
        jnp.asarray(spread, jnp.float32),
    ]


def build_generator1_plan(params, n, h, w):
    """Flatten all 15 used conv layers into the kernel's operand list."""
    plan = []

    s, wl, ho, wo, co = _conv_plan(params["conv1"], h, w, 1, 1, n)
    plan += _layer_group(s, wl, *params["bn1"], wo, co)
    h1, w1 = ho, wo
    s, wl, ho, wo, co = _conv_plan(params["conv2"], h1, w1, 2, 1, n)
    plan += _layer_group(s, wl, *params["bn2"], wo, co)
    h2, w2 = ho, wo
    s, wl, ho, wo, co = _conv_plan(params["conv3"], h2, w2, 2, 1, n)
    plan += _layer_group(s, wl, *params["bn3"], wo, co)
    h3, w3 = ho, wo

    # residual trunk: the 9 convs actually used by the reference forward
    # (rb4 conv1 is computed into a dead `temp` there and skipped here).
    trunk = [("rb1c1", "rb1b1"), ("rb1c2", "rb1b2"),
             ("rb2c1", "rb2b1"), ("rb2c2", "rb2b2"),
             ("rb3c1", "rb3b1"), ("rb3c2", "rb3b2"),
             ("rb4c2", "rb4b2"),
             ("rb5c1", "rb5b1"), ("rb5c2", "rb5b2")]
    srow_r, wl_list, g_list, b_list = None, [], [], []
    wo_r = co_r = None
    for wk, bk in trunk:
        s, wl, ho_r, wo_r, co_r = _conv_plan(params[wk], h3, w3, 1, 1, n)
        srow_r = s
        wl_list.append(wl)
        g, b = params[bk]
        g_list.append(np.asarray(g, np.float32).reshape(1, co_r))
        b_list.append(np.asarray(b, np.float32).reshape(1, co_r))
    fold_r, spread_r = _fold_spread(wo_r, co_r)
    plan += [
        jnp.asarray(srow_r, jnp.bfloat16),                  # shared (3, N*4, N*4)
        jnp.asarray(np.stack(wl_list), jnp.bfloat16),       # (9, 3, 128, 128)
        jnp.asarray(np.stack(g_list), jnp.float32),         # (9, 1, 32)
        jnp.asarray(np.stack(b_list), jnp.float32),         # (9, 1, 32)
        jnp.asarray(fold_r, jnp.float32),
        jnp.asarray(spread_r, jnp.float32),
    ]

    s, wl, ho, wo, co = _deconv_plan(params["deconv1"], h3, w3, 2, 1, n)
    plan += _layer_group(s, wl, *params["dbn1"], wo, co)
    h4, w4 = ho, wo
    s, wl, ho, wo, co = _deconv_plan(params["deconv2"], h4, w4, 2, 1, n)
    plan += _layer_group(s, wl, *params["dbn2"], wo, co)
    h5, w5 = ho, wo
    s, wl, ho, wo, co = _deconv_plan(params["deconv3"], h5, w5, 1, 1, n)
    plan += _layer_group(s, wl, *params["dbn3"], wo, co)

    return tuple(plan)


# ------------------------------ parameters -----------------------------------
# Conv/deconv biases are omitted: each conv feeds a training-mode BatchNorm,
# whose batch-mean subtraction cancels any per-channel constant exactly.

def _init_conv(key, cout, cin, k):
    return jax.random.normal(key, (cout, cin, k, k), jnp.float32) * 0.05


def _init_convT(key, cin, cout, k):
    return jax.random.normal(key, (cin, cout, k, k), jnp.float32) * 0.05


def _init_bn(c):
    return jnp.ones((c,), jnp.float32), jnp.zeros((c,), jnp.float32)


def init_generator1_params(key, input_channel, base_filter):
    bf = base_filter
    keys = iter(jax.random.split(key, 32))
    p = {}
    p["conv1"] = _init_conv(next(keys), bf, 3, input_channel)   # kernel = input_channel
    p["bn1"] = _init_bn(bf)
    p["conv2"] = _init_conv(next(keys), bf * 2, bf, 4)
    p["bn2"] = _init_bn(bf * 2)
    p["conv3"] = _init_conv(next(keys), bf * 4, bf * 2, 4)
    p["bn3"] = _init_bn(bf * 4)
    for rr in range(1, 6):
        for cc in (1, 2):
            p[f"rb{rr}c{cc}"] = _init_conv(next(keys), bf * 4, bf * 4, 3)
            p[f"rb{rr}b{cc}"] = _init_bn(bf * 4)
    p["deconv1"] = _init_convT(next(keys), bf * 4, bf * 2, 4)
    p["dbn1"] = _init_bn(bf * 2)
    p["deconv2"] = _init_convT(next(keys), bf * 2, bf, 4)
    p["dbn2"] = _init_bn(bf)
    p["deconv3"] = _init_convT(next(keys), bf, input_channel, 3)
    p["dbn3"] = _init_bn(3)   # nn.BatchNorm2d(3), as written in the module
    return p


# -------------------------------- forward ------------------------------------

def generator1_forward(plan, x_nchw):
    n, c, h, w = x_nchw.shape
    # NCHW -> lane-dense (N*H, W*C); trivial 6 KB XLA glue.
    x2 = jnp.transpose(x_nchw, (0, 2, 3, 1)).reshape(n * h, w * c).astype(jnp.float32)
    out2 = pl.pallas_call(
        _generator1_kernel,
        out_shape=jax.ShapeDtypeStruct((n * h, w * 3), jnp.float32),
        # No grid: whole-array VMEM residency, no double-buffering machinery.
        in_specs=[pl.BlockSpec(memory_space=pltpu.MemorySpace.VMEM)] * (1 + len(plan)),
        out_specs=pl.BlockSpec(memory_space=pltpu.MemorySpace.VMEM),
    )(x2, *plan)
    out = out2.reshape(n, h, w, 3)
    return jnp.transpose(out, (0, 3, 1, 2))   # -> NCHW


# ---------------------------------- main --------------------------------------

if __name__ == "__main__":
    INPUT_CHANNEL = 3   # must be 3: conv1 takes 3 in-channels & dbn3 is BatchNorm2d(3)
    BASE_FILTER = 8
    N, H, W = 2, 16, 16

    key = jax.random.PRNGKey(0)
    k_params, k_x = jax.random.split(key)
    params = init_generator1_params(k_params, INPUT_CHANNEL, BASE_FILTER)
    plan = build_generator1_plan(params, N, H, W)
    x = jax.random.normal(k_x, (N, INPUT_CHANNEL, H, W), jnp.float32)

    fwd = jax.jit(generator1_forward)
    out = fwd(plan, x)
    jax.block_until_ready(out)
    assert out.shape == (N, INPUT_CHANNEL, H, W), out.shape
    assert bool(jnp.all(jnp.isfinite(out)))
    print("KERNEL_OK")
</pallas_src>

<mosaic_0001>
module attributes {stable_mosaic.version = 11 : i64} {
  func.func @_generator1_kernel(%arg0: memref<32x48xf32, #tpu.memory_space<vmem>>, %arg1: memref<3x32x32xbf16, #tpu.memory_space<vmem>>, %arg2: memref<3x48x128xbf16, #tpu.memory_space<vmem>>, %arg3: memref<1x8xf32, #tpu.memory_space<vmem>>, %arg4: memref<1x8xf32, #tpu.memory_space<vmem>>, %arg5: memref<128x8xf32, #tpu.memory_space<vmem>>, %arg6: memref<8x128xf32, #tpu.memory_space<vmem>>, %arg7: memref<4x16x32xbf16, #tpu.memory_space<vmem>>, %arg8: memref<4x128x128xbf16, #tpu.memory_space<vmem>>, %arg9: memref<1x16xf32, #tpu.memory_space<vmem>>, %arg10: memref<1x16xf32, #tpu.memory_space<vmem>>, %arg11: memref<128x16xf32, #tpu.memory_space<vmem>>, %arg12: memref<16x128xf32, #tpu.memory_space<vmem>>, %arg13: memref<4x8x16xbf16, #tpu.memory_space<vmem>>, %arg14: memref<4x128x128xbf16, #tpu.memory_space<vmem>>, %arg15: memref<1x32xf32, #tpu.memory_space<vmem>>, %arg16: memref<1x32xf32, #tpu.memory_space<vmem>>, %arg17: memref<128x32xf32, #tpu.memory_space<vmem>>, %arg18: memref<32x128xf32, #tpu.memory_space<vmem>>, %arg19: memref<3x8x8xbf16, #tpu.memory_space<vmem>>, %arg20: memref<9x3x128x128xbf16, #tpu.memory_space<vmem>>, %arg21: memref<9x1x32xf32, #tpu.memory_space<vmem>>, %arg22: memref<9x1x32xf32, #tpu.memory_space<vmem>>, %arg23: memref<128x32xf32, #tpu.memory_space<vmem>>, %arg24: memref<32x128xf32, #tpu.memory_space<vmem>>, %arg25: memref<4x16x8xbf16, #tpu.memory_space<vmem>>, %arg26: memref<4x128x128xbf16, #tpu.memory_space<vmem>>, %arg27: memref<1x16xf32, #tpu.memory_space<vmem>>, %arg28: memref<1x16xf32, #tpu.memory_space<vmem>>, %arg29: memref<128x16xf32, #tpu.memory_space<vmem>>, %arg30: memref<16x128xf32, #tpu.memory_space<vmem>>, %arg31: memref<4x32x16xbf16, #tpu.memory_space<vmem>>, %arg32: memref<4x128x128xbf16, #tpu.memory_space<vmem>>, %arg33: memref<1x8xf32, #tpu.memory_space<vmem>>, %arg34: memref<1x8xf32, #tpu.memory_space<vmem>>, %arg35: memref<128x8xf32, #tpu.memory_space<vmem>>, %arg36: memref<8x128xf32, #tpu.memory_space<vmem>>, %arg37: memref<3x32x32xbf16, #tpu.memory_space<vmem>>, %arg38: memref<3x128x48xbf16, #tpu.memory_space<vmem>>, %arg39: memref<1x3xf32, #tpu.memory_space<vmem>>, %arg40: memref<1x3xf32, #tpu.memory_space<vmem>>, %arg41: memref<48x3xf32, #tpu.memory_space<vmem>>, %arg42: memref<3x48xf32, #tpu.memory_space<vmem>>, %arg43: memref<32x48xf32, #tpu.memory_space<vmem>>) attributes {dimension_semantics = [], scalar_prefetch = 0 : i64, scratch_operands = 0 : i64, tpu.core_type = #tpu.core_type<tc>} {
    %c0 = arith.constant 0 : index
    %c0_0 = arith.constant 0 : index
    %0 = vector.load %arg0[%c0, %c0_0] : memref<32x48xf32, #tpu.memory_space<vmem>>, vector<32x48xf32>
    %c0_1 = arith.constant 0 : index
    %c0_2 = arith.constant 0 : index
    %1 = vector.load %arg3[%c0_1, %c0_2] : memref<1x8xf32, #tpu.memory_space<vmem>>, vector<1x8xf32>
    %c0_3 = arith.constant 0 : index
    %c0_4 = arith.constant 0 : index
    %2 = vector.load %arg4[%c0_3, %c0_4] : memref<1x8xf32, #tpu.memory_space<vmem>>, vector<1x8xf32>
    %c0_5 = arith.constant 0 : index
    %c0_6 = arith.constant 0 : index
    %3 = vector.load %arg5[%c0_5, %c0_6] : memref<128x8xf32, #tpu.memory_space<vmem>>, vector<128x8xf32>
    %c0_7 = arith.constant 0 : index
    %c0_8 = arith.constant 0 : index
    %4 = vector.load %arg6[%c0_7, %c0_8] : memref<8x128xf32, #tpu.memory_space<vmem>>, vector<8x128xf32>
    %5 = arith.truncf %0 : vector<32x48xf32> to vector<32x48xbf16>
    %c0_9 = arith.constant 0 : index
    %c0_10 = arith.constant 0 : index
    %c0_11 = arith.constant 0 : index
    %6 = vector.load %arg1[%c0_9, %c0_10, %c0_11] : memref<3x32x32xbf16, #tpu.memory_space<vmem>>, vector<1x32x32xbf16>
    %7 = vector.shape_cast %6 : vector<1x32x32xbf16> to vector<32x32xbf16>
    %cst = arith.constant dense<0.000000e+00> : vector<32x48xf32>
    %8 = tpu.matmul %7, %5, %cst {dimension_numbers = #tpu.dot_dimension_numbers<[1], [0], [0], [1], [0, 0, 1, 1], [], []>} : vector<32x32xbf16>, vector<32x48xbf16>, vector<32x48xf32> -> vector<32x48xf32>
    %9 = arith.truncf %8 : vector<32x48xf32> to vector<32x48xbf16>
    %c0_12 = arith.constant 0 : index
    %c0_13 = arith.constant 0 : index
    %c0_14 = arith.constant 0 : index
    %10 = vector.load %arg2[%c0_12, %c0_13, %c0_14] : memref<3x48x128xbf16, #tpu.memory_space<vmem>>, vector<1x48x128xbf16>
    %11 = vector.shape_cast %10 : vector<1x48x128xbf16> to vector<48x128xbf16>
    %cst_15 = arith.constant dense<0.000000e+00> : vector<32x128xf32>
    %12 = tpu.matmul %9, %11, %cst_15 {dimension_numbers = #tpu.dot_dimension_numbers<[1], [0], [0], [1], [0, 0, 1, 1], [], []>} : vector<32x48xbf16>, vector<48x128xbf16>, vector<32x128xf32> -> vector<32x128xf32>
    %c1 = arith.constant 1 : index
    %c0_16 = arith.constant 0 : index
    %c0_17 = arith.constant 0 : index
    %13 = vector.load %arg1[%c1, %c0_16, %c0_17] : memref<3x32x32xbf16, #tpu.memory_space<vmem>>, vector<1x32x32xbf16>
    %14 = vector.shape_cast %13 : vector<1x32x32xbf16> to vector<32x32xbf16>
    %cst_18 = arith.constant dense<0.000000e+00> : vector<32x48xf32>
    %15 = tpu.matmul %14, %5, %cst_18 {dimension_numbers = #tpu.dot_dimension_numbers<[1], [0], [0], [1], [0, 0, 1, 1], [], []>} : vector<32x32xbf16>, vector<32x48xbf16>, vector<32x48xf32> -> vector<32x48xf32>
    %16 = arith.truncf %15 : vector<32x48xf32> to vector<32x48xbf16>
    %c1_19 = arith.constant 1 : index
    %c0_20 = arith.constant 0 : index
    %c0_21 = arith.constant 0 : index
    %17 = vector.load %arg2[%c1_19, %c0_20, %c0_21] : memref<3x48x128xbf16, #tpu.memory_space<vmem>>, vector<1x48x128xbf16>
    %18 = vector.shape_cast %17 : vector<1x48x128xbf16> to vector<48x128xbf16>
    %cst_22 = arith.constant dense<0.000000e+00> : vector<32x128xf32>
    %19 = tpu.matmul %16, %18, %cst_22 {dimension_numbers = #tpu.dot_dimension_numbers<[1], [0], [0], [1], [0, 0, 1, 1], [], []>} : vector<32x48xbf16>, vector<48x128xbf16>, vector<32x128xf32> -> vector<32x128xf32>
    %20 = arith.addf %12, %19 : vector<32x128xf32>
    %c2 = arith.constant 2 : index
    %c0_23 = arith.constant 0 : index
    %c0_24 = arith.constant 0 : index
    %21 = vector.load %arg1[%c2, %c0_23, %c0_24] : memref<3x32x32xbf16, #tpu.memory_space<vmem>>, vector<1x32x32xbf16>
    %22 = vector.shape_cast %21 : vector<1x32x32xbf16> to vector<32x32xbf16>
    %cst_25 = arith.constant dense<0.000000e+00> : vector<32x48xf32>
    %23 = tpu.matmul %22, %5, %cst_25 {dimension_numbers = #tpu.dot_dimension_numbers<[1], [0], [0], [1], [0, 0, 1, 1], [], []>} : vector<32x32xbf16>, vector<32x48xbf16>, vector<32x48xf32> -> vector<32x48xf32>
    %24 = arith.truncf %23 : vector<32x48xf32> to vector<32x48xbf16>
    %c2_26 = arith.constant 2 : index
    %c0_27 = arith.constant 0 : index
    %c0_28 = arith.constant 0 : index
    %25 = vector.load %arg2[%c2_26, %c0_27, %c0_28] : memref<3x48x128xbf16, #tpu.memory_space<vmem>>, vector<1x48x128xbf16>
    %26 = vector.shape_cast %25 : vector<1x48x128xbf16> to vector<48x128xbf16>
    %cst_29 = arith.constant dense<0.000000e+00> : vector<32x128xf32>
    %27 = tpu.matmul %24, %26, %cst_29 {dimension_numbers = #tpu.dot_dimension_numbers<[1], [0], [0], [1], [0, 0, 1, 1], [], []>} : vector<32x48xbf16>, vector<48x128xbf16>, vector<32x128xf32> -> vector<32x128xf32>
    %28 = arith.addf %20, %27 : vector<32x128xf32>
    %cst_30 = arith.constant dense<0.000000e+00> : vector<128xf32>
    %29 = vector.multi_reduction <add>, %28, %cst_30 [0] : vector<32x128xf32> to vector<128xf32>
    %30 = vector.shape_cast %29 : vector<128xf32> to vector<1x128xf32>
    %cst_31 = arith.constant dense<0.000000e+00> : vector<1x8xf32>
    %31 = tpu.matmul %30, %3, %cst_31 {dimension_numbers = #tpu.dot_dimension_numbers<[1], [0], [0], [1], [0, 0, 1, 1], [], []>} : vector<1x128xf32>, vector<128x8xf32>, vector<1x8xf32> -> vector<1x8xf32>
    %cst_32 = arith.constant 0.001953125 : f32
    %32 = vector.broadcast %cst_32 : f32 to vector<1x8xf32>
    %33 = arith.mulf %31, %32 : vector<1x8xf32>
    %cst_33 = arith.constant dense<0.000000e+00> : vector<1x128xf32>
    %34 = tpu.matmul %33, %4, %cst_33 {dimension_numbers = #tpu.dot_dimension_numbers<[1], [0], [0], [1], [0, 0, 1, 1], [], []>} : vector<1x8xf32>, vector<8x128xf32>, vector<1x128xf32> -> vector<1x128xf32>
    %35 = vector.broadcast %34 : vector<1x128xf32> to vector<32x128xf32>
    %36 = arith.subf %28, %35 : vector<32x128xf32>
    %37 = arith.mulf %36, %36 : vector<32x128xf32>
    %cst_34 = arith.constant dense<0.000000e+00> : vector<128xf32>
    %38 = vector.multi_reduction <add>, %37, %cst_34 [0] : vector<32x128xf32> to vector<128xf32>
    %39 = vector.shape_cast %38 : vector<128xf32> to vector<1x128xf32>
    %cst_35 = arith.constant dense<0.000000e+00> : vector<1x8xf32>
    %40 = tpu.matmul %39, %3, %cst_35 {dimension_numbers = #tpu.dot_dimension_numbers<[1], [0], [0], [1], [0, 0, 1, 1], [], []>} : vector<1x128xf32>, vector<128x8xf32>, vector<1x8xf32> -> vector<1x8xf32>
    %cst_36 = arith.constant 0.001953125 : f32
    %41 = vector.broadcast %cst_36 : f32 to vector<1x8xf32>
    %42 = arith.mulf %40, %41 : vector<1x8xf32>
    %cst_37 = arith.constant 9.99999974E-6 : f32
    %43 = vector.broadcast %cst_37 : f32 to vector<1x8xf32>
    %44 = arith.addf %42, %43 : vector<1x8xf32>
    %45 = math.rsqrt %44 : vector<1x8xf32>
    %46 = arith.mulf %1, %45 : vector<1x8xf32>
    %47 = arith.mulf %33, %46 : vector<1x8xf32>
    %48 = arith.subf %2, %47 : vector<1x8xf32>
    %cst_38 = arith.constant dense<0.000000e+00> : vector<1x128xf32>
    %49 = tpu.matmul %46, %4, %cst_38 {dimension_numbers = #tpu.dot_dimension_numbers<[1], [0], [0], [1], [0, 0, 1, 1], [], []>} : vector<1x8xf32>, vector<8x128xf32>, vector<1x128xf32> -> vector<1x128xf32>
    %cst_39 = arith.constant dense<0.000000e+00> : vector<1x128xf32>
    %50 = tpu.matmul %48, %4, %cst_39 {dimension_numbers = #tpu.dot_dimension_numbers<[1], [0], [0], [1], [0, 0, 1, 1], [], []>} : vector<1x8xf32>, vector<8x128xf32>, vector<1x128xf32> -> vector<1x128xf32>
    %51 = vector.broadcast %49 : vector<1x128xf32> to vector<32x128xf32>
    %52 = arith.mulf %28, %51 : vector<32x128xf32>
    %53 = vector.broadcast %50 : vector<1x128xf32> to vector<32x128xf32>
    %54 = arith.addf %52, %53 : vector<32x128xf32>
    %cst_40 = arith.constant 0.000000e+00 : f32
    %55 = vector.broadcast %cst_40 : f32 to vector<32x128xf32>
    %56 = arith.maximumf %54, %55 : vector<32x128xf32>
    %c0_41 = arith.constant 0 : index
    %c0_42 = arith.constant 0 : index
    %57 = vector.load %arg9[%c0_41, %c0_42] : memref<1x16xf32, #tpu.memory_space<vmem>>, vector<1x16xf32>
    %c0_43 = arith.constant 0 : index
    %c0_44 = arith.constant 0 : index
    %58 = vector.load %arg10[%c0_43, %c0_44] : memref<1x16xf32, #tpu.memory_space<vmem>>, vector<1x16xf32>
    %c0_45 = arith.constant 0 : index
    %c0_46 = arith.constant 0 : index
    %59 = vector.load %arg11[%c0_45, %c0_46] : memref<128x16xf32, #tpu.memory_space<vmem>>, vector<128x16xf32>
    %c0_47 = arith.constant 0 : index
    %c0_48 = arith.constant 0 : index
    %60 = vector.load %arg12[%c0_47, %c0_48] : memref<16x128xf32, #tpu.memory_space<vmem>>, vector<16x128xf32>
    %61 = arith.truncf %56 : vector<32x128xf32> to vector<32x128xbf16>
    %c0_49 = arith.constant 0 : index
    %c0_50 = arith.constant 0 : index
    %c0_51 = arith.constant 0 : index
    %62 = vector.load %arg7[%c0_49, %c0_50, %c0_51] : memref<4x16x32xbf16, #tpu.memory_space<vmem>>, vector<1x16x32xbf16>
    %63 = vector.shape_cast %62 : vector<1x16x32xbf16> to vector<16x32xbf16>
    %cst_52 = arith.constant dense<0.000000e+00> : vector<16x128xf32>
    %64 = tpu.matmul %63, %61, %cst_52 {dimension_numbers = #tpu.dot_dimension_numbers<[1], [0], [0], [1], [0, 0, 1, 1], [], []>} : vector<16x32xbf16>, vector<32x128xbf16>, vector<16x128xf32> -> vector<16x128xf32>
    %65 = arith.truncf %64 : vector<16x128xf32> to vector<16x128xbf16>
    %c0_53 = arith.constant 0 : index
    %c0_54 = arith.constant 0 : index
    %c0_55 = arith.constant 0 : index
    %66 = vector.load %arg8[%c0_53, %c0_54, %c0_55] : memref<4x128x128xbf16, #tpu.memory_space<vmem>>, vector<1x128x128xbf16>
    %67 = vector.shape_cast %66 : vector<1x128x128xbf16> to vector<128x128xbf16>
    %cst_56 = arith.constant dense<0.000000e+00> : vector<16x128xf32>
    %68 = tpu.matmul %65, %67, %cst_56 {dimension_numbers = #tpu.dot_dimension_numbers<[1], [0], [0], [1], [0, 0, 1, 1], [], []>} : vector<16x128xbf16>, vector<128x128xbf16>, vector<16x128xf32> -> vector<16x128xf32>
    %c1_57 = arith.constant 1 : index
    %c0_58 = arith.constant 0 : index
    %c0_59 = arith.constant 0 : index
    %69 = vector.load %arg7[%c1_57, %c0_58, %c0_59] : memref<4x16x32xbf16, #tpu.memory_space<vmem>>, vector<1x16x32xbf16>
    %70 = vector.shape_cast %69 : vector<1x16x32xbf16> to vector<16x32xbf16>
    %cst_60 = arith.constant dense<0.000000e+00> : vector<16x128xf32>
    %71 = tpu.matmul %70, %61, %cst_60 {dimension_numbers = #tpu.dot_dimension_numbers<[1], [0], [0], [1], [0, 0, 1, 1], [], []>} : vector<16x32xbf16>, vector<32x128xbf16>, vector<16x128xf32> -> vector<16x128xf32>
    %72 = arith.truncf %71 : vector<16x128xf32> to vector<16x128xbf16>
    %c1_61 = arith.constant 1 : index
    %c0_62 = arith.constant 0 : index
    %c0_63 = arith.constant 0 : index
    %73 = vector.load %arg8[%c1_61, %c0_62, %c0_63] : memref<4x128x128xbf16, #tpu.memory_space<vmem>>, vector<1x128x128xbf16>
    %74 = vector.shape_cast %73 : vector<1x128x128xbf16> to vector<128x128xbf16>
    %cst_64 = arith.constant dense<0.000000e+00> : vector<16x128xf32>
    %75 = tpu.matmul %72, %74, %cst_64 {dimension_numbers = #tpu.dot_dimension_numbers<[1], [0], [0], [1], [0, 0, 1, 1], [], []>} : vector<16x128xbf16>, vector<128x128xbf16>, vector<16x128xf32> -> vector<16x128xf32>
    %76 = arith.addf %68, %75 : vector<16x128xf32>
    %c2_65 = arith.constant 2 : index
    %c0_66 = arith.constant 0 : index
    %c0_67 = arith.constant 0 : index
    %77 = vector.load %arg7[%c2_65, %c0_66, %c0_67] : memref<4x16x32xbf16, #tpu.memory_space<vmem>>, vector<1x16x32xbf16>
    %78 = vector.shape_cast %77 : vector<1x16x32xbf16> to vector<16x32xbf16>
    %cst_68 = arith.constant dense<0.000000e+00> : vector<16x128xf32>
    %79 = tpu.matmul %78, %61, %cst_68 {dimension_numbers = #tpu.dot_dimension_numbers<[1], [0], [0], [1], [0, 0, 1, 1], [], []>} : vector<16x32xbf16>, vector<32x128xbf16>, vector<16x128xf32> -> vector<16x128xf32>
    %80 = arith.truncf %79 : vector<16x128xf32> to vector<16x128xbf16>
    %c2_69 = arith.constant 2 : index
    %c0_70 = arith.constant 0 : index
    %c0_71 = arith.constant 0 : index
    %81 = vector.load %arg8[%c2_69, %c0_70, %c0_71] : memref<4x128x128xbf16, #tpu.memory_space<vmem>>, vector<1x128x128xbf16>
    %82 = vector.shape_cast %81 : vector<1x128x128xbf16> to vector<128x128xbf16>
    %cst_72 = arith.constant dense<0.000000e+00> : vector<16x128xf32>
    %83 = tpu.matmul %80, %82, %cst_72 {dimension_numbers = #tpu.dot_dimension_numbers<[1], [0], [0], [1], [0, 0, 1, 1], [], []>} : vector<16x128xbf16>, vector<128x128xbf16>, vector<16x128xf32> -> vector<16x128xf32>
    %84 = arith.addf %76, %83 : vector<16x128xf32>
    %c3 = arith.constant 3 : index
    %c0_73 = arith.constant 0 : index
    %c0_74 = arith.constant 0 : index
    %85 = vector.load %arg7[%c3, %c0_73, %c0_74] : memref<4x16x32xbf16, #tpu.memory_space<vmem>>, vector<1x16x32xbf16>
    %86 = vector.shape_cast %85 : vector<1x16x32xbf16> to vector<16x32xbf16>
    %cst_75 = arith.constant dense<0.000000e+00> : vector<16x128xf32>
    %87 = tpu.matmul %86, %61, %cst_75 {dimension_numbers = #tpu.dot_dimension_numbers<[1], [0], [0], [1], [0, 0, 1, 1], [], []>} : vector<16x32xbf16>, vector<32x128xbf16>, vector<16x128xf32> -> vector<16x128xf32>
    %88 = arith.truncf %87 : vector<16x128xf32> to vector<16x128xbf16>
    %c3_76 = arith.constant 3 : index
    %c0_77 = arith.constant 0 : index
    %c0_78 = arith.constant 0 : index
    %89 = vector.load %arg8[%c3_76, %c0_77, %c0_78] : memref<4x128x128xbf16, #tpu.memory_space<vmem>>, vector<1x128x128xbf16>
    %90 = vector.shape_cast %89 : vector<1x128x128xbf16> to vector<128x128xbf16>
    %cst_79 = arith.constant dense<0.000000e+00> : vector<16x128xf32>
    %91 = tpu.matmul %88, %90, %cst_79 {dimension_numbers = #tpu.dot_dimension_numbers<[1], [0], [0], [1], [0, 0, 1, 1], [], []>} : vector<16x128xbf16>, vector<128x128xbf16>, vector<16x128xf32> -> vector<16x128xf32>
    %92 = arith.addf %84, %91 : vector<16x128xf32>
    %cst_80 = arith.constant dense<0.000000e+00> : vector<128xf32>
    %93 = vector.multi_reduction <add>, %92, %cst_80 [0] : vector<16x128xf32> to vector<128xf32>
    %94 = vector.shape_cast %93 : vector<128xf32> to vector<1x128xf32>
    %cst_81 = arith.constant dense<0.000000e+00> : vector<1x16xf32>
    %95 = tpu.matmul %94, %59, %cst_81 {dimension_numbers = #tpu.dot_dimension_numbers<[1], [0], [0], [1], [0, 0, 1, 1], [], []>} : vector<1x128xf32>, vector<128x16xf32>, vector<1x16xf32> -> vector<1x16xf32>
    %cst_82 = arith.constant 7.812500e-03 : f32
    %96 = vector.broadcast %cst_82 : f32 to vector<1x16xf32>
    %97 = arith.mulf %95, %96 : vector<1x16xf32>
    %cst_83 = arith.constant dense<0.000000e+00> : vector<1x128xf32>
    %98 = tpu.matmul %97, %60, %cst_83 {dimension_numbers = #tpu.dot_dimension_numbers<[1], [0], [0], [1], [0, 0, 1, 1], [], []>} : vector<1x16xf32>, vector<16x128xf32>, vector<1x128xf32> -> vector<1x128xf32>
    %99 = vector.broadcast %98 : vector<1x128xf32> to vector<16x128xf32>
    %100 = arith.subf %92, %99 : vector<16x128xf32>
    %101 = arith.mulf %100, %100 : vector<16x128xf32>
    %cst_84 = arith.constant dense<0.000000e+00> : vector<128xf32>
    %102 = vector.multi_reduction <add>, %101, %cst_84 [0] : vector<16x128xf32> to vector<128xf32>
    %103 = vector.shape_cast %102 : vector<128xf32> to vector<1x128xf32>
    %cst_85 = arith.constant dense<0.000000e+00> : vector<1x16xf32>
    %104 = tpu.matmul %103, %59, %cst_85 {dimension_numbers = #tpu.dot_dimension_numbers<[1], [0], [0], [1], [0, 0, 1, 1], [], []>} : vector<1x128xf32>, vector<128x16xf32>, vector<1x16xf32> -> vector<1x16xf32>
    %cst_86 = arith.constant 7.812500e-03 : f32
    %105 = vector.broadcast %cst_86 : f32 to vector<1x16xf32>
    %106 = arith.mulf %104, %105 : vector<1x16xf32>
    %cst_87 = arith.constant 9.99999974E-6 : f32
    %107 = vector.broadcast %cst_87 : f32 to vector<1x16xf32>
    %108 = arith.addf %106, %107 : vector<1x16xf32>
    %109 = math.rsqrt %108 : vector<1x16xf32>
    %110 = arith.mulf %57, %109 : vector<1x16xf32>
    %111 = arith.mulf %97, %110 : vector<1x16xf32>
    %112 = arith.subf %58, %111 : vector<1x16xf32>
    %cst_88 = arith.constant dense<0.000000e+00> : vector<1x128xf32>
    %113 = tpu.matmul %110, %60, %cst_88 {dimension_numbers = #tpu.dot_dimension_numbers<[1], [0], [0], [1], [0, 0, 1, 1], [], []>} : vector<1x16xf32>, vector<16x128xf32>, vector<1x128xf32> -> vector<1x128xf32>
    %cst_89 = arith.constant dense<0.000000e+00> : vector<1x128xf32>
    %114 = tpu.matmul %112, %60, %cst_89 {dimension_numbers = #tpu.dot_dimension_numbers<[1], [0], [0], [1], [0, 0, 1, 1], [], []>} : vector<1x16xf32>, vector<16x128xf32>, vector<1x128xf32> -> vector<1x128xf32>
    %115 = vector.broadcast %113 : vector<1x128xf32> to vector<16x128xf32>
    %116 = arith.mulf %92, %115 : vector<16x128xf32>
    %117 = vector.broadcast %114 : vector<1x128xf32> to vector<16x128xf32>
    %118 = arith.addf %116, %117 : vector<16x128xf32>
    %cst_90 = arith.constant 0.000000e+00 : f32
    %119 = vector.broadcast %cst_90 : f32 to vector<16x128xf32>
    %120 = arith.maximumf %118, %119 : vector<16x128xf32>
    %c0_91 = arith.constant 0 : index
    %c0_92 = arith.constant 0 : index
    %121 = vector.load %arg15[%c0_91, %c0_92] : memref<1x32xf32, #tpu.memory_space<vmem>>, vector<1x32xf32>
    %c0_93 = arith.constant 0 : index
    %c0_94 = arith.constant 0 : index
    %122 = vector.load %arg16[%c0_93, %c0_94] : memref<1x32xf32, #tpu.memory_space<vmem>>, vector<1x32xf32>
    %c0_95 = arith.constant 0 : index
    %c0_96 = arith.constant 0 : index
    %123 = vector.load %arg17[%c0_95, %c0_96] : memref<128x32xf32, #tpu.memory_space<vmem>>, vector<128x32xf32>
    %c0_97 = arith.constant 0 : index
    %c0_98 = arith.constant 0 : index
    %124 = vector.load %arg18[%c0_97, %c0_98] : memref<32x128xf32, #tpu.memory_space<vmem>>, vector<32x128xf32>
    %125 = arith.truncf %120 : vector<16x128xf32> to vector<16x128xbf16>
    %c0_99 = arith.constant 0 : index
    %c0_100 = arith.constant 0 : index
    %c0_101 = arith.constant 0 : index
    %126 = vector.load %arg13[%c0_99, %c0_100, %c0_101] : memref<4x8x16xbf16, #tpu.memory_space<vmem>>, vector<1x8x16xbf16>
    %127 = vector.shape_cast %126 : vector<1x8x16xbf16> to vector<8x16xbf16>
    %cst_102 = arith.constant dense<0.000000e+00> : vector<8x128xf32>
    %128 = tpu.matmul %127, %125, %cst_102 {dimension_numbers = #tpu.dot_dimension_numbers<[1], [0], [0], [1], [0, 0, 1, 1], [], []>} : vector<8x16xbf16>, vector<16x128xbf16>, vector<8x128xf32> -> vector<8x128xf32>
    %129 = arith.truncf %128 : vector<8x128xf32> to vector<8x128xbf16>
    %c0_103 = arith.constant 0 : index
    %c0_104 = arith.constant 0 : index
    %c0_105 = arith.constant 0 : index
    %130 = vector.load %arg14[%c0_103, %c0_104, %c0_105] : memref<4x128x128xbf16, #tpu.memory_space<vmem>>, vector<1x128x128xbf16>
    %131 = vector.shape_cast %130 : vector<1x128x128xbf16> to vector<128x128xbf16>
    %cst_106 = arith.constant dense<0.000000e+00> : vector<8x128xf32>
    %132 = tpu.matmul %129, %131, %cst_106 {dimension_numbers = #tpu.dot_dimension_numbers<[1], [0], [0], [1], [0, 0, 1, 1], [], []>} : vector<8x128xbf16>, vector<128x128xbf16>, vector<8x128xf32> -> vector<8x128xf32>
    %c1_107 = arith.constant 1 : index
    %c0_108 = arith.constant 0 : index
    %c0_109 = arith.constant 0 : index
    %133 = vector.load %arg13[%c1_107, %c0_108, %c0_109] : memref<4x8x16xbf16, #tpu.memory_space<vmem>>, vector<1x8x16xbf16>
    %134 = vector.shape_cast %133 : vector<1x8x16xbf16> to vector<8x16xbf16>
    %cst_110 = arith.constant dense<0.000000e+00> : vector<8x128xf32>
    %135 = tpu.matmul %134, %125, %cst_110 {dimension_numbers = #tpu.dot_dimension_numbers<[1], [0], [0], [1], [0, 0, 1, 1], [], []>} : vector<8x16xbf16>, vector<16x128xbf16>, vector<8x128xf32> -> vector<8x128xf32>
    %136 = arith.truncf %135 : vector<8x128xf32> to vector<8x128xbf16>
    %c1_111 = arith.constant 1 : index
    %c0_112 = arith.constant 0 : index
    %c0_113 = arith.constant 0 : index
    %137 = vector.load %arg14[%c1_111, %c0_112, %c0_113] : memref<4x128x128xbf16, #tpu.memory_space<vmem>>, vector<1x128x128xbf16>
    %138 = vector.shape_cast %137 : vector<1x128x128xbf16> to vector<128x128xbf16>
    %cst_114 = arith.constant dense<0.000000e+00> : vector<8x128xf32>
    %139 = tpu.matmul %136, %138, %cst_114 {dimension_numbers = #tpu.dot_dimension_numbers<[1], [0], [0], [1], [0, 0, 1, 1], [], []>} : vector<8x128xbf16>, vector<128x128xbf16>, vector<8x128xf32> -> vector<8x128xf32>
    %140 = arith.addf %132, %139 : vector<8x128xf32>
    %c2_115 = arith.constant 2 : index
    %c0_116 = arith.constant 0 : index
    %c0_117 = arith.constant 0 : index
    %141 = vector.load %arg13[%c2_115, %c0_116, %c0_117] : memref<4x8x16xbf16, #tpu.memory_space<vmem>>, vector<1x8x16xbf16>
    %142 = vector.shape_cast %141 : vector<1x8x16xbf16> to vector<8x16xbf16>
    %cst_118 = arith.constant dense<0.000000e+00> : vector<8x128xf32>
    %143 = tpu.matmul %142, %125, %cst_118 {dimension_numbers = #tpu.dot_dimension_numbers<[1], [0], [0], [1], [0, 0, 1, 1], [], []>} : vector<8x16xbf16>, vector<16x128xbf16>, vector<8x128xf32> -> vector<8x128xf32>
    %144 = arith.truncf %143 : vector<8x128xf32> to vector<8x128xbf16>
    %c2_119 = arith.constant 2 : index
    %c0_120 = arith.constant 0 : index
    %c0_121 = arith.constant 0 : index
    %145 = vector.load %arg14[%c2_119, %c0_120, %c0_121] : memref<4x128x128xbf16, #tpu.memory_space<vmem>>, vector<1x128x128xbf16>
    %146 = vector.shape_cast %145 : vector<1x128x128xbf16> to vector<128x128xbf16>
    %cst_122 = arith.constant dense<0.000000e+00> : vector<8x128xf32>
    %147 = tpu.matmul %144, %146, %cst_122 {dimension_numbers = #tpu.dot_dimension_numbers<[1], [0], [0], [1], [0, 0, 1, 1], [], []>} : vector<8x128xbf16>, vector<128x128xbf16>, vector<8x128xf32> -> vector<8x128xf32>
    %148 = arith.addf %140, %147 : vector<8x128xf32>
    %c3_123 = arith.constant 3 : index
    %c0_124 = arith.constant 0 : index
    %c0_125 = arith.constant 0 : index
    %149 = vector.load %arg13[%c3_123, %c0_124, %c0_125] : memref<4x8x16xbf16, #tpu.memory_space<vmem>>, vector<1x8x16xbf16>
    %150 = vector.shape_cast %149 : vector<1x8x16xbf16> to vector<8x16xbf16>
    %cst_126 = arith.constant dense<0.000000e+00> : vector<8x128xf32>
    %151 = tpu.matmul %150, %125, %cst_126 {dimension_numbers = #tpu.dot_dimension_numbers<[1], [0], [0], [1], [0, 0, 1, 1], [], []>} : vector<8x16xbf16>, vector<16x128xbf16>, vector<8x128xf32> -> vector<8x128xf32>
    %152 = arith.truncf %151 : vector<8x128xf32> to vector<8x128xbf16>
    %c3_127 = arith.constant 3 : index
    %c0_128 = arith.constant 0 : index
    %c0_129 = arith.constant 0 : index
    %153 = vector.load %arg14[%c3_127, %c0_128, %c0_129] : memref<4x128x128xbf16, #tpu.memory_space<vmem>>, vector<1x128x128xbf16>
    %154 = vector.shape_cast %153 : vector<1x128x128xbf16> to vector<128x128xbf16>
    %cst_130 = arith.constant dense<0.000000e+00> : vector<8x128xf32>
    %155 = tpu.matmul %152, %154, %cst_130 {dimension_numbers = #tpu.dot_dimension_numbers<[1], [0], [0], [1], [0, 0, 1, 1], [], []>} : vector<8x128xbf16>, vector<128x128xbf16>, vector<8x128xf32> -> vector<8x128xf32>
    %156 = arith.addf %148, %155 : vector<8x128xf32>
    %cst_131 = arith.constant dense<0.000000e+00> : vector<128xf32>
    %157 = vector.multi_reduction <add>, %156, %cst_131 [0] : vector<8x128xf32> to vector<128xf32>
    %158 = vector.shape_cast %157 : vector<128xf32> to vector<1x128xf32>
    %cst_132 = arith.constant dense<0.000000e+00> : vector<1x32xf32>
    %159 = tpu.matmul %158, %123, %cst_132 {dimension_numbers = #tpu.dot_dimension_numbers<[1], [0], [0], [1], [0, 0, 1, 1], [], []>} : vector<1x128xf32>, vector<128x32xf32>, vector<1x32xf32> -> vector<1x32xf32>
    %cst_133 = arith.constant 3.125000e-02 : f32
    %160 = vector.broadcast %cst_133 : f32 to vector<1x32xf32>
    %161 = arith.mulf %159, %160 : vector<1x32xf32>
    %cst_134 = arith.constant dense<0.000000e+00> : vector<1x128xf32>
    %162 = tpu.matmul %161, %124, %cst_134 {dimension_numbers = #tpu.dot_dimension_numbers<[1], [0], [0], [1], [0, 0, 1, 1], [], []>} : vector<1x32xf32>, vector<32x128xf32>, vector<1x128xf32> -> vector<1x128xf32>
    %163 = vector.broadcast %162 : vector<1x128xf32> to vector<8x128xf32>
    %164 = arith.subf %156, %163 : vector<8x128xf32>
    %165 = arith.mulf %164, %164 : vector<8x128xf32>
    %cst_135 = arith.constant dense<0.000000e+00> : vector<128xf32>
    %166 = vector.multi_reduction <add>, %165, %cst_135 [0] : vector<8x128xf32> to vector<128xf32>
    %167 = vector.shape_cast %166 : vector<128xf32> to vector<1x128xf32>
    %cst_136 = arith.constant dense<0.000000e+00> : vector<1x32xf32>
    %168 = tpu.matmul %167, %123, %cst_136 {dimension_numbers = #tpu.dot_dimension_numbers<[1], [0], [0], [1], [0, 0, 1, 1], [], []>} : vector<1x128xf32>, vector<128x32xf32>, vector<1x32xf32> -> vector<1x32xf32>
    %cst_137 = arith.constant 3.125000e-02 : f32
    %169 = vector.broadcast %cst_137 : f32 to vector<1x32xf32>
    %170 = arith.mulf %168, %169 : vector<1x32xf32>
    %cst_138 = arith.constant 9.99999974E-6 : f32
    %171 = vector.broadcast %cst_138 : f32 to vector<1x32xf32>
    %172 = arith.addf %170, %171 : vector<1x32xf32>
    %173 = math.rsqrt %172 : vector<1x32xf32>
    %174 = arith.mulf %121, %173 : vector<1x32xf32>
    %175 = arith.mulf %161, %174 : vector<1x32xf32>
    %176 = arith.subf %122, %175 : vector<1x32xf32>
    %cst_139 = arith.constant dense<0.000000e+00> : vector<1x128xf32>
    %177 = tpu.matmul %174, %124, %cst_139 {dimension_numbers = #tpu.dot_dimension_numbers<[1], [0], [0], [1], [0, 0, 1, 1], [], []>} : vector<1x32xf32>, vector<32x128xf32>, vector<1x128xf32> -> vector<1x128xf32>
    %cst_140 = arith.constant dense<0.000000e+00> : vector<1x128xf32>
    %178 = tpu.matmul %176, %124, %cst_140 {dimension_numbers = #tpu.dot_dimension_numbers<[1], [0], [0], [1], [0, 0, 1, 1], [], []>} : vector<1x32xf32>, vector<32x128xf32>, vector<1x128xf32> -> vector<1x128xf32>
    %179 = vector.broadcast %177 : vector<1x128xf32> to vector<8x128xf32>
    %180 = arith.mulf %156, %179 : vector<8x128xf32>
    %181 = vector.broadcast %178 : vector<1x128xf32> to vector<8x128xf32>
    %182 = arith.addf %180, %181 : vector<8x128xf32>
    %cst_141 = arith.constant 0.000000e+00 : f32
    %183 = vector.broadcast %cst_141 : f32 to vector<8x128xf32>
    %184 = arith.maximumf %182, %183 : vector<8x128xf32>
    %c0_142 = arith.constant 0 : index
    %c0_143 = arith.constant 0 : index
    %185 = vector.load %arg23[%c0_142, %c0_143] : memref<128x32xf32, #tpu.memory_space<vmem>>, vector<128x32xf32>
    %c0_144 = arith.constant 0 : index
    %c0_145 = arith.constant 0 : index
    %186 = vector.load %arg24[%c0_144, %c0_145] : memref<32x128xf32, #tpu.memory_space<vmem>>, vector<32x128xf32>
    %c0_146 = arith.constant 0 : index
    %c0_147 = arith.constant 0 : index
    %c0_148 = arith.constant 0 : index
    %187 = vector.load %arg21[%c0_146, %c0_147, %c0_148] : memref<9x1x32xf32, #tpu.memory_space<vmem>>, vector<1x1x32xf32>
    %188 = vector.shape_cast %187 : vector<1x1x32xf32> to vector<1x32xf32>
    %c0_149 = arith.constant 0 : index
    %c0_150 = arith.constant 0 : index
    %c0_151 = arith.constant 0 : index
    %189 = vector.load %arg22[%c0_149, %c0_150, %c0_151] : memref<9x1x32xf32, #tpu.memory_space<vmem>>, vector<1x1x32xf32>
    %190 = vector.shape_cast %189 : vector<1x1x32xf32> to vector<1x32xf32>
    %191 = arith.truncf %184 : vector<8x128xf32> to vector<8x128xbf16>
    %c0_152 = arith.constant 0 : index
    %c0_153 = arith.constant 0 : index
    %c0_154 = arith.constant 0 : index
    %192 = vector.load %arg19[%c0_152, %c0_153, %c0_154] : memref<3x8x8xbf16, #tpu.memory_space<vmem>>, vector<1x8x8xbf16>
    %193 = vector.shape_cast %192 : vector<1x8x8xbf16> to vector<8x8xbf16>
    %cst_155 = arith.constant dense<0.000000e+00> : vector<8x128xf32>
    %194 = tpu.matmul %193, %191, %cst_155 {dimension_numbers = #tpu.dot_dimension_numbers<[1], [0], [0], [1], [0, 0, 1, 1], [], []>} : vector<8x8xbf16>, vector<8x128xbf16>, vector<8x128xf32> -> vector<8x128xf32>
    %195 = arith.truncf %194 : vector<8x128xf32> to vector<8x128xbf16>
    %c0_156 = arith.constant 0 : index
    %c0_157 = arith.constant 0 : index
    %c0_158 = arith.constant 0 : index
    %c0_159 = arith.constant 0 : index
    %196 = vector.load %arg20[%c0_156, %c0_157, %c0_158, %c0_159] : memref<9x3x128x128xbf16, #tpu.memory_space<vmem>>, vector<1x1x128x128xbf16>
    %197 = vector.shape_cast %196 : vector<1x1x128x128xbf16> to vector<128x128xbf16>
    %cst_160 = arith.constant dense<0.000000e+00> : vector<8x128xf32>
    %198 = tpu.matmul %195, %197, %cst_160 {dimension_numbers = #tpu.dot_dimension_numbers<[1], [0], [0], [1], [0, 0, 1, 1], [], []>} : vector<8x128xbf16>, vector<128x128xbf16>, vector<8x128xf32> -> vector<8x128xf32>
    %c1_161 = arith.constant 1 : index
    %c0_162 = arith.constant 0 : index
    %c0_163 = arith.constant 0 : index
    %199 = vector.load %arg19[%c1_161, %c0_162, %c0_163] : memref<3x8x8xbf16, #tpu.memory_space<vmem>>, vector<1x8x8xbf16>
    %200 = vector.shape_cast %199 : vector<1x8x8xbf16> to vector<8x8xbf16>
    %cst_164 = arith.constant dense<0.000000e+00> : vector<8x128xf32>
    %201 = tpu.matmul %200, %191, %cst_164 {dimension_numbers = #tpu.dot_dimension_numbers<[1], [0], [0], [1], [0, 0, 1, 1], [], []>} : vector<8x8xbf16>, vector<8x128xbf16>, vector<8x128xf32> -> vector<8x128xf32>
    %202 = arith.truncf %201 : vector<8x128xf32> to vector<8x128xbf16>
    %c0_165 = arith.constant 0 : index
    %c1_166 = arith.constant 1 : index
    %c0_167 = arith.constant 0 : index
    %c0_168 = arith.constant 0 : index
    %203 = vector.load %arg20[%c0_165, %c1_166, %c0_167, %c0_168] : memref<9x3x128x128xbf16, #tpu.memory_space<vmem>>, vector<1x1x128x128xbf16>
    %204 = vector.shape_cast %203 : vector<1x1x128x128xbf16> to vector<128x128xbf16>
    %cst_169 = arith.constant dense<0.000000e+00> : vector<8x128xf32>
    %205 = tpu.matmul %202, %204, %cst_169 {dimension_numbers = #tpu.dot_dimension_numbers<[1], [0], [0], [1], [0, 0, 1, 1], [], []>} : vector<8x128xbf16>, vector<128x128xbf16>, vector<8x128xf32> -> vector<8x128xf32>
    %206 = arith.addf %198, %205 : vector<8x128xf32>
    %c2_170 = arith.constant 2 : index
    %c0_171 = arith.constant 0 : index
    %c0_172 = arith.constant 0 : index
    %207 = vector.load %arg19[%c2_170, %c0_171, %c0_172] : memref<3x8x8xbf16, #tpu.memory_space<vmem>>, vector<1x8x8xbf16>
    %208 = vector.shape_cast %207 : vector<1x8x8xbf16> to vector<8x8xbf16>
    %cst_173 = arith.constant dense<0.000000e+00> : vector<8x128xf32>
    %209 = tpu.matmul %208, %191, %cst_173 {dimension_numbers = #tpu.dot_dimension_numbers<[1], [0], [0], [1], [0, 0, 1, 1], [], []>} : vector<8x8xbf16>, vector<8x128xbf16>, vector<8x128xf32> -> vector<8x128xf32>
    %210 = arith.truncf %209 : vector<8x128xf32> to vector<8x128xbf16>
    %c0_174 = arith.constant 0 : index
    %c2_175 = arith.constant 2 : index
    %c0_176 = arith.constant 0 : index
    %c0_177 = arith.constant 0 : index
    %211 = vector.load %arg20[%c0_174, %c2_175, %c0_176, %c0_177] : memref<9x3x128x128xbf16, #tpu.memory_space<vmem>>, vector<1x1x128x128xbf16>
    %212 = vector.shape_cast %211 : vector<1x1x128x128xbf16> to vector<128x128xbf16>
    %cst_178 = arith.constant dense<0.000000e+00> : vector<8x128xf32>
    %213 = tpu.matmul %210, %212, %cst_178 {dimension_numbers = #tpu.dot_dimension_numbers<[1], [0], [0], [1], [0, 0, 1, 1], [], []>} : vector<8x128xbf16>, vector<128x128xbf16>, vector<8x128xf32> -> vector<8x128xf32>
    %214 = arith.addf %206, %213 : vector<8x128xf32>
    %cst_179 = arith.constant dense<0.000000e+00> : vector<128xf32>
    %215 = vector.multi_reduction <add>, %214, %cst_179 [0] : vector<8x128xf32> to vector<128xf32>
    %216 = vector.shape_cast %215 : vector<128xf32> to vector<1x128xf32>
    %cst_180 = arith.constant dense<0.000000e+00> : vector<1x32xf32>
    %217 = tpu.matmul %216, %185, %cst_180 {dimension_numbers = #tpu.dot_dimension_numbers<[1], [0], [0], [1], [0, 0, 1, 1], [], []>} : vector<1x128xf32>, vector<128x32xf32>, vector<1x32xf32> -> vector<1x32xf32>
    %cst_181 = arith.constant 3.125000e-02 : f32
    %218 = vector.broadcast %cst_181 : f32 to vector<1x32xf32>
    %219 = arith.mulf %217, %218 : vector<1x32xf32>
    %cst_182 = arith.constant dense<0.000000e+00> : vector<1x128xf32>
    %220 = tpu.matmul %219, %186, %cst_182 {dimension_numbers = #tpu.dot_dimension_numbers<[1], [0], [0], [1], [0, 0, 1, 1], [], []>} : vector<1x32xf32>, vector<32x128xf32>, vector<1x128xf32> -> vector<1x128xf32>
    %221 = vector.broadcast %220 : vector<1x128xf32> to vector<8x128xf32>
    %222 = arith.subf %214, %221 : vector<8x128xf32>
    %223 = arith.mulf %222, %222 : vector<8x128xf32>
    %cst_183 = arith.constant dense<0.000000e+00> : vector<128xf32>
    %224 = vector.multi_reduction <add>, %223, %cst_183 [0] : vector<8x128xf32> to vector<128xf32>
    %225 = vector.shape_cast %224 : vector<128xf32> to vector<1x128xf32>
    %cst_184 = arith.constant dense<0.000000e+00> : vector<1x32xf32>
    %226 = tpu.matmul %225, %185, %cst_184 {dimension_numbers = #tpu.dot_dimension_numbers<[1], [0], [0], [1], [0, 0, 1, 1], [], []>} : vector<1x128xf32>, vector<128x32xf32>, vector<1x32xf32> -> vector<1x32xf32>
    %cst_185 = arith.constant 3.125000e-02 : f32
    %227 = vector.broadcast %cst_185 : f32 to vector<1x32xf32>
    %228 = arith.mulf %226, %227 : vector<1x32xf32>
    %cst_186 = arith.constant 9.99999974E-6 : f32
    %229 = vector.broadcast %cst_186 : f32 to vector<1x32xf32>
    %230 = arith.addf %228, %229 : vector<1x32xf32>
    %231 = math.rsqrt %230 : vector<1x32xf32>
    %232 = arith.mulf %188, %231 : vector<1x32xf32>
    %233 = arith.mulf %219, %232 : vector<1x32xf32>
    %234 = arith.subf %190, %233 : vector<1x32xf32>
    %cst_187 = arith.constant dense<0.000000e+00> : vector<1x128xf32>
    %235 = tpu.matmul %232, %186, %cst_187 {dimension_numbers = #tpu.dot_dimension_numbers<[1], [0], [0], [1], [0, 0, 1, 1], [], []>} : vector<1x32xf32>, vector<32x128xf32>, vector<1x128xf32> -> vector<1x128xf32>
    %cst_188 = arith.constant dense<0.000000e+00> : vector<1x128xf32>
    %236 = tpu.matmul %234, %186, %cst_188 {dimension_numbers = #tpu.dot_dimension_numbers<[1], [0], [0], [1], [0, 0, 1, 1], [], []>} : vector<1x32xf32>, vector<32x128xf32>, vector<1x128xf32> -> vector<1x128xf32>
    %237 = vector.broadcast %235 : vector<1x128xf32> to vector<8x128xf32>
    %238 = arith.mulf %214, %237 : vector<8x128xf32>
    %239 = vector.broadcast %236 : vector<1x128xf32> to vector<8x128xf32>
    %240 = arith.addf %238, %239 : vector<8x128xf32>
    %cst_189 = arith.constant 0.000000e+00 : f32
    %241 = vector.broadcast %cst_189 : f32 to vector<8x128xf32>
    %242 = arith.maximumf %240, %241 : vector<8x128xf32>
    %c1_190 = arith.constant 1 : index
    %c0_191 = arith.constant 0 : index
    %c0_192 = arith.constant 0 : index
    %243 = vector.load %arg21[%c1_190, %c0_191, %c0_192] : memref<9x1x32xf32, #tpu.memory_space<vmem>>, vector<1x1x32xf32>
    %244 = vector.shape_cast %243 : vector<1x1x32xf32> to vector<1x32xf32>
    %c1_193 = arith.constant 1 : index
    %c0_194 = arith.constant 0 : index
    %c0_195 = arith.constant 0 : index
    %245 = vector.load %arg22[%c1_193, %c0_194, %c0_195] : memref<9x1x32xf32, #tpu.memory_space<vmem>>, vector<1x1x32xf32>
    %246 = vector.shape_cast %245 : vector<1x1x32xf32> to vector<1x32xf32>
    %247 = arith.truncf %242 : vector<8x128xf32> to vector<8x128xbf16>
    %c0_196 = arith.constant 0 : index
    %c0_197 = arith.constant 0 : index
    %c0_198 = arith.constant 0 : index
    %248 = vector.load %arg19[%c0_196, %c0_197, %c0_198] : memref<3x8x8xbf16, #tpu.memory_space<vmem>>, vector<1x8x8xbf16>
    %249 = vector.shape_cast %248 : vector<1x8x8xbf16> to vector<8x8xbf16>
    %cst_199 = arith.constant dense<0.000000e+00> : vector<8x128xf32>
    %250 = tpu.matmul %249, %247, %cst_199 {dimension_numbers = #tpu.dot_dimension_numbers<[1], [0], [0], [1], [0, 0, 1, 1], [], []>} : vector<8x8xbf16>, vector<8x128xbf16>, vector<8x128xf32> -> vector<8x128xf32>
    %251 = arith.truncf %250 : vector<8x128xf32> to vector<8x128xbf16>
    %c1_200 = arith.constant 1 : index
    %c0_201 = arith.constant 0 : index
    %c0_202 = arith.constant 0 : index
    %c0_203 = arith.constant 0 : index
    %252 = vector.load %arg20[%c1_200, %c0_201, %c0_202, %c0_203] : memref<9x3x128x128xbf16, #tpu.memory_space<vmem>>, vector<1x1x128x128xbf16>
    %253 = vector.shape_cast %252 : vector<1x1x128x128xbf16> to vector<128x128xbf16>
    %cst_204 = arith.constant dense<0.000000e+00> : vector<8x128xf32>
    %254 = tpu.matmul %251, %253, %cst_204 {dimension_numbers = #tpu.dot_dimension_numbers<[1], [0], [0], [1], [0, 0, 1, 1], [], []>} : vector<8x128xbf16>, vector<128x128xbf16>, vector<8x128xf32> -> vector<8x128xf32>
    %c1_205 = arith.constant 1 : index
    %c0_206 = arith.constant 0 : index
    %c0_207 = arith.constant 0 : index
    %255 = vector.load %arg19[%c1_205, %c0_206, %c0_207] : memref<3x8x8xbf16, #tpu.memory_space<vmem>>, vector<1x8x8xbf16>
    %256 = vector.shape_cast %255 : vector<1x8x8xbf16> to vector<8x8xbf16>
    %cst_208 = arith.constant dense<0.000000e+00> : vector<8x128xf32>
    %257 = tpu.matmul %256, %247, %cst_208 {dimension_numbers = #tpu.dot_dimension_numbers<[1], [0], [0], [1], [0, 0, 1, 1], [], []>} : vector<8x8xbf16>, vector<8x128xbf16>, vector<8x128xf32> -> vector<8x128xf32>
    %258 = arith.truncf %257 : vector<8x128xf32> to vector<8x128xbf16>
    %c1_209 = arith.constant 1 : index
    %c1_210 = arith.constant 1 : index
    %c0_211 = arith.constant 0 : index
    %c0_212 = arith.constant 0 : index
    %259 = vector.load %arg20[%c1_209, %c1_210, %c0_211, %c0_212] : memref<9x3x128x128xbf16, #tpu.memory_space<vmem>>, vector<1x1x128x128xbf16>
    %260 = vector.shape_cast %259 : vector<1x1x128x128xbf16> to vector<128x128xbf16>
    %cst_213 = arith.constant dense<0.000000e+00> : vector<8x128xf32>
    %261 = tpu.matmul %258, %260, %cst_213 {dimension_numbers = #tpu.dot_dimension_numbers<[1], [0], [0], [1], [0, 0, 1, 1], [], []>} : vector<8x128xbf16>, vector<128x128xbf16>, vector<8x128xf32> -> vector<8x128xf32>
    %262 = arith.addf %254, %261 : vector<8x128xf32>
    %c2_214 = arith.constant 2 : index
    %c0_215 = arith.constant 0 : index
    %c0_216 = arith.constant 0 : index
    %263 = vector.load %arg19[%c2_214, %c0_215, %c0_216] : memref<3x8x8xbf16, #tpu.memory_space<vmem>>, vector<1x8x8xbf16>
    %264 = vector.shape_cast %263 : vector<1x8x8xbf16> to vector<8x8xbf16>
    %cst_217 = arith.constant dense<0.000000e+00> : vector<8x128xf32>
    %265 = tpu.matmul %264, %247, %cst_217 {dimension_numbers = #tpu.dot_dimension_numbers<[1], [0], [0], [1], [0, 0, 1, 1], [], []>} : vector<8x8xbf16>, vector<8x128xbf16>, vector<8x128xf32> -> vector<8x128xf32>
    %266 = arith.truncf %265 : vector<8x128xf32> to vector<8x128xbf16>
    %c1_218 = arith.constant 1 : index
    %c2_219 = arith.constant 2 : index
    %c0_220 = arith.constant 0 : index
    %c0_221 = arith.constant 0 : index
    %267 = vector.load %arg20[%c1_218, %c2_219, %c0_220, %c0_221] : memref<9x3x128x128xbf16, #tpu.memory_space<vmem>>, vector<1x1x128x128xbf16>
    %268 = vector.shape_cast %267 : vector<1x1x128x128xbf16> to vector<128x128xbf16>
    %cst_222 = arith.constant dense<0.000000e+00> : vector<8x128xf32>
    %269 = tpu.matmul %266, %268, %cst_222 {dimension_numbers = #tpu.dot_dimension_numbers<[1], [0], [0], [1], [0, 0, 1, 1], [], []>} : vector<8x128xbf16>, vector<128x128xbf16>, vector<8x128xf32> -> vector<8x128xf32>
    %270 = arith.addf %262, %269 : vector<8x128xf32>
    %cst_223 = arith.constant dense<0.000000e+00> : vector<128xf32>
    %271 = vector.multi_reduction <add>, %270, %cst_223 [0] : vector<8x128xf32> to vector<128xf32>
    %272 = vector.shape_cast %271 : vector<128xf32> to vector<1x128xf32>
    %cst_224 = arith.constant dense<0.000000e+00> : vector<1x32xf32>
    %273 = tpu.matmul %272, %185, %cst_224 {dimension_numbers = #tpu.dot_dimension_numbers<[1], [0], [0], [1], [0, 0, 1, 1], [], []>} : vector<1x128xf32>, vector<128x32xf32>, vector<1x32xf32> -> vector<1x32xf32>
    %cst_225 = arith.constant 3.125000e-02 : f32
    %274 = vector.broadcast %cst_225 : f32 to vector<1x32xf32>
    %275 = arith.mulf %273, %274 : vector<1x32xf32>
    %cst_226 = arith.constant dense<0.000000e+00> : vector<1x128xf32>
    %276 = tpu.matmul %275, %186, %cst_226 {dimension_numbers = #tpu.dot_dimension_numbers<[1], [0], [0], [1], [0, 0, 1, 1], [], []>} : vector<1x32xf32>, vector<32x128xf32>, vector<1x128xf32> -> vector<1x128xf32>
    %277 = vector.broadcast %276 : vector<1x128xf32> to vector<8x128xf32>
    %278 = arith.subf %270, %277 : vector<8x128xf32>
    %279 = arith.mulf %278, %278 : vector<8x128xf32>
    %cst_227 = arith.constant dense<0.000000e+00> : vector<128xf32>
    %280 = vector.multi_reduction <add>, %279, %cst_227 [0] : vector<8x128xf32> to vector<128xf32>
    %281 = vector.shape_cast %280 : vector<128xf32> to vector<1x128xf32>
    %cst_228 = arith.constant dense<0.000000e+00> : vector<1x32xf32>
    %282 = tpu.matmul %281, %185, %cst_228 {dimension_numbers = #tpu.dot_dimension_numbers<[1], [0], [0], [1], [0, 0, 1, 1], [], []>} : vector<1x128xf32>, vector<128x32xf32>, vector<1x32xf32> -> vector<1x32xf32>
    %cst_229 = arith.constant 3.125000e-02 : f32
    %283 = vector.broadcast %cst_229 : f32 to vector<1x32xf32>
    %284 = arith.mulf %282, %283 : vector<1x32xf32>
    %cst_230 = arith.constant 9.99999974E-6 : f32
    %285 = vector.broadcast %cst_230 : f32 to vector<1x32xf32>
    %286 = arith.addf %284, %285 : vector<1x32xf32>
    %287 = math.rsqrt %286 : vector<1x32xf32>
    %288 = arith.mulf %244, %287 : vector<1x32xf32>
    %289 = arith.mulf %275, %288 : vector<1x32xf32>
    %290 = arith.subf %246, %289 : vector<1x32xf32>
    %cst_231 = arith.constant dense<0.000000e+00> : vector<1x128xf32>
    %291 = tpu.matmul %288, %186, %cst_231 {dimension_numbers = #tpu.dot_dimension_numbers<[1], [0], [0], [1], [0, 0, 1, 1], [], []>} : vector<1x32xf32>, vector<32x128xf32>, vector<1x128xf32> -> vector<1x128xf32>
    %cst_232 = arith.constant dense<0.000000e+00> : vector<1x128xf32>
    %292 = tpu.matmul %290, %186, %cst_232 {dimension_numbers = #tpu.dot_dimension_numbers<[1], [0], [0], [1], [0, 0, 1, 1], [], []>} : vector<1x32xf32>, vector<32x128xf32>, vector<1x128xf32> -> vector<1x128xf32>
    %293 = vector.broadcast %291 : vector<1x128xf32> to vector<8x128xf32>
    %294 = arith.mulf %270, %293 : vector<8x128xf32>
    %295 = vector.broadcast %292 : vector<1x128xf32> to vector<8x128xf32>
    %296 = arith.addf %294, %295 : vector<8x128xf32>
    %cst_233 = arith.constant 0.000000e+00 : f32
    %297 = vector.broadcast %cst_233 : f32 to vector<8x128xf32>
    %298 = arith.maximumf %296, %297 : vector<8x128xf32>
    %299 = arith.addf %184, %298 : vector<8x128xf32>
    %c2_234 = arith.constant 2 : index
    %c0_235 = arith.constant 0 : index
    %c0_236 = arith.constant 0 : index
    %300 = vector.load %arg21[%c2_234, %c0_235, %c0_236] : memref<9x1x32xf32, #tpu.memory_space<vmem>>, vector<1x1x32xf32>
    %301 = vector.shape_cast %300 : vector<1x1x32xf32> to vector<1x32xf32>
    %c2_237 = arith.constant 2 : index
    %c0_238 = arith.constant 0 : index
    %c0_239 = arith.constant 0 : index
    %302 = vector.load %arg22[%c2_237, %c0_238, %c0_239] : memref<9x1x32xf32, #tpu.memory_space<vmem>>, vector<1x1x32xf32>
    %303 = vector.shape_cast %302 : vector<1x1x32xf32> to vector<1x32xf32>
    %304 = arith.truncf %299 : vector<8x128xf32> to vector<8x128xbf16>
    %c0_240 = arith.constant 0 : index
    %c0_241 = arith.constant 0 : index
    %c0_242 = arith.constant 0 : index
    %305 = vector.load %arg19[%c0_240, %c0_241, %c0_242] : memref<3x8x8xbf16, #tpu.memory_space<vmem>>, vector<1x8x8xbf16>
    %306 = vector.shape_cast %305 : vector<1x8x8xbf16> to vector<8x8xbf16>
    %cst_243 = arith.constant dense<0.000000e+00> : vector<8x128xf32>
    %307 = tpu.matmul %306, %304, %cst_243 {dimension_numbers = #tpu.dot_dimension_numbers<[1], [0], [0], [1], [0, 0, 1, 1], [], []>} : vector<8x8xbf16>, vector<8x128xbf16>, vector<8x128xf32> -> vector<8x128xf32>
    %308 = arith.truncf %307 : vector<8x128xf32> to vector<8x128xbf16>
    %c2_244 = arith.constant 2 : index
    %c0_245 = arith.constant 0 : index
    %c0_246 = arith.constant 0 : index
    %c0_247 = arith.constant 0 : index
    %309 = vector.load %arg20[%c2_244, %c0_245, %c0_246, %c0_247] : memref<9x3x128x128xbf16, #tpu.memory_space<vmem>>, vector<1x1x128x128xbf16>
    %310 = vector.shape_cast %309 : vector<1x1x128x128xbf16> to vector<128x128xbf16>
    %cst_248 = arith.constant dense<0.000000e+00> : vector<8x128xf32>
    %311 = tpu.matmul %308, %310, %cst_248 {dimension_numbers = #tpu.dot_dimension_numbers<[1], [0], [0], [1], [0, 0, 1, 1], [], []>} : vector<8x128xbf16>, vector<128x128xbf16>, vector<8x128xf32> -> vector<8x128xf32>
    %c1_249 = arith.constant 1 : index
    %c0_250 = arith.constant 0 : index
    %c0_251 = arith.constant 0 : index
    %312 = vector.load %arg19[%c1_249, %c0_250, %c0_251] : memref<3x8x8xbf16, #tpu.memory_space<vmem>>, vector<1x8x8xbf16>
    %313 = vector.shape_cast %312 : vector<1x8x8xbf16> to vector<8x8xbf16>
    %cst_252 = arith.constant dense<0.000000e+00> : vector<8x128xf32>
    %314 = tpu.matmul %313, %304, %cst_252 {dimension_numbers = #tpu.dot_dimension_numbers<[1], [0], [0], [1], [0, 0, 1, 1], [], []>} : vector<8x8xbf16>, vector<8x128xbf16>, vector<8x128xf32> -> vector<8x128xf32>
    %315 = arith.truncf %314 : vector<8x128xf32> to vector<8x128xbf16>
    %c2_253 = arith.constant 2 : index
    %c1_254 = arith.constant 1 : index
    %c0_255 = arith.constant 0 : index
    %c0_256 = arith.constant 0 : index
    %316 = vector.load %arg20[%c2_253, %c1_254, %c0_255, %c0_256] : memref<9x3x128x128xbf16, #tpu.memory_space<vmem>>, vector<1x1x128x128xbf16>
    %317 = vector.shape_cast %316 : vector<1x1x128x128xbf16> to vector<128x128xbf16>
    %cst_257 = arith.constant dense<0.000000e+00> : vector<8x128xf32>
    %318 = tpu.matmul %315, %317, %cst_257 {dimension_numbers = #tpu.dot_dimension_numbers<[1], [0], [0], [1], [0, 0, 1, 1], [], []>} : vector<8x128xbf16>, vector<128x128xbf16>, vector<8x128xf32> -> vector<8x128xf32>
    %319 = arith.addf %311, %318 : vector<8x128xf32>
    %c2_258 = arith.constant 2 : index
    %c0_259 = arith.constant 0 : index
    %c0_260 = arith.constant 0 : index
    %320 = vector.load %arg19[%c2_258, %c0_259, %c0_260] : memref<3x8x8xbf16, #tpu.memory_space<vmem>>, vector<1x8x8xbf16>
    %321 = vector.shape_cast %320 : vector<1x8x8xbf16> to vector<8x8xbf16>
    %cst_261 = arith.constant dense<0.000000e+00> : vector<8x128xf32>
    %322 = tpu.matmul %321, %304, %cst_261 {dimension_numbers = #tpu.dot_dimension_numbers<[1], [0], [0], [1], [0, 0, 1, 1], [], []>} : vector<8x8xbf16>, vector<8x128xbf16>, vector<8x128xf32> -> vector<8x128xf32>
    %323 = arith.truncf %322 : vector<8x128xf32> to vector<8x128xbf16>
    %c2_262 = arith.constant 2 : index
    %c2_263 = arith.constant 2 : index
    %c0_264 = arith.constant 0 : index
    %c0_265 = arith.constant 0 : index
    %324 = vector.load %arg20[%c2_262, %c2_263, %c0_264, %c0_265] : memref<9x3x128x128xbf16, #tpu.memory_space<vmem>>, vector<1x1x128x128xbf16>
    %325 = vector.shape_cast %324 : vector<1x1x128x128xbf16> to vector<128x128xbf16>
    %cst_266 = arith.constant dense<0.000000e+00> : vector<8x128xf32>
    %326 = tpu.matmul %323, %325, %cst_266 {dimension_numbers = #tpu.dot_dimension_numbers<[1], [0], [0], [1], [0, 0, 1, 1], [], []>} : vector<8x128xbf16>, vector<128x128xbf16>, vector<8x128xf32> -> vector<8x128xf32>
    %327 = arith.addf %319, %326 : vector<8x128xf32>
    %cst_267 = arith.constant dense<0.000000e+00> : vector<128xf32>
    %328 = vector.multi_reduction <add>, %327, %cst_267 [0] : vector<8x128xf32> to vector<128xf32>
    %329 = vector.shape_cast %328 : vector<128xf32> to vector<1x128xf32>
    %cst_268 = arith.constant dense<0.000000e+00> : vector<1x32xf32>
    %330 = tpu.matmul %329, %185, %cst_268 {dimension_numbers = #tpu.dot_dimension_numbers<[1], [0], [0], [1], [0, 0, 1, 1], [], []>} : vector<1x128xf32>, vector<128x32xf32>, vector<1x32xf32> -> vector<1x32xf32>
    %cst_269 = arith.constant 3.125000e-02 : f32
    %331 = vector.broadcast %cst_269 : f32 to vector<1x32xf32>
    %332 = arith.mulf %330, %331 : vector<1x32xf32>
    %cst_270 = arith.constant dense<0.000000e+00> : vector<1x128xf32>
    %333 = tpu.matmul %332, %186, %cst_270 {dimension_numbers = #tpu.dot_dimension_numbers<[1], [0], [0], [1], [0, 0, 1, 1], [], []>} : vector<1x32xf32>, vector<32x128xf32>, vector<1x128xf32> -> vector<1x128xf32>
    %334 = vector.broadcast %333 : vector<1x128xf32> to vector<8x128xf32>
    %335 = arith.subf %327, %334 : vector<8x128xf32>
    %336 = arith.mulf %335, %335 : vector<8x128xf32>
    %cst_271 = arith.constant dense<0.000000e+00> : vector<128xf32>
    %337 = vector.multi_reduction <add>, %336, %cst_271 [0] : vector<8x128xf32> to vector<128xf32>
    %338 = vector.shape_cast %337 : vector<128xf32> to vector<1x128xf32>
    %cst_272 = arith.constant dense<0.000000e+00> : vector<1x32xf32>
    %339 = tpu.matmul %338, %185, %cst_272 {dimension_numbers = #tpu.dot_dimension_numbers<[1], [0], [0], [1], [0, 0, 1, 1], [], []>} : vector<1x128xf32>, vector<128x32xf32>, vector<1x32xf32> -> vector<1x32xf32>
    %cst_273 = arith.constant 3.125000e-02 : f32
    %340 = vector.broadcast %cst_273 : f32 to vector<1x32xf32>
    %341 = arith.mulf %339, %340 : vector<1x32xf32>
    %cst_274 = arith.constant 9.99999974E-6 : f32
    %342 = vector.broadcast %cst_274 : f32 to vector<1x32xf32>
    %343 = arith.addf %341, %342 : vector<1x32xf32>
    %344 = math.rsqrt %343 : vector<1x32xf32>
    %345 = arith.mulf %301, %344 : vector<1x32xf32>
    %346 = arith.mulf %332, %345 : vector<1x32xf32>
    %347 = arith.subf %303, %346 : vector<1x32xf32>
    %cst_275 = arith.constant dense<0.000000e+00> : vector<1x128xf32>
    %348 = tpu.matmul %345, %186, %cst_275 {dimension_numbers = #tpu.dot_dimension_numbers<[1], [0], [0], [1], [0, 0, 1, 1], [], []>} : vector<1x32xf32>, vector<32x128xf32>, vector<1x128xf32> -> vector<1x128xf32>
    %cst_276 = arith.constant dense<0.000000e+00> : vector<1x128xf32>
    %349 = tpu.matmul %347, %186, %cst_276 {dimension_numbers = #tpu.dot_dimension_numbers<[1], [0], [0], [1], [0, 0, 1, 1], [], []>} : vector<1x32xf32>, vector<32x128xf32>, vector<1x128xf32> -> vector<1x128xf32>
    %350 = vector.broadcast %348 : vector<1x128xf32> to vector<8x128xf32>
    %351 = arith.mulf %327, %350 : vector<8x128xf32>
    %352 = vector.broadcast %349 : vector<1x128xf32> to vector<8x128xf32>
    %353 = arith.addf %351, %352 : vector<8x128xf32>
    %cst_277 = arith.constant 0.000000e+00 : f32
    %354 = vector.broadcast %cst_277 : f32 to vector<8x128xf32>
    %355 = arith.maximumf %353, %354 : vector<8x128xf32>
    %356 = arith.addf %299, %355 : vector<8x128xf32>
    %c3_278 = arith.constant 3 : index
    %c0_279 = arith.constant 0 : index
    %c0_280 = arith.constant 0 : index
    %357 = vector.load %arg21[%c3_278, %c0_279, %c0_280] : memref<9x1x32xf32, #tpu.memory_space<vmem>>, vector<1x1x32xf32>
    %358 = vector.shape_cast %357 : vector<1x1x32xf32> to vector<1x32xf32>
    %c3_281 = arith.constant 3 : index
    %c0_282 = arith.constant 0 : index
    %c0_283 = arith.constant 0 : index
    %359 = vector.load %arg22[%c3_281, %c0_282, %c0_283] : memref<9x1x32xf32, #tpu.memory_space<vmem>>, vector<1x1x32xf32>
    %360 = vector.shape_cast %359 : vector<1x1x32xf32> to vector<1x32xf32>
    %361 = arith.truncf %356 : vector<8x128xf32> to vector<8x128xbf16>
    %c0_284 = arith.constant 0 : index
    %c0_285 = arith.constant 0 : index
    %c0_286 = arith.constant 0 : index
    %362 = vector.load %arg19[%c0_284, %c0_285, %c0_286] : memref<3x8x8xbf16, #tpu.memory_space<vmem>>, vector<1x8x8xbf16>
    %363 = vector.shape_cast %362 : vector<1x8x8xbf16> to vector<8x8xbf16>
    %cst_287 = arith.constant dense<0.000000e+00> : vector<8x128xf32>
    %364 = tpu.matmul %363, %361, %cst_287 {dimension_numbers = #tpu.dot_dimension_numbers<[1], [0], [0], [1], [0, 0, 1, 1], [], []>} : vector<8x8xbf16>, vector<8x128xbf16>, vector<8x128xf32> -> vector<8x128xf32>
    %365 = arith.truncf %364 : vector<8x128xf32> to vector<8x128xbf16>
    %c3_288 = arith.constant 3 : index
    %c0_289 = arith.constant 0 : index
    %c0_290 = arith.constant 0 : index
    %c0_291 = arith.constant 0 : index
    %366 = vector.load %arg20[%c3_288, %c0_289, %c0_290, %c0_291] : memref<9x3x128x128xbf16, #tpu.memory_space<vmem>>, vector<1x1x128x128xbf16>
    %367 = vector.shape_cast %366 : vector<1x1x128x128xbf16> to vector<128x128xbf16>
    %cst_292 = arith.constant dense<0.000000e+00> : vector<8x128xf32>
    %368 = tpu.matmul %365, %367, %cst_292 {dimension_numbers = #tpu.dot_dimension_numbers<[1], [0], [0], [1], [0, 0, 1, 1], [], []>} : vector<8x128xbf16>, vector<128x128xbf16>, vector<8x128xf32> -> vector<8x128xf32>
    %c1_293 = arith.constant 1 : index
    %c0_294 = arith.constant 0 : index
    %c0_295 = arith.constant 0 : index
    %369 = vector.load %arg19[%c1_293, %c0_294, %c0_295] : memref<3x8x8xbf16, #tpu.memory_space<vmem>>, vector<1x8x8xbf16>
    %370 = vector.shape_cast %369 : vector<1x8x8xbf16> to vector<8x8xbf16>
    %cst_296 = arith.constant dense<0.000000e+00> : vector<8x128xf32>
    %371 = tpu.matmul %370, %361, %cst_296 {dimension_numbers = #tpu.dot_dimension_numbers<[1], [0], [0], [1], [0, 0, 1, 1], [], []>} : vector<8x8xbf16>, vector<8x128xbf16>, vector<8x128xf32> -> vector<8x128xf32>
    %372 = arith.truncf %371 : vector<8x128xf32> to vector<8x128xbf16>
    %c3_297 = arith.constant 3 : index
    %c1_298 = arith.constant 1 : index
    %c0_299 = arith.constant 0 : index
    %c0_300 = arith.constant 0 : index
    %373 = vector.load %arg20[%c3_297, %c1_298, %c0_299, %c0_300] : memref<9x3x128x128xbf16, #tpu.memory_space<vmem>>, vector<1x1x128x128xbf16>
    %374 = vector.shape_cast %373 : vector<1x1x128x128xbf16> to vector<128x128xbf16>
    %cst_301 = arith.constant dense<0.000000e+00> : vector<8x128xf32>
    %375 = tpu.matmul %372, %374, %cst_301 {dimension_numbers = #tpu.dot_dimension_numbers<[1], [0], [0], [1], [0, 0, 1, 1], [], []>} : vector<8x128xbf16>, vector<128x128xbf16>, vector<8x128xf32> -> vector<8x128xf32>
    %376 = arith.addf %368, %375 : vector<8x128xf32>
    %c2_302 = arith.constant 2 : index
    %c0_303 = arith.constant 0 : index
    %c0_304 = arith.constant 0 : index
    %377 = vector.load %arg19[%c2_302, %c0_303, %c0_304] : memref<3x8x8xbf16, #tpu.memory_space<vmem>>, vector<1x8x8xbf16>
    %378 = vector.shape_cast %377 : vector<1x8x8xbf16> to vector<8x8xbf16>
    %cst_305 = arith.constant dense<0.000000e+00> : vector<8x128xf32>
    %379 = tpu.matmul %378, %361, %cst_305 {dimension_numbers = #tpu.dot_dimension_numbers<[1], [0], [0], [1], [0, 0, 1, 1], [], []>} : vector<8x8xbf16>, vector<8x128xbf16>, vector<8x128xf32> -> vector<8x128xf32>
    %380 = arith.truncf %379 : vector<8x128xf32> to vector<8x128xbf16>
    %c3_306 = arith.constant 3 : index
    %c2_307 = arith.constant 2 : index
    %c0_308 = arith.constant 0 : index
    %c0_309 = arith.constant 0 : index
    %381 = vector.load %arg20[%c3_306, %c2_307, %c0_308, %c0_309] : memref<9x3x128x128xbf16, #tpu.memory_space<vmem>>, vector<1x1x128x128xbf16>
    %382 = vector.shape_cast %381 : vector<1x1x128x128xbf16> to vector<128x128xbf16>
    %cst_310 = arith.constant dense<0.000000e+00> : vector<8x128xf32>
    %383 = tpu.matmul %380, %382, %cst_310 {dimension_numbers = #tpu.dot_dimension_numbers<[1], [0], [0], [1], [0, 0, 1, 1], [], []>} : vector<8x128xbf16>, vector<128x128xbf16>, vector<8x128xf32> -> vector<8x128xf32>
    %384 = arith.addf %376, %383 : vector<8x128xf32>
    %cst_311 = arith.constant dense<0.000000e+00> : vector<128xf32>
    %385 = vector.multi_reduction <add>, %384, %cst_311 [0] : vector<8x128xf32> to vector<128xf32>
    %386 = vector.shape_cast %385 : vector<128xf32> to vector<1x128xf32>
    %cst_312 = arith.constant dense<0.000000e+00> : vector<1x32xf32>
    %387 = tpu.matmul %386, %185, %cst_312 {dimension_numbers = #tpu.dot_dimension_numbers<[1], [0], [0], [1], [0, 0, 1, 1], [], []>} : vector<1x128xf32>, vector<128x32xf32>, vector<1x32xf32> -> vector<1x32xf32>
    %cst_313 = arith.constant 3.125000e-02 : f32
    %388 = vector.broadcast %cst_313 : f32 to vector<1x32xf32>
    %389 = arith.mulf %387, %388 : vector<1x32xf32>
    %cst_314 = arith.constant dense<0.000000e+00> : vector<1x128xf32>
    %390 = tpu.matmul %389, %186, %cst_314 {dimension_numbers = #tpu.dot_dimension_numbers<[1], [0], [0], [1], [0, 0, 1, 1], [], []>} : vector<1x32xf32>, vector<32x128xf32>, vector<1x128xf32> -> vector<1x128xf32>
    %391 = vector.broadcast %390 : vector<1x128xf32> to vector<8x128xf32>
    %392 = arith.subf %384, %391 : vector<8x128xf32>
    %393 = arith.mulf %392, %392 : vector<8x128xf32>
    %cst_315 = arith.constant dense<0.000000e+00> : vector<128xf32>
    %394 = vector.multi_reduction <add>, %393, %cst_315 [0] : vector<8x128xf32> to vector<128xf32>
    %395 = vector.shape_cast %394 : vector<128xf32> to vector<1x128xf32>
    %cst_316 = arith.constant dense<0.000000e+00> : vector<1x32xf32>
    %396 = tpu.matmul %395, %185, %cst_316 {dimension_numbers = #tpu.dot_dimension_numbers<[1], [0], [0], [1], [0, 0, 1, 1], [], []>} : vector<1x128xf32>, vector<128x32xf32>, vector<1x32xf32> -> vector<1x32xf32>
    %cst_317 = arith.constant 3.125000e-02 : f32
    %397 = vector.broadcast %cst_317 : f32 to vector<1x32xf32>
    %398 = arith.mulf %396, %397 : vector<1x32xf32>
    %cst_318 = arith.constant 9.99999974E-6 : f32
    %399 = vector.broadcast %cst_318 : f32 to vector<1x32xf32>
    %400 = arith.addf %398, %399 : vector<1x32xf32>
    %401 = math.rsqrt %400 : vector<1x32xf32>
    %402 = arith.mulf %358, %401 : vector<1x32xf32>
    %403 = arith.mulf %389, %402 : vector<1x32xf32>
    %404 = arith.subf %360, %403 : vector<1x32xf32>
    %cst_319 = arith.constant dense<0.000000e+00> : vector<1x128xf32>
    %405 = tpu.matmul %402, %186, %cst_319 {dimension_numbers = #tpu.dot_dimension_numbers<[1], [0], [0], [1], [0, 0, 1, 1], [], []>} : vector<1x32xf32>, vector<32x128xf32>, vector<1x128xf32> -> vector<1x128xf32>
    %cst_320 = arith.constant dense<0.000000e+00> : vector<1x128xf32>
    %406 = tpu.matmul %404, %186, %cst_320 {dimension_numbers = #tpu.dot_dimension_numbers<[1], [0], [0], [1], [0, 0, 1, 1], [], []>} : vector<1x32xf32>, vector<32x128xf32>, vector<1x128xf32> -> vector<1x128xf32>
    %407 = vector.broadcast %405 : vector<1x128xf32> to vector<8x128xf32>
    %408 = arith.mulf %384, %407 : vector<8x128xf32>
    %409 = vector.broadcast %406 : vector<1x128xf32> to vector<8x128xf32>
    %410 = arith.addf %408, %409 : vector<8x128xf32>
    %cst_321 = arith.constant 0.000000e+00 : f32
    %411 = vector.broadcast %cst_321 : f32 to vector<8x128xf32>
    %412 = arith.maximumf %410, %411 : vector<8x128xf32>
    %413 = arith.addf %299, %412 : vector<8x128xf32>
    %c4 = arith.constant 4 : index
    %c0_322 = arith.constant 0 : index
    %c0_323 = arith.constant 0 : index
    %414 = vector.load %arg21[%c4, %c0_322, %c0_323] : memref<9x1x32xf32, #tpu.memory_space<vmem>>, vector<1x1x32xf32>
    %415 = vector.shape_cast %414 : vector<1x1x32xf32> to vector<1x32xf32>
    %c4_324 = arith.constant 4 : index
    %c0_325 = arith.constant 0 : index
    %c0_326 = arith.constant 0 : index
    %416 = vector.load %arg22[%c4_324, %c0_325, %c0_326] : memref<9x1x32xf32, #tpu.memory_space<vmem>>, vector<1x1x32xf32>
    %417 = vector.shape_cast %416 : vector<1x1x32xf32> to vector<1x32xf32>
    %418 = arith.truncf %413 : vector<8x128xf32> to vector<8x128xbf16>
    %c0_327 = arith.constant 0 : index
    %c0_328 = arith.constant 0 : index
    %c0_329 = arith.constant 0 : index
    %419 = vector.load %arg19[%c0_327, %c0_328, %c0_329] : memref<3x8x8xbf16, #tpu.memory_space<vmem>>, vector<1x8x8xbf16>
    %420 = vector.shape_cast %419 : vector<1x8x8xbf16> to vector<8x8xbf16>
    %cst_330 = arith.constant dense<0.000000e+00> : vector<8x128xf32>
    %421 = tpu.matmul %420, %418, %cst_330 {dimension_numbers = #tpu.dot_dimension_numbers<[1], [0], [0], [1], [0, 0, 1, 1], [], []>} : vector<8x8xbf16>, vector<8x128xbf16>, vector<8x128xf32> -> vector<8x128xf32>
    %422 = arith.truncf %421 : vector<8x128xf32> to vector<8x128xbf16>
    %c4_331 = arith.constant 4 : index
    %c0_332 = arith.constant 0 : index
    %c0_333 = arith.constant 0 : index
    %c0_334 = arith.constant 0 : index
    %423 = vector.load %arg20[%c4_331, %c0_332, %c0_333, %c0_334] : memref<9x3x128x128xbf16, #tpu.memory_space<vmem>>, vector<1x1x128x128xbf16>
    %424 = vector.shape_cast %423 : vector<1x1x128x128xbf16> to vector<128x128xbf16>
    %cst_335 = arith.constant dense<0.000000e+00> : vector<8x128xf32>
    %425 = tpu.matmul %422, %424, %cst_335 {dimension_numbers = #tpu.dot_dimension_numbers<[1], [0], [0], [1], [0, 0, 1, 1], [], []>} : vector<8x128xbf16>, vector<128x128xbf16>, vector<8x128xf32> -> vector<8x128xf32>
    %c1_336 = arith.constant 1 : index
    %c0_337 = arith.constant 0 : index
    %c0_338 = arith.constant 0 : index
    %426 = vector.load %arg19[%c1_336, %c0_337, %c0_338] : memref<3x8x8xbf16, #tpu.memory_space<vmem>>, vector<1x8x8xbf16>
    %427 = vector.shape_cast %426 : vector<1x8x8xbf16> to vector<8x8xbf16>
    %cst_339 = arith.constant dense<0.000000e+00> : vector<8x128xf32>
    %428 = tpu.matmul %427, %418, %cst_339 {dimension_numbers = #tpu.dot_dimension_numbers<[1], [0], [0], [1], [0, 0, 1, 1], [], []>} : vector<8x8xbf16>, vector<8x128xbf16>, vector<8x128xf32> -> vector<8x128xf32>
    %429 = arith.truncf %428 : vector<8x128xf32> to vector<8x128xbf16>
    %c4_340 = arith.constant 4 : index
    %c1_341 = arith.constant 1 : index
    %c0_342 = arith.constant 0 : index
    %c0_343 = arith.constant 0 : index
    %430 = vector.load %arg20[%c4_340, %c1_341, %c0_342, %c0_343] : memref<9x3x128x128xbf16, #tpu.memory_space<vmem>>, vector<1x1x128x128xbf16>
    %431 = vector.shape_cast %430 : vector<1x1x128x128xbf16> to vector<128x128xbf16>
    %cst_344 = arith.constant dense<0.000000e+00> : vector<8x128xf32>
    %432 = tpu.matmul %429, %431, %cst_344 {dimension_numbers = #tpu.dot_dimension_numbers<[1], [0], [0], [1], [0, 0, 1, 1], [], []>} : vector<8x128xbf16>, vector<128x128xbf16>, vector<8x128xf32> -> vector<8x128xf32>
    %433 = arith.addf %425, %432 : vector<8x128xf32>
    %c2_345 = arith.constant 2 : index
    %c0_346 = arith.constant 0 : index
    %c0_347 = arith.constant 0 : index
    %434 = vector.load %arg19[%c2_345, %c0_346, %c0_347] : memref<3x8x8xbf16, #tpu.memory_space<vmem>>, vector<1x8x8xbf16>
    %435 = vector.shape_cast %434 : vector<1x8x8xbf16> to vector<8x8xbf16>
    %cst_348 = arith.constant dense<0.000000e+00> : vector<8x128xf32>
    %436 = tpu.matmul %435, %418, %cst_348 {dimension_numbers = #tpu.dot_dimension_numbers<[1], [0], [0], [1], [0, 0, 1, 1], [], []>} : vector<8x8xbf16>, vector<8x128xbf16>, vector<8x128xf32> -> vector<8x128xf32>
    %437 = arith.truncf %436 : vector<8x128xf32> to vector<8x128xbf16>
    %c4_349 = arith.constant 4 : index
    %c2_350 = arith.constant 2 : index
    %c0_351 = arith.constant 0 : index
    %c0_352 = arith.constant 0 : index
    %438 = vector.load %arg20[%c4_349, %c2_350, %c0_351, %c0_352] : memref<9x3x128x128xbf16, #tpu.memory_space<vmem>>, vector<1x1x128x128xbf16>
    %439 = vector.shape_cast %438 : vector<1x1x128x128xbf16> to vector<128x128xbf16>
    %cst_353 = arith.constant dense<0.000000e+00> : vector<8x128xf32>
    %440 = tpu.matmul %437, %439, %cst_353 {dimension_numbers = #tpu.dot_dimension_numbers<[1], [0], [0], [1], [0, 0, 1, 1], [], []>} : vector<8x128xbf16>, vector<128x128xbf16>, vector<8x128xf32> -> vector<8x128xf32>
    %441 = arith.addf %433, %440 : vector<8x128xf32>
    %cst_354 = arith.constant dense<0.000000e+00> : vector<128xf32>
    %442 = vector.multi_reduction <add>, %441, %cst_354 [0] : vector<8x128xf32> to vector<128xf32>
    %443 = vector.shape_cast %442 : vector<128xf32> to vector<1x128xf32>
    %cst_355 = arith.constant dense<0.000000e+00> : vector<1x32xf32>
    %444 = tpu.matmul %443, %185, %cst_355 {dimension_numbers = #tpu.dot_dimension_numbers<[1], [0], [0], [1], [0, 0, 1, 1], [], []>} : vector<1x128xf32>, vector<128x32xf32>, vector<1x32xf32> -> vector<1x32xf32>
    %cst_356 = arith.constant 3.125000e-02 : f32
    %445 = vector.broadcast %cst_356 : f32 to vector<1x32xf32>
    %446 = arith.mulf %444, %445 : vector<1x32xf32>
    %cst_357 = arith.constant dense<0.000000e+00> : vector<1x128xf32>
    %447 = tpu.matmul %446, %186, %cst_357 {dimension_numbers = #tpu.dot_dimension_numbers<[1], [0], [0], [1], [0, 0, 1, 1], [], []>} : vector<1x32xf32>, vector<32x128xf32>, vector<1x128xf32> -> vector<1x128xf32>
    %448 = vector.broadcast %447 : vector<1x128xf32> to vector<8x128xf32>
    %449 = arith.subf %441, %448 : vector<8x128xf32>
    %450 = arith.mulf %449, %449 : vector<8x128xf32>
    %cst_358 = arith.constant dense<0.000000e+00> : vector<128xf32>
    %451 = vector.multi_reduction <add>, %450, %cst_358 [0] : vector<8x128xf32> to vector<128xf32>
    %452 = vector.shape_cast %451 : vector<128xf32> to vector<1x128xf32>
    %cst_359 = arith.constant dense<0.000000e+00> : vector<1x32xf32>
    %453 = tpu.matmul %452, %185, %cst_359 {dimension_numbers = #tpu.dot_dimension_numbers<[1], [0], [0], [1], [0, 0, 1, 1], [], []>} : vector<1x128xf32>, vector<128x32xf32>, vector<1x32xf32> -> vector<1x32xf32>
    %cst_360 = arith.constant 3.125000e-02 : f32
    %454 = vector.broadcast %cst_360 : f32 to vector<1x32xf32>
    %455 = arith.mulf %453, %454 : vector<1x32xf32>
    %cst_361 = arith.constant 9.99999974E-6 : f32
    %456 = vector.broadcast %cst_361 : f32 to vector<1x32xf32>
    %457 = arith.addf %455, %456 : vector<1x32xf32>
    %458 = math.rsqrt %457 : vector<1x32xf32>
    %459 = arith.mulf %415, %458 : vector<1x32xf32>
    %460 = arith.mulf %446, %459 : vector<1x32xf32>
    %461 = arith.subf %417, %460 : vector<1x32xf32>
    %cst_362 = arith.constant dense<0.000000e+00> : vector<1x128xf32>
    %462 = tpu.matmul %459, %186, %cst_362 {dimension_numbers = #tpu.dot_dimension_numbers<[1], [0], [0], [1], [0, 0, 1, 1], [], []>} : vector<1x32xf32>, vector<32x128xf32>, vector<1x128xf32> -> vector<1x128xf32>
    %cst_363 = arith.constant dense<0.000000e+00> : vector<1x128xf32>
    %463 = tpu.matmul %461, %186, %cst_363 {dimension_numbers = #tpu.dot_dimension_numbers<[1], [0], [0], [1], [0, 0, 1, 1], [], []>} : vector<1x32xf32>, vector<32x128xf32>, vector<1x128xf32> -> vector<1x128xf32>
    %464 = vector.broadcast %462 : vector<1x128xf32> to vector<8x128xf32>
    %465 = arith.mulf %441, %464 : vector<8x128xf32>
    %466 = vector.broadcast %463 : vector<1x128xf32> to vector<8x128xf32>
    %467 = arith.addf %465, %466 : vector<8x128xf32>
    %cst_364 = arith.constant 0.000000e+00 : f32
    %468 = vector.broadcast %cst_364 : f32 to vector<8x128xf32>
    %469 = arith.maximumf %467, %468 : vector<8x128xf32>
    %470 = arith.addf %413, %469 : vector<8x128xf32>
    %c5 = arith.constant 5 : index
    %c0_365 = arith.constant 0 : index
    %c0_366 = arith.constant 0 : index
    %471 = vector.load %arg21[%c5, %c0_365, %c0_366] : memref<9x1x32xf32, #tpu.memory_space<vmem>>, vector<1x1x32xf32>
    %472 = vector.shape_cast %471 : vector<1x1x32xf32> to vector<1x32xf32>
    %c5_367 = arith.constant 5 : index
    %c0_368 = arith.constant 0 : index
    %c0_369 = arith.constant 0 : index
    %473 = vector.load %arg22[%c5_367, %c0_368, %c0_369] : memref<9x1x32xf32, #tpu.memory_space<vmem>>, vector<1x1x32xf32>
    %474 = vector.shape_cast %473 : vector<1x1x32xf32> to vector<1x32xf32>
    %475 = arith.truncf %470 : vector<8x128xf32> to vector<8x128xbf16>
    %c0_370 = arith.constant 0 : index
    %c0_371 = arith.constant 0 : index
    %c0_372 = arith.constant 0 : index
    %476 = vector.load %arg19[%c0_370, %c0_371, %c0_372] : memref<3x8x8xbf16, #tpu.memory_space<vmem>>, vector<1x8x8xbf16>
    %477 = vector.shape_cast %476 : vector<1x8x8xbf16> to vector<8x8xbf16>
    %cst_373 = arith.constant dense<0.000000e+00> : vector<8x128xf32>
    %478 = tpu.matmul %477, %475, %cst_373 {dimension_numbers = #tpu.dot_dimension_numbers<[1], [0], [0], [1], [0, 0, 1, 1], [], []>} : vector<8x8xbf16>, vector<8x128xbf16>, vector<8x128xf32> -> vector<8x128xf32>
    %479 = arith.truncf %478 : vector<8x128xf32> to vector<8x128xbf16>
    %c5_374 = arith.constant 5 : index
    %c0_375 = arith.constant 0 : index
    %c0_376 = arith.constant 0 : index
    %c0_377 = arith.constant 0 : index
    %480 = vector.load %arg20[%c5_374, %c0_375, %c0_376, %c0_377] : memref<9x3x128x128xbf16, #tpu.memory_space<vmem>>, vector<1x1x128x128xbf16>
    %481 = vector.shape_cast %480 : vector<1x1x128x128xbf16> to vector<128x128xbf16>
    %cst_378 = arith.constant dense<0.000000e+00> : vector<8x128xf32>
    %482 = tpu.matmul %479, %481, %cst_378 {dimension_numbers = #tpu.dot_dimension_numbers<[1], [0], [0], [1], [0, 0, 1, 1], [], []>} : vector<8x128xbf16>, vector<128x128xbf16>, vector<8x128xf32> -> vector<8x128xf32>
    %c1_379 = arith.constant 1 : index
    %c0_380 = arith.constant 0 : index
    %c0_381 = arith.constant 0 : index
    %483 = vector.load %arg19[%c1_379, %c0_380, %c0_381] : memref<3x8x8xbf16, #tpu.memory_space<vmem>>, vector<1x8x8xbf16>
    %484 = vector.shape_cast %483 : vector<1x8x8xbf16> to vector<8x8xbf16>
    %cst_382 = arith.constant dense<0.000000e+00> : vector<8x128xf32>
    %485 = tpu.matmul %484, %475, %cst_382 {dimension_numbers = #tpu.dot_dimension_numbers<[1], [0], [0], [1], [0, 0, 1, 1], [], []>} : vector<8x8xbf16>, vector<8x128xbf16>, vector<8x128xf32> -> vector<8x128xf32>
    %486 = arith.truncf %485 : vector<8x128xf32> to vector<8x128xbf16>
    %c5_383 = arith.constant 5 : index
    %c1_384 = arith.constant 1 : index
    %c0_385 = arith.constant 0 : index
    %c0_386 = arith.constant 0 : index
    %487 = vector.load %arg20[%c5_383, %c1_384, %c0_385, %c0_386] : memref<9x3x128x128xbf16, #tpu.memory_space<vmem>>, vector<1x1x128x128xbf16>
    %488 = vector.shape_cast %487 : vector<1x1x128x128xbf16> to vector<128x128xbf16>
    %cst_387 = arith.constant dense<0.000000e+00> : vector<8x128xf32>
    %489 = tpu.matmul %486, %488, %cst_387 {dimension_numbers = #tpu.dot_dimension_numbers<[1], [0], [0], [1], [0, 0, 1, 1], [], []>} : vector<8x128xbf16>, vector<128x128xbf16>, vector<8x128xf32> -> vector<8x128xf32>
    %490 = arith.addf %482, %489 : vector<8x128xf32>
    %c2_388 = arith.constant 2 : index
    %c0_389 = arith.constant 0 : index
    %c0_390 = arith.constant 0 : index
    %491 = vector.load %arg19[%c2_388, %c0_389, %c0_390] : memref<3x8x8xbf16, #tpu.memory_space<vmem>>, vector<1x8x8xbf16>
    %492 = vector.shape_cast %491 : vector<1x8x8xbf16> to vector<8x8xbf16>
    %cst_391 = arith.constant dense<0.000000e+00> : vector<8x128xf32>
    %493 = tpu.matmul %492, %475, %cst_391 {dimension_numbers = #tpu.dot_dimension_numbers<[1], [0], [0], [1], [0, 0, 1, 1], [], []>} : vector<8x8xbf16>, vector<8x128xbf16>, vector<8x128xf32> -> vector<8x128xf32>
    %494 = arith.truncf %493 : vector<8x128xf32> to vector<8x128xbf16>
    %c5_392 = arith.constant 5 : index
    %c2_393 = arith.constant 2 : index
    %c0_394 = arith.constant 0 : index
    %c0_395 = arith.constant 0 : index
    %495 = vector.load %arg20[%c5_392, %c2_393, %c0_394, %c0_395] : memref<9x3x128x128xbf16, #tpu.memory_space<vmem>>, vector<1x1x128x128xbf16>
    %496 = vector.shape_cast %495 : vector<1x1x128x128xbf16> to vector<128x128xbf16>
    %cst_396 = arith.constant dense<0.000000e+00> : vector<8x128xf32>
    %497 = tpu.matmul %494, %496, %cst_396 {dimension_numbers = #tpu.dot_dimension_numbers<[1], [0], [0], [1], [0, 0, 1, 1], [], []>} : vector<8x128xbf16>, vector<128x128xbf16>, vector<8x128xf32> -> vector<8x128xf32>
    %498 = arith.addf %490, %497 : vector<8x128xf32>
    %cst_397 = arith.constant dense<0.000000e+00> : vector<128xf32>
    %499 = vector.multi_reduction <add>, %498, %cst_397 [0] : vector<8x128xf32> to vector<128xf32>
    %500 = vector.shape_cast %499 : vector<128xf32> to vector<1x128xf32>
    %cst_398 = arith.constant dense<0.000000e+00> : vector<1x32xf32>
    %501 = tpu.matmul %500, %185, %cst_398 {dimension_numbers = #tpu.dot_dimension_numbers<[1], [0], [0], [1], [0, 0, 1, 1], [], []>} : vector<1x128xf32>, vector<128x32xf32>, vector<1x32xf32> -> vector<1x32xf32>
    %cst_399 = arith.constant 3.125000e-02 : f32
    %502 = vector.broadcast %cst_399 : f32 to vector<1x32xf32>
    %503 = arith.mulf %501, %502 : vector<1x32xf32>
    %cst_400 = arith.constant dense<0.000000e+00> : vector<1x128xf32>
    %504 = tpu.matmul %503, %186, %cst_400 {dimension_numbers = #tpu.dot_dimension_numbers<[1], [0], [0], [1], [0, 0, 1, 1], [], []>} : vector<1x32xf32>, vector<32x128xf32>, vector<1x128xf32> -> vector<1x128xf32>
    %505 = vector.broadcast %504 : vector<1x128xf32> to vector<8x128xf32>
    %506 = arith.subf %498, %505 : vector<8x128xf32>
    %507 = arith.mulf %506, %506 : vector<8x128xf32>
    %cst_401 = arith.constant dense<0.000000e+00> : vector<128xf32>
    %508 = vector.multi_reduction <add>, %507, %cst_401 [0] : vector<8x128xf32> to vector<128xf32>
    %509 = vector.shape_cast %508 : vector<128xf32> to vector<1x128xf32>
    %cst_402 = arith.constant dense<0.000000e+00> : vector<1x32xf32>
    %510 = tpu.matmul %509, %185, %cst_402 {dimension_numbers = #tpu.dot_dimension_numbers<[1], [0], [0], [1], [0, 0, 1, 1], [], []>} : vector<1x128xf32>, vector<128x32xf32>, vector<1x32xf32> -> vector<1x32xf32>
    %cst_403 = arith.constant 3.125000e-02 : f32
    %511 = vector.broadcast %cst_403 : f32 to vector<1x32xf32>
    %512 = arith.mulf %510, %511 : vector<1x32xf32>
    %cst_404 = arith.constant 9.99999974E-6 : f32
    %513 = vector.broadcast %cst_404 : f32 to vector<1x32xf32>
    %514 = arith.addf %512, %513 : vector<1x32xf32>
    %515 = math.rsqrt %514 : vector<1x32xf32>
    %516 = arith.mulf %472, %515 : vector<1x32xf32>
    %517 = arith.mulf %503, %516 : vector<1x32xf32>
    %518 = arith.subf %474, %517 : vector<1x32xf32>
    %cst_405 = arith.constant dense<0.000000e+00> : vector<1x128xf32>
    %519 = tpu.matmul %516, %186, %cst_405 {dimension_numbers = #tpu.dot_dimension_numbers<[1], [0], [0], [1], [0, 0, 1, 1], [], []>} : vector<1x32xf32>, vector<32x128xf32>, vector<1x128xf32> -> vector<1x128xf32>
    %cst_406 = arith.constant dense<0.000000e+00> : vector<1x128xf32>
    %520 = tpu.matmul %518, %186, %cst_406 {dimension_numbers = #tpu.dot_dimension_numbers<[1], [0], [0], [1], [0, 0, 1, 1], [], []>} : vector<1x32xf32>, vector<32x128xf32>, vector<1x128xf32> -> vector<1x128xf32>
    %521 = vector.broadcast %519 : vector<1x128xf32> to vector<8x128xf32>
    %522 = arith.mulf %498, %521 : vector<8x128xf32>
    %523 = vector.broadcast %520 : vector<1x128xf32> to vector<8x128xf32>
    %524 = arith.addf %522, %523 : vector<8x128xf32>
    %cst_407 = arith.constant 0.000000e+00 : f32
    %525 = vector.broadcast %cst_407 : f32 to vector<8x128xf32>
    %526 = arith.maximumf %524, %525 : vector<8x128xf32>
    %527 = arith.addf %413, %526 : vector<8x128xf32>
    %c6 = arith.constant 6 : index
    %c0_408 = arith.constant 0 : index
    %c0_409 = arith.constant 0 : index
    %528 = vector.load %arg21[%c6, %c0_408, %c0_409] : memref<9x1x32xf32, #tpu.memory_space<vmem>>, vector<1x1x32xf32>
    %529 = vector.shape_cast %528 : vector<1x1x32xf32> to vector<1x32xf32>
    %c6_410 = arith.constant 6 : index
    %c0_411 = arith.constant 0 : index
    %c0_412 = arith.constant 0 : index
    %530 = vector.load %arg22[%c6_410, %c0_411, %c0_412] : memref<9x1x32xf32, #tpu.memory_space<vmem>>, vector<1x1x32xf32>
    %531 = vector.shape_cast %530 : vector<1x1x32xf32> to vector<1x32xf32>
    %532 = arith.truncf %527 : vector<8x128xf32> to vector<8x128xbf16>
    %c0_413 = arith.constant 0 : index
    %c0_414 = arith.constant 0 : index
    %c0_415 = arith.constant 0 : index
    %533 = vector.load %arg19[%c0_413, %c0_414, %c0_415] : memref<3x8x8xbf16, #tpu.memory_space<vmem>>, vector<1x8x8xbf16>
    %534 = vector.shape_cast %533 : vector<1x8x8xbf16> to vector<8x8xbf16>
    %cst_416 = arith.constant dense<0.000000e+00> : vector<8x128xf32>
    %535 = tpu.matmul %534, %532, %cst_416 {dimension_numbers = #tpu.dot_dimension_numbers<[1], [0], [0], [1], [0, 0, 1, 1], [], []>} : vector<8x8xbf16>, vector<8x128xbf16>, vector<8x128xf32> -> vector<8x128xf32>
    %536 = arith.truncf %535 : vector<8x128xf32> to vector<8x128xbf16>
    %c6_417 = arith.constant 6 : index
    %c0_418 = arith.constant 0 : index
    %c0_419 = arith.constant 0 : index
    %c0_420 = arith.constant 0 : index
    %537 = vector.load %arg20[%c6_417, %c0_418, %c0_419, %c0_420] : memref<9x3x128x128xbf16, #tpu.memory_space<vmem>>, vector<1x1x128x128xbf16>
    %538 = vector.shape_cast %537 : vector<1x1x128x128xbf16> to vector<128x128xbf16>
    %cst_421 = arith.constant dense<0.000000e+00> : vector<8x128xf32>
    %539 = tpu.matmul %536, %538, %cst_421 {dimension_numbers = #tpu.dot_dimension_numbers<[1], [0], [0], [1], [0, 0, 1, 1], [], []>} : vector<8x128xbf16>, vector<128x128xbf16>, vector<8x128xf32> -> vector<8x128xf32>
    %c1_422 = arith.constant 1 : index
    %c0_423 = arith.constant 0 : index
    %c0_424 = arith.constant 0 : index
    %540 = vector.load %arg19[%c1_422, %c0_423, %c0_424] : memref<3x8x8xbf16, #tpu.memory_space<vmem>>, vector<1x8x8xbf16>
    %541 = vector.shape_cast %540 : vector<1x8x8xbf16> to vector<8x8xbf16>
    %cst_425 = arith.constant dense<0.000000e+00> : vector<8x128xf32>
    %542 = tpu.matmul %541, %532, %cst_425 {dimension_numbers = #tpu.dot_dimension_numbers<[1], [0], [0], [1], [0, 0, 1, 1], [], []>} : vector<8x8xbf16>, vector<8x128xbf16>, vector<8x128xf32> -> vector<8x128xf32>
    %543 = arith.truncf %542 : vector<8x128xf32> to vector<8x128xbf16>
    %c6_426 = arith.constant 6 : index
    %c1_427 = arith.constant 1 : index
    %c0_428 = arith.constant 0 : index
    %c0_429 = arith.constant 0 : index
    %544 = vector.load %arg20[%c6_426, %c1_427, %c0_428, %c0_429] : memref<9x3x128x128xbf16, #tpu.memory_space<vmem>>, vector<1x1x128x128xbf16>
    %545 = vector.shape_cast %544 : vector<1x1x128x128xbf16> to vector<128x128xbf16>
    %cst_430 = arith.constant dense<0.000000e+00> : vector<8x128xf32>
    %546 = tpu.matmul %543, %545, %cst_430 {dimension_numbers = #tpu.dot_dimension_numbers<[1], [0], [0], [1], [0, 0, 1, 1], [], []>} : vector<8x128xbf16>, vector<128x128xbf16>, vector<8x128xf32> -> vector<8x128xf32>
    %547 = arith.addf %539, %546 : vector<8x128xf32>
    %c2_431 = arith.constant 2 : index
    %c0_432 = arith.constant 0 : index
    %c0_433 = arith.constant 0 : index
    %548 = vector.load %arg19[%c2_431, %c0_432, %c0_433] : memref<3x8x8xbf16, #tpu.memory_space<vmem>>, vector<1x8x8xbf16>
    %549 = vector.shape_cast %548 : vector<1x8x8xbf16> to vector<8x8xbf16>
    %cst_434 = arith.constant dense<0.000000e+00> : vector<8x128xf32>
    %550 = tpu.matmul %549, %532, %cst_434 {dimension_numbers = #tpu.dot_dimension_numbers<[1], [0], [0], [1], [0, 0, 1, 1], [], []>} : vector<8x8xbf16>, vector<8x128xbf16>, vector<8x128xf32> -> vector<8x128xf32>
    %551 = arith.truncf %550 : vector<8x128xf32> to vector<8x128xbf16>
    %c6_435 = arith.constant 6 : index
    %c2_436 = arith.constant 2 : index
    %c0_437 = arith.constant 0 : index
    %c0_438 = arith.constant 0 : index
    %552 = vector.load %arg20[%c6_435, %c2_436, %c0_437, %c0_438] : memref<9x3x128x128xbf16, #tpu.memory_space<vmem>>, vector<1x1x128x128xbf16>
    %553 = vector.shape_cast %552 : vector<1x1x128x128xbf16> to vector<128x128xbf16>
    %cst_439 = arith.constant dense<0.000000e+00> : vector<8x128xf32>
    %554 = tpu.matmul %551, %553, %cst_439 {dimension_numbers = #tpu.dot_dimension_numbers<[1], [0], [0], [1], [0, 0, 1, 1], [], []>} : vector<8x128xbf16>, vector<128x128xbf16>, vector<8x128xf32> -> vector<8x128xf32>
    %555 = arith.addf %547, %554 : vector<8x128xf32>
    %cst_440 = arith.constant dense<0.000000e+00> : vector<128xf32>
    %556 = vector.multi_reduction <add>, %555, %cst_440 [0] : vector<8x128xf32> to vector<128xf32>
    %557 = vector.shape_cast %556 : vector<128xf32> to vector<1x128xf32>
    %cst_441 = arith.constant dense<0.000000e+00> : vector<1x32xf32>
    %558 = tpu.matmul %557, %185, %cst_441 {dimension_numbers = #tpu.dot_dimension_numbers<[1], [0], [0], [1], [0, 0, 1, 1], [], []>} : vector<1x128xf32>, vector<128x32xf32>, vector<1x32xf32> -> vector<1x32xf32>
    %cst_442 = arith.constant 3.125000e-02 : f32
    %559 = vector.broadcast %cst_442 : f32 to vector<1x32xf32>
    %560 = arith.mulf %558, %559 : vector<1x32xf32>
    %cst_443 = arith.constant dense<0.000000e+00> : vector<1x128xf32>
    %561 = tpu.matmul %560, %186, %cst_443 {dimension_numbers = #tpu.dot_dimension_numbers<[1], [0], [0], [1], [0, 0, 1, 1], [], []>} : vector<1x32xf32>, vector<32x128xf32>, vector<1x128xf32> -> vector<1x128xf32>
    %562 = vector.broadcast %561 : vector<1x128xf32> to vector<8x128xf32>
    %563 = arith.subf %555, %562 : vector<8x128xf32>
    %564 = arith.mulf %563, %563 : vector<8x128xf32>
    %cst_444 = arith.constant dense<0.000000e+00> : vector<128xf32>
    %565 = vector.multi_reduction <add>, %564, %cst_444 [0] : vector<8x128xf32> to vector<128xf32>
    %566 = vector.shape_cast %565 : vector<128xf32> to vector<1x128xf32>
    %cst_445 = arith.constant dense<0.000000e+00> : vector<1x32xf32>
    %567 = tpu.matmul %566, %185, %cst_445 {dimension_numbers = #tpu.dot_dimension_numbers<[1], [0], [0], [1], [0, 0, 1, 1], [], []>} : vector<1x128xf32>, vector<128x32xf32>, vector<1x32xf32> -> vector<1x32xf32>
    %cst_446 = arith.constant 3.125000e-02 : f32
    %568 = vector.broadcast %cst_446 : f32 to vector<1x32xf32>
    %569 = arith.mulf %567, %568 : vector<1x32xf32>
    %cst_447 = arith.constant 9.99999974E-6 : f32
    %570 = vector.broadcast %cst_447 : f32 to vector<1x32xf32>
    %571 = arith.addf %569, %570 : vector<1x32xf32>
    %572 = math.rsqrt %571 : vector<1x32xf32>
    %573 = arith.mulf %529, %572 : vector<1x32xf32>
    %574 = arith.mulf %560, %573 : vector<1x32xf32>
    %575 = arith.subf %531, %574 : vector<1x32xf32>
    %cst_448 = arith.constant dense<0.000000e+00> : vector<1x128xf32>
    %576 = tpu.matmul %573, %186, %cst_448 {dimension_numbers = #tpu.dot_dimension_numbers<[1], [0], [0], [1], [0, 0, 1, 1], [], []>} : vector<1x32xf32>, vector<32x128xf32>, vector<1x128xf32> -> vector<1x128xf32>
    %cst_449 = arith.constant dense<0.000000e+00> : vector<1x128xf32>
    %577 = tpu.matmul %575, %186, %cst_449 {dimension_numbers = #tpu.dot_dimension_numbers<[1], [0], [0], [1], [0, 0, 1, 1], [], []>} : vector<1x32xf32>, vector<32x128xf32>, vector<1x128xf32> -> vector<1x128xf32>
    %578 = vector.broadcast %576 : vector<1x128xf32> to vector<8x128xf32>
    %579 = arith.mulf %555, %578 : vector<8x128xf32>
    %580 = vector.broadcast %577 : vector<1x128xf32> to vector<8x128xf32>
    %581 = arith.addf %579, %580 : vector<8x128xf32>
    %cst_450 = arith.constant 0.000000e+00 : f32
    %582 = vector.broadcast %cst_450 : f32 to vector<8x128xf32>
    %583 = arith.maximumf %581, %582 : vector<8x128xf32>
    %584 = arith.addf %527, %583 : vector<8x128xf32>
    %c7 = arith.constant 7 : index
    %c0_451 = arith.constant 0 : index
    %c0_452 = arith.constant 0 : index
    %585 = vector.load %arg21[%c7, %c0_451, %c0_452] : memref<9x1x32xf32, #tpu.memory_space<vmem>>, vector<1x1x32xf32>
    %586 = vector.shape_cast %585 : vector<1x1x32xf32> to vector<1x32xf32>
    %c7_453 = arith.constant 7 : index
    %c0_454 = arith.constant 0 : index
    %c0_455 = arith.constant 0 : index
    %587 = vector.load %arg22[%c7_453, %c0_454, %c0_455] : memref<9x1x32xf32, #tpu.memory_space<vmem>>, vector<1x1x32xf32>
    %588 = vector.shape_cast %587 : vector<1x1x32xf32> to vector<1x32xf32>
    %589 = arith.truncf %584 : vector<8x128xf32> to vector<8x128xbf16>
    %c0_456 = arith.constant 0 : index
    %c0_457 = arith.constant 0 : index
    %c0_458 = arith.constant 0 : index
    %590 = vector.load %arg19[%c0_456, %c0_457, %c0_458] : memref<3x8x8xbf16, #tpu.memory_space<vmem>>, vector<1x8x8xbf16>
    %591 = vector.shape_cast %590 : vector<1x8x8xbf16> to vector<8x8xbf16>
    %cst_459 = arith.constant dense<0.000000e+00> : vector<8x128xf32>
    %592 = tpu.matmul %591, %589, %cst_459 {dimension_numbers = #tpu.dot_dimension_numbers<[1], [0], [0], [1], [0, 0, 1, 1], [], []>} : vector<8x8xbf16>, vector<8x128xbf16>, vector<8x128xf32> -> vector<8x128xf32>
    %593 = arith.truncf %592 : vector<8x128xf32> to vector<8x128xbf16>
    %c7_460 = arith.constant 7 : index
    %c0_461 = arith.constant 0 : index
    %c0_462 = arith.constant 0 : index
    %c0_463 = arith.constant 0 : index
    %594 = vector.load %arg20[%c7_460, %c0_461, %c0_462, %c0_463] : memref<9x3x128x128xbf16, #tpu.memory_space<vmem>>, vector<1x1x128x128xbf16>
    %595 = vector.shape_cast %594 : vector<1x1x128x128xbf16> to vector<128x128xbf16>
    %cst_464 = arith.constant dense<0.000000e+00> : vector<8x128xf32>
    %596 = tpu.matmul %593, %595, %cst_464 {dimension_numbers = #tpu.dot_dimension_numbers<[1], [0], [0], [1], [0, 0, 1, 1], [], []>} : vector<8x128xbf16>, vector<128x128xbf16>, vector<8x128xf32> -> vector<8x128xf32>
    %c1_465 = arith.constant 1 : index
    %c0_466 = arith.constant 0 : index
    %c0_467 = arith.constant 0 : index
    %597 = vector.load %arg19[%c1_465, %c0_466, %c0_467] : memref<3x8x8xbf16, #tpu.memory_space<vmem>>, vector<1x8x8xbf16>
    %598 = vector.shape_cast %597 : vector<1x8x8xbf16> to vector<8x8xbf16>
    %cst_468 = arith.constant dense<0.000000e+00> : vector<8x128xf32>
    %599 = tpu.matmul %598, %589, %cst_468 {dimension_numbers = #tpu.dot_dimension_numbers<[1], [0], [0], [1], [0, 0, 1, 1], [], []>} : vector<8x8xbf16>, vector<8x128xbf16>, vector<8x128xf32> -> vector<8x128xf32>
    %600 = arith.truncf %599 : vector<8x128xf32> to vector<8x128xbf16>
    %c7_469 = arith.constant 7 : index
    %c1_470 = arith.constant 1 : index
    %c0_471 = arith.constant 0 : index
    %c0_472 = arith.constant 0 : index
    %601 = vector.load %arg20[%c7_469, %c1_470, %c0_471, %c0_472] : memref<9x3x128x128xbf16, #tpu.memory_space<vmem>>, vector<1x1x128x128xbf16>
    %602 = vector.shape_cast %601 : vector<1x1x128x128xbf16> to vector<128x128xbf16>
    %cst_473 = arith.constant dense<0.000000e+00> : vector<8x128xf32>
    %603 = tpu.matmul %600, %602, %cst_473 {dimension_numbers = #tpu.dot_dimension_numbers<[1], [0], [0], [1], [0, 0, 1, 1], [], []>} : vector<8x128xbf16>, vector<128x128xbf16>, vector<8x128xf32> -> vector<8x128xf32>
    %604 = arith.addf %596, %603 : vector<8x128xf32>
    %c2_474 = arith.constant 2 : index
    %c0_475 = arith.constant 0 : index
    %c0_476 = arith.constant 0 : index
    %605 = vector.load %arg19[%c2_474, %c0_475, %c0_476] : memref<3x8x8xbf16, #tpu.memory_space<vmem>>, vector<1x8x8xbf16>
    %606 = vector.shape_cast %605 : vector<1x8x8xbf16> to vector<8x8xbf16>
    %cst_477 = arith.constant dense<0.000000e+00> : vector<8x128xf32>
    %607 = tpu.matmul %606, %589, %cst_477 {dimension_numbers = #tpu.dot_dimension_numbers<[1], [0], [0], [1], [0, 0, 1, 1], [], []>} : vector<8x8xbf16>, vector<8x128xbf16>, vector<8x128xf32> -> vector<8x128xf32>
    %608 = arith.truncf %607 : vector<8x128xf32> to vector<8x128xbf16>
    %c7_478 = arith.constant 7 : index
    %c2_479 = arith.constant 2 : index
    %c0_480 = arith.constant 0 : index
    %c0_481 = arith.constant 0 : index
    %609 = vector.load %arg20[%c7_478, %c2_479, %c0_480, %c0_481] : memref<9x3x128x128xbf16, #tpu.memory_space<vmem>>, vector<1x1x128x128xbf16>
    %610 = vector.shape_cast %609 : vector<1x1x128x128xbf16> to vector<128x128xbf16>
    %cst_482 = arith.constant dense<0.000000e+00> : vector<8x128xf32>
    %611 = tpu.matmul %608, %610, %cst_482 {dimension_numbers = #tpu.dot_dimension_numbers<[1], [0], [0], [1], [0, 0, 1, 1], [], []>} : vector<8x128xbf16>, vector<128x128xbf16>, vector<8x128xf32> -> vector<8x128xf32>
    %612 = arith.addf %604, %611 : vector<8x128xf32>
    %cst_483 = arith.constant dense<0.000000e+00> : vector<128xf32>
    %613 = vector.multi_reduction <add>, %612, %cst_483 [0] : vector<8x128xf32> to vector<128xf32>
    %614 = vector.shape_cast %613 : vector<128xf32> to vector<1x128xf32>
    %cst_484 = arith.constant dense<0.000000e+00> : vector<1x32xf32>
    %615 = tpu.matmul %614, %185, %cst_484 {dimension_numbers = #tpu.dot_dimension_numbers<[1], [0], [0], [1], [0, 0, 1, 1], [], []>} : vector<1x128xf32>, vector<128x32xf32>, vector<1x32xf32> -> vector<1x32xf32>
    %cst_485 = arith.constant 3.125000e-02 : f32
    %616 = vector.broadcast %cst_485 : f32 to vector<1x32xf32>
    %617 = arith.mulf %615, %616 : vector<1x32xf32>
    %cst_486 = arith.constant dense<0.000000e+00> : vector<1x128xf32>
    %618 = tpu.matmul %617, %186, %cst_486 {dimension_numbers = #tpu.dot_dimension_numbers<[1], [0], [0], [1], [0, 0, 1, 1], [], []>} : vector<1x32xf32>, vector<32x128xf32>, vector<1x128xf32> -> vector<1x128xf32>
    %619 = vector.broadcast %618 : vector<1x128xf32> to vector<8x128xf32>
    %620 = arith.subf %612, %619 : vector<8x128xf32>
    %621 = arith.mulf %620, %620 : vector<8x128xf32>
    %cst_487 = arith.constant dense<0.000000e+00> : vector<128xf32>
    %622 = vector.multi_reduction <add>, %621, %cst_487 [0] : vector<8x128xf32> to vector<128xf32>
    %623 = vector.shape_cast %622 : vector<128xf32> to vector<1x128xf32>
    %cst_488 = arith.constant dense<0.000000e+00> : vector<1x32xf32>
    %624 = tpu.matmul %623, %185, %cst_488 {dimension_numbers = #tpu.dot_dimension_numbers<[1], [0], [0], [1], [0, 0, 1, 1], [], []>} : vector<1x128xf32>, vector<128x32xf32>, vector<1x32xf32> -> vector<1x32xf32>
    %cst_489 = arith.constant 3.125000e-02 : f32
    %625 = vector.broadcast %cst_489 : f32 to vector<1x32xf32>
    %626 = arith.mulf %624, %625 : vector<1x32xf32>
    %cst_490 = arith.constant 9.99999974E-6 : f32
    %627 = vector.broadcast %cst_490 : f32 to vector<1x32xf32>
    %628 = arith.addf %626, %627 : vector<1x32xf32>
    %629 = math.rsqrt %628 : vector<1x32xf32>
    %630 = arith.mulf %586, %629 : vector<1x32xf32>
    %631 = arith.mulf %617, %630 : vector<1x32xf32>
    %632 = arith.subf %588, %631 : vector<1x32xf32>
    %cst_491 = arith.constant dense<0.000000e+00> : vector<1x128xf32>
    %633 = tpu.matmul %630, %186, %cst_491 {dimension_numbers = #tpu.dot_dimension_numbers<[1], [0], [0], [1], [0, 0, 1, 1], [], []>} : vector<1x32xf32>, vector<32x128xf32>, vector<1x128xf32> -> vector<1x128xf32>
    %cst_492 = arith.constant dense<0.000000e+00> : vector<1x128xf32>
    %634 = tpu.matmul %632, %186, %cst_492 {dimension_numbers = #tpu.dot_dimension_numbers<[1], [0], [0], [1], [0, 0, 1, 1], [], []>} : vector<1x32xf32>, vector<32x128xf32>, vector<1x128xf32> -> vector<1x128xf32>
    %635 = vector.broadcast %633 : vector<1x128xf32> to vector<8x128xf32>
    %636 = arith.mulf %612, %635 : vector<8x128xf32>
    %637 = vector.broadcast %634 : vector<1x128xf32> to vector<8x128xf32>
    %638 = arith.addf %636, %637 : vector<8x128xf32>
    %cst_493 = arith.constant 0.000000e+00 : f32
    %639 = vector.broadcast %cst_493 : f32 to vector<8x128xf32>
    %640 = arith.maximumf %638, %639 : vector<8x128xf32>
    %641 = arith.addf %584, %640 : vector<8x128xf32>
    %c8 = arith.constant 8 : index
    %c0_494 = arith.constant 0 : index
    %c0_495 = arith.constant 0 : index
    %642 = vector.load %arg21[%c8, %c0_494, %c0_495] : memref<9x1x32xf32, #tpu.memory_space<vmem>>, vector<1x1x32xf32>
    %643 = vector.shape_cast %642 : vector<1x1x32xf32> to vector<1x32xf32>
    %c8_496 = arith.constant 8 : index
    %c0_497 = arith.constant 0 : index
    %c0_498 = arith.constant 0 : index
    %644 = vector.load %arg22[%c8_496, %c0_497, %c0_498] : memref<9x1x32xf32, #tpu.memory_space<vmem>>, vector<1x1x32xf32>
    %645 = vector.shape_cast %644 : vector<1x1x32xf32> to vector<1x32xf32>
    %646 = arith.truncf %641 : vector<8x128xf32> to vector<8x128xbf16>
    %c0_499 = arith.constant 0 : index
    %c0_500 = arith.constant 0 : index
    %c0_501 = arith.constant 0 : index
    %647 = vector.load %arg19[%c0_499, %c0_500, %c0_501] : memref<3x8x8xbf16, #tpu.memory_space<vmem>>, vector<1x8x8xbf16>
    %648 = vector.shape_cast %647 : vector<1x8x8xbf16> to vector<8x8xbf16>
    %cst_502 = arith.constant dense<0.000000e+00> : vector<8x128xf32>
    %649 = tpu.matmul %648, %646, %cst_502 {dimension_numbers = #tpu.dot_dimension_numbers<[1], [0], [0], [1], [0, 0, 1, 1], [], []>} : vector<8x8xbf16>, vector<8x128xbf16>, vector<8x128xf32> -> vector<8x128xf32>
    %650 = arith.truncf %649 : vector<8x128xf32> to vector<8x128xbf16>
    %c8_503 = arith.constant 8 : index
    %c0_504 = arith.constant 0 : index
    %c0_505 = arith.constant 0 : index
    %c0_506 = arith.constant 0 : index
    %651 = vector.load %arg20[%c8_503, %c0_504, %c0_505, %c0_506] : memref<9x3x128x128xbf16, #tpu.memory_space<vmem>>, vector<1x1x128x128xbf16>
    %652 = vector.shape_cast %651 : vector<1x1x128x128xbf16> to vector<128x128xbf16>
    %cst_507 = arith.constant dense<0.000000e+00> : vector<8x128xf32>
    %653 = tpu.matmul %650, %652, %cst_507 {dimension_numbers = #tpu.dot_dimension_numbers<[1], [0], [0], [1], [0, 0, 1, 1], [], []>} : vector<8x128xbf16>, vector<128x128xbf16>, vector<8x128xf32> -> vector<8x128xf32>
    %c1_508 = arith.constant 1 : index
    %c0_509 = arith.constant 0 : index
    %c0_510 = arith.constant 0 : index
    %654 = vector.load %arg19[%c1_508, %c0_509, %c0_510] : memref<3x8x8xbf16, #tpu.memory_space<vmem>>, vector<1x8x8xbf16>
    %655 = vector.shape_cast %654 : vector<1x8x8xbf16> to vector<8x8xbf16>
    %cst_511 = arith.constant dense<0.000000e+00> : vector<8x128xf32>
    %656 = tpu.matmul %655, %646, %cst_511 {dimension_numbers = #tpu.dot_dimension_numbers<[1], [0], [0], [1], [0, 0, 1, 1], [], []>} : vector<8x8xbf16>, vector<8x128xbf16>, vector<8x128xf32> -> vector<8x128xf32>
    %657 = arith.truncf %656 : vector<8x128xf32> to vector<8x128xbf16>
    %c8_512 = arith.constant 8 : index
    %c1_513 = arith.constant 1 : index
    %c0_514 = arith.constant 0 : index
    %c0_515 = arith.constant 0 : index
    %658 = vector.load %arg20[%c8_512, %c1_513, %c0_514, %c0_515] : memref<9x3x128x128xbf16, #tpu.memory_space<vmem>>, vector<1x1x128x128xbf16>
    %659 = vector.shape_cast %658 : vector<1x1x128x128xbf16> to vector<128x128xbf16>
    %cst_516 = arith.constant dense<0.000000e+00> : vector<8x128xf32>
    %660 = tpu.matmul %657, %659, %cst_516 {dimension_numbers = #tpu.dot_dimension_numbers<[1], [0], [0], [1], [0, 0, 1, 1], [], []>} : vector<8x128xbf16>, vector<128x128xbf16>, vector<8x128xf32> -> vector<8x128xf32>
    %661 = arith.addf %653, %660 : vector<8x128xf32>
    %c2_517 = arith.constant 2 : index
    %c0_518 = arith.constant 0 : index
    %c0_519 = arith.constant 0 : index
    %662 = vector.load %arg19[%c2_517, %c0_518, %c0_519] : memref<3x8x8xbf16, #tpu.memory_space<vmem>>, vector<1x8x8xbf16>
    %663 = vector.shape_cast %662 : vector<1x8x8xbf16> to vector<8x8xbf16>
    %cst_520 = arith.constant dense<0.000000e+00> : vector<8x128xf32>
    %664 = tpu.matmul %663, %646, %cst_520 {dimension_numbers = #tpu.dot_dimension_numbers<[1], [0], [0], [1], [0, 0, 1, 1], [], []>} : vector<8x8xbf16>, vector<8x128xbf16>, vector<8x128xf32> -> vector<8x128xf32>
    %665 = arith.truncf %664 : vector<8x128xf32> to vector<8x128xbf16>
    %c8_521 = arith.constant 8 : index
    %c2_522 = arith.constant 2 : index
    %c0_523 = arith.constant 0 : index
    %c0_524 = arith.constant 0 : index
    %666 = vector.load %arg20[%c8_521, %c2_522, %c0_523, %c0_524] : memref<9x3x128x128xbf16, #tpu.memory_space<vmem>>, vector<1x1x128x128xbf16>
    %667 = vector.shape_cast %666 : vector<1x1x128x128xbf16> to vector<128x128xbf16>
    %cst_525 = arith.constant dense<0.000000e+00> : vector<8x128xf32>
    %668 = tpu.matmul %665, %667, %cst_525 {dimension_numbers = #tpu.dot_dimension_numbers<[1], [0], [0], [1], [0, 0, 1, 1], [], []>} : vector<8x128xbf16>, vector<128x128xbf16>, vector<8x128xf32> -> vector<8x128xf32>
    %669 = arith.addf %661, %668 : vector<8x128xf32>
    %cst_526 = arith.constant dense<0.000000e+00> : vector<128xf32>
    %670 = vector.multi_reduction <add>, %669, %cst_526 [0] : vector<8x128xf32> to vector<128xf32>
    %671 = vector.shape_cast %670 : vector<128xf32> to vector<1x128xf32>
    %cst_527 = arith.constant dense<0.000000e+00> : vector<1x32xf32>
    %672 = tpu.matmul %671, %185, %cst_527 {dimension_numbers = #tpu.dot_dimension_numbers<[1], [0], [0], [1], [0, 0, 1, 1], [], []>} : vector<1x128xf32>, vector<128x32xf32>, vector<1x32xf32> -> vector<1x32xf32>
    %cst_528 = arith.constant 3.125000e-02 : f32
    %673 = vector.broadcast %cst_528 : f32 to vector<1x32xf32>
    %674 = arith.mulf %672, %673 : vector<1x32xf32>
    %cst_529 = arith.constant dense<0.000000e+00> : vector<1x128xf32>
    %675 = tpu.matmul %674, %186, %cst_529 {dimension_numbers = #tpu.dot_dimension_numbers<[1], [0], [0], [1], [0, 0, 1, 1], [], []>} : vector<1x32xf32>, vector<32x128xf32>, vector<1x128xf32> -> vector<1x128xf32>
    %676 = vector.broadcast %675 : vector<1x128xf32> to vector<8x128xf32>
    %677 = arith.subf %669, %676 : vector<8x128xf32>
    %678 = arith.mulf %677, %677 : vector<8x128xf32>
    %cst_530 = arith.constant dense<0.000000e+00> : vector<128xf32>
    %679 = vector.multi_reduction <add>, %678, %cst_530 [0] : vector<8x128xf32> to vector<128xf32>
    %680 = vector.shape_cast %679 : vector<128xf32> to vector<1x128xf32>
    %cst_531 = arith.constant dense<0.000000e+00> : vector<1x32xf32>
    %681 = tpu.matmul %680, %185, %cst_531 {dimension_numbers = #tpu.dot_dimension_numbers<[1], [0], [0], [1], [0, 0, 1, 1], [], []>} : vector<1x128xf32>, vector<128x32xf32>, vector<1x32xf32> -> vector<1x32xf32>
    %cst_532 = arith.constant 3.125000e-02 : f32
    %682 = vector.broadcast %cst_532 : f32 to vector<1x32xf32>
    %683 = arith.mulf %681, %682 : vector<1x32xf32>
    %cst_533 = arith.constant 9.99999974E-6 : f32
    %684 = vector.broadcast %cst_533 : f32 to vector<1x32xf32>
    %685 = arith.addf %683, %684 : vector<1x32xf32>
    %686 = math.rsqrt %685 : vector<1x32xf32>
    %687 = arith.mulf %643, %686 : vector<1x32xf32>
    %688 = arith.mulf %674, %687 : vector<1x32xf32>
    %689 = arith.subf %645, %688 : vector<1x32xf32>
    %cst_534 = arith.constant dense<0.000000e+00> : vector<1x128xf32>
    %690 = tpu.matmul %687, %186, %cst_534 {dimension_numbers = #tpu.dot_dimension_numbers<[1], [0], [0], [1], [0, 0, 1, 1], [], []>} : vector<1x32xf32>, vector<32x128xf32>, vector<1x128xf32> -> vector<1x128xf32>
    %cst_535 = arith.constant dense<0.000000e+00> : vector<1x128xf32>
    %691 = tpu.matmul %689, %186, %cst_535 {dimension_numbers = #tpu.dot_dimension_numbers<[1], [0], [0], [1], [0, 0, 1, 1], [], []>} : vector<1x32xf32>, vector<32x128xf32>, vector<1x128xf32> -> vector<1x128xf32>
    %692 = vector.broadcast %690 : vector<1x128xf32> to vector<8x128xf32>
    %693 = arith.mulf %669, %692 : vector<8x128xf32>
    %694 = vector.broadcast %691 : vector<1x128xf32> to vector<8x128xf32>
    %695 = arith.addf %693, %694 : vector<8x128xf32>
    %cst_536 = arith.constant 0.000000e+00 : f32
    %696 = vector.broadcast %cst_536 : f32 to vector<8x128xf32>
    %697 = arith.maximumf %695, %696 : vector<8x128xf32>
    %698 = arith.addf %584, %697 : vector<8x128xf32>
    %c0_537 = arith.constant 0 : index
    %c0_538 = arith.constant 0 : index
    %699 = vector.load %arg27[%c0_537, %c0_538] : memref<1x16xf32, #tpu.memory_space<vmem>>, vector<1x16xf32>
    %c0_539 = arith.constant 0 : index
    %c0_540 = arith.constant 0 : index
    %700 = vector.load %arg28[%c0_539, %c0_540] : memref<1x16xf32, #tpu.memory_space<vmem>>, vector<1x16xf32>
    %c0_541 = arith.constant 0 : index
    %c0_542 = arith.constant 0 : index
    %701 = vector.load %arg29[%c0_541, %c0_542] : memref<128x16xf32, #tpu.memory_space<vmem>>, vector<128x16xf32>
    %c0_543 = arith.constant 0 : index
    %c0_544 = arith.constant 0 : index
    %702 = vector.load %arg30[%c0_543, %c0_544] : memref<16x128xf32, #tpu.memory_space<vmem>>, vector<16x128xf32>
    %703 = arith.truncf %698 : vector<8x128xf32> to vector<8x128xbf16>
    %c0_545 = arith.constant 0 : index
    %c0_546 = arith.constant 0 : index
    %c0_547 = arith.constant 0 : index
    %704 = vector.load %arg25[%c0_545, %c0_546, %c0_547] : memref<4x16x8xbf16, #tpu.memory_space<vmem>>, vector<1x16x8xbf16>
    %705 = vector.shape_cast %704 : vector<1x16x8xbf16> to vector<16x8xbf16>
    %cst_548 = arith.constant dense<0.000000e+00> : vector<16x128xf32>
    %706 = tpu.matmul %705, %703, %cst_548 {dimension_numbers = #tpu.dot_dimension_numbers<[1], [0], [0], [1], [0, 0, 1, 1], [], []>} : vector<16x8xbf16>, vector<8x128xbf16>, vector<16x128xf32> -> vector<16x128xf32>
    %707 = arith.truncf %706 : vector<16x128xf32> to vector<16x128xbf16>
    %c0_549 = arith.constant 0 : index
    %c0_550 = arith.constant 0 : index
    %c0_551 = arith.constant 0 : index
    %708 = vector.load %arg26[%c0_549, %c0_550, %c0_551] : memref<4x128x128xbf16, #tpu.memory_space<vmem>>, vector<1x128x128xbf16>
    %709 = vector.shape_cast %708 : vector<1x128x128xbf16> to vector<128x128xbf16>
    %cst_552 = arith.constant dense<0.000000e+00> : vector<16x128xf32>
    %710 = tpu.matmul %707, %709, %cst_552 {dimension_numbers = #tpu.dot_dimension_numbers<[1], [0], [0], [1], [0, 0, 1, 1], [], []>} : vector<16x128xbf16>, vector<128x128xbf16>, vector<16x128xf32> -> vector<16x128xf32>
    %c1_553 = arith.constant 1 : index
    %c0_554 = arith.constant 0 : index
    %c0_555 = arith.constant 0 : index
    %711 = vector.load %arg25[%c1_553, %c0_554, %c0_555] : memref<4x16x8xbf16, #tpu.memory_space<vmem>>, vector<1x16x8xbf16>
    %712 = vector.shape_cast %711 : vector<1x16x8xbf16> to vector<16x8xbf16>
    %cst_556 = arith.constant dense<0.000000e+00> : vector<16x128xf32>
    %713 = tpu.matmul %712, %703, %cst_556 {dimension_numbers = #tpu.dot_dimension_numbers<[1], [0], [0], [1], [0, 0, 1, 1], [], []>} : vector<16x8xbf16>, vector<8x128xbf16>, vector<16x128xf32> -> vector<16x128xf32>
    %714 = arith.truncf %713 : vector<16x128xf32> to vector<16x128xbf16>
    %c1_557 = arith.constant 1 : index
    %c0_558 = arith.constant 0 : index
    %c0_559 = arith.constant 0 : index
    %715 = vector.load %arg26[%c1_557, %c0_558, %c0_559] : memref<4x128x128xbf16, #tpu.memory_space<vmem>>, vector<1x128x128xbf16>
    %716 = vector.shape_cast %715 : vector<1x128x128xbf16> to vector<128x128xbf16>
    %cst_560 = arith.constant dense<0.000000e+00> : vector<16x128xf32>
    %717 = tpu.matmul %714, %716, %cst_560 {dimension_numbers = #tpu.dot_dimension_numbers<[1], [0], [0], [1], [0, 0, 1, 1], [], []>} : vector<16x128xbf16>, vector<128x128xbf16>, vector<16x128xf32> -> vector<16x128xf32>
    %718 = arith.addf %710, %717 : vector<16x128xf32>
    %c2_561 = arith.constant 2 : index
    %c0_562 = arith.constant 0 : index
    %c0_563 = arith.constant 0 : index
    %719 = vector.load %arg25[%c2_561, %c0_562, %c0_563] : memref<4x16x8xbf16, #tpu.memory_space<vmem>>, vector<1x16x8xbf16>
    %720 = vector.shape_cast %719 : vector<1x16x8xbf16> to vector<16x8xbf16>
    %cst_564 = arith.constant dense<0.000000e+00> : vector<16x128xf32>
    %721 = tpu.matmul %720, %703, %cst_564 {dimension_numbers = #tpu.dot_dimension_numbers<[1], [0], [0], [1], [0, 0, 1, 1], [], []>} : vector<16x8xbf16>, vector<8x128xbf16>, vector<16x128xf32> -> vector<16x128xf32>
    %722 = arith.truncf %721 : vector<16x128xf32> to vector<16x128xbf16>
    %c2_565 = arith.constant 2 : index
    %c0_566 = arith.constant 0 : index
    %c0_567 = arith.constant 0 : index
    %723 = vector.load %arg26[%c2_565, %c0_566, %c0_567] : memref<4x128x128xbf16, #tpu.memory_space<vmem>>, vector<1x128x128xbf16>
    %724 = vector.shape_cast %723 : vector<1x128x128xbf16> to vector<128x128xbf16>
    %cst_568 = arith.constant dense<0.000000e+00> : vector<16x128xf32>
    %725 = tpu.matmul %722, %724, %cst_568 {dimension_numbers = #tpu.dot_dimension_numbers<[1], [0], [0], [1], [0, 0, 1, 1], [], []>} : vector<16x128xbf16>, vector<128x128xbf16>, vector<16x128xf32> -> vector<16x128xf32>
    %726 = arith.addf %718, %725 : vector<16x128xf32>
    %c3_569 = arith.constant 3 : index
    %c0_570 = arith.constant 0 : index
    %c0_571 = arith.constant 0 : index
    %727 = vector.load %arg25[%c3_569, %c0_570, %c0_571] : memref<4x16x8xbf16, #tpu.memory_space<vmem>>, vector<1x16x8xbf16>
    %728 = vector.shape_cast %727 : vector<1x16x8xbf16> to vector<16x8xbf16>
    %cst_572 = arith.constant dense<0.000000e+00> : vector<16x128xf32>
    %729 = tpu.matmul %728, %703, %cst_572 {dimension_numbers = #tpu.dot_dimension_numbers<[1], [0], [0], [1], [0, 0, 1, 1], [], []>} : vector<16x8xbf16>, vector<8x128xbf16>, vector<16x128xf32> -> vector<16x128xf32>
    %730 = arith.truncf %729 : vector<16x128xf32> to vector<16x128xbf16>
    %c3_573 = arith.constant 3 : index
    %c0_574 = arith.constant 0 : index
    %c0_575 = arith.constant 0 : index
    %731 = vector.load %arg26[%c3_573, %c0_574, %c0_575] : memref<4x128x128xbf16, #tpu.memory_space<vmem>>, vector<1x128x128xbf16>
    %732 = vector.shape_cast %731 : vector<1x128x128xbf16> to vector<128x128xbf16>
    %cst_576 = arith.constant dense<0.000000e+00> : vector<16x128xf32>
    %733 = tpu.matmul %730, %732, %cst_576 {dimension_numbers = #tpu.dot_dimension_numbers<[1], [0], [0], [1], [0, 0, 1, 1], [], []>} : vector<16x128xbf16>, vector<128x128xbf16>, vector<16x128xf32> -> vector<16x128xf32>
    %734 = arith.addf %726, %733 : vector<16x128xf32>
    %cst_577 = arith.constant dense<0.000000e+00> : vector<128xf32>
    %735 = vector.multi_reduction <add>, %734, %cst_577 [0] : vector<16x128xf32> to vector<128xf32>
    %736 = vector.shape_cast %735 : vector<128xf32> to vector<1x128xf32>
    %cst_578 = arith.constant dense<0.000000e+00> : vector<1x16xf32>
    %737 = tpu.matmul %736, %701, %cst_578 {dimension_numbers = #tpu.dot_dimension_numbers<[1], [0], [0], [1], [0, 0, 1, 1], [], []>} : vector<1x128xf32>, vector<128x16xf32>, vector<1x16xf32> -> vector<1x16xf32>
    %cst_579 = arith.constant 7.812500e-03 : f32
    %738 = vector.broadcast %cst_579 : f32 to vector<1x16xf32>
    %739 = arith.mulf %737, %738 : vector<1x16xf32>
    %cst_580 = arith.constant dense<0.000000e+00> : vector<1x128xf32>
    %740 = tpu.matmul %739, %702, %cst_580 {dimension_numbers = #tpu.dot_dimension_numbers<[1], [0], [0], [1], [0, 0, 1, 1], [], []>} : vector<1x16xf32>, vector<16x128xf32>, vector<1x128xf32> -> vector<1x128xf32>
    %741 = vector.broadcast %740 : vector<1x128xf32> to vector<16x128xf32>
    %742 = arith.subf %734, %741 : vector<16x128xf32>
    %743 = arith.mulf %742, %742 : vector<16x128xf32>
    %cst_581 = arith.constant dense<0.000000e+00> : vector<128xf32>
    %744 = vector.multi_reduction <add>, %743, %cst_581 [0] : vector<16x128xf32> to vector<128xf32>
    %745 = vector.shape_cast %744 : vector<128xf32> to vector<1x128xf32>
    %cst_582 = arith.constant dense<0.000000e+00> : vector<1x16xf32>
    %746 = tpu.matmul %745, %701, %cst_582 {dimension_numbers = #tpu.dot_dimension_numbers<[1], [0], [0], [1], [0, 0, 1, 1], [], []>} : vector<1x128xf32>, vector<128x16xf32>, vector<1x16xf32> -> vector<1x16xf32>
    %cst_583 = arith.constant 7.812500e-03 : f32
    %747 = vector.broadcast %cst_583 : f32 to vector<1x16xf32>
    %748 = arith.mulf %746, %747 : vector<1x16xf32>
    %cst_584 = arith.constant 9.99999974E-6 : f32
    %749 = vector.broadcast %cst_584 : f32 to vector<1x16xf32>
    %750 = arith.addf %748, %749 : vector<1x16xf32>
    %751 = math.rsqrt %750 : vector<1x16xf32>
    %752 = arith.mulf %699, %751 : vector<1x16xf32>
    %753 = arith.mulf %739, %752 : vector<1x16xf32>
    %754 = arith.subf %700, %753 : vector<1x16xf32>
    %cst_585 = arith.constant dense<0.000000e+00> : vector<1x128xf32>
    %755 = tpu.matmul %752, %702, %cst_585 {dimension_numbers = #tpu.dot_dimension_numbers<[1], [0], [0], [1], [0, 0, 1, 1], [], []>} : vector<1x16xf32>, vector<16x128xf32>, vector<1x128xf32> -> vector<1x128xf32>
    %cst_586 = arith.constant dense<0.000000e+00> : vector<1x128xf32>
    %756 = tpu.matmul %754, %702, %cst_586 {dimension_numbers = #tpu.dot_dimension_numbers<[1], [0], [0], [1], [0, 0, 1, 1], [], []>} : vector<1x16xf32>, vector<16x128xf32>, vector<1x128xf32> -> vector<1x128xf32>
    %757 = vector.broadcast %755 : vector<1x128xf32> to vector<16x128xf32>
    %758 = arith.mulf %734, %757 : vector<16x128xf32>
    %759 = vector.broadcast %756 : vector<1x128xf32> to vector<16x128xf32>
    %760 = arith.addf %758, %759 : vector<16x128xf32>
    %cst_587 = arith.constant 0.000000e+00 : f32
    %761 = vector.broadcast %cst_587 : f32 to vector<16x128xf32>
    %762 = arith.maximumf %760, %761 : vector<16x128xf32>
    %c0_588 = arith.constant 0 : index
    %c0_589 = arith.constant 0 : index
    %763 = vector.load %arg33[%c0_588, %c0_589] : memref<1x8xf32, #tpu.memory_space<vmem>>, vector<1x8xf32>
    %c0_590 = arith.constant 0 : index
    %c0_591 = arith.constant 0 : index
    %764 = vector.load %arg34[%c0_590, %c0_591] : memref<1x8xf32, #tpu.memory_space<vmem>>, vector<1x8xf32>
    %c0_592 = arith.constant 0 : index
    %c0_593 = arith.constant 0 : index
    %765 = vector.load %arg35[%c0_592, %c0_593] : memref<128x8xf32, #tpu.memory_space<vmem>>, vector<128x8xf32>
    %c0_594 = arith.constant 0 : index
    %c0_595 = arith.constant 0 : index
    %766 = vector.load %arg36[%c0_594, %c0_595] : memref<8x128xf32, #tpu.memory_space<vmem>>, vector<8x128xf32>
    %767 = arith.truncf %762 : vector<16x128xf32> to vector<16x128xbf16>
    %c0_596 = arith.constant 0 : index
    %c0_597 = arith.constant 0 : index
    %c0_598 = arith.constant 0 : index
    %768 = vector.load %arg31[%c0_596, %c0_597, %c0_598] : memref<4x32x16xbf16, #tpu.memory_space<vmem>>, vector<1x32x16xbf16>
    %769 = vector.shape_cast %768 : vector<1x32x16xbf16> to vector<32x16xbf16>
    %cst_599 = arith.constant dense<0.000000e+00> : vector<32x128xf32>
    %770 = tpu.matmul %769, %767, %cst_599 {dimension_numbers = #tpu.dot_dimension_numbers<[1], [0], [0], [1], [0, 0, 1, 1], [], []>} : vector<32x16xbf16>, vector<16x128xbf16>, vector<32x128xf32> -> vector<32x128xf32>
    %771 = arith.truncf %770 : vector<32x128xf32> to vector<32x128xbf16>
    %c0_600 = arith.constant 0 : index
    %c0_601 = arith.constant 0 : index
    %c0_602 = arith.constant 0 : index
    %772 = vector.load %arg32[%c0_600, %c0_601, %c0_602] : memref<4x128x128xbf16, #tpu.memory_space<vmem>>, vector<1x128x128xbf16>
    %773 = vector.shape_cast %772 : vector<1x128x128xbf16> to vector<128x128xbf16>
    %cst_603 = arith.constant dense<0.000000e+00> : vector<32x128xf32>
    %774 = tpu.matmul %771, %773, %cst_603 {dimension_numbers = #tpu.dot_dimension_numbers<[1], [0], [0], [1], [0, 0, 1, 1], [], []>} : vector<32x128xbf16>, vector<128x128xbf16>, vector<32x128xf32> -> vector<32x128xf32>
    %c1_604 = arith.constant 1 : index
    %c0_605 = arith.constant 0 : index
    %c0_606 = arith.constant 0 : index
    %775 = vector.load %arg31[%c1_604, %c0_605, %c0_606] : memref<4x32x16xbf16, #tpu.memory_space<vmem>>, vector<1x32x16xbf16>
    %776 = vector.shape_cast %775 : vector<1x32x16xbf16> to vector<32x16xbf16>
    %cst_607 = arith.constant dense<0.000000e+00> : vector<32x128xf32>
    %777 = tpu.matmul %776, %767, %cst_607 {dimension_numbers = #tpu.dot_dimension_numbers<[1], [0], [0], [1], [0, 0, 1, 1], [], []>} : vector<32x16xbf16>, vector<16x128xbf16>, vector<32x128xf32> -> vector<32x128xf32>
    %778 = arith.truncf %777 : vector<32x128xf32> to vector<32x128xbf16>
    %c1_608 = arith.constant 1 : index
    %c0_609 = arith.constant 0 : index
    %c0_610 = arith.constant 0 : index
    %779 = vector.load %arg32[%c1_608, %c0_609, %c0_610] : memref<4x128x128xbf16, #tpu.memory_space<vmem>>, vector<1x128x128xbf16>
    %780 = vector.shape_cast %779 : vector<1x128x128xbf16> to vector<128x128xbf16>
    %cst_611 = arith.constant dense<0.000000e+00> : vector<32x128xf32>
    %781 = tpu.matmul %778, %780, %cst_611 {dimension_numbers = #tpu.dot_dimension_numbers<[1], [0], [0], [1], [0, 0, 1, 1], [], []>} : vector<32x128xbf16>, vector<128x128xbf16>, vector<32x128xf32> -> vector<32x128xf32>
    %782 = arith.addf %774, %781 : vector<32x128xf32>
    %c2_612 = arith.constant 2 : index
    %c0_613 = arith.constant 0 : index
    %c0_614 = arith.constant 0 : index
    %783 = vector.load %arg31[%c2_612, %c0_613, %c0_614] : memref<4x32x16xbf16, #tpu.memory_space<vmem>>, vector<1x32x16xbf16>
    %784 = vector.shape_cast %783 : vector<1x32x16xbf16> to vector<32x16xbf16>
    %cst_615 = arith.constant dense<0.000000e+00> : vector<32x128xf32>
    %785 = tpu.matmul %784, %767, %cst_615 {dimension_numbers = #tpu.dot_dimension_numbers<[1], [0], [0], [1], [0, 0, 1, 1], [], []>} : vector<32x16xbf16>, vector<16x128xbf16>, vector<32x128xf32> -> vector<32x128xf32>
    %786 = arith.truncf %785 : vector<32x128xf32> to vector<32x128xbf16>
    %c2_616 = arith.constant 2 : index
    %c0_617 = arith.constant 0 : index
    %c0_618 = arith.constant 0 : index
    %787 = vector.load %arg32[%c2_616, %c0_617, %c0_618] : memref<4x128x128xbf16, #tpu.memory_space<vmem>>, vector<1x128x128xbf16>
    %788 = vector.shape_cast %787 : vector<1x128x128xbf16> to vector<128x128xbf16>
    %cst_619 = arith.constant dense<0.000000e+00> : vector<32x128xf32>
    %789 = tpu.matmul %786, %788, %cst_619 {dimension_numbers = #tpu.dot_dimension_numbers<[1], [0], [0], [1], [0, 0, 1, 1], [], []>} : vector<32x128xbf16>, vector<128x128xbf16>, vector<32x128xf32> -> vector<32x128xf32>
    %790 = arith.addf %782, %789 : vector<32x128xf32>
    %c3_620 = arith.constant 3 : index
    %c0_621 = arith.constant 0 : index
    %c0_622 = arith.constant 0 : index
    %791 = vector.load %arg31[%c3_620, %c0_621, %c0_622] : memref<4x32x16xbf16, #tpu.memory_space<vmem>>, vector<1x32x16xbf16>
    %792 = vector.shape_cast %791 : vector<1x32x16xbf16> to vector<32x16xbf16>
    %cst_623 = arith.constant dense<0.000000e+00> : vector<32x128xf32>
    %793 = tpu.matmul %792, %767, %cst_623 {dimension_numbers = #tpu.dot_dimension_numbers<[1], [0], [0], [1], [0, 0, 1, 1], [], []>} : vector<32x16xbf16>, vector<16x128xbf16>, vector<32x128xf32> -> vector<32x128xf32>
    %794 = arith.truncf %793 : vector<32x128xf32> to vector<32x128xbf16>
    %c3_624 = arith.constant 3 : index
    %c0_625 = arith.constant 0 : index
    %c0_626 = arith.constant 0 : index
    %795 = vector.load %arg32[%c3_624, %c0_625, %c0_626] : memref<4x128x128xbf16, #tpu.memory_space<vmem>>, vector<1x128x128xbf16>
    %796 = vector.shape_cast %795 : vector<1x128x128xbf16> to vector<128x128xbf16>
    %cst_627 = arith.constant dense<0.000000e+00> : vector<32x128xf32>
    %797 = tpu.matmul %794, %796, %cst_627 {dimension_numbers = #tpu.dot_dimension_numbers<[1], [0], [0], [1], [0, 0, 1, 1], [], []>} : vector<32x128xbf16>, vector<128x128xbf16>, vector<32x128xf32> -> vector<32x128xf32>
    %798 = arith.addf %790, %797 : vector<32x128xf32>
    %cst_628 = arith.constant dense<0.000000e+00> : vector<128xf32>
    %799 = vector.multi_reduction <add>, %798, %cst_628 [0] : vector<32x128xf32> to vector<128xf32>
    %800 = vector.shape_cast %799 : vector<128xf32> to vector<1x128xf32>
    %cst_629 = arith.constant dense<0.000000e+00> : vector<1x8xf32>
    %801 = tpu.matmul %800, %765, %cst_629 {dimension_numbers = #tpu.dot_dimension_numbers<[1], [0], [0], [1], [0, 0, 1, 1], [], []>} : vector<1x128xf32>, vector<128x8xf32>, vector<1x8xf32> -> vector<1x8xf32>
    %cst_630 = arith.constant 0.001953125 : f32
    %802 = vector.broadcast %cst_630 : f32 to vector<1x8xf32>
    %803 = arith.mulf %801, %802 : vector<1x8xf32>
    %cst_631 = arith.constant dense<0.000000e+00> : vector<1x128xf32>
    %804 = tpu.matmul %803, %766, %cst_631 {dimension_numbers = #tpu.dot_dimension_numbers<[1], [0], [0], [1], [0, 0, 1, 1], [], []>} : vector<1x8xf32>, vector<8x128xf32>, vector<1x128xf32> -> vector<1x128xf32>
    %805 = vector.broadcast %804 : vector<1x128xf32> to vector<32x128xf32>
    %806 = arith.subf %798, %805 : vector<32x128xf32>
    %807 = arith.mulf %806, %806 : vector<32x128xf32>
    %cst_632 = arith.constant dense<0.000000e+00> : vector<128xf32>
    %808 = vector.multi_reduction <add>, %807, %cst_632 [0] : vector<32x128xf32> to vector<128xf32>
    %809 = vector.shape_cast %808 : vector<128xf32> to vector<1x128xf32>
    %cst_633 = arith.constant dense<0.000000e+00> : vector<1x8xf32>
    %810 = tpu.matmul %809, %765, %cst_633 {dimension_numbers = #tpu.dot_dimension_numbers<[1], [0], [0], [1], [0, 0, 1, 1], [], []>} : vector<1x128xf32>, vector<128x8xf32>, vector<1x8xf32> -> vector<1x8xf32>
    %cst_634 = arith.constant 0.001953125 : f32
    %811 = vector.broadcast %cst_634 : f32 to vector<1x8xf32>
    %812 = arith.mulf %810, %811 : vector<1x8xf32>
    %cst_635 = arith.constant 9.99999974E-6 : f32
    %813 = vector.broadcast %cst_635 : f32 to vector<1x8xf32>
    %814 = arith.addf %812, %813 : vector<1x8xf32>
    %815 = math.rsqrt %814 : vector<1x8xf32>
    %816 = arith.mulf %763, %815 : vector<1x8xf32>
    %817 = arith.mulf %803, %816 : vector<1x8xf32>
    %818 = arith.subf %764, %817 : vector<1x8xf32>
    %cst_636 = arith.constant dense<0.000000e+00> : vector<1x128xf32>
    %819 = tpu.matmul %816, %766, %cst_636 {dimension_numbers = #tpu.dot_dimension_numbers<[1], [0], [0], [1], [0, 0, 1, 1], [], []>} : vector<1x8xf32>, vector<8x128xf32>, vector<1x128xf32> -> vector<1x128xf32>
    %cst_637 = arith.constant dense<0.000000e+00> : vector<1x128xf32>
    %820 = tpu.matmul %818, %766, %cst_637 {dimension_numbers = #tpu.dot_dimension_numbers<[1], [0], [0], [1], [0, 0, 1, 1], [], []>} : vector<1x8xf32>, vector<8x128xf32>, vector<1x128xf32> -> vector<1x128xf32>
    %821 = vector.broadcast %819 : vector<1x128xf32> to vector<32x128xf32>
    %822 = arith.mulf %798, %821 : vector<32x128xf32>
    %823 = vector.broadcast %820 : vector<1x128xf32> to vector<32x128xf32>
    %824 = arith.addf %822, %823 : vector<32x128xf32>
    %cst_638 = arith.constant 0.000000e+00 : f32
    %825 = vector.broadcast %cst_638 : f32 to vector<32x128xf32>
    %826 = arith.maximumf %824, %825 : vector<32x128xf32>
    %c0_639 = arith.constant 0 : index
    %c0_640 = arith.constant 0 : index
    %827 = vector.load %arg39[%c0_639, %c0_640] : memref<1x3xf32, #tpu.memory_space<vmem>>, vector<1x3xf32>
    %c0_641 = arith.constant 0 : index
    %c0_642 = arith.constant 0 : index
    %828 = vector.load %arg40[%c0_641, %c0_642] : memref<1x3xf32, #tpu.memory_space<vmem>>, vector<1x3xf32>
    %c0_643 = arith.constant 0 : index
    %c0_644 = arith.constant 0 : index
    %829 = vector.load %arg41[%c0_643, %c0_644] : memref<48x3xf32, #tpu.memory_space<vmem>>, vector<48x3xf32>
    %c0_645 = arith.constant 0 : index
    %c0_646 = arith.constant 0 : index
    %830 = vector.load %arg42[%c0_645, %c0_646] : memref<3x48xf32, #tpu.memory_space<vmem>>, vector<3x48xf32>
    %831 = arith.truncf %826 : vector<32x128xf32> to vector<32x128xbf16>
    %c0_647 = arith.constant 0 : index
    %c0_648 = arith.constant 0 : index
    %c0_649 = arith.constant 0 : index
    %832 = vector.load %arg37[%c0_647, %c0_648, %c0_649] : memref<3x32x32xbf16, #tpu.memory_space<vmem>>, vector<1x32x32xbf16>
    %833 = vector.shape_cast %832 : vector<1x32x32xbf16> to vector<32x32xbf16>
    %cst_650 = arith.constant dense<0.000000e+00> : vector<32x128xf32>
    %834 = tpu.matmul %833, %831, %cst_650 {dimension_numbers = #tpu.dot_dimension_numbers<[1], [0], [0], [1], [0, 0, 1, 1], [], []>} : vector<32x32xbf16>, vector<32x128xbf16>, vector<32x128xf32> -> vector<32x128xf32>
    %835 = arith.truncf %834 : vector<32x128xf32> to vector<32x128xbf16>
    %c0_651 = arith.constant 0 : index
    %c0_652 = arith.constant 0 : index
    %c0_653 = arith.constant 0 : index
    %836 = vector.load %arg38[%c0_651, %c0_652, %c0_653] : memref<3x128x48xbf16, #tpu.memory_space<vmem>>, vector<1x128x48xbf16>
    %837 = vector.shape_cast %836 : vector<1x128x48xbf16> to vector<128x48xbf16>
    %cst_654 = arith.constant dense<0.000000e+00> : vector<32x48xf32>
    %838 = tpu.matmul %835, %837, %cst_654 {dimension_numbers = #tpu.dot_dimension_numbers<[1], [0], [0], [1], [0, 0, 1, 1], [], []>} : vector<32x128xbf16>, vector<128x48xbf16>, vector<32x48xf32> -> vector<32x48xf32>
    %c1_655 = arith.constant 1 : index
    %c0_656 = arith.constant 0 : index
    %c0_657 = arith.constant 0 : index
    %839 = vector.load %arg37[%c1_655, %c0_656, %c0_657] : memref<3x32x32xbf16, #tpu.memory_space<vmem>>, vector<1x32x32xbf16>
    %840 = vector.shape_cast %839 : vector<1x32x32xbf16> to vector<32x32xbf16>
    %cst_658 = arith.constant dense<0.000000e+00> : vector<32x128xf32>
    %841 = tpu.matmul %840, %831, %cst_658 {dimension_numbers = #tpu.dot_dimension_numbers<[1], [0], [0], [1], [0, 0, 1, 1], [], []>} : vector<32x32xbf16>, vector<32x128xbf16>, vector<32x128xf32> -> vector<32x128xf32>
    %842 = arith.truncf %841 : vector<32x128xf32> to vector<32x128xbf16>
    %c1_659 = arith.constant 1 : index
    %c0_660 = arith.constant 0 : index
    %c0_661 = arith.constant 0 : index
    %843 = vector.load %arg38[%c1_659, %c0_660, %c0_661] : memref<3x128x48xbf16, #tpu.memory_space<vmem>>, vector<1x128x48xbf16>
    %844 = vector.shape_cast %843 : vector<1x128x48xbf16> to vector<128x48xbf16>
    %cst_662 = arith.constant dense<0.000000e+00> : vector<32x48xf32>
    %845 = tpu.matmul %842, %844, %cst_662 {dimension_numbers = #tpu.dot_dimension_numbers<[1], [0], [0], [1], [0, 0, 1, 1], [], []>} : vector<32x128xbf16>, vector<128x48xbf16>, vector<32x48xf32> -> vector<32x48xf32>
    %846 = arith.addf %838, %845 : vector<32x48xf32>
    %c2_663 = arith.constant 2 : index
    %c0_664 = arith.constant 0 : index
    %c0_665 = arith.constant 0 : index
    %847 = vector.load %arg37[%c2_663, %c0_664, %c0_665] : memref<3x32x32xbf16, #tpu.memory_space<vmem>>, vector<1x32x32xbf16>
    %848 = vector.shape_cast %847 : vector<1x32x32xbf16> to vector<32x32xbf16>
    %cst_666 = arith.constant dense<0.000000e+00> : vector<32x128xf32>
    %849 = tpu.matmul %848, %831, %cst_666 {dimension_numbers = #tpu.dot_dimension_numbers<[1], [0], [0], [1], [0, 0, 1, 1], [], []>} : vector<32x32xbf16>, vector<32x128xbf16>, vector<32x128xf32> -> vector<32x128xf32>
    %850 = arith.truncf %849 : vector<32x128xf32> to vector<32x128xbf16>
    %c2_667 = arith.constant 2 : index
    %c0_668 = arith.constant 0 : index
    %c0_669 = arith.constant 0 : index
    %851 = vector.load %arg38[%c2_667, %c0_668, %c0_669] : memref<3x128x48xbf16, #tpu.memory_space<vmem>>, vector<1x128x48xbf16>
    %852 = vector.shape_cast %851 : vector<1x128x48xbf16> to vector<128x48xbf16>
    %cst_670 = arith.constant dense<0.000000e+00> : vector<32x48xf32>
    %853 = tpu.matmul %850, %852, %cst_670 {dimension_numbers = #tpu.dot_dimension_numbers<[1], [0], [0], [1], [0, 0, 1, 1], [], []>} : vector<32x128xbf16>, vector<128x48xbf16>, vector<32x48xf32> -> vector<32x48xf32>
    %854 = arith.addf %846, %853 : vector<32x48xf32>
    %cst_671 = arith.constant dense<0.000000e+00> : vector<48xf32>
    %855 = vector.multi_reduction <add>, %854, %cst_671 [0] : vector<32x48xf32> to vector<48xf32>
    %856 = vector.shape_cast %855 : vector<48xf32> to vector<1x48xf32>
    %cst_672 = arith.constant dense<0.000000e+00> : vector<1x3xf32>
    %857 = tpu.matmul %856, %829, %cst_672 {dimension_numbers = #tpu.dot_dimension_numbers<[1], [0], [0], [1], [0, 0, 1, 1], [], []>} : vector<1x48xf32>, vector<48x3xf32>, vector<1x3xf32> -> vector<1x3xf32>
    %cst_673 = arith.constant 0.001953125 : f32
    %858 = vector.broadcast %cst_673 : f32 to vector<1x3xf32>
    %859 = arith.mulf %857, %858 : vector<1x3xf32>
    %cst_674 = arith.constant dense<0.000000e+00> : vector<1x48xf32>
    %860 = tpu.matmul %859, %830, %cst_674 {dimension_numbers = #tpu.dot_dimension_numbers<[1], [0], [0], [1], [0, 0, 1, 1], [], []>} : vector<1x3xf32>, vector<3x48xf32>, vector<1x48xf32> -> vector<1x48xf32>
    %861 = vector.broadcast %860 : vector<1x48xf32> to vector<32x48xf32>
    %862 = arith.subf %854, %861 : vector<32x48xf32>
    %863 = arith.mulf %862, %862 : vector<32x48xf32>
    %cst_675 = arith.constant dense<0.000000e+00> : vector<48xf32>
    %864 = vector.multi_reduction <add>, %863, %cst_675 [0] : vector<32x48xf32> to vector<48xf32>
    %865 = vector.shape_cast %864 : vector<48xf32> to vector<1x48xf32>
    %cst_676 = arith.constant dense<0.000000e+00> : vector<1x3xf32>
    %866 = tpu.matmul %865, %829, %cst_676 {dimension_numbers = #tpu.dot_dimension_numbers<[1], [0], [0], [1], [0, 0, 1, 1], [], []>} : vector<1x48xf32>, vector<48x3xf32>, vector<1x3xf32> -> vector<1x3xf32>
    %cst_677 = arith.constant 0.001953125 : f32
    %867 = vector.broadcast %cst_677 : f32 to vector<1x3xf32>
    %868 = arith.mulf %866, %867 : vector<1x3xf32>
    %cst_678 = arith.constant 9.99999974E-6 : f32
    %869 = vector.broadcast %cst_678 : f32 to vector<1x3xf32>
    %870 = arith.addf %868, %869 : vector<1x3xf32>
    %871 = math.rsqrt %870 : vector<1x3xf32>
    %872 = arith.mulf %827, %871 : vector<1x3xf32>
    %873 = arith.mulf %859, %872 : vector<1x3xf32>
    %874 = arith.subf %828, %873 : vector<1x3xf32>
    %cst_679 = arith.constant dense<0.000000e+00> : vector<1x48xf32>
    %875 = tpu.matmul %872, %830, %cst_679 {dimension_numbers = #tpu.dot_dimension_numbers<[1], [0], [0], [1], [0, 0, 1, 1], [], []>} : vector<1x3xf32>, vector<3x48xf32>, vector<1x48xf32> -> vector<1x48xf32>
    %cst_680 = arith.constant dense<0.000000e+00> : vector<1x48xf32>
    %876 = tpu.matmul %874, %830, %cst_680 {dimension_numbers = #tpu.dot_dimension_numbers<[1], [0], [0], [1], [0, 0, 1, 1], [], []>} : vector<1x3xf32>, vector<3x48xf32>, vector<1x48xf32> -> vector<1x48xf32>
    %877 = vector.broadcast %875 : vector<1x48xf32> to vector<32x48xf32>
    %878 = arith.mulf %854, %877 : vector<32x48xf32>
    %879 = vector.broadcast %876 : vector<1x48xf32> to vector<32x48xf32>
    %880 = arith.addf %878, %879 : vector<32x48xf32>
    %cst_681 = arith.constant 0.000000e+00 : f32
    %881 = vector.broadcast %cst_681 : f32 to vector<32x48xf32>
    %882 = arith.maximumf %880, %881 : vector<32x48xf32>
    %c0_682 = arith.constant 0 : index
    %c0_683 = arith.constant 0 : index
    %883 = vector.load %arg43[%c0_682, %c0_683] : memref<32x48xf32, #tpu.memory_space<vmem>>, vector<32x48xf32>
    tpu.vector_store %arg43[%c0_682, %c0_683], %882 {strides = array<i32>} : memref<32x48xf32, #tpu.memory_space<vmem>>, vector<32x48xf32>,
    return
  }
}

</mosaic_0001>

<bundles_post_ra>
// kernel: generator1_forward.1
= control target key start
LH: loop header
LB: loop body
LE: loop exit
PB: predicated region body
PF: predicated region fallthrough
CT: control target
= control target key end

     0   :  { %s21563_s6 = smov 1   ;;  %s21564_s10 = smov 2   ;;  %s24136_s0 = inlined_call_operand.smem [shape: u32[44], index: -1, kind: input, shape index: {}] }
   0x1   :  { %s21651_s5 = sld [smem:[%s24136_s0]]   ;;  %s21565_s14 = smov 3  }
   0x2   :  { %s21656_s9 = sld [smem:[%s24136_s0 + %s21563_s6]]   ;;  %s21566_s18 = smov 4  }
   0x3   :  { %s21661_s13 = sld [smem:[%s24136_s0 + %s21564_s10]]   ;;  %s21567_s22 = smov 5  }
   0x4   :  { %s21666_s17 = sld [smem:[%s24136_s0 + %s21565_s14]]   ;;  %s21568_s26 = smov 6  }
   0x5   :  { %s21671_s21 = sld [smem:[%s24136_s0 + %s21566_s18]]   ;;  %s21569_s30 = smov 7  }
   0x6   :  { %s21676_s25 = sld [smem:[%s24136_s0 + %s21567_s22]]   ;;  %s21570_s4 = smov 8  }
   0x7   :  { %24163 = sst [smem:[#allocation60_spill]] %s21651_s5  ;;  %s21571_s10 = smov 9  }
   0x8   :  { %s21681_s29 = sld [smem:[%s24136_s0 + %s21568_s26]]   ;;  %s21572_s15 = smov 10  }
   0x9   :  { %s21686_s3 = sld [smem:[%s24136_s0 + %s21569_s30]]   ;;  %s21573_s20 = smov 11  }
   0xa   :  { %24164 = sst [smem:[#allocation61_spill]] %s21666_s17  ;;  %s21574_s26 = smov 12  }
   0xb   :  { %s21691_s8 = sld [smem:[%s24136_s0 + %s21570_s4]]   ;;  %s21575_s1 = smov 13  }
   0xc   :  { %24165 = sst [smem:[#allocation62_spill]] %s21676_s25  ;;  %s21576_s7 = smov 14  }
   0xd   :  { %s21696_s14 = sld [smem:[%s24136_s0 + %s21571_s10]]   ;;  %s21578_s22 = smov 16  }
   0xe   :  { %24166 = sst [smem:[#allocation63_spill]] %s21681_s29  ;;  %s21579_s28 = smov 17  }
   0xf   :  { %s21701_s19 = sld [smem:[%s24136_s0 + %s21572_s15]]   ;;  %s21577_s15 = smov 15  }
  0x10   :  { %s21706_s24 = sld [smem:[%s24136_s0 + %s21573_s20]]  }
  0x11   :  { %24167 = sst [smem:[#allocation64_spill]] %s21691_s8 }
  0x12   :  { %s21711_s30 = sld [smem:[%s24136_s0 + %s21574_s26]]  }
  0x13   :  { %s21716_s6 = sld [smem:[%s24136_s0 + %s21575_s1]]  }
  0x14   :  { %s21721_s12 = sld [smem:[%s24136_s0 + %s21576_s7]]   ;;  %s21580_s7 = smov 18  }
  0x15   :  { %24168 = sst [smem:[#allocation65_spill]] %s21701_s19 }
  0x16   :  { %24169 = sst [smem:[#allocation66_spill]] %s21706_s24 }
  0x17   :  { %s21726_s20 = sld [smem:[%s24136_s0 + %s21577_s15]]   ;;  %s21581_s15 = smov 19  }
  0x18   :  { %s21731_s27 = sld [smem:[%s24136_s0 + %s21578_s22]]   ;;  %s21582_s22 = smov 20  }
  0x19   :  { %24170 = sst [smem:[#allocation67_spill]] %s21716_s6 }
  0x1a   :  { %s21736_s4 = sld [smem:[%s24136_s0 + %s21579_s28]]   ;;  %s21583_s28 = smov 21  }
  0x1b   :  { %s21741_s24 = sld [smem:[%s24136_s0 + %s21580_s7]]   ;;  %s21584_s7 = smov 22  }
  0x1c   :  { %s21746_s25 = sld [smem:[%s24136_s0 + %s21581_s15]]   ;;  %s21585_s15 = smov 23  }
  0x1d   :  { %24171 = sst [smem:[#allocation68_spill]] %s21726_s20 }
  0x1e   :  { %s21751_s5 = sld [smem:[%s24136_s0 + %s21582_s22]]   ;;  %s21586_s22 = smov 24  }
  0x1f   :  { %s21766_s20 = sld [smem:[%s24136_s0 + %s21585_s15]]   ;;  %s21589_s15 = smov 27  }
  0x20   :  { %24172 = sst [smem:[#allocation69_spill]] %s21736_s4 }
  0x21   :  { %24173 = sst [smem:[#allocation70_spill]] %s21741_s24 }
  0x22   :  { %s21756_s4 = sld [smem:[%s24136_s0 + %s21583_s28]]   ;;  %s21587_s28 = smov 25  }
  0x23   :  { %s21761_s24 = sld [smem:[%s24136_s0 + %s21584_s7]]   ;;  %s21588_s7 = smov 26  }
  0x24   :  { %24174 = sst [smem:[#allocation71_spill]] %s21751_s5 }
  0x25   :  { %24176 = sst [smem:[#allocation73_spill]] %s21766_s20 }
  0x26   :  { %s21771_s5 = sld [smem:[%s24136_s0 + %s21586_s22]]   ;;  %s21590_s22 = smov 28  }
  0x27   :  { %s21781_s6 = sld [smem:[%s24136_s0 + %s21588_s7]]   ;;  %s21592_s7 = smov 30  }
  0x28   :  { %24175 = sst [smem:[#allocation72_spill]] %s21756_s4 }
  0x29   :  { %s21776_s4 = sld [smem:[%s24136_s0 + %s21587_s28]]   ;;  %s21591_s28 = smov 29  }
  0x2a   :  { %s21786_s20 = sld [smem:[%s24136_s0 + %s21589_s15]]   ;;  %s21593_s15 = smov 31  }
  0x2b   :  { %s21801_s19 = sld [smem:[%s24136_s0 + %s21592_s7]]   ;;  %s21596_s7 = smov 34  }
  0x2c   :  { %24177 = sst [smem:[#allocation74_spill]] %s21771_s5 }
  0x2d   :  { %s21791_s5 = sld [smem:[%s24136_s0 + %s21590_s22]]   ;;  %s21594_s22 = smov 32  }
  0x2e   :  { %s21811_s8 = sld [smem:[%s24136_s0 + %s21594_s22]]   ;;  %s21598_s22 = smov 36  }
  0x2f   :  { %24178 = sst [smem:[#allocation75_spill]] %s21776_s4 }
  0x30   :  { %24179 = sst [smem:[#allocation76_spill]] %s21786_s20 }
  0x31   :  { %s21796_s4 = sld [smem:[%s24136_s0 + %s21591_s28]]   ;;  %s21595_s28 = smov 33  }
  0x32   :  { %24181 = sst [smem:[#allocation78_spill]] %s21801_s19 }
  0x33   :  { %s21806_s20 = sld [smem:[%s24136_s0 + %s21593_s15]]   ;;  %s21597_s15 = smov 35  }
  0x34   :  { %24183 = sst [smem:[#allocation80_spill]] %s21811_s8 }
  0x35   :  { %s21821_s19 = sld [smem:[%s24136_s0 + %s21596_s7]]   ;;  %s21600_s7 = smov 38  }
  0x36   :  { %s21831_s8 = sld [smem:[%s24136_s0 + %s21598_s22]]   ;;  %s21602_s22 = smov 40  }
  0x37   :  { %24180 = sst [smem:[#allocation77_spill]] %s21796_s4 }
  0x38   :  { %s21816_s4 = sld [smem:[%s24136_s0 + %s21595_s28]]   ;;  %s21599_s28 = smov 37  }
  0x39   :  { %24182 = sst [smem:[#allocation79_spill]] %s21806_s20 }
  0x3a   :  { %s21826_s20 = sld [smem:[%s24136_s0 + %s21597_s15]]   ;;  %s21601_s15 = smov 39  }
  0x3b   :  { %24184 = sst [smem:[#allocation81_spill]] %s21821_s19 }
  0x3c   :  { %s21836_s29 = sld [smem:[%s24136_s0 + %s21599_s28]]   ;;  %s21603_s28 = smov 41  }
  0x3d   :  { %s21841_s19 = sld [smem:[%s24136_s0 + %s21600_s7]]   ;;  %s21604_s7 = smov 42  }
  0x3e   :  { %s21851_s17 = sld [smem:[%s24136_s0 + %s21602_s22]]  }
  0x40   :  { %24185 = sst [smem:[#allocation82_spill]] %s21826_s20 }
  0x41   :  { %s21846_s20 = sld [smem:[%s24136_s0 + %s21601_s15]]   ;;  %s21605_s15 = smov 43  }
  0x42   :  { %24186 = sst [smem:[#allocation83_spill]] %s21836_s29 }
  0x43   :  { %24187 = sst [smem:[#allocation84_spill]] %s21841_s19 }
  0x44   :  { %s21856_s29 = sld [smem:[%s24136_s0 + %s21603_s28]]  }
  0x45   :  { %s21861_s19 = sld [smem:[%s24136_s0 + %s21604_s7]]  }
  0x47   :  { %24188 = sst [smem:[#allocation85_spill]] %s21846_s20 }
  0x48   :  { %s21866_s20 = sld [smem:[%s24136_s0 + %s21605_s15]]  }
  0x49   :  { %92 = vsyncpa [#allocation3], 0 }
  0x4a   :  { %93 = vsyncpa [#allocation5], 0 }
  0x4b   :  { %94 = vsyncpa [#allocation8], 0 }
  0x4c   :  { %95 = vsyncpa [#allocation11], 0 }
  0x4d   :  { %96 = vsyncpa [#allocation14], 0 }
  0x4e   :  { %97 = vsyncpa [#allocation17], 0 }
  0x4f   :  { %98 = vsyncpa [#allocation20], 0 }
  0x50   :  { %99 = vsyncpa [#allocation23], 0 }
  0x51   :  { %100 = vsyncpa [#allocation26], 0 }
  0x52   :  { %101 = vsyncpa [#allocation29], 0 }
  0x53   :  { %102 = vsyncpa [#allocation32], 0 }
  0x54   :  { %103 = vsyncpa [#allocation35], 0 }
  0x55   :  { %104 = vsyncpa [#allocation38], 0 }
  0x56   :  { %105 = vsyncpa [#allocation41], 0 }
  0x57   :  { %106 = vsyncpa [#allocation44], 0  ;;  %s21606_s0 = smov [#allocation4]   ;;  %s21607_s23 = smov [#allocation7]  }
  0x58   :  { %s126_s22 = sshll.u32 %s21606_s0, 4  ;;  %s149_s26 = sshll.u32 %s21607_s23, 4  ;;  %s127_s22 = int_to_ptr.vmem [resolvable:$true] %s126_s22  ;;  %s21868_s26 = int_to_ptr.vmem [resolvable:$true] %s149_s26 }
  0x59   :  { %s20917_s28 = scalar_lea.hbm %s21661_s13, 1152 }
  0x5a   :  { %p20918_p0 = scmp.ne.s32.totalorder %s21661_s13, %s20917_s28  ;;  %p20921_p1 = scmp.lt.u32.totalorder %s20917_s28, %s21661_s13 }
  0x5c   :  { %p20923_p2 = pnand %p20921_p1, %p20918_p0 }
  0x5e   :  { %20926 = shalt.err (!%p20923_p2)
}
  0x5f   :  { %s20927_s1 = scalar_lea.vmem %s127_s22, 1152  ;;  %p20932_p4 = scmp.lt.s32.totalorder %s127_s22, %s127_s22 }
  0x60   :  { %p20928_p3 = scmp.ne.s32.totalorder %s127_s22, %s20927_s1  ;;  %p20933_p5 = scmp.lt.s32.totalorder %s20927_s1, %s20927_s1 }
  0x62   :  { %p20934_p6 = por %p20933_p5, %p20932_p4 }
  0x64   :  { %p20935_p7 = pnand %p20934_p6, %p20928_p3 }
  0x66   :  { %20938 = shalt.err (!%p20935_p7)
}
  0x67   :  { %s21608_s2 = smov 64   ;;  %s21609_s7 = smov 4  }
  0x68   :  { %132 = dma.hbm_to_vmem [thread:$0]  %s21661_s13, 1152, %s127_s22, [#allocation5], %s21608_s2, %s21608_s2, %s21609_s7  }
  0x69   :  { %s20939_s10 = scalar_lea.hbm %s21671_s21, 16 }
  0x6a   :  { %p20940_p8 = scmp.ne.s32.totalorder %s21671_s21, %s20939_s10  ;;  %p20943_p9 = scmp.lt.u32.totalorder %s20939_s10, %s21671_s21 }
  0x6c   :  { %p20945_p10 = pnand %p20943_p9, %p20940_p8 }
  0x6e   :  { %20948 = shalt.err (!%p20945_p10)
}
  0x6f   :  { %s20949_s11 = scalar_lea.vmem %s21868_s26, 16  ;;  %s20953_s15 = scalar_lea.vmem %s21868_s26, 32 }
  0x70   :  { %p20950_p11 = scmp.ne.s32.totalorder %s21868_s26, %s20949_s11  ;;  %p20954_p12 = scmp.lt.s32.totalorder %s21868_s26, %s21868_s26 }
  0x71   :  { %p20955_p13 = scmp.lt.s32.totalorder %s20953_s15, %s20949_s11 }
  0x73   :  { %p20956_p0 = por %p20955_p13, %p20954_p12 }
  0x75   :  { %p20957_p1 = pnand %p20956_p0, %p20950_p11 }
  0x77   :  { %20960 = shalt.err (!%p20957_p1)
}
  0x78   :  { %152 = dma.hbm_to_vmem [thread:$0]  %s21671_s21, 16, %s21868_s26, [#allocation8]  }
  0x79   :  { %s21610_s13 = smov [#allocation10]   ;;  %s21611_s18 = smov [#allocation13]  }
  0x7a   :  { %s170_s16 = sshll.u32 %s21610_s13, 4  ;;  %s195_s0 = sshll.u32 %s21611_s18, 4  ;;  %s171_s16 = int_to_ptr.vmem [resolvable:$true] %s170_s16  ;;  %s196_s0 = int_to_ptr.vmem [resolvable:$true] %s195_s0 }
  0x7b   :  { %s20961_s22 = scalar_lea.hbm %s21686_s3, 512 }
  0x7c   :  { %p20962_p2 = scmp.ne.s32.totalorder %s21686_s3, %s20961_s22  ;;  %p20965_p3 = scmp.lt.u32.totalorder %s20961_s22, %s21686_s3 }
  0x7e   :  { %p20967_p4 = pnand %p20965_p3, %p20962_p2 }
  0x80   :  { %20970 = shalt.err (!%p20967_p4)
}
  0x81   :  { %s20971_s23 = scalar_lea.vmem %s171_s16, 512  ;;  %p20976_p6 = scmp.lt.s32.totalorder %s171_s16, %s171_s16 }
  0x82   :  { %p20972_p5 = scmp.ne.s32.totalorder %s171_s16, %s20971_s23  ;;  %p20977_p7 = scmp.lt.s32.totalorder %s20971_s23, %s20971_s23 }
  0x84   :  { %p20978_p8 = por %p20977_p7, %p20976_p6 }
  0x86   :  { %p20979_p9 = pnand %p20978_p8, %p20972_p5 }
  0x88   :  { %20982 = shalt.err (!%p20979_p9)
}
  0x89   :  { %176 = dma.hbm_to_vmem [thread:$0]  %s21686_s3, 512, %s171_s16, [#allocation11], %s21608_s2, %s21608_s2, %s21609_s7  }
  0x8a   :  { %s20983_s21 = scalar_lea.hbm %s21696_s14, 16 }
  0x8b   :  { %p20984_p10 = scmp.ne.s32.totalorder %s21696_s14, %s20983_s21  ;;  %p20987_p11 = scmp.lt.u32.totalorder %s20983_s21, %s21696_s14 }
  0x8d   :  { %p20989_p12 = pnand %p20987_p11, %p20984_p10 }
  0x8f   :  { %20992 = shalt.err (!%p20989_p12)
}
  0x90   :  { %s20993_s26 = scalar_lea.vmem %s196_s0, 16  ;;  %s20997_s28 = scalar_lea.vmem %s196_s0, 32 }
  0x91   :  { %p20994_p13 = scmp.ne.s32.totalorder %s196_s0, %s20993_s26  ;;  %p20998_p0 = scmp.lt.s32.totalorder %s196_s0, %s196_s0 }
  0x92   :  { %p20999_p1 = scmp.lt.s32.totalorder %s20997_s28, %s20993_s26 }
  0x94   :  { %p21000_p2 = por %p20999_p1, %p20998_p0 }
  0x96   :  { %p21001_p3 = pnand %p21000_p2, %p20994_p13 }
  0x98   :  { %21004 = shalt.err (!%p21001_p3)
}
  0x99   :  { %198 = dma.hbm_to_vmem [thread:$0]  %s21696_s14, 16, %s196_s0, [#allocation14]  }
  0x9a   :  { %s21612_s1 = smov [#allocation16]   ;;  %s21005_s10 = scalar_lea.hbm %s21711_s30, 256 }
  0x9b   :  { %s216_s3 = sshll.u32 %s21612_s1, 4  ;;  %p21006_p4 = scmp.ne.s32.totalorder %s21711_s30, %s21005_s10  ;;  %s217_s3 = int_to_ptr.vmem [resolvable:$true] %s216_s3 }
  0x9c   :  { %p21009_p5 = scmp.lt.u32.totalorder %s21005_s10, %s21711_s30 }
  0x9e   :  { %p21011_p6 = pnand %p21009_p5, %p21006_p4 }
  0xa0   :  { %21014 = shalt.err (!%p21011_p6)
}
  0xa1   :  { %s21015_s11 = scalar_lea.vmem %s217_s3, 256  ;;  %p21020_p8 = scmp.lt.s32.totalorder %s217_s3, %s217_s3 }
  0xa2   :  { %p21016_p7 = scmp.ne.s32.totalorder %s217_s3, %s21015_s11  ;;  %p21021_p9 = scmp.lt.s32.totalorder %s21015_s11, %s21015_s11 }
  0xa4   :  { %p21022_p10 = por %p21021_p9, %p21020_p8 }
  0xa6   :  { %p21023_p11 = pnand %p21022_p10, %p21016_p7 }
  0xa8   :  { %21026 = shalt.err (!%p21023_p11)
}
  0xa9   :  { %s21613_s15 = smov 128   ;;  %s21614_s14 = smov 8  }
  0xaa   :  { %222 = dma.hbm_to_vmem [thread:$0]  %s21711_s30, 256, %s217_s3, [#allocation17], %s21613_s15, %s21613_s15, %s21614_s14  }
  0xab   :  { %s21615_s13 = smov [#allocation19]   ;;  %s21616_s18 = smov [#allocation22]  }
  0xac   :  { %s240_s16 = sshll.u32 %s21615_s13, 4  ;;  %s263_s0 = sshll.u32 %s21616_s18, 4  ;;  %s241_s16 = int_to_ptr.vmem [resolvable:$true] %s240_s16  ;;  %s264_s0 = int_to_ptr.vmem [resolvable:$true] %s263_s0 }
  0xad   :  { %s21027_s22 = scalar_lea.hbm %s21721_s12, 4096 }
  0xae   :  { %p21028_p12 = scmp.ne.s32.totalorder %s21721_s12, %s21027_s22  ;;  %p21031_p13 = scmp.lt.u32.totalorder %s21027_s22, %s21721_s12 }
  0xb0   :  { %p21033_p0 = pnand %p21031_p13, %p21028_p12 }
  0xb2   :  { %21036 = shalt.err (!%p21033_p0)
}
  0xb3   :  { %s21037_s23 = scalar_lea.vmem %s241_s16, 4096  ;;  %p21042_p2 = scmp.lt.s32.totalorder %s241_s16, %s241_s16 }
  0xb4   :  { %p21038_p1 = scmp.ne.s32.totalorder %s241_s16, %s21037_s23  ;;  %p21043_p3 = scmp.lt.s32.totalorder %s21037_s23, %s21037_s23 }
  0xb6   :  { %p21044_p4 = por %p21043_p3, %p21042_p2 }
  0xb8   :  { %p21045_p5 = pnand %p21044_p4, %p21038_p1 }
  0xba   :  { %21048 = shalt.err (!%p21045_p5)
}
  0xbb   :  { %246 = dma.hbm_to_vmem [thread:$0]  %s21721_s12, 4096, %s241_s16, [#allocation20], %s21608_s2, %s21608_s2, %s21609_s7  }
  0xbc   :  { %s21049_s30 = scalar_lea.hbm %s21731_s27, 16 }
  0xbd   :  { %p21050_p6 = scmp.ne.s32.totalorder %s21731_s27, %s21049_s30  ;;  %p21053_p7 = scmp.lt.u32.totalorder %s21049_s30, %s21731_s27 }
  0xbf   :  { %p21055_p8 = pnand %p21053_p7, %p21050_p6 }
  0xc1   :  { %21058 = shalt.err (!%p21055_p8)
}
  0xc2   :  { %s21059_s21 = scalar_lea.vmem %s264_s0, 16  ;;  %s21063_s26 = scalar_lea.vmem %s264_s0, 32 }
  0xc3   :  { %p21060_p9 = scmp.ne.s32.totalorder %s264_s0, %s21059_s21  ;;  %p21064_p10 = scmp.lt.s32.totalorder %s264_s0, %s264_s0 }
  0xc4   :  { %p21065_p11 = scmp.lt.s32.totalorder %s21063_s26, %s21059_s21 }
  0xc6   :  { %p21066_p12 = por %p21065_p11, %p21064_p10 }
  0xc8   :  { %p21067_p13 = pnand %p21066_p12, %p21060_p9 }
  0xca   :  { %21070 = shalt.err (!%p21067_p13)
}
  0xcb   :  { %266 = dma.hbm_to_vmem [thread:$0]  %s21731_s27, 16, %s264_s0, [#allocation23]  }
  0xcc   :  { %s21617_s12 = smov [#allocation25]   ;;  %s21071_s1 = scalar_lea.hbm %s21746_s25, 192 }
  0xcd   :  { %s286_s28 = sshll.u32 %s21617_s12, 4  ;;  %p21072_p0 = scmp.ne.s32.totalorder %s21746_s25, %s21071_s1  ;;  %s287_s28 = int_to_ptr.vmem [resolvable:$true] %s286_s28 }
  0xce   :  { %p21075_p1 = scmp.lt.u32.totalorder %s21071_s1, %s21746_s25 }
  0xd0   :  { %p21077_p2 = pnand %p21075_p1, %p21072_p0 }
  0xd2   :  { %21080 = shalt.err (!%p21077_p2)
}
  0xd3   :  { %s21081_s3 = scalar_lea.vmem %s287_s28, 192  ;;  %p21086_p4 = scmp.lt.s32.totalorder %s287_s28, %s287_s28 }
  0xd4   :  { %p21082_p3 = scmp.ne.s32.totalorder %s287_s28, %s21081_s3  ;;  %p21087_p5 = scmp.lt.s32.totalorder %s21081_s3, %s21081_s3 }
  0xd6   :  { %p21088_p6 = por %p21087_p5, %p21086_p4 }
  0xd8   :  { %p21089_p7 = pnand %p21088_p6, %p21082_p3 }
  0xda   :  { %21092 = shalt.err (!%p21089_p7)
}
  0xdb   :  { %292 = dma.hbm_to_vmem [thread:$0]  %s21746_s25, 192, %s287_s28, [#allocation26], %s21608_s2, %s21608_s2, %s21609_s7  }
  0xdc   :  { %s21618_s27 = smov [#allocation28]   ;;  %s21619_s11 = smov [#allocation31]  }
  0xdd   :  { %s312_s10 = sshll.u32 %s21618_s27, 4  ;;  %s340_s13 = sshll.u32 %s21619_s11, 4  ;;  %s313_s10 = int_to_ptr.vmem [resolvable:$true] %s312_s10  ;;  %s21923_s13 = int_to_ptr.vmem [resolvable:$true] %s340_s13 }
  0xde   :  { %s21093_s16 = scalar_lea.hbm %s21761_s24, 144 }
  0xdf   :  { %p21094_p8 = scmp.ne.s32.totalorder %s21761_s24, %s21093_s16  ;;  %p21097_p9 = scmp.lt.u32.totalorder %s21093_s16, %s21761_s24 }
  0xe1   :  { %p21099_p10 = pnand %p21097_p9, %p21094_p8 }
  0xe3   :  { %21102 = shalt.err (!%p21099_p10)
}
  0xe4   :  { %s21103_s18 = scalar_lea.vmem %s313_s10, 144  ;;  %s21107_s0 = scalar_lea.vmem %s313_s10, 160 }
  0xe5   :  { %p21104_p11 = scmp.ne.s32.totalorder %s313_s10, %s21103_s18  ;;  %p21108_p12 = scmp.lt.s32.totalorder %s313_s10, %s313_s10 }
  0xe6   :  { %p21109_p13 = scmp.lt.s32.totalorder %s21107_s0, %s21103_s18 }
  0xe8   :  { %p21110_p0 = por %p21109_p13, %p21108_p12 }
  0xea   :  { %p21111_p1 = pnand %p21110_p0, %p21104_p11 }
  0xec   :  { %21114 = shalt.err (!%p21111_p1)
}
  0xed   :  { %s21620_s25 = smov 16   ;;  %s21621_s22 = smov 1  }
  0xee   :  { %318 = dma.hbm_to_vmem [thread:$0]  %s21761_s24, 144, %s313_s10, [#allocation29], %s21620_s25, %s21620_s25, %s21621_s22  }
  0xef   :  { %s21115_s23 = scalar_lea.hbm %s21781_s6, 4096 }
  0xf0   :  { %p21116_p2 = scmp.ne.s32.totalorder %s21781_s6, %s21115_s23  ;;  %p21119_p3 = scmp.lt.u32.totalorder %s21115_s23, %s21781_s6 }
  0xf2   :  { %p21121_p4 = pnand %p21119_p3, %p21116_p2 }
  0xf4   :  { %21124 = shalt.err (!%p21121_p4)
}
  0xf5   :  { %s21125_s30 = scalar_lea.vmem %s21923_s13, 4096  ;;  %p21130_p6 = scmp.lt.s32.totalorder %s21923_s13, %s21923_s13 }
  0xf6   :  { %p21126_p5 = scmp.ne.s32.totalorder %s21923_s13, %s21125_s30  ;;  %p21131_p7 = scmp.lt.s32.totalorder %s21125_s30, %s21125_s30 }
  0xf8   :  { %p21132_p8 = por %p21131_p7, %p21130_p6 }
  0xfa   :  { %p21133_p9 = pnand %p21132_p8, %p21126_p5 }
  0xfc   :  { %21136 = shalt.err (!%p21133_p9)
}
  0xfd   :  { %346 = dma.hbm_to_vmem [thread:$0]  %s21781_s6, 4096, %s21923_s13, [#allocation32], %s21608_s2, %s21608_s2, %s21609_s7  }
  0xfe   :  { %s21622_s24 = smov [#allocation34]   ;;  %s21623_s26 = smov [#allocation37]  }
  0xff   :  { %s363_s21 = sshll.u32 %s21622_s24, 4  ;;  %s391_s12 = sshll.u32 %s21623_s26, 4  ;;  %s364_s21 = int_to_ptr.vmem [resolvable:$true] %s363_s21  ;;  %s392_s12 = int_to_ptr.vmem [resolvable:$true] %s391_s12 }
 0x100   :  { %s21137_s28 = scalar_lea.hbm %s21791_s5, 16 }
 0x101   :  { %p21138_p10 = scmp.ne.s32.totalorder %s21791_s5, %s21137_s28  ;;  %p21141_p11 = scmp.lt.u32.totalorder %s21137_s28, %s21791_s5 }
 0x103   :  { %p21143_p12 = pnand %p21141_p11, %p21138_p10 }
 0x105   :  { %21146 = shalt.err (!%p21143_p12)
}
 0x106   :  { %s21147_s1 = scalar_lea.vmem %s364_s21, 16  ;;  %s21151_s3 = scalar_lea.vmem %s364_s21, 32 }
 0x107   :  { %p21148_p13 = scmp.ne.s32.totalorder %s364_s21, %s21147_s1  ;;  %p21152_p0 = scmp.lt.s32.totalorder %s364_s21, %s364_s21 }
 0x108   :  { %p21153_p1 = scmp.lt.s32.totalorder %s21151_s3, %s21147_s1 }
 0x10a   :  { %p21154_p2 = por %p21153_p1, %p21152_p0 }
 0x10c   :  { %p21155_p3 = pnand %p21154_p2, %p21148_p13 }
 0x10e   :  { %21158 = shalt.err (!%p21155_p3)
}
 0x10f   :  { %366 = dma.hbm_to_vmem [thread:$0]  %s21791_s5, 16, %s364_s21, [#allocation35]  }
 0x110   :  { %s21159_s6 = scalar_lea.hbm %s21816_s4, 16 }
 0x111   :  { %p21160_p4 = scmp.ne.s32.totalorder %s21816_s4, %s21159_s6  ;;  %p21163_p5 = scmp.lt.u32.totalorder %s21159_s6, %s21816_s4 }
 0x113   :  { %p21165_p6 = pnand %p21163_p5, %p21160_p4 }
 0x115   :  { %21168 = shalt.err (!%p21165_p6)
}
 0x116   :  { %s21169_s27 = scalar_lea.vmem %s392_s12, 16  ;;  %s21173_s10 = scalar_lea.vmem %s392_s12, 32 }
 0x117   :  { %p21170_p7 = scmp.ne.s32.totalorder %s392_s12, %s21169_s27  ;;  %p21174_p8 = scmp.lt.s32.totalorder %s392_s12, %s392_s12 }
 0x118   :  { %p21175_p9 = scmp.lt.s32.totalorder %s21173_s10, %s21169_s27 }
 0x11a   :  { %p21176_p10 = por %p21175_p9, %p21174_p8 }
 0x11c   :  { %p21177_p11 = pnand %p21176_p10, %p21170_p7 }
 0x11e   :  { %21180 = shalt.err (!%p21177_p11)
}
 0x11f   :  { %394 = dma.hbm_to_vmem [thread:$0]  %s21816_s4, 16, %s392_s12, [#allocation38]  }
 0x120   :  { %s21624_s11 = smov [#allocation40]   ;;  %s21625_s13 = smov [#allocation2]  }
 0x121   :  { %s413_s5 = sshll.u32 %s21624_s11, 4  ;;  %s114_s16 = sshll.u32 %s21625_s13, 4  ;;  %s414_s5 = int_to_ptr.vmem [resolvable:$true] %s413_s5  ;;  %s21952_s16 = int_to_ptr.vmem [resolvable:$true] %s114_s16 }
 0x122   :  { %s21181_s18 = scalar_lea.hbm %s21831_s8, 128 }
 0x123   :  { %p21182_p12 = scmp.ne.s32.totalorder %s21831_s8, %s21181_s18  ;;  %p21185_p13 = scmp.lt.u32.totalorder %s21181_s18, %s21831_s8 }
 0x125   :  { %p21187_p0 = pnand %p21185_p13, %p21182_p12 }
 0x127   :  { %21190 = shalt.err (!%p21187_p0)
}
 0x128   :  { %s21191_s0 = scalar_lea.vmem %s414_s5, 128  ;;  %p21196_p2 = scmp.lt.s32.totalorder %s414_s5, %s414_s5 }
 0x129   :  { %p21192_p1 = scmp.ne.s32.totalorder %s414_s5, %s21191_s0  ;;  %p21197_p3 = scmp.lt.s32.totalorder %s21191_s0, %s21191_s0 }
 0x12b   :  { %p21198_p4 = por %p21197_p3, %p21196_p2 }
 0x12d   :  { %p21199_p5 = pnand %p21198_p4, %p21192_p1 }
 0x12f   :  { %21202 = shalt.err (!%p21199_p5)
}
 0x130   :  { %416 = dma.hbm_to_vmem [thread:$0]  %s21831_s8, 128, %s414_s5, [#allocation41]  }
 0x131   :  { %s21203_s4 = scalar_lea.hbm %s21656_s9, 768 }
 0x132   :  { %p21204_p6 = scmp.ne.s32.totalorder %s21656_s9, %s21203_s4  ;;  %p21207_p7 = scmp.lt.u32.totalorder %s21203_s4, %s21656_s9 }
 0x134   :  { %p21209_p8 = pnand %p21207_p7, %p21204_p6 }
 0x136   :  { %21212 = shalt.err (!%p21209_p8)
}
 0x137   :  { %s21213_s23 = scalar_lea.vmem %s21952_s16, 768  ;;  %p21218_p10 = scmp.lt.s32.totalorder %s21952_s16, %s21952_s16 }
 0x138   :  { %p21214_p9 = scmp.ne.s32.totalorder %s21952_s16, %s21213_s23  ;;  %p21219_p11 = scmp.lt.s32.totalorder %s21213_s23, %s21213_s23 }
 0x13a   :  { %p21220_p12 = por %p21219_p11, %p21218_p10 }
 0x13c   :  { %p21221_p13 = pnand %p21220_p12, %p21214_p9 }
 0x13e   :  { %21224 = shalt.err (!%p21221_p13)
}
 0x13f   :  { %s24189_s8 = sld [smem:[#allocation61_spill]]  ;;  %s21626_s30 = smov [#allocation6]  }
 0x140   :  { %120 = dma.hbm_to_vmem [thread:$0]  %s21656_s9, 768, %s21952_s16, [#allocation3], %s21608_s2, %s21608_s2, %s21609_s7  }
 0x141   :  { %s139_s24 = sshll.u32 %s21626_s30, 4  ;;  %s21627_s21 = smov [#allocation9]   ;;  %s140_s24 = int_to_ptr.vmem [resolvable:$true] %s139_s24 }
 0x142   :  { %s161_s26 = sshll.u32 %s21627_s21, 4  ;;  %s162_s26 = int_to_ptr.vmem [resolvable:$true] %s161_s26 }
 0x145   :  { %s21225_s12 = scalar_lea.hbm %s24189_s8, 16 }
 0x146   :  { %p21226_p0 = scmp.ne.s32.totalorder %s24189_s8, %s21225_s12  ;;  %p21229_p1 = scmp.lt.u32.totalorder %s21225_s12, %s24189_s8 }
 0x148   :  { %p21231_p2 = pnand %p21229_p1, %p21226_p0 }
 0x14a   :  { %21234 = shalt.err (!%p21231_p2)
}
 0x14b   :  { %s21235_s28 = scalar_lea.vmem %s140_s24, 16  ;;  %s21239_s1 = scalar_lea.vmem %s140_s24, 32 }
 0x14c   :  { %p21236_p3 = scmp.ne.s32.totalorder %s140_s24, %s21235_s28  ;;  %p21240_p4 = scmp.lt.s32.totalorder %s140_s24, %s140_s24 }
 0x14d   :  { %p21241_p5 = scmp.lt.s32.totalorder %s21239_s1, %s21235_s28 }
 0x14f   :  { %p21242_p6 = por %p21241_p5, %p21240_p4 }
 0x151   :  { %p21243_p7 = pnand %p21242_p6, %p21236_p3 }
 0x153   :  { %21246 = shalt.err (!%p21243_p7)
}
 0x154   :  { %s24190_s9 = sld [smem:[#allocation63_spill]] }
 0x155   :  { %142 = dma.hbm_to_vmem [thread:$0]  %s24189_s8, 16, %s140_s24, [#allocation5]  }
 0x15a   :  { %s21247_s3 = scalar_lea.hbm %s24190_s9, 128 }
 0x15b   :  { %p21248_p8 = scmp.ne.s32.totalorder %s24190_s9, %s21247_s3  ;;  %p21251_p9 = scmp.lt.u32.totalorder %s21247_s3, %s24190_s9 }
 0x15d   :  { %p21253_p10 = pnand %p21251_p9, %p21248_p8 }
 0x15f   :  { %21256 = shalt.err (!%p21253_p10)
}
 0x160   :  { %s21257_s6 = scalar_lea.vmem %s162_s26, 128  ;;  %p21262_p12 = scmp.lt.s32.totalorder %s162_s26, %s162_s26 }
 0x161   :  { %p21258_p11 = scmp.ne.s32.totalorder %s162_s26, %s21257_s6  ;;  %p21263_p13 = scmp.lt.s32.totalorder %s21257_s6, %s21257_s6 }
 0x163   :  { %p21264_p0 = por %p21263_p13, %p21262_p12 }
 0x165   :  { %p21265_p1 = pnand %p21264_p0, %p21258_p11 }
 0x167   :  { %21268 = shalt.err (!%p21265_p1)
}
 0x168   :  { %s24191_s27 = sld [smem:[#allocation64_spill]]  ;;  %s21628_s10 = smov [#allocation12]  }
 0x169   :  { %164 = dma.hbm_to_vmem [thread:$0]  %s24190_s9, 128, %s162_s26, [#allocation8]  }
 0x16a   :  { %s182_s11 = sshll.u32 %s21628_s10, 4  ;;  %s21629_s5 = smov [#allocation15]   ;;  %s183_s11 = int_to_ptr.vmem [resolvable:$true] %s182_s11 }
 0x16b   :  { %s205_s13 = sshll.u32 %s21629_s5, 4  ;;  %s206_s13 = int_to_ptr.vmem [resolvable:$true] %s205_s13 }
 0x16e   :  { %s21269_s16 = scalar_lea.hbm %s24191_s27, 4096 }
 0x16f   :  { %p21270_p2 = scmp.ne.s32.totalorder %s24191_s27, %s21269_s16  ;;  %p21273_p3 = scmp.lt.u32.totalorder %s21269_s16, %s24191_s27 }
 0x171   :  { %p21275_p4 = pnand %p21273_p3, %p21270_p2 }
 0x173   :  { %21278 = shalt.err (!%p21275_p4)
}
 0x174   :  { %s21279_s18 = scalar_lea.vmem %s183_s11, 4096  ;;  %p21284_p6 = scmp.lt.s32.totalorder %s183_s11, %s183_s11 }
 0x175   :  { %p21280_p5 = scmp.ne.s32.totalorder %s183_s11, %s21279_s18  ;;  %p21285_p7 = scmp.lt.s32.totalorder %s21279_s18, %s21279_s18 }
 0x177   :  { %p21286_p8 = por %p21285_p7, %p21284_p6 }
 0x179   :  { %p21287_p9 = pnand %p21286_p8, %p21280_p5 }
 0x17b   :  { %21290 = shalt.err (!%p21287_p9)
}
 0x17c   :  { %s24192_s0 = sld [smem:[#allocation65_spill]] }
 0x17d   :  { %188 = dma.hbm_to_vmem [thread:$0]  %s24191_s27, 4096, %s183_s11, [#allocation11], %s21608_s2, %s21608_s2, %s21609_s7  }
 0x182   :  { %s21291_s4 = scalar_lea.hbm %s24192_s0, 16 }
 0x183   :  { %p21292_p10 = scmp.ne.s32.totalorder %s24192_s0, %s21291_s4  ;;  %p21295_p11 = scmp.lt.u32.totalorder %s21291_s4, %s24192_s0 }
 0x185   :  { %p21297_p12 = pnand %p21295_p11, %p21292_p10 }
 0x187   :  { %21300 = shalt.err (!%p21297_p12)
}
 0x188   :  { %s21301_s23 = scalar_lea.vmem %s206_s13, 16  ;;  %s21305_s8 = scalar_lea.vmem %s206_s13, 32 }
 0x189   :  { %p21302_p13 = scmp.ne.s32.totalorder %s206_s13, %s21301_s23  ;;  %p21306_p0 = scmp.lt.s32.totalorder %s206_s13, %s206_s13 }
 0x18a   :  { %p21307_p1 = scmp.lt.s32.totalorder %s21305_s8, %s21301_s23 }
 0x18c   :  { %p21308_p2 = por %p21307_p1, %p21306_p0 }
 0x18e   :  { %p21309_p3 = pnand %p21308_p2, %p21302_p13 }
 0x190   :  { %21312 = shalt.err (!%p21309_p3)
}
 0x191   :  { %s24193_s30 = sld [smem:[#allocation67_spill]]  ;;  %s21630_s24 = smov [#allocation18]  }
 0x192   :  { %208 = dma.hbm_to_vmem [thread:$0]  %s24192_s0, 16, %s206_s13, [#allocation14]  }
 0x193   :  { %s228_s21 = sshll.u32 %s21630_s24, 4  ;;  %s21631_s26 = smov [#allocation21]   ;;  %s229_s21 = int_to_ptr.vmem [resolvable:$true] %s228_s21 }
 0x194   :  { %s253_s12 = sshll.u32 %s21631_s26, 4  ;;  %s254_s12 = int_to_ptr.vmem [resolvable:$true] %s253_s12 }
 0x197   :  { %s21313_s28 = scalar_lea.hbm %s24193_s30, 256 }
 0x198   :  { %p21314_p4 = scmp.ne.s32.totalorder %s24193_s30, %s21313_s28  ;;  %p21317_p5 = scmp.lt.u32.totalorder %s21313_s28, %s24193_s30 }
 0x19a   :  { %p21319_p6 = pnand %p21317_p5, %p21314_p4 }
 0x19c   :  { %21322 = shalt.err (!%p21319_p6)
}
 0x19d   :  { %s21323_s1 = scalar_lea.vmem %s229_s21, 256  ;;  %p21328_p8 = scmp.lt.s32.totalorder %s229_s21, %s229_s21 }
 0x19e   :  { %p21324_p7 = scmp.ne.s32.totalorder %s229_s21, %s21323_s1  ;;  %p21329_p9 = scmp.lt.s32.totalorder %s21323_s1, %s21323_s1 }
 0x1a0   :  { %p21330_p10 = por %p21329_p9, %p21328_p8 }
 0x1a2   :  { %p21331_p11 = pnand %p21330_p10, %p21324_p7 }
 0x1a4   :  { %21334 = shalt.err (!%p21331_p11)
}
 0x1a5   :  { %s24194_s9 = sld [smem:[#allocation68_spill]] }
 0x1a6   :  { %234 = dma.hbm_to_vmem [thread:$0]  %s24193_s30, 256, %s229_s21, [#allocation17], %s21608_s2, %s21608_s2, %s21609_s7  }
 0x1ab   :  { %s21335_s3 = scalar_lea.hbm %s24194_s9, 16 }
 0x1ac   :  { %p21336_p12 = scmp.ne.s32.totalorder %s24194_s9, %s21335_s3  ;;  %p21339_p13 = scmp.lt.u32.totalorder %s21335_s3, %s24194_s9 }
 0x1ae   :  { %p21341_p0 = pnand %p21339_p13, %p21336_p12 }
 0x1b0   :  { %21344 = shalt.err (!%p21341_p0)
}
 0x1b1   :  { %s21345_s6 = scalar_lea.vmem %s254_s12, 16  ;;  %s21349_s27 = scalar_lea.vmem %s254_s12, 32 }
 0x1b2   :  { %p21346_p1 = scmp.ne.s32.totalorder %s254_s12, %s21345_s6  ;;  %p21350_p2 = scmp.lt.s32.totalorder %s254_s12, %s254_s12 }
 0x1b3   :  { %p21351_p3 = scmp.lt.s32.totalorder %s21349_s27, %s21345_s6 }
 0x1b5   :  { %p21352_p4 = por %p21351_p3, %p21350_p2 }
 0x1b7   :  { %p21353_p5 = pnand %p21352_p4, %p21346_p1 }
 0x1b9   :  { %21356 = shalt.err (!%p21353_p5)
}
 0x1ba   :  { %s24195_s10 = sld [smem:[#allocation70_spill]]  ;;  %s21632_s11 = smov [#allocation24]  }
 0x1bb   :  { %256 = dma.hbm_to_vmem [thread:$0]  %s24194_s9, 16, %s254_s12, [#allocation20]  }
 0x1bc   :  { %s274_s5 = sshll.u32 %s21632_s11, 4  ;;  %s21633_s13 = smov [#allocation27]   ;;  %s275_s5 = int_to_ptr.vmem [resolvable:$true] %s274_s5 }
 0x1bd   :  { %s300_s16 = sshll.u32 %s21633_s13, 4  ;;  %s22000_s16 = int_to_ptr.vmem [resolvable:$true] %s300_s16 }
 0x1c0   :  { %s21357_s18 = scalar_lea.hbm %s24195_s10, 512 }
 0x1c1   :  { %p21358_p6 = scmp.ne.s32.totalorder %s24195_s10, %s21357_s18  ;;  %p21361_p7 = scmp.lt.u32.totalorder %s21357_s18, %s24195_s10 }
 0x1c3   :  { %p21363_p8 = pnand %p21361_p7, %p21358_p6 }
 0x1c5   :  { %21366 = shalt.err (!%p21363_p8)
}
 0x1c6   :  { %s21367_s0 = scalar_lea.vmem %s275_s5, 512  ;;  %p21372_p10 = scmp.lt.s32.totalorder %s275_s5, %s275_s5 }
 0x1c7   :  { %p21368_p9 = scmp.ne.s32.totalorder %s275_s5, %s21367_s0  ;;  %p21373_p11 = scmp.lt.s32.totalorder %s21367_s0, %s21367_s0 }
 0x1c9   :  { %p21374_p12 = por %p21373_p11, %p21372_p10 }
 0x1cb   :  { %p21375_p13 = pnand %p21374_p12, %p21368_p9 }
 0x1cd   :  { %21378 = shalt.err (!%p21375_p13)
}
 0x1ce   :  { %s24196_s4 = sld [smem:[#allocation72_spill]] }
 0x1cf   :  { %280 = dma.hbm_to_vmem [thread:$0]  %s24195_s10, 512, %s275_s5, [#allocation23], %s21613_s15, %s21613_s15, %s21614_s14  }
 0x1d4   :  { %s21379_s23 = scalar_lea.hbm %s24196_s4, 144 }
 0x1d5   :  { %p21380_p0 = scmp.ne.s32.totalorder %s24196_s4, %s21379_s23  ;;  %p21383_p1 = scmp.lt.u32.totalorder %s21379_s23, %s24196_s4 }
 0x1d7   :  { %p21385_p2 = pnand %p21383_p1, %p21380_p0 }
 0x1d9   :  { %21388 = shalt.err (!%p21385_p2)
}
 0x1da   :  { %s21389_s8 = scalar_lea.vmem %s22000_s16, 144  ;;  %s21393_s30 = scalar_lea.vmem %s22000_s16, 160 }
 0x1db   :  { %p21390_p3 = scmp.ne.s32.totalorder %s22000_s16, %s21389_s8  ;;  %p21394_p4 = scmp.lt.s32.totalorder %s22000_s16, %s22000_s16 }
 0x1dc   :  { %p21395_p5 = scmp.lt.s32.totalorder %s21393_s30, %s21389_s8 }
 0x1de   :  { %p21396_p6 = por %p21395_p5, %p21394_p4 }
 0x1e0   :  { %p21397_p7 = pnand %p21396_p6, %p21390_p3 }
 0x1e2   :  { %21400 = shalt.err (!%p21397_p7)
}
 0x1e3   :  { %s24197_s24 = sld [smem:[#allocation74_spill]]  ;;  %s21634_s21 = smov [#allocation30]  }
 0x1e4   :  { %306 = dma.hbm_to_vmem [thread:$0]  %s24196_s4, 144, %s22000_s16, [#allocation26], %s21620_s25, %s21620_s25, %s21621_s22  }
 0x1e5   :  { %s326_s26 = sshll.u32 %s21634_s21, 4  ;;  %s21635_s12 = smov [#allocation33]   ;;  %s327_s26 = int_to_ptr.vmem [resolvable:$true] %s326_s26 }
 0x1e6   :  { %s353_s28 = sshll.u32 %s21635_s12, 4  ;;  %s354_s28 = int_to_ptr.vmem [resolvable:$true] %s353_s28 }
 0x1e9   :  { %s21401_s1 = scalar_lea.hbm %s24197_s24, 512 }
 0x1ea   :  { %p21402_p8 = scmp.ne.s32.totalorder %s24197_s24, %s21401_s1  ;;  %p21405_p9 = scmp.lt.u32.totalorder %s21401_s1, %s24197_s24 }
 0x1ec   :  { %p21407_p10 = pnand %p21405_p9, %p21402_p8 }
 0x1ee   :  { %21410 = shalt.err (!%p21407_p10)
}
 0x1ef   :  { %s21411_s9 = scalar_lea.vmem %s327_s26, 512  ;;  %p21416_p12 = scmp.lt.s32.totalorder %s327_s26, %s327_s26 }
 0x1f0   :  { %p21412_p11 = scmp.ne.s32.totalorder %s327_s26, %s21411_s9  ;;  %p21417_p13 = scmp.lt.s32.totalorder %s21411_s9, %s21411_s9 }
 0x1f2   :  { %p21418_p0 = por %p21417_p13, %p21416_p12 }
 0x1f4   :  { %p21419_p1 = pnand %p21418_p0, %p21412_p11 }
 0x1f6   :  { %21422 = shalt.err (!%p21419_p1)
}
 0x1f7   :  { %s24198_s25 = sld [smem:[#allocation76_spill]] }
 0x1f8   :  { %332 = dma.hbm_to_vmem [thread:$0]  %s24197_s24, 512, %s327_s26, [#allocation29], %s21613_s15, %s21613_s15, %s21614_s14  }
 0x1fd   :  { %s21423_s22 = scalar_lea.hbm %s24198_s25, 16 }
 0x1fe   :  { %p21424_p2 = scmp.ne.s32.totalorder %s24198_s25, %s21423_s22  ;;  %p21427_p3 = scmp.lt.u32.totalorder %s21423_s22, %s24198_s25 }
 0x200   :  { %p21429_p4 = pnand %p21427_p3, %p21424_p2 }
 0x202   :  { %21432 = shalt.err (!%p21429_p4)
}
 0x203   :  { %s21433_s3 = scalar_lea.vmem %s354_s28, 16  ;;  %s21437_s6 = scalar_lea.vmem %s354_s28, 32 }
 0x204   :  { %p21434_p5 = scmp.ne.s32.totalorder %s354_s28, %s21433_s3  ;;  %p21438_p6 = scmp.lt.s32.totalorder %s354_s28, %s354_s28 }
 0x205   :  { %p21439_p7 = scmp.lt.s32.totalorder %s21437_s6, %s21433_s3 }
 0x207   :  { %p21440_p8 = por %p21439_p7, %p21438_p6 }
 0x209   :  { %p21441_p9 = pnand %p21440_p8, %p21434_p5 }
 0x20b   :  { %21444 = shalt.err (!%p21441_p9)
}
 0x20c   :  { %s24199_s27 = sld [smem:[#allocation80_spill]]  ;;  %s21636_s10 = smov [#allocation36]  }
 0x20d   :  { %356 = dma.hbm_to_vmem [thread:$0]  %s24198_s25, 16, %s354_s28, [#allocation32]  }
 0x20e   :  { %s378_s15 = sshll.u32 %s21636_s10, 4  ;;  %s21637_s14 = smov [#allocation39]   ;;  %s379_s15 = int_to_ptr.vmem [resolvable:$true] %s378_s15 }
 0x20f   :  { %s401_s11 = sshll.u32 %s21637_s14, 4  ;;  %s402_s11 = int_to_ptr.vmem [resolvable:$true] %s401_s11 }
 0x212   :  { %s21445_s5 = scalar_lea.hbm %s24199_s27, 4096 }
 0x213   :  { %p21446_p10 = scmp.ne.s32.totalorder %s24199_s27, %s21445_s5  ;;  %p21449_p11 = scmp.lt.u32.totalorder %s21445_s5, %s24199_s27 }
 0x215   :  { %p21451_p12 = pnand %p21449_p11, %p21446_p10 }
 0x217   :  { %21454 = shalt.err (!%p21451_p12)
}
 0x218   :  { %s21455_s13 = scalar_lea.vmem %s379_s15, 4096  ;;  %p21460_p0 = scmp.lt.s32.totalorder %s379_s15, %s379_s15 }
 0x219   :  { %p21456_p13 = scmp.ne.s32.totalorder %s379_s15, %s21455_s13  ;;  %p21461_p1 = scmp.lt.s32.totalorder %s21455_s13, %s21455_s13 }
 0x21b   :  { %p21462_p2 = por %p21461_p1, %p21460_p0 }
 0x21d   :  { %p21463_p3 = pnand %p21462_p2, %p21456_p13 }
 0x21f   :  { %21466 = shalt.err (!%p21463_p3)
}
 0x220   :  { %s24200_s16 = sld [smem:[#allocation81_spill]] }
 0x221   :  { %384 = dma.hbm_to_vmem [thread:$0]  %s24199_s27, 4096, %s379_s15, [#allocation35], %s21608_s2, %s21608_s2, %s21609_s7  }
 0x226   :  { %s21467_s18 = scalar_lea.hbm %s24200_s16, 16 }
 0x227   :  { %p21468_p4 = scmp.ne.s32.totalorder %s24200_s16, %s21467_s18  ;;  %p21471_p5 = scmp.lt.u32.totalorder %s21467_s18, %s24200_s16 }
 0x229   :  { %p21473_p6 = pnand %p21471_p5, %p21468_p4 }
 0x22b   :  { %21476 = shalt.err (!%p21473_p6)
}
 0x22c   :  { %s21477_s0 = scalar_lea.vmem %s402_s11, 16  ;;  %s21481_s4 = scalar_lea.vmem %s402_s11, 32 }
 0x22d   :  { %p21478_p7 = scmp.ne.s32.totalorder %s402_s11, %s21477_s0  ;;  %p21482_p8 = scmp.lt.s32.totalorder %s402_s11, %s402_s11 }
 0x22e   :  { %p21483_p9 = scmp.lt.s32.totalorder %s21481_s4, %s21477_s0 }
 0x230   :  { %p21484_p10 = por %p21483_p9, %p21482_p8 }
 0x232   :  { %p21485_p11 = pnand %p21484_p10, %p21478_p7 }
 0x234   :  { %21488 = shalt.err (!%p21485_p11)
}
 0x235   :  { %s24201_s23 = sld [smem:[#allocation85_spill]]  ;;  %s21638_s8 = smov [#allocation42]  }
 0x236   :  { %404 = dma.hbm_to_vmem [thread:$0]  %s24200_s16, 16, %s402_s11, [#allocation38]  }
 0x237   :  { %s427_s2 = sshll.u32 %s21638_s8, 4  ;;  %s21639_s7 = smov [#allocation43]   ;;  %s428_s2 = int_to_ptr.vmem [resolvable:$true] %s427_s2 }
 0x238   :  { %s437_s30 = sshll.u32 %s21639_s7, 4  ;;  %s438_s30 = int_to_ptr.vmem [resolvable:$true] %s437_s30 }
 0x23b   :  { %s21489_s24 = scalar_lea.hbm %s24201_s23, 16 }
 0x23c   :  { %p21490_p12 = scmp.ne.s32.totalorder %s24201_s23, %s21489_s24  ;;  %p21493_p13 = scmp.lt.u32.totalorder %s21489_s24, %s24201_s23 }
 0x23e   :  { %p21495_p0 = pnand %p21493_p13, %p21490_p12 }
 0x240   :  { %21498 = shalt.err (!%p21495_p0)
}
 0x241   :  { %s21499_s21 = scalar_lea.vmem %s428_s2, 16  ;;  %s21503_s26 = scalar_lea.vmem %s428_s2, 32 }
 0x242   :  { %p21500_p1 = scmp.ne.s32.totalorder %s428_s2, %s21499_s21  ;;  %p21504_p2 = scmp.lt.s32.totalorder %s428_s2, %s428_s2 }
 0x243   :  { %p21505_p3 = scmp.lt.s32.totalorder %s21503_s26, %s21499_s21 }
 0x245   :  { %p21506_p4 = por %p21505_p3, %p21504_p2 }
 0x247   :  { %p21507_p5 = pnand %p21506_p4, %p21500_p1 }
 0x249   :  { %21510 = shalt.err (!%p21507_p5)
}
 0x24a   :  { %430 = dma.hbm_to_vmem [thread:$0]  %s24201_s23, 16, %s428_s2, [#allocation41]  }
 0x24b   :  { %s21511_s12 = scalar_lea.hbm %s21851_s17, 16 }
 0x24c   :  { %p21512_p6 = scmp.ne.s32.totalorder %s21851_s17, %s21511_s12  ;;  %p21515_p7 = scmp.lt.u32.totalorder %s21511_s12, %s21851_s17 }
 0x24e   :  { %p21517_p8 = pnand %p21515_p7, %p21512_p6 }
 0x250   :  { %21520 = shalt.err (!%p21517_p8)
}
 0x251   :  { %s21521_s28 = scalar_lea.vmem %s438_s30, 16  ;;  %s21525_s1 = scalar_lea.vmem %s438_s30, 32 }
 0x252   :  { %p21522_p9 = scmp.ne.s32.totalorder %s438_s30, %s21521_s28  ;;  %p21526_p10 = scmp.lt.s32.totalorder %s438_s30, %s438_s30 }
 0x253   :  { %p21527_p11 = scmp.lt.s32.totalorder %s21525_s1, %s21521_s28 }
 0x255   :  { %p21528_p12 = por %p21527_p11, %p21526_p10 }
 0x257   :  { %p21529_p13 = pnand %p21528_p12, %p21522_p9 }
 0x259   :  { %21532 = shalt.err (!%p21529_p13)
}
 0x25a   :  { %440 = dma.hbm_to_vmem [thread:$0]  %s21851_s17, 16, %s438_s30, [#allocation44]  }
 0x25b   :  { %21533 = dma.done.wait [#allocation3], 768  }
 0x25c   :  { %21534 = vsyncadd [#allocation3], 4294966528 }
 0x25d   :  { %21535 = dma.done.wait [#allocation5], 1168  }
 0x25e   :  { %21536 = vsyncadd [#allocation5], 4294966128 }
 0x25f   :  { %21537 = dma.done.wait [#allocation8], 144  }
 0x260   :  { %21538 = vsyncadd [#allocation8], 4294967152 }
 0x261   :  { %21539 = dma.done.wait [#allocation11], 4608  }
 0x262   :  { %21540 = vsyncadd [#allocation11], 4294962688 }
 0x263   :  { %21541 = dma.done.wait [#allocation14], 32  }
 0x264   :  { %21542 = vsyncadd [#allocation14], 4294967264 }
 0x265   :  { %21543 = dma.done.wait [#allocation17], 512  }
 0x266   :  { %21544 = vsyncadd [#allocation17], 4294966784 }
 0x267   :  { %21545 = dma.done.wait [#allocation20], 4112  }
 0x268   :  { %21546 = vsyncadd [#allocation20], 4294963184 }
 0x269   :  { %21547 = dma.done.wait [#allocation23], 528  }
 0x26a   :  { %21548 = vsyncadd [#allocation23], 4294966768 }
 0x26b   :  { %21549 = dma.done.wait [#allocation26], 336  }
 0x26c   :  { %21550 = vsyncadd [#allocation26], 4294966960 }
 0x26d   :  { %21551 = dma.done.wait [#allocation29], 656  }
 0x26e   :  { %21552 = vsyncadd [#allocation29], 4294966640 }
 0x26f   :  { %21553 = dma.done.wait [#allocation32], 4112  }
 0x270   :  { %21554 = vsyncadd [#allocation32], 4294963184 }
 0x271   :  { %21555 = dma.done.wait [#allocation35], 4112  }
 0x272   :  { %21556 = vsyncadd [#allocation35], 4294963184 }
 0x273   :  { %21557 = dma.done.wait [#allocation38], 32  }
 0x274   :  { %21558 = vsyncadd [#allocation38], 4294967264 }
 0x275   :  { %21559 = dma.done.wait [#allocation41], 144  }
 0x276   :  { %21560 = vsyncadd [#allocation41], 4294967152 }
 0x277   :  { %21561 = dma.done.wait [#allocation44], 16  }
 0x278   :  { %21562 = vsyncadd [#allocation44], 4294967280  ;;  %s24202_s17 = sld [smem:[#allocation60_spill]]  ;;  %vm569_vm0 = vcmask 261120   ;;  %v20476_v6 = vld [vmem:[#allocation2 + $0x10] sm:$0xff]   ;;  %v20478_v7 = vld [vmem:[#allocation2] sm:$0xff]  }
 0x279   :  { %16693 = vmatprep.mubr.msk.bf16.mxu1 %vm569_vm0, %v20476_v6  ;;  %v20477_v8 = vld [vmem:[#allocation2 + $0x18] sm:$0xff]   ;;  %16685 = vmatprep.mubr.msk.bf16.mxu0 %vm569_vm0, %v20478_v7  ;;  %v20479_v9 = vld [vmem:[#allocation2 + $0x8] sm:$0xff]   ;;  %v20480_v10 = vld [vmem:[#allocation2 + $0x20] sm:$0xff]   ;;  %s24203_s9 = sld [smem:[#allocation62_spill]]  ;;  %v21640_v19 = vmov 0.0|0.0   ;;  %vm730_vm1 = vcmask 392192  }
 0x27a   :  { %v20482_v11 = vld [vmem:[#allocation4 + $0x18] sm:$0xff]   ;;  %v20483_v12 = vld [vmem:[#allocation4 + $0x20] sm:$0xff]   ;;  %v20484_v14 = vld [vmem:[#allocation4 + $0x28] sm:$0xff]   ;;  %vm21641_vm2 = vmmov 0   ;;  %v21642_v63 = vmov 0.0   ;;  %vm1095_vm3 = vcmask 64512  }
 0x27b   :  { %v20481_v13 = vld [vmem:[#allocation2 + $0x28] sm:$0xff]   ;;  %v20485_v15 = vld [vmem:[#allocation4] sm:$0xff]   ;;  %v20486_v36 = vld [vmem:[#allocation4 + $0x8] sm:$0xff]   ;;  %s24204_s25 = sld [smem:[#allocation66_spill]]  ;;  %vm2170_vm4 = vcmask 130048   ;;  %s24205_s22 = sld [smem:[#allocation69_spill]] }
 0x27c   :  { %v20487_v40 = vld [vmem:[#allocation4 + $0x10] sm:$0xff]   ;;  %v20489_v47 = vld [vmem:[#allocation4 + $0x38] sm:$0xff]   ;;  %v20490_v48 = vld [vmem:[#allocation4 + $0x40] sm:$0xff]   ;;  %s24206_s3 = sld [smem:[#allocation71_spill]]  ;;  %vm3544_vm5 = vcmask 1043456   ;;  %s24207_s6 = sld [smem:[#allocation73_spill]] }
 0x27d   :  { %v20488_v43 = vld [vmem:[#allocation4 + $0x30] sm:$0xff]   ;;  %s24208_s27 = sld [smem:[#allocation75_spill]]  ;;  %s24209_s10 = sld [smem:[#allocation77_spill]]  ;;  %vm14047_vm6 = vcmask 1042432   ;;  %vm14043_vm7 = vcmask 23552  }
 0x27e   :  { %v530_v0 = vld [vmem:[%s24202_s17] sm:$0xff]  ;;  %v531_v1 = vld [vmem:[%s24202_s17 + $0x8] sm:$0xff]  ;;  %v532_v2 = vld [vmem:[%s24202_s17 + $0x10] sm:$0xff]  ;;  %s24210_s15 = sld [smem:[#allocation78_spill]]  ;;  %s24211_s14 = sld [smem:[#allocation79_spill]] }
 0x27f   :  { %v553_v3 = vpack.c.bf16 %v531_v1, %v530_v0  ;;  %v533_v4 = vld [vmem:[%s24202_s17 + $0x18] sm:$0xff]  ;;  %v536_v16 = vld [vmem:[%s24203_s9] sm:$0xff]  ;;  %v537_v17 = vld [vmem:[%s24203_s9 + $0x8] sm:$0xff]  ;;  %s24212_s11 = sld [smem:[#allocation82_spill]]  ;;  %s24213_s5 = sld [smem:[#allocation83_spill]] }
 0x280   :  { %v554_v5 = vpack.c.bf16 %v533_v4, %v532_v2  ;;  %v538_v18 = vld [vmem:[%s24203_s9 + $0x10] sm:$0xff]  ;;  %v22066_v20 = vpack.c.bf16 %v537_v17, %v536_v16  ;;  %v539_v21 = vld [vmem:[%s24203_s9 + $0x18] sm:$0xff]  ;;  %v540_v22 = vld [vmem:[%s24203_s9 + $0x20] sm:$0xff]  ;;  %s24214_s13 = sld [smem:[#allocation84_spill]] }
 0x281   :  { %16689 = vmatprep.subr.bf16.mxu1 %v553_v3  ;;  %16681 = vmatprep.subr.bf16.mxu0 %v553_v3  ;;  %v541_v23 = vld [vmem:[%s24203_s9 + $0x28] sm:$0xff]  ;;  %v22072_v24 = vpack.c.bf16 %v539_v21, %v538_v18  ;;  %v542_v49 = vld [vmem:[%s24203_s9 + $0x30] sm:$0xff]  ;;  %v543_v50 = vld [vmem:[%s24203_s9 + $0x38] sm:$0xff]  ;;  %v1169_v18 = vlaneseq }
 0x282   :  { %16690 = vmatpush3.bf16.msra.mxu1 %v553_v3  ;;  %16682 = vmatpush3.bf16.msra.mxu0 %v553_v3  ;;  %v22076_v25 = vpack.c.bf16 %v541_v23, %v540_v22  ;;  %v19382_v51 = vpack.c.bf16 %v543_v50, %v542_v49  ;;  %v544_v52 = vld [vmem:[%s24203_s9 + $0x40] sm:$0xff]  ;;  %v545_v53 = vld [vmem:[%s24203_s9 + $0x48] sm:$0xff]  ;;  %v546_v55 = vld [vmem:[%s24203_s9 + $0x50] sm:$0xff] }
 0x283   :  { %16691 = vmatprep.subr.bf16.mxu1 %v554_v5  ;;  %16683 = vmatprep.subr.bf16.mxu0 %v554_v5  ;;  %v19385_v54 = vpack.c.bf16 %v545_v53, %v544_v52  ;;  %v547_v56 = vld [vmem:[%s24203_s9 + $0x58] sm:$0xff]  ;;  %v548_v58 = vld [vmem:[%s24203_s9 + $0x60] sm:$0xff]  ;;  %v549_v59 = vld [vmem:[%s24203_s9 + $0x68] sm:$0xff] }
 0x284   :  { %v19388_v57 = vpack.c.bf16 %v547_v56, %v546_v55  ;;  %v550_v60 = vld [vmem:[%s24203_s9 + $0x70] sm:$0xff]  ;;  %v19391_v61 = vpack.c.bf16 %v549_v59, %v548_v58  ;;  %v551_v62 = vld [vmem:[%s24203_s9 + $0x78] sm:$0xff] }
 0x285   :  { %v19394_v0 = vpack.c.bf16 %v551_v62, %v550_v60  ;;  %v535_v49 = vld [vmem:[#allocation7] sm:$0x1] }
 0x286   :  { %16692 = vmatpush3.bf16.msra.mxu1 %v554_v5  ;;  %16684 = vmatpush3.bf16.msra.mxu0 %v554_v5 }
 0x287   :  { %16717 = vmatprep.subr.bf16.mxu1 %v553_v3  ;;  %16697 = vmatprep.subr.bf16.mxu0 %v20482_v11 }
 0x289   :  { %16694 = vmatmul.mubr.msk.bf16.vlgmr.msra.gmra.mrb[0].mxu1 %vm569_vm0, %v20477_v8  ;;  %16686 = vmatmul.mubr.msk.bf16.vlgmr.msra.gmra.mrb[0].mxu0 %vm569_vm0, %v20479_v9 }
 0x28a   :  { %16718 = vmatpush3.bf16.msra.mxu1 %v553_v3  ;;  %16721 = vmatprep.mubr.msk.bf16.mxu1 %vm569_vm0, %v20480_v10 }
 0x28b   :  { %16719 = vmatprep.subr.bf16.mxu1 %v554_v5  ;;  %16698 = vmatpush3.bf16.msra.mxu0 %v20482_v11 }
 0x28c   :  { %16699 = vmatprep.subr.bf16.mxu0 %v20483_v12 }
 0x28e   :  { %16720 = vmatpush3.bf16.msra.mxu1 %v554_v5 }
 0x28f   :  { %16700 = vmatpush3.bf16.msra.mxu0 %v20483_v12  ;;  %19372 = vmatprep.subr.bf16.mxu1 %v21640_v19 }
 0x290   :  { %16701 = vmatprep.subr.bf16.mxu0 %v20484_v14 }
 0x291   :  { %16722 = vmatmul.mubr.msk.bf16.vlgmr.msra.gmra.mrb[4].mxu1 %vm569_vm0, %v20481_v13 }
 0x292   :  { %19374 = vmatpush3.bf16.msra.mxu1 %v22066_v20  ;;  %16767 = vmatprep.mubr.msk.f32.mxu1 %vm21641_vm2, %v21642_v63 }
 0x293   :  { %16702 = vmatpush3.bf16.msra.mxu0 %v20484_v14  ;;  %19375 = vmatprep.subr.bf16.mxu1 %v21640_v19  ;;  %v552_v14 = vld [vmem:[#allocation9] sm:$0xff] }
 0x294   :  { %16707 = vmatprep.subr.bf16.mxu0 %v20485_v15 }
 0x296   :  { %19377 = vmatpush3.bf16.msra.mxu1 %v22072_v24 }
 0x297   :  { %19378 = vmatprep.subr.bf16.mxu1 %v21640_v19 }
 0x29a   :  { %19380 = vmatpush3.bf16.msra.mxu1 %v22076_v25 }
 0x29b   :  { %19381 = vmatprep.subr.bf16.mxu1 %v21640_v19 }
 0x29e   :  { %19383 = vmatpush3.bf16.msra.mxu1 %v19382_v51 }
 0x29f   :  { %19384 = vmatprep.subr.bf16.mxu1 %v21640_v19 }
 0x2a2   :  { %19386 = vmatpush3.bf16.msra.mxu1 %v19385_v54 }
 0x2a3   :  { %19387 = vmatprep.subr.bf16.mxu1 %v21640_v19 }
 0x2a6   :  { %19389 = vmatpush3.bf16.msra.mxu1 %v19388_v57 }
 0x2a7   :  { %19390 = vmatprep.subr.bf16.mxu1 %v21640_v19 }
 0x2aa   :  { %19392 = vmatpush3.bf16.msra.mxu1 %v19391_v61 }
 0x2ab   :  { %19393 = vmatprep.subr.bf16.mxu1 %v21640_v19 }
 0x2ae   :  { %19395 = vmatpush3.bf16.msra.mxu1 %v19394_v0 }
 0x2af   :  { %19396 = vmatprep.subr.bf16.mxu1 %v21640_v19 }
 0x35c   :  { %v16695_v26 = vpop.f32.mrb[0].mxu1  ;;  %v16687_v28 = vpop.f32.mrb[0].mxu0 }
 0x35d   :  { %v688_v27 = vpop.f32.mrb[1].mxu1  ;;  %v610_v30 = vpop.f32.mrb[1].mxu0 }
 0x35e   :  { %v16696_v29 = vpop.f32.mrb[2].mxu1  ;;  %v16688_v33 = vpop.f32.mrb[2].mxu0 }
 0x35f   :  { %v704_v31 = vpack.c.bf16 %v16696_v29, %v16695_v26  ;;  %v691_v32 = vpop.f32.mrb[3].mxu1  ;;  %v626_v35 = vpack.c.bf16 %v16688_v33, %v16687_v28  ;;  %v613_v37 = vpop.f32.mrb[3].mxu0 }
 0x360   :  { %v703_v34 = vpack.c.bf16 %v691_v32, %v688_v27  ;;  %v625_v38 = vpack.c.bf16 %v613_v37, %v610_v30 }
 0x362   :  { %16703 = vmatprep.mubr.msk.bf16.mxu0 %vm730_vm1, %v703_v34 }
 0x363   :  { %16704 = vmatmul.mubr.msk.bf16.vlgmr.msra.gmra.mrb[4].mxu0 %vm730_vm1, %v704_v31 }
 0x364   :  { %16708 = vmatpush3.bf16.msra.mxu0 %v20485_v15  ;;  %16713 = vmatprep.mubr.msk.bf16.mxu0 %vm730_vm1, %v625_v38  ;;  %v16723_v39 = vpop.f32.mrb[4].mxu1 }
 0x365   :  { %16709 = vmatprep.subr.bf16.mxu0 %v20486_v36  ;;  %v914_v41 = vpop.f32.mrb[5].mxu1 }
 0x366   :  { %v16724_v42 = vpop.f32.mrb[6].mxu1 }
 0x367   :  { %v930_v44 = vpack.c.bf16 %v16724_v42, %v16723_v39  ;;  %v917_v45 = vpop.f32.mrb[7].mxu1 }
 0x368   :  { %16710 = vmatpush3.bf16.msra.mxu0 %v20486_v36  ;;  %v929_v46 = vpack.c.bf16 %v917_v45, %v914_v41 }
 0x369   :  { %16711 = vmatprep.subr.bf16.mxu0 %v20487_v40 }
 0x36c   :  { %16712 = vmatpush3.bf16.msra.mxu0 %v20487_v40 }
 0x36d   :  { %16725 = vmatprep.subr.bf16.mxu0 %v20488_v43 }
 0x36f   :  { %16714 = vmatmul.mubr.msk.bf16.vlgmr.msra.gmra.mrb[4].mxu0 %vm730_vm1, %v626_v35 }
 0x370   :  { %16726 = vmatpush3.bf16.msra.mxu0 %v20488_v43  ;;  %16731 = vmatprep.mubr.msk.bf16.mxu0 %vm730_vm1, %v929_v46  ;;  %v534_v46 = vld [vmem:[#allocation6] sm:$0x1] }
 0x371   :  { %16727 = vmatprep.subr.bf16.mxu0 %v20489_v47 }
 0x374   :  { %16728 = vmatpush3.bf16.msra.mxu0 %v20489_v47 }
 0x375   :  { %16729 = vmatprep.subr.bf16.mxu0 %v20490_v48 }
 0x378   :  { %16730 = vmatpush3.bf16.msra.mxu0 %v20490_v48 }
 0x379   :  { %16770 = vmatprep.subr.mxu0 %v21642_v63 }
 0x37b   :  { %16732 = vmatmul.mubr.msk.bf16.vlgmr.msra.gmra.mrb[4].mxu0 %vm730_vm1, %v930_v44 }
 0x37c   :  { %16772 = vmatprep.mubr.msk.f32.mxu0 %vm21641_vm2, %v21642_v63  ;;  %16771 = vmatpush3.msra.mxu0 %v552_v14 }
 0x37d   :  { %16810 = vmatprep.subr.mxu0 %v21642_v63 }
 0x44e   :  { %v22107_v1 = vpop.f32.mrb[4].mxu0 }
 0x44f   :  { %v22109_v2 = vpop.f32.mrb[5].mxu0 }
 0x450   :  { %v22111_v3 = vpop.f32.mrb[6].mxu0 }
 0x451   :  { %v22113_v4 = vpop.f32.mrb[7].mxu0 }
 0x452   :  { %v1015_v5 = vadd.f32 %v22113_v4, %v22109_v2 }
 0x454   :  { %v1016_v6 = vadd.f32 %v22107_v1, %v1015_v5 }
 0x456   :  { %v1017_v7 = vadd.f32 %v22111_v3, %v1016_v6 }
 0x458   :  { %v1018_v8 = vrot.slane %v1017_v7, 4 }
 0x45a   :  { %v1019_v9 = vadd.f32 %v1018_v8, %v1017_v7 }
 0x45c   :  { %v1020_v10 = vrot.slane %v1019_v9, 2 }
 0x45e   :  { %v1021_v11 = vadd.f32 %v1020_v10, %v1019_v9 }
 0x460   :  { %v1022_v12 = vrot.slane %v1021_v11, 1 }
 0x462   :  { %v1023_v13 = vadd.f32 %v1022_v12, %v1021_v11  ;;  %v20494_v12 = vld [vmem:[#allocation10 + $0x18] sm:$0xff]  }
 0x464   :  { %16768 = vmatmul.mubr.f32.vlgmr.msra.gmra.mrb[8].mxu1 %v1023_v13  ;;  %v20495_v13 = vld [vmem:[#allocation12 + $0x40] sm:$0xff]  }
 0x465   :  { %19398 = vmatpush3.bf16.msra.mxu1 %v22066_v20  ;;  %16807 = vmatprep.mubr.msk.f32.mxu1 %vm21641_vm2, %v21642_v63  ;;  %v1170_v20 = vshrl.u32 %v1169_v18, 7  ;;  %v20500_v18 = vld [vmem:[#allocation12 + $0x68] sm:$0xff]  }
 0x466   :  { %19399 = vmatprep.subr.bf16.mxu1 %v21640_v19 }
 0x467   :  { %v22137_v21 = vsub.s32 0, %v1170_v20  ;;  %v20501_v20 = vld [vmem:[#allocation12 + $0x70] sm:$0xff]  }
 0x469   :  { %19401 = vmatpush3.bf16.msra.mxu1 %v22072_v24 }
 0x46a   :  { %19402 = vmatprep.subr.bf16.mxu1 %v21640_v19 }
 0x46d   :  { %19404 = vmatpush3.bf16.msra.mxu1 %v22076_v25 }
 0x46e   :  { %19405 = vmatprep.subr.bf16.mxu1 %v21640_v19 }
 0x471   :  { %19407 = vmatpush3.bf16.msra.mxu1 %v19382_v51 }
 0x472   :  { %19408 = vmatprep.subr.bf16.mxu1 %v21640_v19 }
 0x475   :  { %19410 = vmatpush3.bf16.msra.mxu1 %v19385_v54 }
 0x476   :  { %19411 = vmatprep.subr.bf16.mxu1 %v21640_v19 }
 0x479   :  { %19413 = vmatpush3.bf16.msra.mxu1 %v19388_v57 }
 0x47a   :  { %19414 = vmatprep.subr.bf16.mxu1 %v21640_v19 }
 0x47d   :  { %19416 = vmatpush3.bf16.msra.mxu1 %v19391_v61 }
 0x47e   :  { %19417 = vmatprep.subr.bf16.mxu1 %v21640_v19 }
 0x481   :  { %19419 = vmatpush3.bf16.msra.mxu1 %v19394_v0 }
 0x482   :  { %16876 = vmatprep.subr.bf16.mxu1 %v21642_v63 }
 0x537   :  { %v1090_v15 = vpop.f32.mrb[8].mxu1 }
 0x538   :  { %v1094_v16 = vmul.f32 0.001953125, %v1090_v15  ;;  %v16769_v17 = vpop.f32.mrb[9].mxu1  ;;  %v20497_v15 = vld [vmem:[#allocation12 + $0x50] sm:$0xff]  }
 0x539   :  { %v20499_v17 = vld [vmem:[#allocation12 + $0x60] sm:$0xff]  }
 0x53a   :  { %16773 = vmatmul.mubr.msk.f32.vlgmr.msra.gmra.mrb[8].mxu0 %vm1095_vm3, %v1094_v16 }
 0x53b   :  { %16811 = vmatpush3.msra.mxu0 %v552_v14  ;;  %16812 = vmatprep.mubr.msk.f32.mxu0 %vm21641_vm2, %v21642_v63 }
 0x53c   :  { %16815 = vmatprep.subr.mxu0 %v21642_v63 }
 0x60d   :  { %v1165_v22 = vpop.f32.mrb[8].mxu0 }
 0x60e   :  { %v1172_v23 = vrot.slane %v1165_v22, %v22137_v21  ;;  %v16774_v24 = vpop.f32.mrb[9].mxu0  ;;  %v20502_v22 = vld [vmem:[#allocation12 + $0x78] sm:$0xff]  }
 0x60f   :  { %v1435_v24 = vld [vmem:[%s24204_s25 + $0x8] sm:$0xff] }
 0x610   :  { %v1173_v25 = vsub.f32 %v22109_v2, %v1172_v23  ;;  %v1174_v26 = vsub.f32 %v22113_v4, %v1172_v23  ;;  %v1175_v27 = vsub.f32 %v22107_v1, %v1172_v23  ;;  %v1176_v28 = vsub.f32 %v22111_v3, %v1172_v23  ;;  %v1434_v23 = vld [vmem:[%s24204_s25] sm:$0xff] }
 0x612   :  { %v1177_v29 = vmul.f32 %v1173_v25, %v1173_v25  ;;  %v1178_v30 = vmul.f32 %v1174_v26, %v1174_v26  ;;  %v1179_v31 = vmul.f32 %v1175_v27, %v1175_v27  ;;  %v1180_v33 = vmul.f32 %v1176_v28, %v1176_v28  ;;  %v1436_v25 = vld [vmem:[%s24204_s25 + $0x10] sm:$0xff]  ;;  %v1437_v27 = vld [vmem:[%s24204_s25 + $0x18] sm:$0xff] }
 0x613   :  { %v22190_v26 = vpack.c.bf16 %v1435_v24, %v1434_v23  ;;  %v22194_v28 = vpack.c.bf16 %v1437_v27, %v1436_v25  ;;  %v1446_v24 = vld [vmem:[%s24204_s25 + $0x60] sm:$0xff]  ;;  %v1447_v25 = vld [vmem:[%s24204_s25 + $0x68] sm:$0xff] }
 0x614   :  { %v1181_v32 = vadd.f32 %v1178_v30, %v1177_v29  ;;  %v1438_v29 = vld [vmem:[%s24204_s25 + $0x20] sm:$0xff]  ;;  %v1439_v30 = vld [vmem:[%s24204_s25 + $0x28] sm:$0xff]  ;;  %v19439_v27 = vpack.c.bf16 %v1447_v25, %v1446_v24  ;;  %v2580_v25 = vld [vmem:[#allocation18 + $0x4] sm:$0xf] }
 0x615   :  { %v2819_v24 = vld [vmem:[#allocation18 + $0x8] sm:$0xf] }
 0x616   :  { %v1182_v34 = vadd.f32 %v1181_v32, %v1179_v31  ;;  %v22200_v31 = vpack.c.bf16 %v1439_v30, %v1438_v29  ;;  %v1440_v32 = vld [vmem:[%s24204_s25 + $0x30] sm:$0xff]  ;;  %v1449_v30 = vld [vmem:[%s24204_s25 + $0x78] sm:$0xff] }
 0x617   :  { %v1448_v29 = vld [vmem:[%s24204_s25 + $0x70] sm:$0xff] }
 0x618   :  { %v1183_v35 = vadd.f32 %v1182_v34, %v1180_v33  ;;  %v1441_v33 = vld [vmem:[%s24204_s25 + $0x38] sm:$0xff] }
 0x619   :  { %v22206_v34 = vpack.c.bf16 %v1441_v33, %v1440_v32  ;;  %v19442_v32 = vpack.c.bf16 %v1449_v30, %v1448_v29  ;;  %v20527_v29 = vld [vmem:[#allocation19 + $0x40] sm:$0xff]   ;;  %v20528_v30 = vld [vmem:[#allocation19 + $0x48] sm:$0xff]  }
 0x61a   :  { %v1184_v36 = vrot.slane %v1183_v35, 4 }
 0x61c   :  { %v1185_v37 = vadd.f32 %v1184_v36, %v1183_v35 }
 0x61e   :  { %v1186_v38 = vrot.slane %v1185_v37, 2 }
 0x620   :  { %v1187_v39 = vadd.f32 %v1186_v38, %v1185_v37 }
 0x622   :  { %v1188_v40 = vrot.slane %v1187_v39, 1 }
 0x624   :  { %v1189_v41 = vadd.f32 %v1188_v40, %v1187_v39 }
 0x626   :  { %16808 = vmatmul.mubr.f32.vlgmr.msra.gmra.mrb[10].mxu1 %v1189_v41 }
 0x627   :  { %16880 = vmatprep.mubr.msk.bf16.mxu1 %vm21641_vm2, %v21642_v63 }
 0x6f9   :  { %v1256_v42 = vpop.f32.mrb[10].mxu1 }
 0x6fa   :  { %v1260_v43 = vmul.f32 0.001953125, %v1256_v42  ;;  %v16809_v44 = vpop.f32.mrb[11].mxu1 }
 0x6fc   :  { %v1261_v45 = vadd.f32 1e-05, %v1260_v43 }
 0x6fe   :  { %20881 = vrsqrt.f32 %v1261_v45 }
 0x708   :  { %v20882_v47 = vpop.eup %20881 }
 0x709   :  { %v1263_v48 = vmul.f32 %v20882_v47, %v534_v46 }
 0x70b   :  { %16813 = vmatmul.mubr.msk.f32.vlgmr.msra.gmra.mrb[10].mxu0 %vm1095_vm3, %v1263_v48  ;;  %v1264_v50 = vmul.f32 %v1263_v48, %v1094_v16  ;;  %v20498_v16 = vld [vmem:[#allocation12 + $0x58] sm:$0xff]  }
 0x70c   :  { %16816 = vmatpush3.msra.mxu0 %v552_v14  ;;  %16817 = vmatprep.mubr.msk.f32.mxu0 %vm21641_vm2, %v21642_v63  ;;  %v20496_v14 = vld [vmem:[#allocation12 + $0x48] sm:$0xff]  }
 0x70d   :  { %v1265_v51 = vsub.f32 %v535_v49, %v1264_v50  ;;  %16820 = vmatprep.subr.bf16.mxu0 %v21642_v63  ;;  %v20503_v50 = vld [vmem:[#allocation12] sm:$0xff]  }
 0x70f   :  { %16818 = vmatmul.mubr.msk.f32.vlgmr.msra.gmra.mrb[12].mxu0 %vm1095_vm3, %v1265_v51 }
 0x710   :  { %16824 = vmatprep.mubr.msk.bf16.mxu0 %vm21641_vm2, %v21642_v63 }
 0x7de   :  { %v1335_v52 = vpop.f32.mrb[10].mxu0 }
 0x7df   :  { %v1415_v53 = vrot.slane %v1335_v52, %v22137_v21  ;;  %v16814_v54 = vpop.f32.mrb[11].mxu0 }
 0x7e1   :  { %v1416_v55 = vmul.f32 %v1415_v53, %v22109_v2  ;;  %v1417_v56 = vmul.f32 %v1415_v53, %v22113_v4  ;;  %v1418_v57 = vmul.f32 %v22107_v1, %v1415_v53  ;;  %v1419_v58 = vmul.f32 %v22111_v3, %v1415_v53  ;;  %v20491_v1 = vld [vmem:[#allocation10] sm:$0xff]   ;;  %v20492_v3 = vld [vmem:[#allocation10 + $0x10] sm:$0xff]   ;;  %v20493_v4 = vld [vmem:[#allocation10 + $0x8] sm:$0xff]  }
 0x7e2   :  { %v1408_v59 = vpop.f32.mrb[12].mxu0 }
 0x7e3   :  { %v1423_v60 = vrot.slane %v1408_v59, %v22137_v21  ;;  %v16819_v61 = vpop.f32.mrb[13].mxu0  ;;  %v20507_v59 = vld [vmem:[#allocation12 + $0x20] sm:$0xff]  }
 0x7e4   :  { %v20509_v61 = vld [vmem:[#allocation12 + $0x30] sm:$0xff]  }
 0x7e5   :  { %v1424_v62 = vadd.f32 %v1423_v60, %v1416_v55  ;;  %v1425_v0 = vadd.f32 %v1423_v60, %v1417_v56  ;;  %v1426_v5 = vadd.f32 %v1423_v60, %v1418_v57  ;;  %v1427_v6 = vadd.f32 %v1423_v60, %v1419_v58  ;;  %v20504_v56 = vld [vmem:[#allocation12 + $0x8] sm:$0xff]   ;;  %v20505_v57 = vld [vmem:[#allocation12 + $0x10] sm:$0xff]   ;;  %v20506_v58 = vld [vmem:[#allocation12 + $0x18] sm:$0xff]  }
 0x7e6   :  { %v20508_v60 = vld [vmem:[#allocation12 + $0x28] sm:$0xff]  }
 0x7e7   :  { %v1428_v7 = vmax.f32 %v1424_v62, 0.0  ;;  %v1429_v8 = vmax.f32 %v1425_v0, 0.0  ;;  %v1430_v9 = vmax.f32 %v1426_v5, 0.0  ;;  %v1431_v10 = vmax.f32 %v1427_v6, 0.0  ;;  %v20510_v62 = vld [vmem:[#allocation12 + $0x38] sm:$0xff]   ;;  %v20511_v0 = vld [vmem:[#allocation12 + $0x80] sm:$0xff]  }
 0x7e8   :  { %v20512_v5 = vld [vmem:[#allocation12 + $0x88] sm:$0xff]   ;;  %v20513_v6 = vld [vmem:[#allocation12 + $0x90] sm:$0xff]  }
 0x7e9   :  { %v1452_v11 = vpack.c.bf16 %v1429_v8, %v1428_v7  ;;  %v1453_v2 = vpack.c.bf16 %v1431_v10, %v1430_v9  ;;  %v20514_v7 = vld [vmem:[#allocation12 + $0x98] sm:$0xff]   ;;  %v20515_v8 = vld [vmem:[#allocation12 + $0xa0] sm:$0xff]   ;;  %v20516_v9 = vld [vmem:[#allocation12 + $0xa8] sm:$0xff]  }
 0x7ea   :  { %v20517_v10 = vld [vmem:[#allocation12 + $0xb0] sm:$0xff]  }
 0x7eb   :  { %16821 = vmatpush3.bf16.msra.mxu0 %v1452_v11  ;;  %16877 = vmatpush3.bf16.msra.mxu1 %v1452_v11 }
 0x7ec   :  { %16822 = vmatprep.subr.bf16.mxu0 %v21642_v63  ;;  %16878 = vmatprep.subr.bf16.mxu1 %v21642_v63 }
 0x7ef   :  { %16823 = vmatpush3.bf16.msra.mxu0 %v1453_v2  ;;  %16879 = vmatpush3.bf16.msra.mxu1 %v1453_v2 }
 0x7f0   :  { %16828 = vmatprep.subr.bf16.mxu0 %v21642_v63  ;;  %16904 = vmatprep.subr.bf16.mxu1 %v21642_v63 }
 0x7f2   :  { %16825 = vmatmul.mubr.msk.bf16.vlgmr.msra.gmra.mrb[16].mxu0 %vm569_vm0, %v20491_v1  ;;  %16881 = vmatmul.mubr.msk.bf16.vlgmr.msra.gmra.mrb[12].mxu1 %vm569_vm0, %v20492_v3  ;;  %v20520_v1 = vld [vmem:[#allocation12 + $0xc8] sm:$0xff]   ;;  %v20521_v3 = vld [vmem:[#allocation12 + $0xd0] sm:$0xff]  }
 0x7f3   :  { %16829 = vmatpush3.bf16.msra.mxu0 %v1452_v11  ;;  %16905 = vmatpush3.bf16.msra.mxu1 %v1452_v11  ;;  %v20518_v11 = vld [vmem:[#allocation12 + $0xb8] sm:$0xff]  }
 0x7f4   :  { %16830 = vmatprep.subr.bf16.mxu0 %v21642_v63  ;;  %16906 = vmatprep.subr.bf16.mxu1 %v21642_v63 }
 0x7f5   :  { %16832 = vmatprep.mubr.msk.bf16.mxu0 %vm21641_vm2, %v21642_v63  ;;  %16908 = vmatprep.mubr.msk.bf16.mxu1 %vm21641_vm2, %v21642_v63 }
 0x7f7   :  { %16831 = vmatpush3.bf16.msra.mxu0 %v1453_v2  ;;  %16907 = vmatpush3.bf16.msra.mxu1 %v1453_v2  ;;  %v20519_v2 = vld [vmem:[#allocation12 + $0xc0] sm:$0xff]  }
 0x7f8   :  { %16836 = vmatprep.subr.bf16.mxu0 %v21642_v63  ;;  %19420 = vmatprep.subr.bf16.mxu1 %v21640_v19 }
 0x7fa   :  { %16833 = vmatmul.mubr.msk.bf16.vlgmr.msra.gmra.mrb[20].mxu0 %vm569_vm0, %v20493_v4  ;;  %16909 = vmatmul.mubr.msk.bf16.vlgmr.msra.gmra.mrb[16].mxu1 %vm569_vm0, %v20494_v12  ;;  %v20522_v4 = vld [vmem:[#allocation12 + $0xd8] sm:$0xff]   ;;  %v20523_v12 = vld [vmem:[#allocation12 + $0xe0] sm:$0xff]  }
 0x7fb   :  { %16837 = vmatpush3.bf16.msra.mxu0 %v20495_v13  ;;  %16852 = vmatprep.mubr.msk.bf16.mxu0 %vm21641_vm2, %v21642_v63  ;;  %v20524_v13 = vld [vmem:[#allocation12 + $0xe8] sm:$0xff]  }
 0x7fc   :  { %16838 = vmatprep.subr.bf16.mxu0 %v21642_v63  ;;  %16964 = vmatprep.mubr.msk.f32.mxu1 %vm21641_vm2, %v21642_v63 }
 0x7fd   :  { %19422 = vmatpush3.bf16.msra.mxu1 %v22190_v26 }
 0x7fe   :  { %19423 = vmatprep.subr.bf16.mxu1 %v21640_v19 }
 0x7ff   :  { %16839 = vmatpush3.bf16.msra.mxu0 %v20496_v14  ;;  %v20525_v14 = vld [vmem:[#allocation12 + $0xf0] sm:$0xff]  }
 0x800   :  { %16840 = vmatprep.subr.bf16.mxu0 %v21642_v63 }
 0x801   :  { %19425 = vmatpush3.bf16.msra.mxu1 %v22194_v28 }
 0x802   :  { %19426 = vmatprep.subr.bf16.mxu1 %v21640_v19 }
 0x803   :  { %16841 = vmatpush3.bf16.msra.mxu0 %v20497_v15  ;;  %v20526_v15 = vld [vmem:[#allocation12 + $0xf8] sm:$0xff]  }
 0x804   :  { %16842 = vmatprep.subr.bf16.mxu0 %v21642_v63 }
 0x805   :  { %19428 = vmatpush3.bf16.msra.mxu1 %v22200_v31 }
 0x806   :  { %19429 = vmatprep.subr.bf16.mxu1 %v21640_v19 }
 0x807   :  { %16843 = vmatpush3.bf16.msra.mxu0 %v20498_v16  ;;  %v1442_v16 = vld [vmem:[%s24204_s25 + $0x40] sm:$0xff] }
 0x808   :  { %16844 = vmatprep.subr.bf16.mxu0 %v21642_v63 }
 0x809   :  { %19431 = vmatpush3.bf16.msra.mxu1 %v22206_v34 }
 0x80a   :  { %19432 = vmatprep.subr.bf16.mxu1 %v21640_v19 }
 0x80b   :  { %16845 = vmatpush3.bf16.msra.mxu0 %v20499_v17  ;;  %v1443_v17 = vld [vmem:[%s24204_s25 + $0x48] sm:$0xff] }
 0x80c   :  { %16846 = vmatprep.subr.bf16.mxu0 %v21642_v63 }
 0x80f   :  { %16847 = vmatpush3.bf16.msra.mxu0 %v20500_v18  ;;  %v19433_v18 = vpack.c.bf16 %v1443_v17, %v1442_v16 }
 0x810   :  { %16848 = vmatprep.subr.bf16.mxu0 %v21642_v63 }
 0x811   :  { %19434 = vmatpush3.bf16.msra.mxu1 %v19433_v18 }
 0x812   :  { %19435 = vmatprep.subr.bf16.mxu1 %v21640_v19 }
 0x813   :  { %16849 = vmatpush3.bf16.msra.mxu0 %v20501_v20  ;;  %v1444_v20 = vld [vmem:[%s24204_s25 + $0x50] sm:$0xff] }
 0x814   :  { %16850 = vmatprep.subr.bf16.mxu0 %v21642_v63 }
 0x817   :  { %16851 = vmatpush3.bf16.msra.mxu0 %v20502_v22  ;;  %v1445_v22 = vld [vmem:[%s24204_s25 + $0x58] sm:$0xff] }
 0x818   :  { %16856 = vmatprep.subr.bf16.mxu0 %v21642_v63  ;;  %v19436_v23 = vpack.c.bf16 %v1445_v22, %v1444_v20 }
 0x81a   :  { %19437 = vmatpush3.bf16.msra.mxu1 %v19436_v23 }
 0x81b   :  { %19438 = vmatprep.subr.bf16.mxu1 %v21640_v19 }
 0x81e   :  { %19440 = vmatpush3.bf16.msra.mxu1 %v19439_v27 }
 0x81f   :  { %19441 = vmatprep.subr.bf16.mxu1 %v21640_v19 }
 0x822   :  { %19443 = vmatpush3.bf16.msra.mxu1 %v19442_v32 }
 0x823   :  { %19444 = vmatprep.subr.bf16.mxu1 %v21640_v19 }
 0x8c5   :  { %v1498_v35 = vpop.f32.mrb[16].mxu0  ;;  %v22211_v36 = vpop.f32.mrb[12].mxu1 }
 0x8c6   :  { %v16826_v37 = vpop.f32.mrb[17].mxu0  ;;  %v16882_v38 = vpop.f32.mrb[13].mxu1 }
 0x8c7   :  { %v1501_v39 = vpop.f32.mrb[18].mxu0  ;;  %v22213_v40 = vpop.f32.mrb[14].mxu1 }
 0x8c8   :  { %v1505_v41 = vpack.c.bf16 %v1501_v39, %v1498_v35  ;;  %v16827_v42 = vpop.f32.mrb[19].mxu0  ;;  %v1822_v43 = vpack.c.bf16 %v22213_v40, %v22211_v36  ;;  %v16883_v44 = vpop.f32.mrb[15].mxu1 }
 0x8cd   :  { %v1567_v45 = vpop.f32.mrb[20].mxu0  ;;  %v22217_v46 = vpop.f32.mrb[16].mxu1 }
 0x8ce   :  { %v16834_v47 = vpop.f32.mrb[21].mxu0  ;;  %v16910_v48 = vpop.f32.mrb[17].mxu1 }
 0x8cf   :  { %v1570_v49 = vpop.f32.mrb[22].mxu0  ;;  %v22219_v51 = vpop.f32.mrb[18].mxu1 }
 0x8d0   :  { %v1574_v52 = vpack.c.bf16 %v1570_v49, %v1567_v45  ;;  %v16835_v53 = vpop.f32.mrb[23].mxu0  ;;  %v1983_v54 = vpack.c.bf16 %v22219_v51, %v22217_v46  ;;  %v16911_v55 = vpop.f32.mrb[19].mxu1  ;;  %v1450_v45 = vld [vmem:[#allocation16] sm:$0xff]  ;;  %v1451_v46 = vld [vmem:[#allocation16 + $0x8] sm:$0xff] }
 0x8d1   :  { %v19445_v47 = vpack.c.bf16 %v1451_v46, %v1450_v45  ;;  %v2501_v45 = vld [vmem:[%s24205_s22 + $0x20] sm:$0xff]  ;;  %v2502_v46 = vld [vmem:[%s24205_s22 + $0x28] sm:$0xff] }
 0x8d2   :  { %16853 = vmatmul.mubr.bf16.vlgmr.msra.gmra.mrb[24].mxu0 %v1574_v52 }
 0x8d3   :  { %16857 = vmatpush3.bf16.msra.mxu0 %v20503_v50  ;;  %16872 = vmatprep.mubr.msk.bf16.mxu0 %vm21641_vm2, %v21642_v63 }
 0x8d4   :  { %16858 = vmatprep.subr.bf16.mxu0 %v21642_v63 }
 0x8d7   :  { %16859 = vmatpush3.bf16.msra.mxu0 %v20504_v56 }
 0x8d8   :  { %16860 = vmatprep.subr.bf16.mxu0 %v21642_v63 }
 0x8db   :  { %16861 = vmatpush3.bf16.msra.mxu0 %v20505_v57 }
 0x8dc   :  { %16862 = vmatprep.subr.bf16.mxu0 %v21642_v63 }
 0x8df   :  { %16863 = vmatpush3.bf16.msra.mxu0 %v20506_v58 }
 0x8e0   :  { %16864 = vmatprep.subr.bf16.mxu0 %v21642_v63 }
 0x8e3   :  { %16865 = vmatpush3.bf16.msra.mxu0 %v20507_v59 }
 0x8e4   :  { %16866 = vmatprep.subr.bf16.mxu0 %v21642_v63 }
 0x8e7   :  { %16867 = vmatpush3.bf16.msra.mxu0 %v20508_v60 }
 0x8e8   :  { %16868 = vmatprep.subr.bf16.mxu0 %v21642_v63 }
 0x8eb   :  { %16869 = vmatpush3.bf16.msra.mxu0 %v20509_v61 }
 0x8ec   :  { %16870 = vmatprep.subr.bf16.mxu0 %v21642_v63 }
 0x8ef   :  { %16871 = vmatpush3.bf16.msra.mxu0 %v20510_v62 }
 0x8f0   :  { %16884 = vmatprep.subr.bf16.mxu0 %v21642_v63 }
 0x8f2   :  { %16873 = vmatmul.mubr.bf16.vlgmr.msra.gmra.mrb[24].mxu0 %v1505_v41 }
 0x8f3   :  { %16885 = vmatpush3.bf16.msra.mxu0 %v20511_v0  ;;  %16900 = vmatprep.mubr.msk.bf16.mxu0 %vm21641_vm2, %v21642_v63 }
 0x8f4   :  { %16886 = vmatprep.subr.bf16.mxu0 %v21642_v63 }
 0x8f7   :  { %16887 = vmatpush3.bf16.msra.mxu0 %v20512_v5 }
 0x8f8   :  { %16888 = vmatprep.subr.bf16.mxu0 %v21642_v63 }
 0x8fb   :  { %16889 = vmatpush3.bf16.msra.mxu0 %v20513_v6  ;;  %v1432_v6 = vld [vmem:[#allocation13] sm:$0x1] }
 0x8fc   :  { %16890 = vmatprep.subr.bf16.mxu0 %v21642_v63 }
 0x8ff   :  { %16891 = vmatpush3.bf16.msra.mxu0 %v20514_v7 }
 0x900   :  { %16892 = vmatprep.subr.bf16.mxu0 %v21642_v63 }
 0x903   :  { %16893 = vmatpush3.bf16.msra.mxu0 %v20515_v8 }
 0x904   :  { %16894 = vmatprep.subr.bf16.mxu0 %v21642_v63 }
 0x907   :  { %16895 = vmatpush3.bf16.msra.mxu0 %v20516_v9  ;;  %v1433_v9 = vld [vmem:[#allocation15] sm:$0x1] }
 0x908   :  { %16896 = vmatprep.subr.bf16.mxu0 %v21642_v63 }
 0x90b   :  { %16897 = vmatpush3.bf16.msra.mxu0 %v20517_v10 }
 0x90c   :  { %16898 = vmatprep.subr.bf16.mxu0 %v21642_v63 }
 0x90f   :  { %16899 = vmatpush3.bf16.msra.mxu0 %v20518_v11 }
 0x910   :  { %16912 = vmatprep.subr.bf16.mxu0 %v21642_v63 }
 0x912   :  { %16901 = vmatmul.mubr.bf16.vlgmr.msra.gmra.mrb[24].mxu0 %v1822_v43 }
 0x913   :  { %16913 = vmatpush3.bf16.msra.mxu0 %v20519_v2  ;;  %16928 = vmatprep.mubr.msk.bf16.mxu0 %vm21641_vm2, %v21642_v63 }
 0x914   :  { %16914 = vmatprep.subr.bf16.mxu0 %v21642_v63 }
 0x917   :  { %16915 = vmatpush3.bf16.msra.mxu0 %v20520_v1 }
 0x918   :  { %16916 = vmatprep.subr.bf16.mxu0 %v21642_v63 }
 0x91b   :  { %16917 = vmatpush3.bf16.msra.mxu0 %v20521_v3 }
 0x91c   :  { %16918 = vmatprep.subr.bf16.mxu0 %v21642_v63 }
 0x91f   :  { %16919 = vmatpush3.bf16.msra.mxu0 %v20522_v4 }
 0x920   :  { %16920 = vmatprep.subr.bf16.mxu0 %v21642_v63 }
 0x923   :  { %16921 = vmatpush3.bf16.msra.mxu0 %v20523_v12 }
 0x924   :  { %16922 = vmatprep.subr.bf16.mxu0 %v21642_v63 }
 0x927   :  { %16923 = vmatpush3.bf16.msra.mxu0 %v20524_v13 }
 0x928   :  { %16924 = vmatprep.subr.bf16.mxu0 %v21642_v63 }
 0x92b   :  { %16925 = vmatpush3.bf16.msra.mxu0 %v20525_v14 }
 0x92c   :  { %16926 = vmatprep.subr.bf16.mxu0 %v21642_v63 }
 0x92f   :  { %16927 = vmatpush3.bf16.msra.mxu0 %v20526_v15 }
 0x930   :  { %17075 = vmatprep.subr.bf16.mxu0 %v21642_v63 }
 0x932   :  { %16929 = vmatmul.mubr.bf16.vlgmr.msra.gmra.mrb[24].mxu0 %v1983_v54 }
 0x933   :  { %17077 = vmatprep.mubr.msk.bf16.mxu0 %vm21641_vm2, %v21642_v63 }
 0xa05   :  { %v22273_v33 = vpop.f32.mrb[24].mxu0 }
 0xa06   :  { %v16930_v35 = vpop.f32.mrb[25].mxu0 }
 0xa07   :  { %v22275_v36 = vpop.f32.mrb[26].mxu0  ;;  %v20531_v35 = vld [vmem:[#allocation19 + $0x60] sm:$0xff]  }
 0xa08   :  { %v2092_v37 = vadd.f32 %v22275_v36, %v22273_v33  ;;  %v16931_v38 = vpop.f32.mrb[27].mxu0 }
 0xa09   :  { %v20534_v38 = vld [vmem:[#allocation19 + $0x78] sm:$0xff]  }
 0xa0a   :  { %v2093_v39 = vrot.slane %v2092_v37, 4 }
 0xa0c   :  { %v2094_v40 = vadd.f32 %v2093_v39, %v2092_v37  ;;  %v20533_v37 = vld [vmem:[#allocation19 + $0x70] sm:$0xff]   ;;  %v2497_v39 = vld [vmem:[%s24205_s22] sm:$0xff] }
 0xa0e   :  { %v2095_v41 = vrot.slane %v2094_v40, 2 }
 0xa10   :  { %v2096_v42 = vadd.f32 %v2095_v41, %v2094_v40  ;;  %v2498_v40 = vld [vmem:[%s24205_s22 + $0x8] sm:$0xff]  ;;  %v2499_v41 = vld [vmem:[%s24205_s22 + $0x10] sm:$0xff] }
 0xa12   :  { %v2097_v43 = vrot.slane %v2096_v42, 1 }
 0xa14   :  { %v2098_v44 = vadd.f32 %v2097_v43, %v2096_v42  ;;  %v22341_v42 = vpack.c.bf16 %v2498_v40, %v2497_v39  ;;  %v2500_v43 = vld [vmem:[%s24205_s22 + $0x18] sm:$0xff]  ;;  %v2509_v40 = vld [vmem:[%s24205_s22 + $0x60] sm:$0xff] }
 0xa16   :  { %16965 = vmatmul.mubr.f32.vlgmr.msra.gmra.mrb[20].mxu1 %v2098_v44  ;;  %v22345_v44 = vpack.c.bf16 %v2500_v43, %v2499_v41  ;;  %v2510_v41 = vld [vmem:[%s24205_s22 + $0x68] sm:$0xff] }
 0xa17   :  { %16971 = vmatprep.mubr.msk.f32.mxu1 %vm21641_vm2, %v21642_v63  ;;  %19446 = vmatpush3.bf16.msra.mxu1 %v19445_v47  ;;  %v19496_v43 = vpack.c.bf16 %v2510_v41, %v2509_v40 }
 0xa18   :  { %19447 = vmatprep.subr.bf16.mxu1 %v21640_v19 }
 0xae9   :  { %v2165_v48 = vpop.f32.mrb[20].mxu1 }
 0xaea   :  { %v2169_v49 = vmul.f32 0.0078125, %v2165_v48  ;;  %v16966_v50 = vpop.f32.mrb[21].mxu1  ;;  %v2503_v48 = vld [vmem:[%s24205_s22 + $0x30] sm:$0xff] }
 0xaec   :  { %16972 = vmatmul.mubr.msk.f32.vlgmr.msra.gmra.mrb[22].mxu1 %vm2170_vm4, %v2169_v49 }
 0xaed   :  { %19449 = vmatpush3.bf16.msra.mxu1 %v22190_v26  ;;  %17006 = vmatprep.mubr.msk.f32.mxu1 %vm21641_vm2, %v21642_v63 }
 0xaee   :  { %19450 = vmatprep.subr.bf16.mxu1 %v21640_v19 }
 0xaf1   :  { %19452 = vmatpush3.bf16.msra.mxu1 %v22194_v28 }
 0xaf2   :  { %19453 = vmatprep.subr.bf16.mxu1 %v21640_v19 }
 0xaf5   :  { %19455 = vmatpush3.bf16.msra.mxu1 %v22200_v31 }
 0xaf6   :  { %19456 = vmatprep.subr.bf16.mxu1 %v21640_v19 }
 0xaf9   :  { %19458 = vmatpush3.bf16.msra.mxu1 %v22206_v34 }
 0xafa   :  { %19459 = vmatprep.subr.bf16.mxu1 %v21640_v19 }
 0xafd   :  { %19461 = vmatpush3.bf16.msra.mxu1 %v19433_v18 }
 0xafe   :  { %19462 = vmatprep.subr.bf16.mxu1 %v21640_v19 }
 0xb01   :  { %19464 = vmatpush3.bf16.msra.mxu1 %v19436_v23  ;;  %v2518_v23 = vld [vmem:[#allocation18] sm:$0xf] }
 0xb02   :  { %19465 = vmatprep.subr.bf16.mxu1 %v21640_v19 }
 0xb05   :  { %19467 = vmatpush3.bf16.msra.mxu1 %v19439_v27  ;;  %v2971_v27 = vld [vmem:[#allocation18 + $0xc] sm:$0xf] }
 0xb06   :  { %19468 = vmatprep.subr.bf16.mxu1 %v21640_v19 }
 0xb09   :  { %19470 = vmatpush3.bf16.msra.mxu1 %v19442_v32  ;;  %v20529_v32 = vld [vmem:[#allocation19 + $0x50] sm:$0xff]  }
 0xb0a   :  { %19471 = vmatprep.subr.bf16.mxu1 %v21640_v19 }
 0xbbf   :  { %v2240_v26 = vpop.f32.mrb[22].mxu1 }
 0xbc0   :  { %v2247_v28 = vrot.slane %v2240_v26, %v22137_v21  ;;  %v16973_v31 = vpop.f32.mrb[23].mxu1  ;;  %v2505_v26 = vld [vmem:[%s24205_s22 + $0x40] sm:$0xff] }
 0xbc2   :  { %v2248_v34 = vsub.f32 %v22273_v33, %v2247_v28  ;;  %v2249_v51 = vsub.f32 %v22275_v36, %v2247_v28  ;;  %v2506_v28 = vld [vmem:[%s24205_s22 + $0x48] sm:$0xff] }
 0xbc3   :  { %v22363_v31 = vpack.c.bf16 %v2506_v28, %v2505_v26 }
 0xbc4   :  { %v2250_v52 = vmul.f32 %v2248_v34, %v2248_v34  ;;  %v2251_v53 = vmul.f32 %v2249_v51, %v2249_v51 }
 0xbc6   :  { %v2252_v54 = vadd.f32 %v2251_v53, %v2250_v52 }
 0xbc8   :  { %v2253_v55 = vrot.slane %v2252_v54, 4 }
 0xbca   :  { %v2254_v56 = vadd.f32 %v2253_v55, %v2252_v54 }
 0xbcc   :  { %v2255_v57 = vrot.slane %v2254_v56, 2 }
 0xbce   :  { %v2256_v58 = vadd.f32 %v2255_v57, %v2254_v56 }
 0xbd0   :  { %v2257_v59 = vrot.slane %v2256_v58, 1 }
 0xbd2   :  { %v2258_v60 = vadd.f32 %v2257_v59, %v2256_v58  ;;  %v20535_v59 = vld [vmem:[#allocation19] sm:$0xff]  }
 0xbd4   :  { %17007 = vmatmul.mubr.f32.vlgmr.msra.gmra.mrb[24].mxu1 %v2258_v60 }
 0xbd5   :  { %19473 = vmatpush3.bf16.msra.mxu1 %v19445_v47  ;;  %17013 = vmatprep.mubr.msk.f32.mxu1 %vm21641_vm2, %v21642_v63 }
 0xbd6   :  { %19474 = vmatprep.subr.bf16.mxu1 %v21640_v19 }
 0xca7   :  { %v2325_v61 = vpop.f32.mrb[24].mxu1 }
 0xca8   :  { %v2329_v62 = vmul.f32 0.0078125, %v2325_v61  ;;  %v17008_v0 = vpop.f32.mrb[25].mxu1 }
 0xcaa   :  { %v2330_v5 = vadd.f32 1e-05, %v2329_v62 }
 0xcac   :  { %20883 = vrsqrt.f32 %v2330_v5 }
 0xcb6   :  { %v20884_v7 = vpop.eup %20883 }
 0xcb7   :  { %v2332_v8 = vmul.f32 %v20884_v7, %v1432_v6 }
 0xcb9   :  { %17014 = vmatmul.mubr.msk.f32.vlgmr.msra.gmra.mrb[26].mxu1 %vm2170_vm4, %v2332_v8  ;;  %v2333_v10 = vmul.f32 %v2332_v8, %v2169_v49  ;;  %v2504_v49 = vld [vmem:[%s24205_s22 + $0x38] sm:$0xff] }
 0xcba   :  { %19476 = vmatpush3.bf16.msra.mxu1 %v19445_v47  ;;  %17020 = vmatprep.mubr.msk.f32.mxu1 %vm21641_vm2, %v21642_v63  ;;  %v22351_v47 = vpack.c.bf16 %v2502_v46, %v2501_v45  ;;  %v22357_v50 = vpack.c.bf16 %v2504_v49, %v2503_v48  ;;  %v2511_v45 = vld [vmem:[%s24205_s22 + $0x70] sm:$0xff]  ;;  %v2512_v46 = vld [vmem:[%s24205_s22 + $0x78] sm:$0xff] }
 0xcbb   :  { %v2334_v11 = vsub.f32 %v1433_v9, %v2333_v10  ;;  %17023 = vmatprep.subr.bf16.mxu1 %v21642_v63  ;;  %v20536_v9 = vld [vmem:[#allocation19 + $0x8] sm:$0xff]   ;;  %v20537_v10 = vld [vmem:[#allocation19 + $0x10] sm:$0xff]   ;;  %v19499_v48 = vpack.c.bf16 %v2512_v46, %v2511_v45 }
 0xcbc   :  { %v22483_v45 = vld [vmem:[#allocation25 + $0x4] sm:$0xf]  ;;  %v22490_v46 = vld [vmem:[#allocation25 + $0x8] sm:$0xf] }
 0xcbd   :  { %17021 = vmatmul.mubr.msk.f32.vlgmr.msra.gmra.mrb[28].mxu1 %vm2170_vm4, %v2334_v11  ;;  %v20538_v11 = vld [vmem:[#allocation19 + $0x18] sm:$0xff]  }
 0xcbe   :  { %17025 = vmatprep.mubr.msk.bf16.mxu1 %vm21641_vm2, %v21642_v63 }
 0xd8c   :  { %v2404_v2 = vpop.f32.mrb[26].mxu1 }
 0xd8d   :  { %v2484_v1 = vrot.slane %v2404_v2, %v22137_v21  ;;  %v17015_v3 = vpop.f32.mrb[27].mxu1  ;;  %v20539_v2 = vld [vmem:[#allocation19 + $0x20] sm:$0xff]  }
 0xd8e   :  { %v20541_v3 = vld [vmem:[#allocation19 + $0x30] sm:$0xff]  }
 0xd8f   :  { %v2485_v4 = vmul.f32 %v2484_v1, %v22273_v33  ;;  %v2486_v12 = vmul.f32 %v2484_v1, %v22275_v36  ;;  %v20530_v33 = vld [vmem:[#allocation19 + $0x58] sm:$0xff]   ;;  %v20532_v36 = vld [vmem:[#allocation19 + $0x68] sm:$0xff]  }
 0xd90   :  { %v2477_v13 = vpop.f32.mrb[28].mxu1  ;;  %v20540_v1 = vld [vmem:[#allocation19 + $0x28] sm:$0xff]  }
 0xd91   :  { %v2490_v14 = vrot.slane %v2477_v13, %v22137_v21  ;;  %v17022_v15 = vpop.f32.mrb[29].mxu1 }
 0xd92   :  { %v20545_v15 = vld [vmem:[#allocation19 + $0x90] sm:$0xff]  }
 0xd93   :  { %v2491_v16 = vadd.f32 %v2490_v14, %v2485_v4  ;;  %v2492_v17 = vadd.f32 %v2490_v14, %v2486_v12  ;;  %v20542_v4 = vld [vmem:[#allocation19 + $0x38] sm:$0xff]   ;;  %v20543_v12 = vld [vmem:[#allocation19 + $0x80] sm:$0xff]   ;;  %v20544_v14 = vld [vmem:[#allocation19 + $0x88] sm:$0xff]  }
 0xd95   :  { %v2493_v18 = vmax.f32 %v2491_v16, 0.0  ;;  %v2494_v20 = vmax.f32 %v2492_v17, 0.0  ;;  %v20546_v16 = vld [vmem:[#allocation19 + $0x98] sm:$0xff]   ;;  %v20547_v17 = vld [vmem:[#allocation19 + $0xa0] sm:$0xff]  }
 0xd97   :  { %v2517_v22 = vpack.c.bf16 %v2494_v20, %v2493_v18  ;;  %v20548_v18 = vld [vmem:[#allocation19 + $0xa8] sm:$0xff]   ;;  %v20549_v20 = vld [vmem:[#allocation19 + $0xb0] sm:$0xff]  }
 0xd99   :  { %17024 = vmatpush3.bf16.msra.mxu1 %v2517_v22  ;;  %17076 = vmatpush3.bf16.msra.mxu0 %v2517_v22 }
 0xd9a   :  { %17029 = vmatprep.subr.bf16.mxu1 %v21642_v63  ;;  %17101 = vmatprep.subr.bf16.mxu0 %v21642_v63 }
 0xd9c   :  { %17026 = vmatmul.mubr.msk.bf16.vlgmr.msra.gmra.mrb[32].mxu1 %vm2170_vm4, %v2518_v23  ;;  %17078 = vmatmul.mubr.msk.bf16.vlgmr.msra.gmra.mrb[28].mxu0 %vm2170_vm4, %v2819_v24  ;;  %v20551_v24 = vld [vmem:[#allocation19 + $0xc0] sm:$0xff]  }
 0xd9d   :  { %17030 = vmatpush3.bf16.msra.mxu1 %v2517_v22  ;;  %17102 = vmatpush3.bf16.msra.mxu0 %v2517_v22  ;;  %v20550_v22 = vld [vmem:[#allocation19 + $0xb8] sm:$0xff]  }
 0xd9e   :  { %17031 = vmatprep.mubr.msk.bf16.mxu1 %vm21641_vm2, %v21642_v63  ;;  %17103 = vmatprep.mubr.msk.bf16.mxu0 %vm21641_vm2, %v21642_v63 }
 0xd9f   :  { %17035 = vmatprep.subr.bf16.mxu1 %v21642_v63  ;;  %19477 = vmatprep.subr.bf16.mxu0 %v21640_v19 }
 0xda4   :  { %17032 = vmatmul.mubr.msk.bf16.vlgmr.msra.gmra.mrb[36].mxu1 %vm2170_vm4, %v2580_v25  ;;  %17104 = vmatmul.mubr.msk.bf16.vlgmr.msra.gmra.mrb[32].mxu0 %vm2170_vm4, %v2971_v27  ;;  %v20552_v25 = vld [vmem:[#allocation19 + $0xc8] sm:$0xff]   ;;  %v20553_v27 = vld [vmem:[#allocation19 + $0xd0] sm:$0xff]  }
 0xda5   :  { %17036 = vmatpush3.bf16.msra.mxu1 %v20527_v29  ;;  %17051 = vmatprep.mubr.msk.bf16.mxu1 %vm21641_vm2, %v21642_v63  ;;  %v20554_v29 = vld [vmem:[#allocation19 + $0xd8] sm:$0xff]  }
 0xda6   :  { %17037 = vmatprep.subr.bf16.mxu1 %v21642_v63  ;;  %17159 = vmatprep.mubr.msk.f32.mxu0 %vm21641_vm2, %v21642_v63 }
 0xda7   :  { %19479 = vmatpush3.bf16.msra.mxu0 %v22341_v42 }
 0xda8   :  { %19480 = vmatprep.subr.bf16.mxu0 %v21640_v19 }
 0xda9   :  { %17038 = vmatpush3.bf16.msra.mxu1 %v20528_v30  ;;  %v20555_v30 = vld [vmem:[#allocation19 + $0xe0] sm:$0xff]  }
 0xdaa   :  { %17039 = vmatprep.subr.bf16.mxu1 %v21642_v63 }
 0xdab   :  { %19482 = vmatpush3.bf16.msra.mxu0 %v22345_v44 }
 0xdac   :  { %19483 = vmatprep.subr.bf16.mxu0 %v21640_v19 }
 0xdad   :  { %17040 = vmatpush3.bf16.msra.mxu1 %v20529_v32  ;;  %v20556_v32 = vld [vmem:[#allocation19 + $0xe8] sm:$0xff]  }
 0xdae   :  { %17041 = vmatprep.subr.bf16.mxu1 %v21642_v63 }
 0xdaf   :  { %19485 = vmatpush3.bf16.msra.mxu0 %v22351_v47 }
 0xdb0   :  { %19486 = vmatprep.subr.bf16.mxu0 %v21640_v19 }
 0xdb1   :  { %17042 = vmatpush3.bf16.msra.mxu1 %v20530_v33  ;;  %v20557_v33 = vld [vmem:[#allocation19 + $0xf0] sm:$0xff]  }
 0xdb2   :  { %17043 = vmatprep.subr.bf16.mxu1 %v21642_v63 }
 0xdb3   :  { %19488 = vmatpush3.bf16.msra.mxu0 %v22357_v50 }
 0xdb4   :  { %19489 = vmatprep.subr.bf16.mxu0 %v21640_v19 }
 0xdb5   :  { %17044 = vmatpush3.bf16.msra.mxu1 %v20531_v35  ;;  %v20558_v35 = vld [vmem:[#allocation19 + $0xf8] sm:$0xff]  }
 0xdb6   :  { %17045 = vmatprep.subr.bf16.mxu1 %v21642_v63 }
 0xdb7   :  { %19491 = vmatpush3.bf16.msra.mxu0 %v22363_v31 }
 0xdb8   :  { %19492 = vmatprep.subr.bf16.mxu0 %v21640_v19 }
 0xdb9   :  { %17046 = vmatpush3.bf16.msra.mxu1 %v20532_v36 }
 0xdba   :  { %17047 = vmatprep.subr.bf16.mxu1 %v21642_v63 }
 0xdbd   :  { %17048 = vmatpush3.bf16.msra.mxu1 %v20533_v37  ;;  %v2507_v37 = vld [vmem:[%s24205_s22 + $0x50] sm:$0xff] }
 0xdbe   :  { %17049 = vmatprep.subr.bf16.mxu1 %v21642_v63 }
 0xdc1   :  { %17050 = vmatpush3.bf16.msra.mxu1 %v20534_v38  ;;  %v2508_v38 = vld [vmem:[%s24205_s22 + $0x58] sm:$0xff] }
 0xdc2   :  { %17055 = vmatprep.subr.bf16.mxu1 %v21642_v63  ;;  %v19493_v39 = vpack.c.bf16 %v2508_v38, %v2507_v37 }
 0xdc4   :  { %19494 = vmatpush3.bf16.msra.mxu0 %v19493_v39 }
 0xdc5   :  { %19495 = vmatprep.subr.bf16.mxu0 %v21640_v19 }
 0xdc8   :  { %19497 = vmatpush3.bf16.msra.mxu0 %v19496_v43 }
 0xdc9   :  { %19498 = vmatprep.subr.bf16.mxu0 %v21640_v19 }
 0xdcc   :  { %19500 = vmatpush3.bf16.msra.mxu0 %v19499_v48 }
 0xdcd   :  { %19501 = vmatprep.subr.bf16.mxu0 %v21640_v19 }
 0xe6f   :  { %v2556_v34 = vpop.f32.mrb[32].mxu1  ;;  %v22368_v51 = vpop.f32.mrb[28].mxu0 }
 0xe70   :  { %v17027_v52 = vpop.f32.mrb[33].mxu1  ;;  %v17079_v53 = vpop.f32.mrb[29].mxu0  ;;  %v2562_v13 = vpack.c.bf16 %v2556_v34, %v2556_v34  ;;  %v2863_v23 = vpack.c.bf16 %v22368_v51, %v22368_v51 }
 0xe71   :  { %v2559_v54 = vpop.f32.mrb[34].mxu1  ;;  %v2860_v55 = vpop.f32.mrb[30].mxu0 }
 0xe72   :  { %v17028_v56 = vpop.f32.mrb[35].mxu1  ;;  %v17080_v57 = vpop.f32.mrb[31].mxu0  ;;  %v2513_v55 = vld [vmem:[#allocation24] sm:$0xff] }
 0xe73   :  { %v2514_v56 = vld [vmem:[#allocation24 + $0x8] sm:$0xff] }
 0xe77   :  { %v2618_v58 = vpop.f32.mrb[36].mxu1  ;;  %v22370_v60 = vpop.f32.mrb[32].mxu0 }
 0xe78   :  { %v2624_v61 = vpack.c.bf16 %v2618_v58, %v2618_v58  ;;  %v17033_v62 = vpop.f32.mrb[37].mxu1  ;;  %v17105_v0 = vpop.f32.mrb[33].mxu0  ;;  %v3015_v36 = vpack.c.bf16 %v22370_v60, %v22370_v60  ;;  %v19502_v58 = vpack.c.bf16 %v2514_v56, %v2513_v55  ;;  %v2515_v60 = vld [vmem:[#allocation24 + $0x10] sm:$0xff] }
 0xe79   :  { %v2621_v5 = vpop.f32.mrb[38].mxu1  ;;  %v3012_v6 = vpop.f32.mrb[34].mxu0 }
 0xe7a   :  { %v17034_v7 = vpop.f32.mrb[39].mxu1  ;;  %17052 = vmatmul.mubr.bf16.vlgmr.msra.gmra.mrb[40].mxu1 %v2624_v61  ;;  %v17106_v8 = vpop.f32.mrb[35].mxu0  ;;  %v2516_v61 = vld [vmem:[#allocation24 + $0x18] sm:$0xff] }
 0xe7b   :  { %17056 = vmatpush3.bf16.msra.mxu1 %v20535_v59  ;;  %17071 = vmatprep.mubr.msk.bf16.mxu1 %vm21641_vm2, %v21642_v63  ;;  %v19505_v62 = vpack.c.bf16 %v2516_v61, %v2515_v60 }
 0xe7c   :  { %17057 = vmatprep.subr.bf16.mxu1 %v21642_v63 }
 0xe7f   :  { %17058 = vmatpush3.bf16.msra.mxu1 %v20536_v9 }
 0xe80   :  { %17059 = vmatprep.subr.bf16.mxu1 %v21642_v63 }
 0xe83   :  { %17060 = vmatpush3.bf16.msra.mxu1 %v20537_v10 }
 0xe84   :  { %17061 = vmatprep.subr.bf16.mxu1 %v21642_v63 }
 0xe87   :  { %17062 = vmatpush3.bf16.msra.mxu1 %v20538_v11 }
 0xe88   :  { %17063 = vmatprep.subr.bf16.mxu1 %v21642_v63 }
 0xe8b   :  { %17064 = vmatpush3.bf16.msra.mxu1 %v20539_v2 }
 0xe8c   :  { %17065 = vmatprep.subr.bf16.mxu1 %v21642_v63 }
 0xe8f   :  { %17066 = vmatpush3.bf16.msra.mxu1 %v20540_v1 }
 0xe90   :  { %17067 = vmatprep.subr.bf16.mxu1 %v21642_v63 }
 0xe93   :  { %17068 = vmatpush3.bf16.msra.mxu1 %v20541_v3 }
 0xe94   :  { %17069 = vmatprep.subr.bf16.mxu1 %v21642_v63 }
 0xe97   :  { %17070 = vmatpush3.bf16.msra.mxu1 %v20542_v4 }
 0xe98   :  { %17081 = vmatprep.subr.bf16.mxu1 %v21642_v63 }
 0xe9a   :  { %17072 = vmatmul.mubr.bf16.vlgmr.msra.gmra.mrb[40].mxu1 %v2562_v13  ;;  %v2495_v13 = vld [vmem:[#allocation21] sm:$0x1] }
 0xe9b   :  { %17082 = vmatpush3.bf16.msra.mxu1 %v20543_v12  ;;  %17097 = vmatprep.mubr.msk.bf16.mxu1 %vm21641_vm2, %v21642_v63 }
 0xe9c   :  { %17083 = vmatprep.subr.bf16.mxu1 %v21642_v63 }
 0xe9f   :  { %17084 = vmatpush3.bf16.msra.mxu1 %v20544_v14 }
 0xea0   :  { %17085 = vmatprep.subr.bf16.mxu1 %v21642_v63 }
 0xea3   :  { %17086 = vmatpush3.bf16.msra.mxu1 %v20545_v15 }
 0xea4   :  { %17087 = vmatprep.subr.bf16.mxu1 %v21642_v63 }
 0xea7   :  { %17088 = vmatpush3.bf16.msra.mxu1 %v20546_v16 }
 0xea8   :  { %17089 = vmatprep.subr.bf16.mxu1 %v21642_v63 }
 0xeab   :  { %17090 = vmatpush3.bf16.msra.mxu1 %v20547_v17  ;;  %v2496_v17 = vld [vmem:[#allocation22] sm:$0x1] }
 0xeac   :  { %17091 = vmatprep.subr.bf16.mxu1 %v21642_v63 }
 0xeaf   :  { %17092 = vmatpush3.bf16.msra.mxu1 %v20548_v18 }
 0xeb0   :  { %17093 = vmatprep.subr.bf16.mxu1 %v21642_v63 }
 0xeb3   :  { %17094 = vmatpush3.bf16.msra.mxu1 %v20549_v20  ;;  %v20559_v20 = vld [vmem:[%s24206_s3 + $0x40] sm:$0xff]  }
 0xeb4   :  { %17095 = vmatprep.subr.bf16.mxu1 %v21642_v63 }
 0xeb7   :  { %17096 = vmatpush3.bf16.msra.mxu1 %v20550_v22  ;;  %v20560_v22 = vld [vmem:[%s24206_s3 + $0x48] sm:$0xff]  }
 0xeb8   :  { %17107 = vmatprep.subr.bf16.mxu1 %v21642_v63 }
 0xeba   :  { %17098 = vmatmul.mubr.bf16.vlgmr.msra.gmra.mrb[40].mxu1 %v2863_v23  ;;  %v20561_v23 = vld [vmem:[%s24206_s3 + $0x50] sm:$0xff]  }
 0xebb   :  { %17108 = vmatpush3.bf16.msra.mxu1 %v20551_v24  ;;  %17123 = vmatprep.mubr.msk.bf16.mxu1 %vm21641_vm2, %v21642_v63  ;;  %v20562_v24 = vld [vmem:[%s24206_s3 + $0x58] sm:$0xff]  }
 0xebc   :  { %17109 = vmatprep.subr.bf16.mxu1 %v21642_v63 }
 0xebf   :  { %17110 = vmatpush3.bf16.msra.mxu1 %v20552_v25  ;;  %v20563_v25 = vld [vmem:[%s24206_s3 + $0x60] sm:$0xff]  }
 0xec0   :  { %17111 = vmatprep.subr.bf16.mxu1 %v21642_v63 }
 0xec3   :  { %17112 = vmatpush3.bf16.msra.mxu1 %v20553_v27  ;;  %v20564_v27 = vld [vmem:[%s24206_s3 + $0x68] sm:$0xff]  }
 0xec4   :  { %17113 = vmatprep.subr.bf16.mxu1 %v21642_v63 }
 0xec7   :  { %17114 = vmatpush3.bf16.msra.mxu1 %v20554_v29 }
 0xec8   :  { %17115 = vmatprep.subr.bf16.mxu1 %v21642_v63 }
 0xecb   :  { %17116 = vmatpush3.bf16.msra.mxu1 %v20555_v30 }
 0xecc   :  { %17117 = vmatprep.subr.bf16.mxu1 %v21642_v63 }
 0xecf   :  { %17118 = vmatpush3.bf16.msra.mxu1 %v20556_v32 }
 0xed0   :  { %17119 = vmatprep.subr.bf16.mxu1 %v21642_v63 }
 0xed3   :  { %17120 = vmatpush3.bf16.msra.mxu1 %v20557_v33 }
 0xed4   :  { %17121 = vmatprep.subr.bf16.mxu1 %v21642_v63 }
 0xed7   :  { %17122 = vmatpush3.bf16.msra.mxu1 %v20558_v35 }
 0xed8   :  { %17242 = vmatprep.subr.bf16.mxu1 %v21642_v63 }
 0xeda   :  { %17124 = vmatmul.mubr.bf16.vlgmr.msra.gmra.mrb[40].mxu1 %v3015_v36 }
 0xedb   :  { %17258 = vmatprep.mubr.msk.bf16.mxu1 %vm21641_vm2, %v21642_v63  ;;  %17243 = vmatpush3.bf16.msra.mxu1 %v20559_v20 }
 0xedc   :  { %17244 = vmatprep.subr.bf16.mxu1 %v21642_v63 }
 0xedf   :  { %17245 = vmatpush3.bf16.msra.mxu1 %v20560_v22  ;;  %v3523_v22 = vld [vmem:[%s24207_s6 + $0x30] sm:$0xff] }
 0xee0   :  { %17246 = vmatprep.subr.bf16.mxu1 %v21642_v63 }
 0xee3   :  { %17247 = vmatpush3.bf16.msra.mxu1 %v20561_v23  ;;  %v3524_v23 = vld [vmem:[%s24207_s6 + $0x38] sm:$0xff] }
 0xee4   :  { %17248 = vmatprep.subr.bf16.mxu1 %v21642_v63 }
 0xee7   :  { %17249 = vmatpush3.bf16.msra.mxu1 %v20562_v24  ;;  %v22557_v24 = vpack.c.bf16 %v3524_v23, %v3523_v22 }
 0xee8   :  { %17250 = vmatprep.subr.bf16.mxu1 %v21642_v63 }
 0xeeb   :  { %17251 = vmatpush3.bf16.msra.mxu1 %v20563_v25  ;;  %v3525_v25 = vld [vmem:[%s24207_s6 + $0x40] sm:$0xff] }
 0xeec   :  { %17252 = vmatprep.subr.bf16.mxu1 %v21642_v63 }
 0xeef   :  { %17253 = vmatpush3.bf16.msra.mxu1 %v20564_v27  ;;  %v3526_v27 = vld [vmem:[%s24207_s6 + $0x48] sm:$0xff] }
 0xef0   :  { %17254 = vmatprep.subr.bf16.mxu1 %v21642_v63 }
 0xfad   :  { %v22417_v49 = vpop.f32.mrb[40].mxu1 }
 0xfae   :  { %v3122_v26 = vrot.slane %v22417_v49, 4  ;;  %v17125_v28 = vpop.f32.mrb[41].mxu1 }
 0xfaf   :  { %v3118_v34 = vpop.f32.mrb[42].mxu1 }
 0xfb0   :  { %v3123_v51 = vadd.f32 %v3122_v26, %v22417_v49  ;;  %v17126_v52 = vpop.f32.mrb[43].mxu1 }
 0xfb2   :  { %v3124_v53 = vrot.slane %v3123_v51, 2 }
 0xfb4   :  { %v3125_v54 = vadd.f32 %v3124_v53, %v3123_v51  ;;  %v20567_v53 = vld [vmem:[%s24206_s3] sm:$0xff]  }
 0xfb6   :  { %v3126_v57 = vrot.slane %v3125_v54, 1 }
 0xfb8   :  { %v3127_v59 = vadd.f32 %v3126_v57, %v3125_v54 }
 0xfba   :  { %17160 = vmatmul.mubr.f32.vlgmr.msra.gmra.mrb[14].mxu0 %v3127_v59  ;;  %v20569_v59 = vld [vmem:[%s24206_s3 + $0x10] sm:$0xff]  }
 0xfbb   :  { %19503 = vmatpush3.bf16.msra.mxu0 %v19502_v58  ;;  %17170 = vmatprep.mubr.msk.f32.mxu0 %vm21641_vm2, %v21642_v63 }
 0xfbc   :  { %19504 = vmatprep.subr.bf16.mxu0 %v21640_v19 }
 0xfbf   :  { %19506 = vmatpush3.bf16.msra.mxu0 %v19505_v62 }
 0xfc0   :  { %19507 = vmatprep.subr.bf16.mxu0 %v21640_v19 }
0x108d   :  { %v3194_v0 = vpop.f32.mrb[14].mxu0 }
0x108e   :  { %v3198_v5 = vmul.f32 0.03125, %v3194_v0  ;;  %v17161_v6 = vpop.f32.mrb[15].mxu0 }
0x108f   :  { %v20571_v6 = vld [vmem:[%s24206_s3 + $0x20] sm:$0xff]  }
0x1090   :  { %17171 = vmatmul.mubr.msk.f32.vlgmr.msra.gmra.mrb[36].mxu0 %vm569_vm0, %v3198_v5 }
0x1091   :  { %19509 = vmatpush3.bf16.msra.mxu0 %v22341_v42  ;;  %17205 = vmatprep.mubr.msk.f32.mxu0 %vm21641_vm2, %v21642_v63 }
0x1092   :  { %19510 = vmatprep.subr.bf16.mxu0 %v21640_v19 }
0x1095   :  { %19512 = vmatpush3.bf16.msra.mxu0 %v22345_v44 }
0x1096   :  { %19513 = vmatprep.subr.bf16.mxu0 %v21640_v19 }
0x1099   :  { %19515 = vmatpush3.bf16.msra.mxu0 %v22351_v47 }
0x109a   :  { %19516 = vmatprep.subr.bf16.mxu0 %v21640_v19 }
0x109d   :  { %19518 = vmatpush3.bf16.msra.mxu0 %v22357_v50 }
0x109e   :  { %19519 = vmatprep.subr.bf16.mxu0 %v21640_v19 }
0x10a1   :  { %19521 = vmatpush3.bf16.msra.mxu0 %v22363_v31 }
0x10a2   :  { %19522 = vmatprep.subr.bf16.mxu0 %v21640_v19 }
0x10a5   :  { %19524 = vmatpush3.bf16.msra.mxu0 %v19493_v39 }
0x10a6   :  { %19525 = vmatprep.subr.bf16.mxu0 %v21640_v19 }
0x10a9   :  { %19527 = vmatpush3.bf16.msra.mxu0 %v19496_v43  ;;  %v22475_v43 = vld [vmem:[#allocation25] sm:$0xf] }
0x10aa   :  { %19528 = vmatprep.subr.bf16.mxu0 %v21640_v19 }
0x10ad   :  { %19530 = vmatpush3.bf16.msra.mxu0 %v19499_v48  ;;  %v20565_v48 = vld [vmem:[%s24206_s3 + $0x70] sm:$0xff]  }
0x10ae   :  { %19531 = vmatprep.subr.bf16.mxu0 %v21640_v19  ;;  %17255 = vmatpush3.bf16.msra.mxu1 %v20565_v48  ;;  %v3533_v48 = vld [vmem:[#allocation30] sm:$0xff] }
0x10af   :  { %17256 = vmatprep.subr.bf16.mxu1 %v21642_v63 }
0x1163   :  { %v3268_v42 = vpop.f32.mrb[36].mxu0 }
0x1164   :  { %v3275_v44 = vrot.slane %v3268_v42, %v22137_v21  ;;  %v17172_v47 = vpop.f32.mrb[37].mxu0  ;;  %v20572_v42 = vld [vmem:[%s24206_s3 + $0x28] sm:$0xff]  }
0x1165   :  { %v20574_v47 = vld [vmem:[%s24206_s3 + $0x38] sm:$0xff]  }
0x1166   :  { %v3276_v50 = vsub.f32 %v22417_v49, %v3275_v44  ;;  %v20573_v44 = vld [vmem:[%s24206_s3 + $0x30] sm:$0xff]  }
0x1168   :  { %v3277_v7 = vmul.f32 %v3276_v50, %v3276_v50  ;;  %v20575_v50 = vld [vmem:[%s24206_s3 + $0x80] sm:$0xff]  }
0x116a   :  { %v3278_v8 = vrot.slane %v3277_v7, 4 }
0x116c   :  { %v3279_v31 = vadd.f32 %v3278_v8, %v3277_v7  ;;  %v20576_v8 = vld [vmem:[%s24206_s3 + $0x88] sm:$0xff]  }
0x116e   :  { %v3280_v9 = vrot.slane %v3279_v31, 2 }
0x1170   :  { %v3281_v10 = vadd.f32 %v3280_v9, %v3279_v31  ;;  %v20577_v31 = vld [vmem:[%s24206_s3 + $0x90] sm:$0xff]   ;;  %v20578_v9 = vld [vmem:[%s24206_s3 + $0x98] sm:$0xff]  }
0x1172   :  { %v3282_v11 = vrot.slane %v3281_v10, 1 }
0x1174   :  { %v3283_v2 = vadd.f32 %v3282_v11, %v3281_v10  ;;  %v20579_v10 = vld [vmem:[%s24206_s3 + $0xa0] sm:$0xff]   ;;  %v20580_v11 = vld [vmem:[%s24206_s3 + $0xa8] sm:$0xff]  }
0x1176   :  { %17206 = vmatmul.mubr.f32.vlgmr.msra.gmra.mrb[38].mxu0 %v3283_v2  ;;  %v20581_v2 = vld [vmem:[%s24206_s3 + $0xb0] sm:$0xff]  }
0x1177   :  { %19533 = vmatpush3.bf16.msra.mxu0 %v19502_v58  ;;  %17216 = vmatprep.mubr.msk.f32.mxu0 %vm21641_vm2, %v21642_v63 }
0x1178   :  { %19534 = vmatprep.subr.bf16.mxu0 %v21640_v19 }
0x117b   :  { %19536 = vmatpush3.bf16.msra.mxu0 %v19505_v62 }
0x117c   :  { %19537 = vmatprep.subr.bf16.mxu0 %v21640_v19 }
0x1249   :  { %v3350_v1 = vpop.f32.mrb[38].mxu0 }
0x124a   :  { %v3354_v3 = vmul.f32 0.03125, %v3350_v1  ;;  %v17207_v4 = vpop.f32.mrb[39].mxu0  ;;  %v20582_v1 = vld [vmem:[%s24206_s3 + $0xb8] sm:$0xff]  }
0x124b   :  { %v3518_v4 = vld [vmem:[%s24207_s6 + $0x8] sm:$0xff] }
0x124c   :  { %v3355_v12 = vadd.f32 1e-05, %v3354_v3  ;;  %v3517_v3 = vld [vmem:[%s24207_s6] sm:$0xff] }
0x124e   :  { %20885 = vrsqrt.f32 %v3355_v12 }
0x1258   :  { %v20886_v14 = vpop.eup %20885 }
0x1259   :  { %v3357_v15 = vmul.f32 %v20886_v14, %v2495_v13  ;;  %v22537_v13 = vpack.c.bf16 %v3518_v4, %v3517_v3  ;;  %v3519_v14 = vld [vmem:[%s24207_s6 + $0x10] sm:$0xff] }
0x125b   :  { %17217 = vmatmul.mubr.msk.f32.vlgmr.msra.gmra.mrb[40].mxu0 %vm569_vm0, %v3357_v15  ;;  %v3358_v16 = vmul.f32 %v3357_v15, %v3198_v5  ;;  %v20570_v5 = vld [vmem:[%s24206_s3 + $0x18] sm:$0xff]  }
0x125c   :  { %19539 = vmatpush3.bf16.msra.mxu0 %v19502_v58  ;;  %17227 = vmatprep.mubr.msk.f32.mxu0 %vm21641_vm2, %v21642_v63  ;;  %v20568_v58 = vld [vmem:[%s24206_s3 + $0x8] sm:$0xff]   ;;  %v3520_v15 = vld [vmem:[%s24207_s6 + $0x18] sm:$0xff] }
0x125d   :  { %19540 = vmatprep.subr.bf16.mxu0 %v21640_v19  ;;  %v3359_v18 = vsub.f32 %v2496_v17, %v3358_v16  ;;  %v22543_v16 = vpack.c.bf16 %v3520_v15, %v3519_v14  ;;  %v3521_v17 = vld [vmem:[%s24207_s6 + $0x20] sm:$0xff] }
0x1260   :  { %19542 = vmatpush3.bf16.msra.mxu0 %v19505_v62 }
0x1261   :  { %17230 = vmatprep.subr.bf16.mxu0 %v21642_v63 }
0x1263   :  { %17228 = vmatmul.mubr.msk.f32.vlgmr.msra.gmra.mrb[42].mxu0 %vm569_vm0, %v3359_v18  ;;  %v3522_v18 = vld [vmem:[%s24207_s6 + $0x28] sm:$0xff] }
0x1264   :  { %17232 = vmatprep.mubr.msk.bf16.mxu0 %vm21641_vm2, %v21642_v63  ;;  %v22551_v20 = vpack.c.bf16 %v3522_v18, %v3521_v17  ;;  %v3538_v18 = vld [vmem:[#allocation28] sm:$0x1] }
0x132e   :  { %v3429_v29 = vpop.f32.mrb[40].mxu0 }
0x132f   :  { %v3509_v30 = vrot.slane %v3429_v29, %v22137_v21  ;;  %v17218_v32 = vpop.f32.mrb[41].mxu0  ;;  %v22563_v29 = vpack.c.bf16 %v3526_v27, %v3525_v25 }
0x1330   :  { %v3528_v32 = vld [vmem:[%s24207_s6 + $0x58] sm:$0xff] }
0x1331   :  { %v3510_v33 = vmul.f32 %v3509_v30, %v22417_v49  ;;  %v20566_v49 = vld [vmem:[%s24206_s3 + $0x78] sm:$0xff]   ;;  %v3527_v30 = vld [vmem:[%s24207_s6 + $0x50] sm:$0xff] }
0x1332   :  { %17257 = vmatpush3.bf16.msra.mxu1 %v20566_v49  ;;  %v3534_v49 = vld [vmem:[#allocation30 + $0x8] sm:$0xff] }
0x1333   :  { %17262 = vmatprep.subr.bf16.mxu1 %v21642_v63 }
0x1336   :  { %v3502_v35 = vpop.f32.mrb[42].mxu0 }
0x1337   :  { %v3514_v36 = vrot.slane %v3502_v35, %v22137_v21  ;;  %v17229_v37 = vpop.f32.mrb[43].mxu0  ;;  %v3529_v35 = vld [vmem:[%s24207_s6 + $0x60] sm:$0xff] }
0x1339   :  { %v3515_v38 = vadd.f32 %v3514_v36, %v3510_v33  ;;  %v22570_v33 = vpack.c.bf16 %v3528_v32, %v3527_v30  ;;  %v3530_v36 = vld [vmem:[%s24207_s6 + $0x68] sm:$0xff] }
0x133a   :  { %v22576_v37 = vpack.c.bf16 %v3530_v36, %v3529_v35 }
0x133b   :  { %v22470_v39 = vmax.f32 %v3515_v38, 0.0  ;;  %v3531_v38 = vld [vmem:[%s24207_s6 + $0x70] sm:$0xff] }
0x133d   :  { %v3539_v40 = vpack.c.bf16 %v22470_v39, %v22470_v39 }
0x133f   :  { %v3546_v41 = vsel %vm3544_vm5, %v3539_v40, 0  ;;  %v3532_v40 = vld [vmem:[%s24207_s6 + $0x78] sm:$0xff] }
0x1340   :  { %17231 = vmatpush3.bf16.msra.mxu0 %v3546_v41 }
0x1341   :  { %17236 = vmatprep.subr.bf16.mxu0 %v21642_v63 }
0x1343   :  { %17233 = vmatmul.mubr.msk.bf16.vlgmr.msra.gmra.mrb[44].mxu0 %vm1095_vm3, %v22475_v43 }
0x1344   :  { %17237 = vmatpush3.bf16.msra.mxu0 %v3546_v41  ;;  %17238 = vmatprep.mubr.msk.bf16.mxu0 %vm21641_vm2, %v21642_v63 }
0x1345   :  { %17282 = vmatprep.subr.bf16.mxu0 %v21642_v63 }
0x134b   :  { %17239 = vmatmul.mubr.msk.bf16.vlgmr.msra.gmra.mrb[48].mxu0 %vm1095_vm3, %v22483_v45 }
0x134c   :  { %17283 = vmatpush3.bf16.msra.mxu0 %v3546_v41  ;;  %17284 = vmatprep.mubr.msk.bf16.mxu0 %vm21641_vm2, %v21642_v63  ;;  %v22582_v41 = vpack.c.bf16 %v3532_v40, %v3531_v38 }
0x134d   :  { %19567 = vmatprep.subr.bf16.mxu0 %v21640_v19 }
0x1353   :  { %17285 = vmatmul.mubr.msk.bf16.vlgmr.msra.gmra.mrb[52].mxu0 %vm1095_vm3, %v22490_v46 }
0x1354   :  { %17351 = vmatprep.mubr.msk.f32.mxu0 %vm21641_vm2, %v21642_v63 }
0x1416   :  { %v3582_v26 = vpop.f32.mrb[44].mxu0 }
0x1417   :  { %v17234_v28 = vpop.f32.mrb[45].mxu0  ;;  %v3588_v7 = vpack.c.bf16 %v3582_v26, %v3582_v26  ;;  %v22586_v26 = vpack.c.bf16 %v3534_v49, %v3533_v48 }
0x1418   :  { %v3585_v34 = vpop.f32.mrb[46].mxu0 }
0x1419   :  { %v17235_v51 = vpop.f32.mrb[47].mxu0  ;;  %19569 = vmatpush3.bf16.msra.mxu0 %v22586_v26 }
0x141a   :  { %19570 = vmatprep.subr.bf16.mxu0 %v21640_v19 }
0x141e   :  { %v3644_v52 = vpop.f32.mrb[48].mxu0 }
0x141f   :  { %v3650_v54 = vpack.c.bf16 %v3644_v52, %v3644_v52  ;;  %v17240_v55 = vpop.f32.mrb[49].mxu0 }
0x1420   :  { %v3647_v56 = vpop.f32.mrb[50].mxu0 }
0x1421   :  { %v17241_v57 = vpop.f32.mrb[51].mxu0  ;;  %17259 = vmatmul.mubr.bf16.vlgmr.msra.gmra.mrb[44].mxu1 %v3650_v54 }
0x1422   :  { %17263 = vmatpush3.bf16.msra.mxu1 %v20567_v53  ;;  %17278 = vmatprep.mubr.msk.bf16.mxu1 %vm21641_vm2, %v21642_v63 }
0x1423   :  { %17264 = vmatprep.subr.bf16.mxu1 %v21642_v63 }
0x1426   :  { %17265 = vmatpush3.bf16.msra.mxu1 %v20568_v58  ;;  %v3883_v60 = vpop.f32.mrb[52].mxu0 }
0x1427   :  { %17266 = vmatprep.subr.bf16.mxu1 %v21642_v63  ;;  %v17286_v61 = vpop.f32.mrb[53].mxu0  ;;  %v3889_v12 = vpack.c.bf16 %v3883_v60, %v3883_v60  ;;  %v3536_v60 = vld [vmem:[#allocation30 + $0x18] sm:$0xff] }
0x1428   :  { %v3886_v62 = vpop.f32.mrb[54].mxu0 }
0x1429   :  { %v17287_v0 = vpop.f32.mrb[55].mxu0 }
0x142a   :  { %17267 = vmatpush3.bf16.msra.mxu1 %v20569_v59  ;;  %v3535_v59 = vld [vmem:[#allocation30 + $0x10] sm:$0xff] }
0x142b   :  { %17268 = vmatprep.subr.bf16.mxu1 %v21642_v63  ;;  %v22596_v61 = vpack.c.bf16 %v3536_v60, %v3535_v59 }
0x142d   :  { %19572 = vmatpush3.bf16.msra.mxu0 %v22596_v61 }
0x142e   :  { %17269 = vmatpush3.bf16.msra.mxu1 %v20570_v5  ;;  %19573 = vmatprep.subr.bf16.mxu0 %v21640_v19 }
0x142f   :  { %17270 = vmatprep.subr.bf16.mxu1 %v21642_v63 }
0x1432   :  { %17271 = vmatpush3.bf16.msra.mxu1 %v20571_v6 }
0x1433   :  { %17272 = vmatprep.subr.bf16.mxu1 %v21642_v63 }
0x1436   :  { %17273 = vmatpush3.bf16.msra.mxu1 %v20572_v42 }
0x1437   :  { %17274 = vmatprep.subr.bf16.mxu1 %v21642_v63 }
0x143a   :  { %17275 = vmatpush3.bf16.msra.mxu1 %v20573_v44 }
0x143b   :  { %17276 = vmatprep.subr.bf16.mxu1 %v21642_v63 }
0x143e   :  { %17277 = vmatpush3.bf16.msra.mxu1 %v20574_v47 }
0x143f   :  { %17288 = vmatprep.subr.bf16.mxu1 %v21642_v63 }
0x1441   :  { %17279 = vmatmul.mubr.bf16.vlgmr.msra.gmra.mrb[44].mxu1 %v3588_v7 }
0x1442   :  { %17289 = vmatpush3.bf16.msra.mxu1 %v20575_v50  ;;  %17304 = vmatprep.mubr.msk.bf16.mxu1 %vm21641_vm2, %v21642_v63 }
0x1443   :  { %17290 = vmatprep.subr.bf16.mxu1 %v21642_v63 }
0x1446   :  { %17291 = vmatpush3.bf16.msra.mxu1 %v20576_v8 }
0x1447   :  { %17292 = vmatprep.subr.bf16.mxu1 %v21642_v63 }
0x144a   :  { %17293 = vmatpush3.bf16.msra.mxu1 %v20577_v31 }
0x144b   :  { %17294 = vmatprep.subr.bf16.mxu1 %v21642_v63 }
0x144e   :  { %17295 = vmatpush3.bf16.msra.mxu1 %v20578_v9 }
0x144f   :  { %17296 = vmatprep.subr.bf16.mxu1 %v21642_v63 }
0x1452   :  { %17297 = vmatpush3.bf16.msra.mxu1 %v20579_v10 }
0x1453   :  { %17298 = vmatprep.subr.bf16.mxu1 %v21642_v63 }
0x1456   :  { %17299 = vmatpush3.bf16.msra.mxu1 %v20580_v11 }
0x1457   :  { %17300 = vmatprep.subr.bf16.mxu1 %v21642_v63 }
0x145a   :  { %17301 = vmatpush3.bf16.msra.mxu1 %v20581_v2 }
0x145b   :  { %17302 = vmatprep.subr.bf16.mxu1 %v21642_v63 }
0x145e   :  { %17303 = vmatpush3.bf16.msra.mxu1 %v20582_v1 }
0x145f   :  { %19543 = vmatprep.subr.bf16.mxu1 %v21640_v19 }
0x1461   :  { %17305 = vmatmul.mubr.bf16.vlgmr.msra.gmra.mrb[44].mxu1 %v3889_v12  ;;  %v3537_v12 = vld [vmem:[#allocation27] sm:$0x1] }
0x1462   :  { %19545 = vmatpush3.bf16.msra.mxu1 %v22537_v13  ;;  %17340 = vmatprep.mubr.msk.f32.mxu1 %vm21641_vm2, %v21642_v63 }
0x1463   :  { %19546 = vmatprep.subr.bf16.mxu1 %v21640_v19 }
0x1466   :  { %19548 = vmatpush3.bf16.msra.mxu1 %v22543_v16 }
0x1467   :  { %19549 = vmatprep.subr.bf16.mxu1 %v21640_v19 }
0x146a   :  { %19551 = vmatpush3.bf16.msra.mxu1 %v22551_v20 }
0x146b   :  { %19552 = vmatprep.subr.bf16.mxu1 %v21640_v19 }
0x146e   :  { %19554 = vmatpush3.bf16.msra.mxu1 %v22557_v24 }
0x146f   :  { %19555 = vmatprep.subr.bf16.mxu1 %v21640_v19 }
0x1472   :  { %19557 = vmatpush3.bf16.msra.mxu1 %v22563_v29 }
0x1473   :  { %19558 = vmatprep.subr.bf16.mxu1 %v21640_v19 }
0x1476   :  { %19560 = vmatpush3.bf16.msra.mxu1 %v22570_v33 }
0x1477   :  { %19561 = vmatprep.subr.bf16.mxu1 %v21640_v19 }
0x147a   :  { %19563 = vmatpush3.bf16.msra.mxu1 %v22576_v37 }
0x147b   :  { %19564 = vmatprep.subr.bf16.mxu1 %v21640_v19 }
0x147e   :  { %19566 = vmatpush3.bf16.msra.mxu1 %v22582_v41 }
0x147f   :  { %17411 = vmatprep.subr.bf16.mxu1 %v21642_v63 }
0x1534   :  { %v22590_v28 = vpop.f32.mrb[44].mxu1 }
0x1535   :  { %v3996_v34 = vrot.slane %v22590_v28, 4  ;;  %v17306_v51 = vpop.f32.mrb[45].mxu1 }
0x1536   :  { %v3992_v52 = vpop.f32.mrb[46].mxu1  ;;  %v20585_v51 = vld [vmem:[%s24206_s3 + $0x110] sm:$0xff]  }
0x1537   :  { %v3997_v53 = vadd.f32 %v3996_v34, %v22590_v28  ;;  %v17307_v54 = vpop.f32.mrb[47].mxu1  ;;  %v20583_v34 = vld [vmem:[%s24206_s3 + $0x100] sm:$0xff]   ;;  %v20586_v52 = vld [vmem:[%s24206_s3 + $0x118] sm:$0xff]  }
0x1538   :  { %v20588_v54 = vld [vmem:[%s24206_s3 + $0x128] sm:$0xff]  }
0x1539   :  { %v3998_v55 = vrot.slane %v3997_v53, 2 }
0x153b   :  { %v3999_v56 = vadd.f32 %v3998_v55, %v3997_v53  ;;  %v20587_v53 = vld [vmem:[%s24206_s3 + $0x120] sm:$0xff]   ;;  %v20589_v55 = vld [vmem:[%s24206_s3 + $0x130] sm:$0xff]  }
0x153d   :  { %v4000_v57 = vrot.slane %v3999_v56, 1 }
0x153f   :  { %v4001_v58 = vadd.f32 %v4000_v57, %v3999_v56  ;;  %v20590_v56 = vld [vmem:[%s24206_s3 + $0x138] sm:$0xff]  }
0x1541   :  { %17341 = vmatmul.mubr.f32.vlgmr.msra.gmra.mrb[30].mxu1 %v4001_v58  ;;  %v20591_v58 = vld [vmem:[%s24206_s3 + $0xc0] sm:$0xff]  }
0x1542   :  { %17413 = vmatprep.mubr.msk.bf16.mxu1 %vm21641_vm2, %v21642_v63 }
0x1614   :  { %v4068_v62 = vpop.f32.mrb[30].mxu1 }
0x1615   :  { %v4072_v0 = vmul.f32 0.03125, %v4068_v62  ;;  %v17342_v5 = vpop.f32.mrb[31].mxu1 }
0x1617   :  { %17352 = vmatmul.mubr.msk.f32.vlgmr.msra.gmra.mrb[56].mxu0 %vm569_vm0, %v4072_v0 }
0x1618   :  { %19575 = vmatpush3.bf16.msra.mxu0 %v22537_v13  ;;  %17386 = vmatprep.mubr.msk.f32.mxu0 %vm21641_vm2, %v21642_v63 }
0x1619   :  { %19576 = vmatprep.subr.bf16.mxu0 %v21640_v19 }
0x161c   :  { %19578 = vmatpush3.bf16.msra.mxu0 %v22543_v16 }
0x161d   :  { %19579 = vmatprep.subr.bf16.mxu0 %v21640_v19 }
0x1620   :  { %19581 = vmatpush3.bf16.msra.mxu0 %v22551_v20 }
0x1621   :  { %19582 = vmatprep.subr.bf16.mxu0 %v21640_v19 }
0x1624   :  { %19584 = vmatpush3.bf16.msra.mxu0 %v22557_v24 }
0x1625   :  { %19585 = vmatprep.subr.bf16.mxu0 %v21640_v19 }
0x1628   :  { %19587 = vmatpush3.bf16.msra.mxu0 %v22563_v29 }
0x1629   :  { %19588 = vmatprep.subr.bf16.mxu0 %v21640_v19 }
0x162c   :  { %19590 = vmatpush3.bf16.msra.mxu0 %v22570_v33 }
0x162d   :  { %19591 = vmatprep.subr.bf16.mxu0 %v21640_v19 }
0x1630   :  { %19593 = vmatpush3.bf16.msra.mxu0 %v22576_v37 }
0x1631   :  { %19594 = vmatprep.subr.bf16.mxu0 %v21640_v19 }
0x1634   :  { %19596 = vmatpush3.bf16.msra.mxu0 %v22582_v41 }
0x1635   :  { %19597 = vmatprep.subr.bf16.mxu0 %v21640_v19 }
0x16ea   :  { %v4142_v6 = vpop.f32.mrb[56].mxu0 }
0x16eb   :  { %v4149_v42 = vrot.slane %v4142_v6, %v22137_v21  ;;  %v17353_v44 = vpop.f32.mrb[57].mxu0 }
0x16ed   :  { %v4150_v47 = vsub.f32 %v22590_v28, %v4149_v42 }
0x16ef   :  { %v4151_v50 = vmul.f32 %v4150_v47, %v4150_v47  ;;  %v20592_v47 = vld [vmem:[%s24206_s3 + $0xc8] sm:$0xff]  }
0x16f1   :  { %v4152_v7 = vrot.slane %v4151_v50, 4 }
0x16f3   :  { %v4153_v8 = vadd.f32 %v4152_v7, %v4151_v50  ;;  %v20593_v50 = vld [vmem:[%s24206_s3 + $0xd0] sm:$0xff]  }
0x16f5   :  { %v4154_v31 = vrot.slane %v4153_v8, 2 }
0x16f7   :  { %v4155_v9 = vadd.f32 %v4154_v31, %v4153_v8 }
0x16f9   :  { %v4156_v10 = vrot.slane %v4155_v9, 1 }
0x16fb   :  { %v4157_v11 = vadd.f32 %v4156_v10, %v4155_v9  ;;  %v20594_v10 = vld [vmem:[%s24206_s3 + $0xd8] sm:$0xff]  }
0x16fd   :  { %17387 = vmatmul.mubr.f32.vlgmr.msra.gmra.mrb[58].mxu0 %v4157_v11  ;;  %v20595_v11 = vld [vmem:[%s24206_s3 + $0xe0] sm:$0xff]  }
0x16fe   :  { %19599 = vmatpush3.bf16.msra.mxu0 %v22586_v26  ;;  %17397 = vmatprep.mubr.msk.f32.mxu0 %vm21641_vm2, %v21642_v63 }
0x16ff   :  { %19600 = vmatprep.subr.bf16.mxu0 %v21640_v19 }
0x1702   :  { %19602 = vmatpush3.bf16.msra.mxu0 %v22596_v61 }
0x1703   :  { %19603 = vmatprep.subr.bf16.mxu0 %v21640_v19 }
0x17d0   :  { %v4224_v2 = vpop.f32.mrb[58].mxu0 }
0x17d1   :  { %v4228_v1 = vmul.f32 0.03125, %v4224_v2  ;;  %v17388_v3 = vpop.f32.mrb[59].mxu0  ;;  %v20596_v2 = vld [vmem:[%s24206_s3 + $0xe8] sm:$0xff]  }
0x17d2   :  { %v20598_v3 = vld [vmem:[%s24206_s3 + $0xf8] sm:$0xff]  }
0x17d3   :  { %v4229_v4 = vadd.f32 1e-05, %v4228_v1  ;;  %v20597_v1 = vld [vmem:[%s24206_s3 + $0xf0] sm:$0xff]  }
0x17d5   :  { %20887 = vrsqrt.f32 %v4229_v4 }
0x17df   :  { %v20888_v14 = vpop.eup %20887 }
0x17e0   :  { %v4231_v15 = vmul.f32 %v20888_v14, %v3537_v12  ;;  %v20599_v12 = vld [vmem:[%s24206_s3 + $0x140] sm:$0xff]   ;;  %v20600_v14 = vld [vmem:[%s24206_s3 + $0x148] sm:$0xff]  }
0x17e2   :  { %17398 = vmatmul.mubr.msk.f32.vlgmr.msra.gmra.mrb[60].mxu0 %vm569_vm0, %v4231_v15  ;;  %v4232_v17 = vmul.f32 %v4231_v15, %v4072_v0  ;;  %v20601_v15 = vld [vmem:[%s24206_s3 + $0x150] sm:$0xff]  }
0x17e3   :  { %19605 = vmatpush3.bf16.msra.mxu0 %v22586_v26  ;;  %17408 = vmatprep.mubr.msk.f32.mxu0 %vm21641_vm2, %v21642_v63 }
0x17e4   :  { %19606 = vmatprep.subr.bf16.mxu0 %v21640_v19  ;;  %v4233_v22 = vsub.f32 %v3538_v18, %v4232_v17  ;;  %v20602_v17 = vld [vmem:[%s24206_s3 + $0x158] sm:$0xff]   ;;  %v20603_v18 = vld [vmem:[%s24206_s3 + $0x160] sm:$0xff]  }
0x17e7   :  { %19608 = vmatpush3.bf16.msra.mxu0 %v22596_v61 }
0x17e8   :  { %17417 = vmatprep.subr.bf16.mxu0 %v21642_v63 }
0x17ea   :  { %17409 = vmatmul.mubr.msk.f32.vlgmr.msra.gmra.mrb[62].mxu0 %vm569_vm0, %v4233_v22  ;;  %v20604_v22 = vld [vmem:[%s24206_s3 + $0x168] sm:$0xff]  }
0x17eb   :  { %17419 = vmatprep.mubr.msk.bf16.mxu0 %vm21641_vm2, %v21642_v63 }
0x18b5   :  { %v4303_v23 = vpop.f32.mrb[60].mxu0 }
0x18b6   :  { %v4383_v25 = vrot.slane %v4303_v23, %v22137_v21  ;;  %v17399_v27 = vpop.f32.mrb[61].mxu0  ;;  %v20605_v23 = vld [vmem:[%s24206_s3 + $0x170] sm:$0xff]  }
0x18b8   :  { %v4384_v30 = vmul.f32 %v4383_v25, %v22590_v28  ;;  %v20584_v28 = vld [vmem:[%s24206_s3 + $0x108] sm:$0xff]   ;;  %v20606_v25 = vld [vmem:[%s24206_s3 + $0x178] sm:$0xff]  }
0x18bd   :  { %v4376_v32 = vpop.f32.mrb[62].mxu0 }
0x18be   :  { %v4388_v35 = vrot.slane %v4376_v32, %v22137_v21  ;;  %v17410_v36 = vpop.f32.mrb[63].mxu0 }
0x18c0   :  { %v4389_v38 = vadd.f32 %v4388_v35, %v4384_v30 }
0x18c2   :  { %v4390_v40 = vmax.f32 %v4389_v38, 0.0 }
0x18c4   :  { %v4395_v48 = vpack.c.bf16 %v4390_v40, %v4390_v40 }
0x18c6   :  { %v4397_v49 = vsel %vm3544_vm5, %v4395_v48, 0 }
0x18c7   :  { %17412 = vmatpush3.bf16.msra.mxu1 %v4397_v49  ;;  %17418 = vmatpush3.bf16.msra.mxu0 %v4397_v49 }
0x18c8   :  { %17463 = vmatprep.subr.bf16.mxu0 %v21642_v63  ;;  %17423 = vmatprep.subr.bf16.mxu1 %v21642_v63 }
0x18ca   :  { %17420 = vmatmul.mubr.msk.bf16.vlgmr.msra.gmra.mrb[64].mxu0 %vm1095_vm3, %v22483_v45  ;;  %17414 = vmatmul.mubr.msk.bf16.vlgmr.msra.gmra.mrb[48].mxu1 %vm1095_vm3, %v22475_v43 }
0x18cb   :  { %17464 = vmatpush3.bf16.msra.mxu0 %v4397_v49  ;;  %17465 = vmatprep.mubr.msk.bf16.mxu0 %vm21641_vm2, %v21642_v63 }
0x18cc   :  { %17424 = vmatpush3.bf16.msra.mxu1 %v20583_v34  ;;  %17439 = vmatprep.mubr.msk.bf16.mxu1 %vm21641_vm2, %v21642_v63 }
0x18cd   :  { %17425 = vmatprep.subr.bf16.mxu1 %v21642_v63  ;;  %19609 = vmatprep.subr.bf16.mxu0 %v21640_v19 }
0x18d0   :  { %17426 = vmatpush3.bf16.msra.mxu1 %v20584_v28 }
0x18d1   :  { %17427 = vmatprep.subr.bf16.mxu1 %v21642_v63 }
0x18d2   :  { %17466 = vmatmul.mubr.msk.bf16.vlgmr.msra.gmra.mrb[68].mxu0 %vm1095_vm3, %v22490_v46 }
0x18d3   :  { %19611 = vmatpush3.bf16.msra.mxu0 %v22537_v13  ;;  %17521 = vmatprep.mubr.msk.f32.mxu0 %vm21641_vm2, %v21642_v63 }
0x18d4   :  { %17428 = vmatpush3.bf16.msra.mxu1 %v20585_v51  ;;  %19612 = vmatprep.subr.bf16.mxu0 %v21640_v19 }
0x18d5   :  { %17429 = vmatprep.subr.bf16.mxu1 %v21642_v63 }
0x18d7   :  { %19614 = vmatpush3.bf16.msra.mxu0 %v22543_v16 }
0x18d8   :  { %17430 = vmatpush3.bf16.msra.mxu1 %v20586_v52  ;;  %19615 = vmatprep.subr.bf16.mxu0 %v21640_v19 }
0x18d9   :  { %17431 = vmatprep.subr.bf16.mxu1 %v21642_v63 }
0x18db   :  { %19617 = vmatpush3.bf16.msra.mxu0 %v22551_v20 }
0x18dc   :  { %17432 = vmatpush3.bf16.msra.mxu1 %v20587_v53  ;;  %19618 = vmatprep.subr.bf16.mxu0 %v21640_v19 }
0x18dd   :  { %17433 = vmatprep.subr.bf16.mxu1 %v21642_v63 }
0x18df   :  { %19620 = vmatpush3.bf16.msra.mxu0 %v22557_v24 }
0x18e0   :  { %17434 = vmatpush3.bf16.msra.mxu1 %v20588_v54  ;;  %19621 = vmatprep.subr.bf16.mxu0 %v21640_v19 }
0x18e1   :  { %17435 = vmatprep.subr.bf16.mxu1 %v21642_v63 }
0x18e3   :  { %19623 = vmatpush3.bf16.msra.mxu0 %v22563_v29 }
0x18e4   :  { %17436 = vmatpush3.bf16.msra.mxu1 %v20589_v55  ;;  %19624 = vmatprep.subr.bf16.mxu0 %v21640_v19 }
0x18e5   :  { %17437 = vmatprep.subr.bf16.mxu1 %v21642_v63 }
0x18e7   :  { %19626 = vmatpush3.bf16.msra.mxu0 %v22570_v33 }
0x18e8   :  { %17438 = vmatpush3.bf16.msra.mxu1 %v20590_v56  ;;  %19627 = vmatprep.subr.bf16.mxu0 %v21640_v19 }
0x18e9   :  { %17443 = vmatprep.subr.bf16.mxu1 %v21642_v63 }
0x18eb   :  { %19629 = vmatpush3.bf16.msra.mxu0 %v22576_v37 }
0x18ec   :  { %19630 = vmatprep.subr.bf16.mxu0 %v21640_v19 }
0x18ef   :  { %19632 = vmatpush3.bf16.msra.mxu0 %v22582_v41 }
0x18f0   :  { %19633 = vmatprep.subr.bf16.mxu0 %v21640_v19 }
0x199d   :  { %v4491_v57 = vpop.f32.mrb[64].mxu0  ;;  %v4433_v59 = vpop.f32.mrb[48].mxu1 }
0x199e   :  { %v4497_v60 = vpack.c.bf16 %v4491_v57, %v4491_v57  ;;  %v17421_v62 = vpop.f32.mrb[65].mxu0  ;;  %v17415_v0 = vpop.f32.mrb[49].mxu1  ;;  %v4439_v4 = vpack.c.bf16 %v4433_v59, %v4433_v59 }
0x199f   :  { %v4494_v5 = vpop.f32.mrb[66].mxu0  ;;  %v4436_v6 = vpop.f32.mrb[50].mxu1 }
0x19a0   :  { %v17422_v42 = vpop.f32.mrb[67].mxu0  ;;  %17440 = vmatmul.mubr.bf16.vlgmr.msra.gmra.mrb[52].mxu1 %v4497_v60  ;;  %v17416_v44 = vpop.f32.mrb[51].mxu1 }
0x19a1   :  { %17444 = vmatpush3.bf16.msra.mxu1 %v20591_v58  ;;  %17459 = vmatprep.mubr.msk.bf16.mxu1 %vm21641_vm2, %v21642_v63 }
0x19a2   :  { %17445 = vmatprep.subr.bf16.mxu1 %v21642_v63 }
0x19a5   :  { %17446 = vmatpush3.bf16.msra.mxu1 %v20592_v47  ;;  %v4725_v7 = vpop.f32.mrb[68].mxu0 }
0x19a6   :  { %17447 = vmatprep.subr.bf16.mxu1 %v21642_v63  ;;  %v17467_v8 = vpop.f32.mrb[69].mxu0  ;;  %v4731_v27 = vpack.c.bf16 %v4725_v7, %v4725_v7  ;;  %v4392_v7 = vld [vmem:[#allocation27 + $0x1] sm:$0x1] }
0x19a7   :  { %v4728_v31 = vpop.f32.mrb[70].mxu0 }
0x19a8   :  { %v17468_v9 = vpop.f32.mrb[71].mxu0 }
0x19a9   :  { %17448 = vmatpush3.bf16.msra.mxu1 %v20593_v50 }
0x19aa   :  { %17449 = vmatprep.subr.bf16.mxu1 %v21642_v63 }
0x19ad   :  { %17450 = vmatpush3.bf16.msra.mxu1 %v20594_v10  ;;  %v4394_v10 = vld [vmem:[#allocation28 + $0x1] sm:$0x1] }
0x19ae   :  { %17451 = vmatprep.subr.bf16.mxu1 %v21642_v63 }
0x19b1   :  { %17452 = vmatpush3.bf16.msra.mxu1 %v20595_v11 }
0x19b2   :  { %17453 = vmatprep.subr.bf16.mxu1 %v21642_v63 }
0x19b5   :  { %17454 = vmatpush3.bf16.msra.mxu1 %v20596_v2 }
0x19b6   :  { %17455 = vmatprep.subr.bf16.mxu1 %v21642_v63 }
0x19b9   :  { %17456 = vmatpush3.bf16.msra.mxu1 %v20597_v1 }
0x19ba   :  { %17457 = vmatprep.subr.bf16.mxu1 %v21642_v63 }
0x19bd   :  { %17458 = vmatpush3.bf16.msra.mxu1 %v20598_v3 }
0x19be   :  { %17469 = vmatprep.subr.bf16.mxu1 %v21642_v63 }
0x19c0   :  { %17460 = vmatmul.mubr.bf16.vlgmr.msra.gmra.mrb[52].mxu1 %v4439_v4 }
0x19c1   :  { %17470 = vmatpush3.bf16.msra.mxu1 %v20599_v12  ;;  %17485 = vmatprep.mubr.msk.bf16.mxu1 %vm21641_vm2, %v21642_v63 }
0x19c2   :  { %17471 = vmatprep.subr.bf16.mxu1 %v21642_v63 }
0x19c5   :  { %17472 = vmatpush3.bf16.msra.mxu1 %v20600_v14 }
0x19c6   :  { %17473 = vmatprep.subr.bf16.mxu1 %v21642_v63 }
0x19c9   :  { %17474 = vmatpush3.bf16.msra.mxu1 %v20601_v15 }
0x19ca   :  { %17475 = vmatprep.subr.bf16.mxu1 %v21642_v63 }
0x19cd   :  { %17476 = vmatpush3.bf16.msra.mxu1 %v20602_v17 }
0x19ce   :  { %17477 = vmatprep.subr.bf16.mxu1 %v21642_v63 }
0x19d1   :  { %17478 = vmatpush3.bf16.msra.mxu1 %v20603_v18 }
0x19d2   :  { %17479 = vmatprep.subr.bf16.mxu1 %v21642_v63 }
0x19d5   :  { %17480 = vmatpush3.bf16.msra.mxu1 %v20604_v22 }
0x19d6   :  { %17481 = vmatprep.subr.bf16.mxu1 %v21642_v63 }
0x19d9   :  { %17482 = vmatpush3.bf16.msra.mxu1 %v20605_v23 }
0x19da   :  { %17483 = vmatprep.subr.bf16.mxu1 %v21642_v63 }
0x19dd   :  { %17484 = vmatpush3.bf16.msra.mxu1 %v20606_v25 }
0x19de   :  { %17598 = vmatprep.subr.bf16.mxu1 %v21642_v63 }
0x19e0   :  { %17486 = vmatmul.mubr.bf16.vlgmr.msra.gmra.mrb[52].mxu1 %v4731_v27  ;;  %v20607_v27 = vld [vmem:[%s24206_s3 + $0x1c0] sm:$0xff]  }
0x19e1   :  { %17600 = vmatprep.mubr.msk.bf16.mxu1 %vm21641_vm2, %v21642_v63 }
0x1ab3   :  { %v22726_v30 = vpop.f32.mrb[52].mxu1 }
0x1ab4   :  { %v4838_v32 = vrot.slane %v22726_v30, 4  ;;  %v17487_v35 = vpop.f32.mrb[53].mxu1 }
0x1ab5   :  { %v4834_v36 = vpop.f32.mrb[54].mxu1  ;;  %v20614_v35 = vld [vmem:[%s24206_s3 + $0x1f8] sm:$0xff]  }
0x1ab6   :  { %v4839_v38 = vadd.f32 %v4838_v32, %v22726_v30  ;;  %v17488_v40 = vpop.f32.mrb[55].mxu1  ;;  %v20613_v32 = vld [vmem:[%s24206_s3 + $0x1f0] sm:$0xff]  }
0x1ab8   :  { %v4840_v48 = vrot.slane %v4839_v38, 2 }
0x1aba   :  { %v4841_v49 = vadd.f32 %v4840_v48, %v4839_v38  ;;  %v20615_v38 = vld [vmem:[%s24206_s3 + $0x180] sm:$0xff]  }
0x1abc   :  { %v4842_v34 = vrot.slane %v4841_v49, 1 }
0x1abe   :  { %v4843_v28 = vadd.f32 %v4842_v34, %v4841_v49 }
0x1ac0   :  { %17522 = vmatmul.mubr.f32.vlgmr.msra.gmra.mrb[72].mxu0 %v4843_v28 }
0x1ac1   :  { %19635 = vmatpush3.bf16.msra.mxu0 %v22586_v26  ;;  %17532 = vmatprep.mubr.msk.f32.mxu0 %vm21641_vm2, %v21642_v63 }
0x1ac2   :  { %19636 = vmatprep.subr.bf16.mxu0 %v21640_v19 }
0x1ac5   :  { %19638 = vmatpush3.bf16.msra.mxu0 %v22596_v61 }
0x1ac6   :  { %19639 = vmatprep.subr.bf16.mxu0 %v21640_v19 }
0x1b93   :  { %v4910_v51 = vpop.f32.mrb[72].mxu0 }
0x1b94   :  { %v4914_v52 = vmul.f32 0.03125, %v4910_v51  ;;  %v17523_v53 = vpop.f32.mrb[73].mxu0 }
0x1b96   :  { %17533 = vmatmul.mubr.msk.f32.vlgmr.msra.gmra.mrb[74].mxu0 %vm569_vm0, %v4914_v52 }
0x1b97   :  { %19641 = vmatpush3.bf16.msra.mxu0 %v22537_v13  ;;  %17567 = vmatprep.mubr.msk.f32.mxu0 %vm21641_vm2, %v21642_v63 }
0x1b98   :  { %19642 = vmatprep.subr.bf16.mxu0 %v21640_v19 }
0x1b9b   :  { %19644 = vmatpush3.bf16.msra.mxu0 %v22543_v16 }
0x1b9c   :  { %19645 = vmatprep.subr.bf16.mxu0 %v21640_v19 }
0x1b9f   :  { %19647 = vmatpush3.bf16.msra.mxu0 %v22551_v20 }
0x1ba0   :  { %19648 = vmatprep.subr.bf16.mxu0 %v21640_v19 }
0x1ba3   :  { %19650 = vmatpush3.bf16.msra.mxu0 %v22557_v24 }
0x1ba4   :  { %19651 = vmatprep.subr.bf16.mxu0 %v21640_v19 }
0x1ba7   :  { %19653 = vmatpush3.bf16.msra.mxu0 %v22563_v29 }
0x1ba8   :  { %19654 = vmatprep.subr.bf16.mxu0 %v21640_v19 }
0x1bab   :  { %19656 = vmatpush3.bf16.msra.mxu0 %v22570_v33 }
0x1bac   :  { %19657 = vmatprep.subr.bf16.mxu0 %v21640_v19 }
0x1baf   :  { %19659 = vmatpush3.bf16.msra.mxu0 %v22576_v37 }
0x1bb0   :  { %19660 = vmatprep.subr.bf16.mxu0 %v21640_v19 }
0x1bb3   :  { %19662 = vmatpush3.bf16.msra.mxu0 %v22582_v41 }
0x1bb4   :  { %19663 = vmatprep.subr.bf16.mxu0 %v21640_v19 }
0x1c69   :  { %v4984_v54 = vpop.f32.mrb[74].mxu0 }
0x1c6a   :  { %v4991_v55 = vrot.slane %v4984_v54, %v22137_v21  ;;  %v17534_v56 = vpop.f32.mrb[75].mxu0  ;;  %v20616_v54 = vld [vmem:[%s24206_s3 + $0x188] sm:$0xff]  }
0x1c6c   :  { %v4992_v57 = vsub.f32 %v22726_v30, %v4991_v55  ;;  %v20617_v55 = vld [vmem:[%s24206_s3 + $0x190] sm:$0xff]  }
0x1c6e   :  { %v4993_v58 = vmul.f32 %v4992_v57, %v4992_v57 }
0x1c70   :  { %v4994_v59 = vrot.slane %v4993_v58, 4 }
0x1c72   :  { %v4995_v60 = vadd.f32 %v4994_v59, %v4993_v58 }
0x1c74   :  { %v4996_v62 = vrot.slane %v4995_v60, 2 }
0x1c76   :  { %v4997_v0 = vadd.f32 %v4996_v62, %v4995_v60  ;;  %v20618_v60 = vld [vmem:[%s24206_s3 + $0x198] sm:$0xff]   ;;  %v20619_v62 = vld [vmem:[%s24206_s3 + $0x1a0] sm:$0xff]  }
0x1c78   :  { %v4998_v5 = vrot.slane %v4997_v0, 1 }
0x1c7a   :  { %v4999_v6 = vadd.f32 %v4998_v5, %v4997_v0  ;;  %v20620_v0 = vld [vmem:[%s24206_s3 + $0x1a8] sm:$0xff]   ;;  %v20621_v5 = vld [vmem:[%s24206_s3 + $0x1b0] sm:$0xff]  }
0x1c7c   :  { %17568 = vmatmul.mubr.f32.vlgmr.msra.gmra.mrb[76].mxu0 %v4999_v6  ;;  %v20622_v6 = vld [vmem:[%s24206_s3 + $0x1b8] sm:$0xff]  }
0x1c7d   :  { %19665 = vmatpush3.bf16.msra.mxu0 %v22586_v26  ;;  %17578 = vmatprep.mubr.msk.f32.mxu0 %vm21641_vm2, %v21642_v63 }
0x1c7e   :  { %19666 = vmatprep.subr.bf16.mxu0 %v21640_v19 }
0x1c81   :  { %19668 = vmatpush3.bf16.msra.mxu0 %v22596_v61 }
0x1c82   :  { %19669 = vmatprep.subr.bf16.mxu0 %v21640_v19 }
0x1d4f   :  { %v5066_v42 = vpop.f32.mrb[76].mxu0 }
0x1d50   :  { %v5070_v44 = vmul.f32 0.03125, %v5066_v42  ;;  %v17569_v47 = vpop.f32.mrb[77].mxu0 }
0x1d51   :  { %v20624_v47 = vld [vmem:[%s24206_s3 + $0x208] sm:$0xff]  }
0x1d52   :  { %v5071_v50 = vadd.f32 1e-05, %v5070_v44  ;;  %v20623_v44 = vld [vmem:[%s24206_s3 + $0x200] sm:$0xff]  }
0x1d54   :  { %20889 = vrsqrt.f32 %v5071_v50  ;;  %v20625_v50 = vld [vmem:[%s24206_s3 + $0x210] sm:$0xff]  }
0x1d5e   :  { %v20890_v8 = vpop.eup %20889 }
0x1d5f   :  { %v5073_v31 = vmul.f32 %v20890_v8, %v4392_v7  ;;  %v20626_v7 = vld [vmem:[%s24206_s3 + $0x218] sm:$0xff]   ;;  %v20627_v8 = vld [vmem:[%s24206_s3 + $0x220] sm:$0xff]  }
0x1d61   :  { %17579 = vmatmul.mubr.msk.f32.vlgmr.msra.gmra.mrb[78].mxu0 %vm569_vm0, %v5073_v31  ;;  %v5074_v9 = vmul.f32 %v5073_v31, %v4914_v52  ;;  %v20628_v31 = vld [vmem:[%s24206_s3 + $0x228] sm:$0xff]  }
0x1d62   :  { %19671 = vmatpush3.bf16.msra.mxu0 %v22586_v26  ;;  %17589 = vmatprep.mubr.msk.f32.mxu0 %vm21641_vm2, %v21642_v63 }
0x1d63   :  { %19672 = vmatprep.subr.bf16.mxu0 %v21640_v19  ;;  %v5075_v11 = vsub.f32 %v4394_v10, %v5074_v9  ;;  %v20629_v9 = vld [vmem:[%s24206_s3 + $0x230] sm:$0xff]   ;;  %v20630_v10 = vld [vmem:[%s24206_s3 + $0x238] sm:$0xff]  }
0x1d66   :  { %19674 = vmatpush3.bf16.msra.mxu0 %v22596_v61 }
0x1d67   :  { %17592 = vmatprep.subr.bf16.mxu0 %v21642_v63 }
0x1d69   :  { %17590 = vmatmul.mubr.msk.f32.vlgmr.msra.gmra.mrb[80].mxu0 %vm569_vm0, %v5075_v11 }
0x1d6a   :  { %17594 = vmatprep.mubr.msk.bf16.mxu0 %vm21641_vm2, %v21642_v63 }
0x1e34   :  { %v5145_v2 = vpop.f32.mrb[78].mxu0 }
0x1e35   :  { %v5225_v1 = vrot.slane %v5145_v2, %v22137_v21  ;;  %v17580_v3 = vpop.f32.mrb[79].mxu0 }
0x1e37   :  { %v5226_v4 = vmul.f32 %v5225_v1, %v22726_v30  ;;  %v20611_v30 = vld [vmem:[%s24206_s3 + $0x1e0] sm:$0xff]  }
0x1e3c   :  { %v5218_v12 = vpop.f32.mrb[80].mxu0 }
0x1e3d   :  { %v5230_v14 = vrot.slane %v5218_v12, %v22137_v21  ;;  %v17591_v15 = vpop.f32.mrb[81].mxu0 }
0x1e3f   :  { %v5231_v17 = vadd.f32 %v5230_v14, %v5226_v4 }
0x1e41   :  { %v5232_v18 = vmax.f32 %v5231_v17, 0.0 }
0x1e43   :  { %v22777_v22 = vadd.f32 %v5232_v18, %v22470_v39  ;;  %v20608_v39 = vld [vmem:[%s24206_s3 + $0x1c8] sm:$0xff]  }
0x1e45   :  { %v5238_v23 = vpack.c.bf16 %v22777_v22, %v22777_v22 }
0x1e47   :  { %v5240_v25 = vsel %vm3544_vm5, %v5238_v23, 0 }
0x1e48   :  { %17593 = vmatpush3.bf16.msra.mxu0 %v5240_v25  ;;  %17599 = vmatpush3.bf16.msra.mxu1 %v5240_v25 }
0x1e49   :  { %17644 = vmatprep.subr.bf16.mxu1 %v21642_v63  ;;  %17604 = vmatprep.subr.bf16.mxu0 %v21642_v63 }
0x1e4b   :  { %17601 = vmatmul.mubr.msk.bf16.vlgmr.msra.gmra.mrb[56].mxu1 %vm1095_vm3, %v22483_v45  ;;  %17595 = vmatmul.mubr.msk.bf16.vlgmr.msra.gmra.mrb[84].mxu0 %vm1095_vm3, %v22475_v43  ;;  %v20609_v45 = vld [vmem:[%s24206_s3 + $0x1d0] sm:$0xff]   ;;  %v20610_v43 = vld [vmem:[%s24206_s3 + $0x1d8] sm:$0xff]  }
0x1e4c   :  { %17645 = vmatpush3.bf16.msra.mxu1 %v5240_v25  ;;  %17646 = vmatprep.mubr.msk.bf16.mxu1 %vm21641_vm2, %v21642_v63 }
0x1e4d   :  { %17605 = vmatpush3.bf16.msra.mxu0 %v20607_v27  ;;  %17620 = vmatprep.mubr.msk.bf16.mxu0 %vm21641_vm2, %v21642_v63 }
0x1e4e   :  { %17606 = vmatprep.subr.bf16.mxu0 %v21642_v63  ;;  %19675 = vmatprep.subr.bf16.mxu1 %v21640_v19 }
0x1e51   :  { %17607 = vmatpush3.bf16.msra.mxu0 %v20608_v39 }
0x1e52   :  { %17608 = vmatprep.subr.bf16.mxu0 %v21642_v63 }
0x1e53   :  { %17647 = vmatmul.mubr.msk.bf16.vlgmr.msra.gmra.mrb[60].mxu1 %vm1095_vm3, %v22490_v46  ;;  %v20612_v46 = vld [vmem:[%s24206_s3 + $0x1e8] sm:$0xff]  }
0x1e54   :  { %19677 = vmatpush3.bf16.msra.mxu1 %v22537_v13  ;;  %17702 = vmatprep.mubr.msk.f32.mxu1 %vm21641_vm2, %v21642_v63 }
0x1e55   :  { %17609 = vmatpush3.bf16.msra.mxu0 %v20609_v45  ;;  %19678 = vmatprep.subr.bf16.mxu1 %v21640_v19 }
0x1e56   :  { %17610 = vmatprep.subr.bf16.mxu0 %v21642_v63 }
0x1e58   :  { %19680 = vmatpush3.bf16.msra.mxu1 %v22543_v16 }
0x1e59   :  { %17611 = vmatpush3.bf16.msra.mxu0 %v20610_v43  ;;  %19681 = vmatprep.subr.bf16.mxu1 %v21640_v19 }
0x1e5a   :  { %17612 = vmatprep.subr.bf16.mxu0 %v21642_v63 }
0x1e5c   :  { %19683 = vmatpush3.bf16.msra.mxu1 %v22551_v20 }
0x1e5d   :  { %17613 = vmatpush3.bf16.msra.mxu0 %v20611_v30  ;;  %19684 = vmatprep.subr.bf16.mxu1 %v21640_v19 }
0x1e5e   :  { %17614 = vmatprep.subr.bf16.mxu0 %v21642_v63 }
0x1e60   :  { %19686 = vmatpush3.bf16.msra.mxu1 %v22557_v24 }
0x1e61   :  { %17615 = vmatpush3.bf16.msra.mxu0 %v20612_v46  ;;  %19687 = vmatprep.subr.bf16.mxu1 %v21640_v19 }
0x1e62   :  { %17616 = vmatprep.subr.bf16.mxu0 %v21642_v63 }
0x1e64   :  { %19689 = vmatpush3.bf16.msra.mxu1 %v22563_v29 }
0x1e65   :  { %17617 = vmatpush3.bf16.msra.mxu0 %v20613_v32  ;;  %19690 = vmatprep.subr.bf16.mxu1 %v21640_v19 }
0x1e66   :  { %17618 = vmatprep.subr.bf16.mxu0 %v21642_v63 }
0x1e68   :  { %19692 = vmatpush3.bf16.msra.mxu1 %v22570_v33 }
0x1e69   :  { %17619 = vmatpush3.bf16.msra.mxu0 %v20614_v35  ;;  %19693 = vmatprep.subr.bf16.mxu1 %v21640_v19 }
0x1e6a   :  { %17624 = vmatprep.subr.bf16.mxu0 %v21642_v63 }
0x1e6c   :  { %19695 = vmatpush3.bf16.msra.mxu1 %v22576_v37 }
0x1e6d   :  { %19696 = vmatprep.subr.bf16.mxu1 %v21640_v19 }
0x1e70   :  { %19698 = vmatpush3.bf16.msra.mxu1 %v22582_v41 }
0x1e71   :  { %19699 = vmatprep.subr.bf16.mxu1 %v21640_v19 }
0x1f1e   :  { %v5334_v36 = vpop.f32.mrb[56].mxu1  ;;  %v5276_v40 = vpop.f32.mrb[84].mxu0 }
0x1f1f   :  { %v5340_v48 = vpack.c.bf16 %v5334_v36, %v5334_v36  ;;  %v17602_v49 = vpop.f32.mrb[57].mxu1  ;;  %v17596_v34 = vpop.f32.mrb[85].mxu0  ;;  %v5282_v42 = vpack.c.bf16 %v5276_v40, %v5276_v40 }
0x1f20   :  { %v5337_v28 = vpop.f32.mrb[58].mxu1  ;;  %v5279_v51 = vpop.f32.mrb[86].mxu0 }
0x1f21   :  { %v17603_v52 = vpop.f32.mrb[59].mxu1  ;;  %17621 = vmatmul.mubr.bf16.vlgmr.msra.gmra.mrb[88].mxu0 %v5340_v48  ;;  %v17597_v53 = vpop.f32.mrb[87].mxu0 }
0x1f22   :  { %17625 = vmatpush3.bf16.msra.mxu0 %v20615_v38  ;;  %17640 = vmatprep.mubr.msk.bf16.mxu0 %vm21641_vm2, %v21642_v63  ;;  %v5235_v53 = vld [vmem:[#allocation27 + $0x2] sm:$0x1] }
0x1f23   :  { %17626 = vmatprep.subr.bf16.mxu0 %v21642_v63 }
0x1f26   :  { %17627 = vmatpush3.bf16.msra.mxu0 %v20616_v54  ;;  %v5568_v56 = vpop.f32.mrb[60].mxu1 }
0x1f27   :  { %17628 = vmatprep.subr.bf16.mxu0 %v21642_v63  ;;  %v17648_v57 = vpop.f32.mrb[61].mxu1  ;;  %v5574_v11 = vpack.c.bf16 %v5568_v56, %v5568_v56 }
0x1f28   :  { %v5571_v58 = vpop.f32.mrb[62].mxu1  ;;  %v5237_v57 = vld [vmem:[#allocation28 + $0x2] sm:$0x1] }
0x1f29   :  { %v17649_v59 = vpop.f32.mrb[63].mxu1 }
0x1f2a   :  { %17629 = vmatpush3.bf16.msra.mxu0 %v20617_v55 }
0x1f2b   :  { %17630 = vmatprep.subr.bf16.mxu0 %v21642_v63 }
0x1f2e   :  { %17631 = vmatpush3.bf16.msra.mxu0 %v20618_v60 }
0x1f2f   :  { %17632 = vmatprep.subr.bf16.mxu0 %v21642_v63 }
0x1f32   :  { %17633 = vmatpush3.bf16.msra.mxu0 %v20619_v62 }
0x1f33   :  { %17634 = vmatprep.subr.bf16.mxu0 %v21642_v63 }
0x1f36   :  { %17635 = vmatpush3.bf16.msra.mxu0 %v20620_v0 }
0x1f37   :  { %17636 = vmatprep.subr.bf16.mxu0 %v21642_v63 }
0x1f3a   :  { %17637 = vmatpush3.bf16.msra.mxu0 %v20621_v5 }
0x1f3b   :  { %17638 = vmatprep.subr.bf16.mxu0 %v21642_v63 }
0x1f3e   :  { %17639 = vmatpush3.bf16.msra.mxu0 %v20622_v6 }
0x1f3f   :  { %17650 = vmatprep.subr.bf16.mxu0 %v21642_v63 }
0x1f41   :  { %17641 = vmatmul.mubr.bf16.vlgmr.msra.gmra.mrb[88].mxu0 %v5282_v42 }
0x1f42   :  { %17651 = vmatpush3.bf16.msra.mxu0 %v20623_v44  ;;  %17666 = vmatprep.mubr.msk.bf16.mxu0 %vm21641_vm2, %v21642_v63 }
0x1f43   :  { %17652 = vmatprep.subr.bf16.mxu0 %v21642_v63 }
0x1f46   :  { %17653 = vmatpush3.bf16.msra.mxu0 %v20624_v47 }
0x1f47   :  { %17654 = vmatprep.subr.bf16.mxu0 %v21642_v63 }
0x1f4a   :  { %17655 = vmatpush3.bf16.msra.mxu0 %v20625_v50 }
0x1f4b   :  { %17656 = vmatprep.subr.bf16.mxu0 %v21642_v63 }
0x1f4e   :  { %17657 = vmatpush3.bf16.msra.mxu0 %v20626_v7 }
0x1f4f   :  { %17658 = vmatprep.subr.bf16.mxu0 %v21642_v63 }
0x1f52   :  { %17659 = vmatpush3.bf16.msra.mxu0 %v20627_v8 }
0x1f53   :  { %17660 = vmatprep.subr.bf16.mxu0 %v21642_v63 }
0x1f56   :  { %17661 = vmatpush3.bf16.msra.mxu0 %v20628_v31  ;;  %v20631_v31 = vld [vmem:[%s24206_s3 + $0x280] sm:$0xff]  }
0x1f57   :  { %17662 = vmatprep.subr.bf16.mxu0 %v21642_v63 }
0x1f5a   :  { %17663 = vmatpush3.bf16.msra.mxu0 %v20629_v9  ;;  %v22922_v9 = vld [vmem:[#allocation25 + $0x4] sm:$0xf] }
0x1f5b   :  { %17664 = vmatprep.subr.bf16.mxu0 %v21642_v63 }
0x1f5e   :  { %17665 = vmatpush3.bf16.msra.mxu0 %v20630_v10  ;;  %v22926_v10 = vld [vmem:[#allocation25] sm:$0xf] }
0x1f5f   :  { %17779 = vmatprep.subr.bf16.mxu0 %v21642_v63 }
0x1f61   :  { %17667 = vmatmul.mubr.bf16.vlgmr.msra.gmra.mrb[88].mxu0 %v5574_v11  ;;  %v20632_v11 = vld [vmem:[%s24206_s3 + $0x288] sm:$0xff]  }
0x1f62   :  { %17781 = vmatprep.mubr.msk.bf16.mxu0 %vm21641_vm2, %v21642_v63 }
0x2034   :  { %v22867_v2 = vpop.f32.mrb[88].mxu0 }
0x2035   :  { %v5681_v1 = vrot.slane %v22867_v2, 4  ;;  %v17668_v3 = vpop.f32.mrb[89].mxu0 }
0x2036   :  { %v5677_v4 = vpop.f32.mrb[90].mxu0  ;;  %v20634_v3 = vld [vmem:[%s24206_s3 + $0x298] sm:$0xff]  }
0x2037   :  { %v5682_v12 = vadd.f32 %v5681_v1, %v22867_v2  ;;  %v17669_v14 = vpop.f32.mrb[91].mxu0  ;;  %v22939_v1 = vld [vmem:[#allocation25 + $0x8] sm:$0xf]  ;;  %v20635_v4 = vld [vmem:[%s24206_s3 + $0x2a0] sm:$0xff]  }
0x2038   :  { %v20637_v14 = vld [vmem:[%s24206_s3 + $0x2b0] sm:$0xff]  }
0x2039   :  { %v5683_v15 = vrot.slane %v5682_v12, 2 }
0x203b   :  { %v5684_v17 = vadd.f32 %v5683_v15, %v5682_v12  ;;  %v20636_v12 = vld [vmem:[%s24206_s3 + $0x2a8] sm:$0xff]   ;;  %v20638_v15 = vld [vmem:[%s24206_s3 + $0x2b8] sm:$0xff]  }
0x203d   :  { %v5685_v18 = vrot.slane %v5684_v17, 1 }
0x203f   :  { %v5686_v23 = vadd.f32 %v5685_v18, %v5684_v17  ;;  %v20639_v18 = vld [vmem:[%s24206_s3 + $0x240] sm:$0xff]  }
0x2041   :  { %17703 = vmatmul.mubr.f32.vlgmr.msra.gmra.mrb[64].mxu1 %v5686_v23 }
0x2042   :  { %19701 = vmatpush3.bf16.msra.mxu1 %v22586_v26  ;;  %17713 = vmatprep.mubr.msk.f32.mxu1 %vm21641_vm2, %v21642_v63 }
0x2043   :  { %19702 = vmatprep.subr.bf16.mxu1 %v21640_v19 }
0x2046   :  { %19704 = vmatpush3.bf16.msra.mxu1 %v22596_v61 }
0x2047   :  { %19705 = vmatprep.subr.bf16.mxu1 %v21640_v19 }
0x2114   :  { %v5753_v25 = vpop.f32.mrb[64].mxu1 }
0x2115   :  { %v5757_v27 = vmul.f32 0.03125, %v5753_v25  ;;  %v17704_v39 = vpop.f32.mrb[65].mxu1 }
0x2117   :  { %17714 = vmatmul.mubr.msk.f32.vlgmr.msra.gmra.mrb[66].mxu1 %vm569_vm0, %v5757_v27 }
0x2118   :  { %19707 = vmatpush3.bf16.msra.mxu1 %v22537_v13  ;;  %17748 = vmatprep.mubr.msk.f32.mxu1 %vm21641_vm2, %v21642_v63 }
0x2119   :  { %19708 = vmatprep.subr.bf16.mxu1 %v21640_v19 }
0x211c   :  { %19710 = vmatpush3.bf16.msra.mxu1 %v22543_v16 }
0x211d   :  { %19711 = vmatprep.subr.bf16.mxu1 %v21640_v19 }
0x2120   :  { %19713 = vmatpush3.bf16.msra.mxu1 %v22551_v20 }
0x2121   :  { %19714 = vmatprep.subr.bf16.mxu1 %v21640_v19 }
0x2124   :  { %19716 = vmatpush3.bf16.msra.mxu1 %v22557_v24 }
0x2125   :  { %19717 = vmatprep.subr.bf16.mxu1 %v21640_v19 }
0x2128   :  { %19719 = vmatpush3.bf16.msra.mxu1 %v22563_v29 }
0x2129   :  { %19720 = vmatprep.subr.bf16.mxu1 %v21640_v19 }
0x212c   :  { %19722 = vmatpush3.bf16.msra.mxu1 %v22570_v33 }
0x212d   :  { %19723 = vmatprep.subr.bf16.mxu1 %v21640_v19 }
0x2130   :  { %19725 = vmatpush3.bf16.msra.mxu1 %v22576_v37 }
0x2131   :  { %19726 = vmatprep.subr.bf16.mxu1 %v21640_v19 }
0x2134   :  { %19728 = vmatpush3.bf16.msra.mxu1 %v22582_v41 }
0x2135   :  { %19729 = vmatprep.subr.bf16.mxu1 %v21640_v19 }
0x21ea   :  { %v5827_v45 = vpop.f32.mrb[66].mxu1 }
0x21eb   :  { %v5834_v43 = vrot.slane %v5827_v45, %v22137_v21  ;;  %v17715_v30 = vpop.f32.mrb[67].mxu1 }
0x21ed   :  { %v5835_v46 = vsub.f32 %v22867_v2, %v5834_v43 }
0x21ef   :  { %v5836_v32 = vmul.f32 %v5835_v46, %v5835_v46 }
0x21f1   :  { %v5837_v35 = vrot.slane %v5836_v32, 4 }
0x21f3   :  { %v5838_v36 = vadd.f32 %v5837_v35, %v5836_v32  ;;  %v20640_v32 = vld [vmem:[%s24206_s3 + $0x248] sm:$0xff]   ;;  %v20641_v35 = vld [vmem:[%s24206_s3 + $0x250] sm:$0xff]  }
0x21f5   :  { %v5839_v38 = vrot.slane %v5838_v36, 2 }
0x21f7   :  { %v5840_v40 = vadd.f32 %v5839_v38, %v5838_v36 }
0x21f9   :  { %v5841_v48 = vrot.slane %v5840_v40, 1 }
0x21fb   :  { %v5842_v49 = vadd.f32 %v5841_v48, %v5840_v40 }
0x21fd   :  { %17749 = vmatmul.mubr.f32.vlgmr.msra.gmra.mrb[68].mxu1 %v5842_v49  ;;  %v20642_v49 = vld [vmem:[%s24206_s3 + $0x258] sm:$0xff]  }
0x21fe   :  { %19731 = vmatpush3.bf16.msra.mxu1 %v22586_v26  ;;  %17759 = vmatprep.mubr.msk.f32.mxu1 %vm21641_vm2, %v21642_v63 }
0x21ff   :  { %19732 = vmatprep.subr.bf16.mxu1 %v21640_v19 }
0x2202   :  { %19734 = vmatpush3.bf16.msra.mxu1 %v22596_v61 }
0x2203   :  { %19735 = vmatprep.subr.bf16.mxu1 %v21640_v19 }
0x22d0   :  { %v5909_v34 = vpop.f32.mrb[68].mxu1 }
0x22d1   :  { %v5913_v28 = vmul.f32 0.03125, %v5909_v34  ;;  %v17750_v51 = vpop.f32.mrb[69].mxu1  ;;  %v20643_v34 = vld [vmem:[%s24206_s3 + $0x260] sm:$0xff]  }
0x22d2   :  { %v20645_v51 = vld [vmem:[%s24206_s3 + $0x270] sm:$0xff]  }
0x22d3   :  { %v5914_v52 = vadd.f32 1e-05, %v5913_v28  ;;  %v20644_v28 = vld [vmem:[%s24206_s3 + $0x268] sm:$0xff]  }
0x22d5   :  { %20891 = vrsqrt.f32 %v5914_v52  ;;  %v20646_v52 = vld [vmem:[%s24206_s3 + $0x278] sm:$0xff]  }
0x22df   :  { %v20892_v54 = vpop.eup %20891 }
0x22e0   :  { %v5916_v55 = vmul.f32 %v20892_v54, %v5235_v53  ;;  %v20647_v54 = vld [vmem:[%s24206_s3 + $0x2c0] sm:$0xff]  }
0x22e2   :  { %17760 = vmatmul.mubr.msk.f32.vlgmr.msra.gmra.mrb[70].mxu1 %vm569_vm0, %v5916_v55  ;;  %v5917_v56 = vmul.f32 %v5916_v55, %v5757_v27  ;;  %v20648_v55 = vld [vmem:[%s24206_s3 + $0x2c8] sm:$0xff]  }
0x22e3   :  { %19737 = vmatpush3.bf16.msra.mxu1 %v22586_v26  ;;  %17770 = vmatprep.mubr.msk.f32.mxu1 %vm21641_vm2, %v21642_v63 }
0x22e4   :  { %19738 = vmatprep.subr.bf16.mxu1 %v21640_v19  ;;  %v5918_v58 = vsub.f32 %v5237_v57, %v5917_v56  ;;  %v20649_v56 = vld [vmem:[%s24206_s3 + $0x2d0] sm:$0xff]   ;;  %v20650_v57 = vld [vmem:[%s24206_s3 + $0x2d8] sm:$0xff]  }
0x22e7   :  { %19740 = vmatpush3.bf16.msra.mxu1 %v22596_v61 }
0x22e8   :  { %17773 = vmatprep.subr.bf16.mxu1 %v21642_v63 }
0x22ea   :  { %17771 = vmatmul.mubr.msk.f32.vlgmr.msra.gmra.mrb[72].mxu1 %vm569_vm0, %v5918_v58  ;;  %v20651_v58 = vld [vmem:[%s24206_s3 + $0x2e0] sm:$0xff]  }
0x22eb   :  { %17775 = vmatprep.mubr.msk.bf16.mxu1 %vm21641_vm2, %v21642_v63 }
0x23b5   :  { %v5988_v59 = vpop.f32.mrb[70].mxu1 }
0x23b6   :  { %v6068_v60 = vrot.slane %v5988_v59, %v22137_v21  ;;  %v17761_v62 = vpop.f32.mrb[71].mxu1  ;;  %v20652_v59 = vld [vmem:[%s24206_s3 + $0x2e8] sm:$0xff]  }
0x23b7   :  { %v20654_v62 = vld [vmem:[%s24206_s3 + $0x2f8] sm:$0xff]  }
0x23b8   :  { %v6069_v0 = vmul.f32 %v6068_v60, %v22867_v2  ;;  %v20633_v2 = vld [vmem:[%s24206_s3 + $0x290] sm:$0xff]  }
0x23b9   :  { %v20653_v60 = vld [vmem:[%s24206_s3 + $0x2f0] sm:$0xff]  }
0x23bd   :  { %v6061_v5 = vpop.f32.mrb[72].mxu1 }
0x23be   :  { %v6073_v6 = vrot.slane %v6061_v5, %v22137_v21  ;;  %v17772_v42 = vpop.f32.mrb[73].mxu1 }
0x23c0   :  { %v6074_v44 = vadd.f32 %v6073_v6, %v6069_v0 }
0x23c2   :  { %v6075_v47 = vmax.f32 %v6074_v44, 0.0 }
0x23c4   :  { %v6076_v50 = vadd.f32 %v6075_v47, %v22777_v22 }
0x23c6   :  { %v6081_v7 = vpack.c.bf16 %v6076_v50, %v6076_v50 }
0x23c8   :  { %v6083_v8 = vsel %vm3544_vm5, %v6081_v7, 0 }
0x23c9   :  { %17774 = vmatpush3.bf16.msra.mxu1 %v6083_v8  ;;  %17780 = vmatpush3.bf16.msra.mxu0 %v6083_v8 }
0x23ca   :  { %17825 = vmatprep.subr.bf16.mxu0 %v21642_v63  ;;  %17785 = vmatprep.subr.bf16.mxu1 %v21642_v63 }
0x23cc   :  { %17782 = vmatmul.mubr.msk.bf16.vlgmr.msra.gmra.mrb[92].mxu0 %vm1095_vm3, %v22922_v9  ;;  %17776 = vmatmul.mubr.msk.bf16.vlgmr.msra.gmra.mrb[76].mxu1 %vm1095_vm3, %v22926_v10 }
0x23cd   :  { %17826 = vmatpush3.bf16.msra.mxu0 %v6083_v8  ;;  %17827 = vmatprep.mubr.msk.bf16.mxu0 %vm21641_vm2, %v21642_v63 }
0x23ce   :  { %17786 = vmatpush3.bf16.msra.mxu1 %v20631_v31  ;;  %17801 = vmatprep.mubr.msk.bf16.mxu1 %vm21641_vm2, %v21642_v63 }
0x23cf   :  { %17787 = vmatprep.subr.bf16.mxu1 %v21642_v63  ;;  %19741 = vmatprep.subr.bf16.mxu0 %v21640_v19 }
0x23d2   :  { %17788 = vmatpush3.bf16.msra.mxu1 %v20632_v11 }
0x23d3   :  { %17789 = vmatprep.subr.bf16.mxu1 %v21642_v63 }
0x23d4   :  { %17828 = vmatmul.mubr.msk.bf16.vlgmr.msra.gmra.mrb[96].mxu0 %vm1095_vm3, %v22939_v1 }
0x23d5   :  { %19743 = vmatpush3.bf16.msra.mxu0 %v22537_v13  ;;  %17883 = vmatprep.mubr.msk.f32.mxu0 %vm21641_vm2, %v21642_v63 }
0x23d6   :  { %17790 = vmatpush3.bf16.msra.mxu1 %v20633_v2  ;;  %19744 = vmatprep.subr.bf16.mxu0 %v21640_v19 }
0x23d7   :  { %17791 = vmatprep.subr.bf16.mxu1 %v21642_v63 }
0x23d9   :  { %19746 = vmatpush3.bf16.msra.mxu0 %v22543_v16 }
0x23da   :  { %17792 = vmatpush3.bf16.msra.mxu1 %v20634_v3  ;;  %19747 = vmatprep.subr.bf16.mxu0 %v21640_v19 }
0x23db   :  { %17793 = vmatprep.subr.bf16.mxu1 %v21642_v63 }
0x23dd   :  { %19749 = vmatpush3.bf16.msra.mxu0 %v22551_v20 }
0x23de   :  { %17794 = vmatpush3.bf16.msra.mxu1 %v20635_v4  ;;  %19750 = vmatprep.subr.bf16.mxu0 %v21640_v19 }
0x23df   :  { %17795 = vmatprep.subr.bf16.mxu1 %v21642_v63 }
0x23e1   :  { %19752 = vmatpush3.bf16.msra.mxu0 %v22557_v24 }
0x23e2   :  { %17796 = vmatpush3.bf16.msra.mxu1 %v20636_v12  ;;  %19753 = vmatprep.subr.bf16.mxu0 %v21640_v19 }
0x23e3   :  { %17797 = vmatprep.subr.bf16.mxu1 %v21642_v63 }
0x23e5   :  { %19755 = vmatpush3.bf16.msra.mxu0 %v22563_v29 }
0x23e6   :  { %17798 = vmatpush3.bf16.msra.mxu1 %v20637_v14  ;;  %19756 = vmatprep.subr.bf16.mxu0 %v21640_v19 }
0x23e7   :  { %17799 = vmatprep.subr.bf16.mxu1 %v21642_v63 }
0x23e9   :  { %19758 = vmatpush3.bf16.msra.mxu0 %v22570_v33 }
0x23ea   :  { %17800 = vmatpush3.bf16.msra.mxu1 %v20638_v15  ;;  %19759 = vmatprep.subr.bf16.mxu0 %v21640_v19 }
0x23eb   :  { %17805 = vmatprep.subr.bf16.mxu1 %v21642_v63 }
0x23ed   :  { %19761 = vmatpush3.bf16.msra.mxu0 %v22576_v37 }
0x23ee   :  { %19762 = vmatprep.subr.bf16.mxu0 %v21640_v19 }
0x23f1   :  { %19764 = vmatpush3.bf16.msra.mxu0 %v22582_v41 }
0x23f2   :  { %19765 = vmatprep.subr.bf16.mxu0 %v21640_v19 }
0x249f   :  { %v6177_v17 = vpop.f32.mrb[92].mxu0  ;;  %v6119_v23 = vpop.f32.mrb[76].mxu1 }
0x24a0   :  { %v6183_v25 = vpack.c.bf16 %v6177_v17, %v6177_v17  ;;  %v17783_v27 = vpop.f32.mrb[93].mxu0  ;;  %v17777_v39 = vpop.f32.mrb[77].mxu1  ;;  %v6125_v53 = vpack.c.bf16 %v6119_v23, %v6119_v23 }
0x24a1   :  { %v6180_v45 = vpop.f32.mrb[94].mxu0  ;;  %v6122_v43 = vpop.f32.mrb[78].mxu1 }
0x24a2   :  { %v17784_v30 = vpop.f32.mrb[95].mxu0  ;;  %17802 = vmatmul.mubr.bf16.vlgmr.msra.gmra.mrb[80].mxu1 %v6183_v25  ;;  %v17778_v46 = vpop.f32.mrb[79].mxu1 }
0x24a3   :  { %17806 = vmatpush3.bf16.msra.mxu1 %v20639_v18  ;;  %17821 = vmatprep.mubr.msk.bf16.mxu1 %vm21641_vm2, %v21642_v63 }
0x24a4   :  { %17807 = vmatprep.subr.bf16.mxu1 %v21642_v63 }
0x24a7   :  { %17808 = vmatpush3.bf16.msra.mxu1 %v20640_v32  ;;  %v6411_v36 = vpop.f32.mrb[96].mxu0 }
0x24a8   :  { %17809 = vmatprep.subr.bf16.mxu1 %v21642_v63  ;;  %v17829_v38 = vpop.f32.mrb[97].mxu0  ;;  %v6417_v0 = vpack.c.bf16 %v6411_v36, %v6411_v36  ;;  %v6078_v36 = vld [vmem:[#allocation27 + $0x3] sm:$0x1] }
0x24a9   :  { %v6414_v40 = vpop.f32.mrb[98].mxu0 }
0x24aa   :  { %v17830_v48 = vpop.f32.mrb[99].mxu0 }
0x24ab   :  { %17810 = vmatpush3.bf16.msra.mxu1 %v20641_v35 }
0x24ac   :  { %17811 = vmatprep.subr.bf16.mxu1 %v21642_v63 }
0x24af   :  { %17812 = vmatpush3.bf16.msra.mxu1 %v20642_v49  ;;  %v6080_v49 = vld [vmem:[#allocation28 + $0x3] sm:$0x1] }
0x24b0   :  { %17813 = vmatprep.subr.bf16.mxu1 %v21642_v63 }
0x24b3   :  { %17814 = vmatpush3.bf16.msra.mxu1 %v20643_v34 }
0x24b4   :  { %17815 = vmatprep.subr.bf16.mxu1 %v21642_v63 }
0x24b7   :  { %17816 = vmatpush3.bf16.msra.mxu1 %v20644_v28 }
0x24b8   :  { %17817 = vmatprep.subr.bf16.mxu1 %v21642_v63 }
0x24bb   :  { %17818 = vmatpush3.bf16.msra.mxu1 %v20645_v51 }
0x24bc   :  { %17819 = vmatprep.subr.bf16.mxu1 %v21642_v63 }
0x24bf   :  { %17820 = vmatpush3.bf16.msra.mxu1 %v20646_v52 }
0x24c0   :  { %17831 = vmatprep.subr.bf16.mxu1 %v21642_v63 }
0x24c2   :  { %17822 = vmatmul.mubr.bf16.vlgmr.msra.gmra.mrb[80].mxu1 %v6125_v53 }
0x24c3   :  { %17832 = vmatpush3.bf16.msra.mxu1 %v20647_v54  ;;  %17847 = vmatprep.mubr.msk.bf16.mxu1 %vm21641_vm2, %v21642_v63 }
0x24c4   :  { %17833 = vmatprep.subr.bf16.mxu1 %v21642_v63 }
0x24c7   :  { %17834 = vmatpush3.bf16.msra.mxu1 %v20648_v55 }
0x24c8   :  { %17835 = vmatprep.subr.bf16.mxu1 %v21642_v63 }
0x24cb   :  { %17836 = vmatpush3.bf16.msra.mxu1 %v20649_v56 }
0x24cc   :  { %17837 = vmatprep.subr.bf16.mxu1 %v21642_v63 }
0x24cf   :  { %17838 = vmatpush3.bf16.msra.mxu1 %v20650_v57 }
0x24d0   :  { %17839 = vmatprep.subr.bf16.mxu1 %v21642_v63 }
0x24d3   :  { %17840 = vmatpush3.bf16.msra.mxu1 %v20651_v58 }
0x24d4   :  { %17841 = vmatprep.subr.bf16.mxu1 %v21642_v63 }
0x24d7   :  { %17842 = vmatpush3.bf16.msra.mxu1 %v20652_v59 }
0x24d8   :  { %17843 = vmatprep.subr.bf16.mxu1 %v21642_v63 }
0x24db   :  { %17844 = vmatpush3.bf16.msra.mxu1 %v20653_v60 }
0x24dc   :  { %17845 = vmatprep.subr.bf16.mxu1 %v21642_v63 }
0x24df   :  { %17846 = vmatpush3.bf16.msra.mxu1 %v20654_v62 }
0x24e0   :  { %17960 = vmatprep.subr.bf16.mxu1 %v21642_v63 }
0x24e2   :  { %17848 = vmatmul.mubr.bf16.vlgmr.msra.gmra.mrb[80].mxu1 %v6417_v0  ;;  %v20655_v0 = vld [vmem:[%s24206_s3 + $0x340] sm:$0xff]  }
0x24e3   :  { %17962 = vmatprep.mubr.msk.bf16.mxu1 %vm21641_vm2, %v21642_v63 }
0x25b5   :  { %v23010_v5 = vpop.f32.mrb[80].mxu1 }
0x25b6   :  { %v6524_v6 = vrot.slane %v23010_v5, 4  ;;  %v17849_v42 = vpop.f32.mrb[81].mxu1 }
0x25b7   :  { %v6520_v44 = vpop.f32.mrb[82].mxu1  ;;  %v20659_v42 = vld [vmem:[%s24206_s3 + $0x360] sm:$0xff]  }
0x25b8   :  { %v6525_v47 = vadd.f32 %v6524_v6, %v23010_v5  ;;  %v17850_v50 = vpop.f32.mrb[83].mxu1  ;;  %v20658_v6 = vld [vmem:[%s24206_s3 + $0x358] sm:$0xff]   ;;  %v20660_v44 = vld [vmem:[%s24206_s3 + $0x368] sm:$0xff]  }
0x25b9   :  { %v20662_v50 = vld [vmem:[%s24206_s3 + $0x378] sm:$0xff]  }
0x25ba   :  { %v6526_v7 = vrot.slane %v6525_v47, 2 }
0x25bc   :  { %v6527_v8 = vadd.f32 %v6526_v7, %v6525_v47  ;;  %v20661_v47 = vld [vmem:[%s24206_s3 + $0x370] sm:$0xff]  }
0x25be   :  { %v6528_v31 = vrot.slane %v6527_v8, 1 }
0x25c0   :  { %v6529_v11 = vadd.f32 %v6528_v31, %v6527_v8  ;;  %v20663_v8 = vld [vmem:[%s24206_s3 + $0x300] sm:$0xff]  }
0x25c2   :  { %17884 = vmatmul.mubr.f32.vlgmr.msra.gmra.mrb[82].mxu0 %v6529_v11 }
0x25c3   :  { %19767 = vmatpush3.bf16.msra.mxu0 %v22586_v26  ;;  %17894 = vmatprep.mubr.msk.f32.mxu0 %vm21641_vm2, %v21642_v63 }
0x25c4   :  { %19768 = vmatprep.subr.bf16.mxu0 %v21640_v19 }
0x25c7   :  { %19770 = vmatpush3.bf16.msra.mxu0 %v22596_v61 }
0x25c8   :  { %19771 = vmatprep.subr.bf16.mxu0 %v21640_v19 }
0x2695   :  { %v6596_v2 = vpop.f32.mrb[82].mxu0 }
0x2696   :  { %v6600_v3 = vmul.f32 0.03125, %v6596_v2  ;;  %v17885_v4 = vpop.f32.mrb[83].mxu0 }
0x2698   :  { %17895 = vmatmul.mubr.msk.f32.vlgmr.msra.gmra.mrb[100].mxu0 %vm569_vm0, %v6600_v3 }
0x2699   :  { %19773 = vmatpush3.bf16.msra.mxu0 %v22537_v13  ;;  %17929 = vmatprep.mubr.msk.f32.mxu0 %vm21641_vm2, %v21642_v63 }
0x269a   :  { %19774 = vmatprep.subr.bf16.mxu0 %v21640_v19 }
0x269d   :  { %19776 = vmatpush3.bf16.msra.mxu0 %v22543_v16 }
0x269e   :  { %19777 = vmatprep.subr.bf16.mxu0 %v21640_v19 }
0x26a1   :  { %19779 = vmatpush3.bf16.msra.mxu0 %v22551_v20 }
0x26a2   :  { %19780 = vmatprep.subr.bf16.mxu0 %v21640_v19 }
0x26a5   :  { %19782 = vmatpush3.bf16.msra.mxu0 %v22557_v24 }
0x26a6   :  { %19783 = vmatprep.subr.bf16.mxu0 %v21640_v19 }
0x26a9   :  { %19785 = vmatpush3.bf16.msra.mxu0 %v22563_v29 }
0x26aa   :  { %19786 = vmatprep.subr.bf16.mxu0 %v21640_v19 }
0x26ad   :  { %19788 = vmatpush3.bf16.msra.mxu0 %v22570_v33 }
0x26ae   :  { %19789 = vmatprep.subr.bf16.mxu0 %v21640_v19 }
0x26b1   :  { %19791 = vmatpush3.bf16.msra.mxu0 %v22576_v37 }
0x26b2   :  { %19792 = vmatprep.subr.bf16.mxu0 %v21640_v19 }
0x26b5   :  { %19794 = vmatpush3.bf16.msra.mxu0 %v22582_v41 }
0x26b6   :  { %19795 = vmatprep.subr.bf16.mxu0 %v21640_v19 }
0x276b   :  { %v6670_v12 = vpop.f32.mrb[100].mxu0 }
0x276c   :  { %v6677_v14 = vrot.slane %v6670_v12, %v22137_v21  ;;  %v17896_v15 = vpop.f32.mrb[101].mxu0 }
0x276e   :  { %v6678_v17 = vsub.f32 %v23010_v5, %v6677_v14 }
0x2770   :  { %v6679_v18 = vmul.f32 %v6678_v17, %v6678_v17  ;;  %v20664_v17 = vld [vmem:[%s24206_s3 + $0x308] sm:$0xff]  }
0x2772   :  { %v6680_v23 = vrot.slane %v6679_v18, 4 }
0x2774   :  { %v6681_v25 = vadd.f32 %v6680_v23, %v6679_v18  ;;  %v20665_v18 = vld [vmem:[%s24206_s3 + $0x310] sm:$0xff]  }
0x2776   :  { %v6682_v27 = vrot.slane %v6681_v25, 2 }
0x2778   :  { %v6683_v39 = vadd.f32 %v6682_v27, %v6681_v25 }
0x277a   :  { %v6684_v45 = vrot.slane %v6683_v39, 1 }
0x277c   :  { %v6685_v43 = vadd.f32 %v6684_v45, %v6683_v39  ;;  %v20666_v45 = vld [vmem:[%s24206_s3 + $0x318] sm:$0xff]  }
0x277e   :  { %17930 = vmatmul.mubr.f32.vlgmr.msra.gmra.mrb[102].mxu0 %v6685_v43  ;;  %v20667_v43 = vld [vmem:[%s24206_s3 + $0x320] sm:$0xff]  }
0x277f   :  { %19797 = vmatpush3.bf16.msra.mxu0 %v22586_v26  ;;  %17940 = vmatprep.mubr.msk.f32.mxu0 %vm21641_vm2, %v21642_v63 }
0x2780   :  { %19798 = vmatprep.subr.bf16.mxu0 %v21640_v19 }
0x2783   :  { %19800 = vmatpush3.bf16.msra.mxu0 %v22596_v61 }
0x2784   :  { %19801 = vmatprep.subr.bf16.mxu0 %v21640_v19 }
0x2851   :  { %v6752_v30 = vpop.f32.mrb[102].mxu0 }
0x2852   :  { %v6756_v46 = vmul.f32 0.03125, %v6752_v30  ;;  %v17931_v32 = vpop.f32.mrb[103].mxu0  ;;  %v20668_v30 = vld [vmem:[%s24206_s3 + $0x328] sm:$0xff]  }
0x2853   :  { %v20670_v32 = vld [vmem:[%s24206_s3 + $0x338] sm:$0xff]  }
0x2854   :  { %v6757_v35 = vadd.f32 1e-05, %v6756_v46  ;;  %v20669_v46 = vld [vmem:[%s24206_s3 + $0x330] sm:$0xff]  }
0x2856   :  { %20893 = vrsqrt.f32 %v6757_v35 }
0x2860   :  { %v20894_v38 = vpop.eup %20893 }
0x2861   :  { %v6759_v40 = vmul.f32 %v20894_v38, %v6078_v36  ;;  %v20671_v36 = vld [vmem:[%s24206_s3 + $0x380] sm:$0xff]   ;;  %v20672_v38 = vld [vmem:[%s24206_s3 + $0x388] sm:$0xff]  }
0x2863   :  { %17941 = vmatmul.mubr.msk.f32.vlgmr.msra.gmra.mrb[104].mxu0 %vm569_vm0, %v6759_v40  ;;  %v6760_v48 = vmul.f32 %v6759_v40, %v6600_v3  ;;  %v20673_v40 = vld [vmem:[%s24206_s3 + $0x390] sm:$0xff]  }
0x2864   :  { %19803 = vmatpush3.bf16.msra.mxu0 %v22586_v26  ;;  %17951 = vmatprep.mubr.msk.f32.mxu0 %vm21641_vm2, %v21642_v63 }
0x2865   :  { %19804 = vmatprep.subr.bf16.mxu0 %v21640_v19  ;;  %v6761_v34 = vsub.f32 %v6080_v49, %v6760_v48  ;;  %v20674_v48 = vld [vmem:[%s24206_s3 + $0x398] sm:$0xff]   ;;  %v20675_v49 = vld [vmem:[%s24206_s3 + $0x3a0] sm:$0xff]  }
0x2868   :  { %19806 = vmatpush3.bf16.msra.mxu0 %v22596_v61 }
0x2869   :  { %17954 = vmatprep.subr.bf16.mxu0 %v21642_v63 }
0x286b   :  { %17952 = vmatmul.mubr.msk.f32.vlgmr.msra.gmra.mrb[106].mxu0 %vm569_vm0, %v6761_v34  ;;  %v20676_v34 = vld [vmem:[%s24206_s3 + $0x3a8] sm:$0xff]  }
0x286c   :  { %17956 = vmatprep.mubr.msk.bf16.mxu0 %vm21641_vm2, %v21642_v63 }
0x2936   :  { %v6831_v28 = vpop.f32.mrb[104].mxu0 }
0x2937   :  { %v6911_v51 = vrot.slane %v6831_v28, %v22137_v21  ;;  %v17942_v52 = vpop.f32.mrb[105].mxu0  ;;  %v20677_v28 = vld [vmem:[%s24206_s3 + $0x3b0] sm:$0xff]  }
0x2939   :  { %v6912_v53 = vmul.f32 %v6911_v51, %v23010_v5  ;;  %v20657_v5 = vld [vmem:[%s24206_s3 + $0x350] sm:$0xff]   ;;  %v20678_v51 = vld [vmem:[%s24206_s3 + $0x3b8] sm:$0xff]  }
0x293e   :  { %v6904_v54 = vpop.f32.mrb[106].mxu0 }
0x293f   :  { %v6916_v55 = vrot.slane %v6904_v54, %v22137_v21  ;;  %v17953_v56 = vpop.f32.mrb[107].mxu0 }
0x2941   :  { %v6917_v57 = vadd.f32 %v6916_v55, %v6912_v53 }
0x2943   :  { %v6918_v58 = vmax.f32 %v6917_v57, 0.0 }
0x2945   :  { %v23061_v59 = vadd.f32 %v6918_v58, %v22777_v22  ;;  %v20656_v22 = vld [vmem:[%s24206_s3 + $0x348] sm:$0xff]  }
0x2947   :  { %v6924_v60 = vpack.c.bf16 %v23061_v59, %v23061_v59 }
0x2949   :  { %v6926_v62 = vsel %vm3544_vm5, %v6924_v60, 0 }
0x294a   :  { %17955 = vmatpush3.bf16.msra.mxu0 %v6926_v62  ;;  %17961 = vmatpush3.bf16.msra.mxu1 %v6926_v62 }
0x294b   :  { %18006 = vmatprep.subr.bf16.mxu1 %v21642_v63  ;;  %17966 = vmatprep.subr.bf16.mxu0 %v21642_v63 }
0x294d   :  { %17963 = vmatmul.mubr.msk.bf16.vlgmr.msra.gmra.mrb[84].mxu1 %vm1095_vm3, %v22922_v9  ;;  %17957 = vmatmul.mubr.msk.bf16.vlgmr.msra.gmra.mrb[108].mxu0 %vm1095_vm3, %v22926_v10 }
0x294e   :  { %18007 = vmatpush3.bf16.msra.mxu1 %v6926_v62  ;;  %18008 = vmatprep.mubr.msk.bf16.mxu1 %vm21641_vm2, %v21642_v63 }
0x294f   :  { %17967 = vmatpush3.bf16.msra.mxu0 %v20655_v0  ;;  %17982 = vmatprep.mubr.msk.bf16.mxu0 %vm21641_vm2, %v21642_v63 }
0x2950   :  { %17968 = vmatprep.subr.bf16.mxu0 %v21642_v63  ;;  %19807 = vmatprep.subr.bf16.mxu1 %v21640_v19 }
0x2953   :  { %17969 = vmatpush3.bf16.msra.mxu0 %v20656_v22 }
0x2954   :  { %17970 = vmatprep.subr.bf16.mxu0 %v21642_v63 }
0x2955   :  { %18009 = vmatmul.mubr.msk.bf16.vlgmr.msra.gmra.mrb[88].mxu1 %vm1095_vm3, %v22939_v1 }
0x2956   :  { %19809 = vmatpush3.bf16.msra.mxu1 %v22537_v13  ;;  %18064 = vmatprep.mubr.msk.f32.mxu1 %vm21641_vm2, %v21642_v63 }
0x2957   :  { %17971 = vmatpush3.bf16.msra.mxu0 %v20657_v5  ;;  %19810 = vmatprep.subr.bf16.mxu1 %v21640_v19 }
0x2958   :  { %17972 = vmatprep.subr.bf16.mxu0 %v21642_v63 }
0x295a   :  { %19812 = vmatpush3.bf16.msra.mxu1 %v22543_v16 }
0x295b   :  { %17973 = vmatpush3.bf16.msra.mxu0 %v20658_v6  ;;  %19813 = vmatprep.subr.bf16.mxu1 %v21640_v19 }
0x295c   :  { %17974 = vmatprep.subr.bf16.mxu0 %v21642_v63 }
0x295e   :  { %19815 = vmatpush3.bf16.msra.mxu1 %v22551_v20 }
0x295f   :  { %17975 = vmatpush3.bf16.msra.mxu0 %v20659_v42  ;;  %19816 = vmatprep.subr.bf16.mxu1 %v21640_v19 }
0x2960   :  { %17976 = vmatprep.subr.bf16.mxu0 %v21642_v63 }
0x2962   :  { %19818 = vmatpush3.bf16.msra.mxu1 %v22557_v24 }
0x2963   :  { %17977 = vmatpush3.bf16.msra.mxu0 %v20660_v44  ;;  %19819 = vmatprep.subr.bf16.mxu1 %v21640_v19 }
0x2964   :  { %17978 = vmatprep.subr.bf16.mxu0 %v21642_v63 }
0x2966   :  { %19821 = vmatpush3.bf16.msra.mxu1 %v22563_v29 }
0x2967   :  { %17979 = vmatpush3.bf16.msra.mxu0 %v20661_v47  ;;  %19822 = vmatprep.subr.bf16.mxu1 %v21640_v19 }
0x2968   :  { %17980 = vmatprep.subr.bf16.mxu0 %v21642_v63 }
0x296a   :  { %19824 = vmatpush3.bf16.msra.mxu1 %v22570_v33 }
0x296b   :  { %17981 = vmatpush3.bf16.msra.mxu0 %v20662_v50  ;;  %19825 = vmatprep.subr.bf16.mxu1 %v21640_v19 }
0x296c   :  { %17986 = vmatprep.subr.bf16.mxu0 %v21642_v63 }
0x296e   :  { %19827 = vmatpush3.bf16.msra.mxu1 %v22576_v37 }
0x296f   :  { %19828 = vmatprep.subr.bf16.mxu1 %v21640_v19 }
0x2972   :  { %19830 = vmatpush3.bf16.msra.mxu1 %v22582_v41 }
0x2973   :  { %19831 = vmatprep.subr.bf16.mxu1 %v21640_v19 }
0x2a20   :  { %v7020_v7 = vpop.f32.mrb[84].mxu1  ;;  %v6962_v31 = vpop.f32.mrb[108].mxu0 }
0x2a21   :  { %v7026_v11 = vpack.c.bf16 %v7020_v7, %v7020_v7  ;;  %v17964_v2 = vpop.f32.mrb[85].mxu1  ;;  %v17958_v3 = vpop.f32.mrb[109].mxu0  ;;  %v6968_v35 = vpack.c.bf16 %v6962_v31, %v6962_v31 }
0x2a22   :  { %v7023_v4 = vpop.f32.mrb[86].mxu1  ;;  %v6965_v12 = vpop.f32.mrb[110].mxu0 }
0x2a23   :  { %v17965_v14 = vpop.f32.mrb[87].mxu1  ;;  %17983 = vmatmul.mubr.bf16.vlgmr.msra.gmra.mrb[112].mxu0 %v7026_v11  ;;  %v17959_v15 = vpop.f32.mrb[111].mxu0 }
0x2a24   :  { %17987 = vmatpush3.bf16.msra.mxu0 %v20663_v8  ;;  %18002 = vmatprep.mubr.msk.bf16.mxu0 %vm21641_vm2, %v21642_v63 }
0x2a25   :  { %17988 = vmatprep.subr.bf16.mxu0 %v21642_v63 }
0x2a28   :  { %17989 = vmatpush3.bf16.msra.mxu0 %v20664_v17  ;;  %v7254_v23 = vpop.f32.mrb[88].mxu1 }
0x2a29   :  { %17990 = vmatprep.subr.bf16.mxu0 %v21642_v63  ;;  %v18010_v25 = vpop.f32.mrb[89].mxu1  ;;  %v7260_v52 = vpack.c.bf16 %v7254_v23, %v7254_v23  ;;  %v6921_v23 = vld [vmem:[#allocation27 + $0x4] sm:$0x1] }
0x2a2a   :  { %v7257_v27 = vpop.f32.mrb[90].mxu1 }
0x2a2b   :  { %v18011_v39 = vpop.f32.mrb[91].mxu1 }
0x2a2c   :  { %17991 = vmatpush3.bf16.msra.mxu0 %v20665_v18 }
0x2a2d   :  { %17992 = vmatprep.subr.bf16.mxu0 %v21642_v63 }
0x2a30   :  { %17993 = vmatpush3.bf16.msra.mxu0 %v20666_v45  ;;  %v6923_v45 = vld [vmem:[#allocation28 + $0x4] sm:$0x1] }
0x2a31   :  { %17994 = vmatprep.subr.bf16.mxu0 %v21642_v63 }
0x2a34   :  { %17995 = vmatpush3.bf16.msra.mxu0 %v20667_v43 }
0x2a35   :  { %17996 = vmatprep.subr.bf16.mxu0 %v21642_v63 }
0x2a38   :  { %17997 = vmatpush3.bf16.msra.mxu0 %v20668_v30 }
0x2a39   :  { %17998 = vmatprep.subr.bf16.mxu0 %v21642_v63 }
0x2a3c   :  { %17999 = vmatpush3.bf16.msra.mxu0 %v20669_v46 }
0x2a3d   :  { %18000 = vmatprep.subr.bf16.mxu0 %v21642_v63 }
0x2a40   :  { %18001 = vmatpush3.bf16.msra.mxu0 %v20670_v32 }
0x2a41   :  { %18012 = vmatprep.subr.bf16.mxu0 %v21642_v63 }
0x2a43   :  { %18003 = vmatmul.mubr.bf16.vlgmr.msra.gmra.mrb[112].mxu0 %v6968_v35 }
0x2a44   :  { %18013 = vmatpush3.bf16.msra.mxu0 %v20671_v36  ;;  %18028 = vmatprep.mubr.msk.bf16.mxu0 %vm21641_vm2, %v21642_v63 }
0x2a45   :  { %18014 = vmatprep.subr.bf16.mxu0 %v21642_v63 }
0x2a48   :  { %18015 = vmatpush3.bf16.msra.mxu0 %v20672_v38 }
0x2a49   :  { %18016 = vmatprep.subr.bf16.mxu0 %v21642_v63 }
0x2a4c   :  { %18017 = vmatpush3.bf16.msra.mxu0 %v20673_v40 }
0x2a4d   :  { %18018 = vmatprep.subr.bf16.mxu0 %v21642_v63 }
0x2a50   :  { %18019 = vmatpush3.bf16.msra.mxu0 %v20674_v48 }
0x2a51   :  { %18020 = vmatprep.subr.bf16.mxu0 %v21642_v63 }
0x2a54   :  { %18021 = vmatpush3.bf16.msra.mxu0 %v20675_v49 }
0x2a55   :  { %18022 = vmatprep.subr.bf16.mxu0 %v21642_v63 }
0x2a58   :  { %18023 = vmatpush3.bf16.msra.mxu0 %v20676_v34 }
0x2a59   :  { %18024 = vmatprep.subr.bf16.mxu0 %v21642_v63 }
0x2a5c   :  { %18025 = vmatpush3.bf16.msra.mxu0 %v20677_v28 }
0x2a5d   :  { %18026 = vmatprep.subr.bf16.mxu0 %v21642_v63 }
0x2a60   :  { %18027 = vmatpush3.bf16.msra.mxu0 %v20678_v51 }
0x2a61   :  { %18141 = vmatprep.subr.bf16.mxu0 %v21642_v63 }
0x2a63   :  { %18029 = vmatmul.mubr.bf16.vlgmr.msra.gmra.mrb[112].mxu0 %v7260_v52  ;;  %v20679_v52 = vld [vmem:[%s24206_s3 + $0x400] sm:$0xff]  }
0x2a64   :  { %18143 = vmatprep.mubr.msk.bf16.mxu0 %vm21641_vm2, %v21642_v63 }
0x2b36   :  { %v23151_v53 = vpop.f32.mrb[112].mxu0 }
0x2b37   :  { %v7367_v54 = vrot.slane %v23151_v53, 4  ;;  %v18030_v55 = vpop.f32.mrb[113].mxu0 }
0x2b38   :  { %v7363_v56 = vpop.f32.mrb[114].mxu0  ;;  %v20685_v55 = vld [vmem:[%s24206_s3 + $0x430] sm:$0xff]  }
0x2b39   :  { %v7368_v57 = vadd.f32 %v7367_v54, %v23151_v53  ;;  %v18031_v58 = vpop.f32.mrb[115].mxu0  ;;  %v20683_v54 = vld [vmem:[%s24206_s3 + $0x420] sm:$0xff]   ;;  %v20686_v56 = vld [vmem:[%s24206_s3 + $0x438] sm:$0xff]  }
0x2b3a   :  { %v20687_v58 = vld [vmem:[%s24206_s3 + $0x3c0] sm:$0xff]  }
0x2b3b   :  { %v7369_v60 = vrot.slane %v7368_v57, 2 }
0x2b3d   :  { %v7370_v62 = vadd.f32 %v7369_v60, %v7368_v57 }
0x2b3f   :  { %v7371_v0 = vrot.slane %v7370_v62, 1 }
0x2b41   :  { %v7372_v22 = vadd.f32 %v7371_v0, %v7370_v62 }
0x2b43   :  { %18065 = vmatmul.mubr.f32.vlgmr.msra.gmra.mrb[74].mxu1 %v7372_v22 }
0x2b44   :  { %19833 = vmatpush3.bf16.msra.mxu1 %v22586_v26  ;;  %18075 = vmatprep.mubr.msk.f32.mxu1 %vm21641_vm2, %v21642_v63 }
0x2b45   :  { %19834 = vmatprep.subr.bf16.mxu1 %v21640_v19 }
0x2b48   :  { %19836 = vmatpush3.bf16.msra.mxu1 %v22596_v61 }
0x2b49   :  { %19837 = vmatprep.subr.bf16.mxu1 %v21640_v19 }
0x2c16   :  { %v7439_v5 = vpop.f32.mrb[74].mxu1 }
0x2c17   :  { %v7443_v6 = vmul.f32 0.03125, %v7439_v5  ;;  %v18066_v42 = vpop.f32.mrb[75].mxu1 }
0x2c19   :  { %18076 = vmatmul.mubr.msk.f32.vlgmr.msra.gmra.mrb[92].mxu1 %vm569_vm0, %v7443_v6 }
0x2c1a   :  { %19839 = vmatpush3.bf16.msra.mxu1 %v22537_v13  ;;  %18110 = vmatprep.mubr.msk.f32.mxu1 %vm21641_vm2, %v21642_v63 }
0x2c1b   :  { %19840 = vmatprep.subr.bf16.mxu1 %v21640_v19 }
0x2c1e   :  { %19842 = vmatpush3.bf16.msra.mxu1 %v22543_v16 }
0x2c1f   :  { %19843 = vmatprep.subr.bf16.mxu1 %v21640_v19 }
0x2c22   :  { %19845 = vmatpush3.bf16.msra.mxu1 %v22551_v20 }
0x2c23   :  { %19846 = vmatprep.subr.bf16.mxu1 %v21640_v19 }
0x2c26   :  { %19848 = vmatpush3.bf16.msra.mxu1 %v22557_v24 }
0x2c27   :  { %19849 = vmatprep.subr.bf16.mxu1 %v21640_v19 }
0x2c2a   :  { %19851 = vmatpush3.bf16.msra.mxu1 %v22563_v29 }
0x2c2b   :  { %19852 = vmatprep.subr.bf16.mxu1 %v21640_v19 }
0x2c2e   :  { %19854 = vmatpush3.bf16.msra.mxu1 %v22570_v33 }
0x2c2f   :  { %19855 = vmatprep.subr.bf16.mxu1 %v21640_v19 }
0x2c32   :  { %19857 = vmatpush3.bf16.msra.mxu1 %v22576_v37 }
0x2c33   :  { %19858 = vmatprep.subr.bf16.mxu1 %v21640_v19 }
0x2c36   :  { %19860 = vmatpush3.bf16.msra.mxu1 %v22582_v41 }
0x2c37   :  { %19861 = vmatprep.subr.bf16.mxu1 %v21640_v19 }
0x2cec   :  { %v7513_v44 = vpop.f32.mrb[92].mxu1 }
0x2ced   :  { %v7520_v47 = vrot.slane %v7513_v44, %v22137_v21  ;;  %v18077_v50 = vpop.f32.mrb[93].mxu1 }
0x2cee   :  { %v20689_v50 = vld [vmem:[%s24206_s3 + $0x3d0] sm:$0xff]  }
0x2cef   :  { %v7521_v7 = vsub.f32 %v23151_v53, %v7520_v47  ;;  %v20688_v47 = vld [vmem:[%s24206_s3 + $0x3c8] sm:$0xff]  }
0x2cf1   :  { %v7522_v8 = vmul.f32 %v7521_v7, %v7521_v7 }
0x2cf3   :  { %v7523_v31 = vrot.slane %v7522_v8, 4 }
0x2cf5   :  { %v7524_v11 = vadd.f32 %v7523_v31, %v7522_v8 }
0x2cf7   :  { %v7525_v2 = vrot.slane %v7524_v11, 2 }
0x2cf9   :  { %v7526_v3 = vadd.f32 %v7525_v2, %v7524_v11  ;;  %v20690_v2 = vld [vmem:[%s24206_s3 + $0x3d8] sm:$0xff]  }
0x2cfb   :  { %v7527_v4 = vrot.slane %v7526_v3, 1 }
0x2cfd   :  { %v7528_v12 = vadd.f32 %v7527_v4, %v7526_v3  ;;  %v20691_v3 = vld [vmem:[%s24206_s3 + $0x3e0] sm:$0xff]   ;;  %v20692_v4 = vld [vmem:[%s24206_s3 + $0x3e8] sm:$0xff]  }
0x2cff   :  { %18111 = vmatmul.mubr.f32.vlgmr.msra.gmra.mrb[94].mxu1 %v7528_v12  ;;  %v20693_v12 = vld [vmem:[%s24206_s3 + $0x3f0] sm:$0xff]  }
0x2d00   :  { %19863 = vmatpush3.bf16.msra.mxu1 %v22586_v26  ;;  %18121 = vmatprep.mubr.msk.f32.mxu1 %vm21641_vm2, %v21642_v63 }
0x2d01   :  { %19864 = vmatprep.subr.bf16.mxu1 %v21640_v19 }
0x2d04   :  { %19866 = vmatpush3.bf16.msra.mxu1 %v22596_v61 }
0x2d05   :  { %19867 = vmatprep.subr.bf16.mxu1 %v21640_v19 }
0x2dd2   :  { %v7595_v14 = vpop.f32.mrb[94].mxu1 }
0x2dd3   :  { %v7599_v15 = vmul.f32 0.03125, %v7595_v14  ;;  %v18112_v17 = vpop.f32.mrb[95].mxu1  ;;  %v20694_v14 = vld [vmem:[%s24206_s3 + $0x3f8] sm:$0xff]  }
0x2dd4   :  { %v20695_v17 = vld [vmem:[%s24206_s3 + $0x440] sm:$0xff]  }
0x2dd5   :  { %v7600_v18 = vadd.f32 1e-05, %v7599_v15 }
0x2dd7   :  { %20895 = vrsqrt.f32 %v7600_v18  ;;  %v20696_v18 = vld [vmem:[%s24206_s3 + $0x448] sm:$0xff]  }
0x2de1   :  { %v20896_v25 = vpop.eup %20895 }
0x2de2   :  { %v7602_v27 = vmul.f32 %v20896_v25, %v6921_v23  ;;  %v20697_v23 = vld [vmem:[%s24206_s3 + $0x450] sm:$0xff]   ;;  %v20698_v25 = vld [vmem:[%s24206_s3 + $0x458] sm:$0xff]  }
0x2de4   :  { %18122 = vmatmul.mubr.msk.f32.vlgmr.msra.gmra.mrb[96].mxu1 %vm569_vm0, %v7602_v27  ;;  %v7603_v39 = vmul.f32 %v7602_v27, %v7443_v6  ;;  %v20699_v27 = vld [vmem:[%s24206_s3 + $0x460] sm:$0xff]  }
0x2de5   :  { %19869 = vmatpush3.bf16.msra.mxu1 %v22586_v26  ;;  %18132 = vmatprep.mubr.msk.f32.mxu1 %vm21641_vm2, %v21642_v63 }
0x2de6   :  { %19870 = vmatprep.subr.bf16.mxu1 %v21640_v19  ;;  %v7604_v43 = vsub.f32 %v6923_v45, %v7603_v39  ;;  %v20700_v39 = vld [vmem:[%s24206_s3 + $0x468] sm:$0xff]   ;;  %v20701_v45 = vld [vmem:[%s24206_s3 + $0x470] sm:$0xff]  }
0x2de9   :  { %19872 = vmatpush3.bf16.msra.mxu1 %v22596_v61 }
0x2dea   :  { %18135 = vmatprep.subr.bf16.mxu1 %v21642_v63 }
0x2dec   :  { %18133 = vmatmul.mubr.msk.f32.vlgmr.msra.gmra.mrb[98].mxu1 %vm569_vm0, %v7604_v43  ;;  %v20702_v43 = vld [vmem:[%s24206_s3 + $0x478] sm:$0xff]  }
0x2ded   :  { %18137 = vmatprep.mubr.msk.bf16.mxu1 %vm21641_vm2, %v21642_v63 }
0x2eb7   :  { %v7674_v30 = vpop.f32.mrb[96].mxu1 }
0x2eb8   :  { %v7754_v46 = vrot.slane %v7674_v30, %v22137_v21  ;;  %v18123_v32 = vpop.f32.mrb[97].mxu1 }
0x2eba   :  { %v7755_v35 = vmul.f32 %v7754_v46, %v23151_v53  ;;  %v20680_v53 = vld [vmem:[%s24206_s3 + $0x408] sm:$0xff]  }
0x2ebf   :  { %v7747_v36 = vpop.f32.mrb[98].mxu1 }
0x2ec0   :  { %v7759_v38 = vrot.slane %v7747_v36, %v22137_v21  ;;  %v18134_v40 = vpop.f32.mrb[99].mxu1 }
0x2ec2   :  { %v7760_v48 = vadd.f32 %v7759_v38, %v7755_v35 }
0x2ec4   :  { %v7761_v49 = vmax.f32 %v7760_v48, 0.0 }
0x2ec6   :  { %v7762_v34 = vadd.f32 %v7761_v49, %v23061_v59 }
0x2ec8   :  { %v7767_v28 = vpack.c.bf16 %v7762_v34, %v7762_v34 }
0x2eca   :  { %v7769_v51 = vsel %vm3544_vm5, %v7767_v28, 0 }
0x2ecb   :  { %18136 = vmatpush3.bf16.msra.mxu1 %v7769_v51  ;;  %18142 = vmatpush3.bf16.msra.mxu0 %v7769_v51 }
0x2ecc   :  { %18187 = vmatprep.subr.bf16.mxu0 %v21642_v63  ;;  %18147 = vmatprep.subr.bf16.mxu1 %v21642_v63 }
0x2ece   :  { %18144 = vmatmul.mubr.msk.bf16.vlgmr.msra.gmra.mrb[116].mxu0 %vm1095_vm3, %v22922_v9  ;;  %18138 = vmatmul.mubr.msk.bf16.vlgmr.msra.gmra.mrb[100].mxu1 %vm1095_vm3, %v22926_v10  ;;  %v20681_v9 = vld [vmem:[%s24206_s3 + $0x410] sm:$0xff]   ;;  %v20682_v10 = vld [vmem:[%s24206_s3 + $0x418] sm:$0xff]  }
0x2ecf   :  { %18188 = vmatpush3.bf16.msra.mxu0 %v7769_v51  ;;  %18189 = vmatprep.mubr.msk.bf16.mxu0 %vm21641_vm2, %v21642_v63 }
0x2ed0   :  { %18148 = vmatpush3.bf16.msra.mxu1 %v20679_v52  ;;  %18163 = vmatprep.mubr.msk.bf16.mxu1 %vm21641_vm2, %v21642_v63 }
0x2ed1   :  { %18149 = vmatprep.subr.bf16.mxu1 %v21642_v63  ;;  %19873 = vmatprep.subr.bf16.mxu0 %v21640_v19 }
0x2ed4   :  { %18150 = vmatpush3.bf16.msra.mxu1 %v20680_v53 }
0x2ed5   :  { %18151 = vmatprep.subr.bf16.mxu1 %v21642_v63 }
0x2ed6   :  { %18190 = vmatmul.mubr.msk.bf16.vlgmr.msra.gmra.mrb[120].mxu0 %vm1095_vm3, %v22939_v1  ;;  %v20684_v1 = vld [vmem:[%s24206_s3 + $0x428] sm:$0xff]  }
0x2ed7   :  { %19875 = vmatpush3.bf16.msra.mxu0 %v22537_v13  ;;  %18245 = vmatprep.mubr.msk.f32.mxu0 %vm21641_vm2, %v21642_v63 }
0x2ed8   :  { %18152 = vmatpush3.bf16.msra.mxu1 %v20681_v9  ;;  %19876 = vmatprep.subr.bf16.mxu0 %v21640_v19 }
0x2ed9   :  { %18153 = vmatprep.subr.bf16.mxu1 %v21642_v63 }
0x2edb   :  { %19878 = vmatpush3.bf16.msra.mxu0 %v22543_v16 }
0x2edc   :  { %18154 = vmatpush3.bf16.msra.mxu1 %v20682_v10  ;;  %19879 = vmatprep.subr.bf16.mxu0 %v21640_v19 }
0x2edd   :  { %18155 = vmatprep.subr.bf16.mxu1 %v21642_v63 }
0x2edf   :  { %19881 = vmatpush3.bf16.msra.mxu0 %v22551_v20 }
0x2ee0   :  { %18156 = vmatpush3.bf16.msra.mxu1 %v20683_v54  ;;  %19882 = vmatprep.subr.bf16.mxu0 %v21640_v19 }
0x2ee1   :  { %18157 = vmatprep.subr.bf16.mxu1 %v21642_v63 }
0x2ee3   :  { %19884 = vmatpush3.bf16.msra.mxu0 %v22557_v24 }
0x2ee4   :  { %18158 = vmatpush3.bf16.msra.mxu1 %v20684_v1  ;;  %19885 = vmatprep.subr.bf16.mxu0 %v21640_v19 }
0x2ee5   :  { %18159 = vmatprep.subr.bf16.mxu1 %v21642_v63 }
0x2ee7   :  { %19887 = vmatpush3.bf16.msra.mxu0 %v22563_v29 }
0x2ee8   :  { %18160 = vmatpush3.bf16.msra.mxu1 %v20685_v55  ;;  %19888 = vmatprep.subr.bf16.mxu0 %v21640_v19 }
0x2ee9   :  { %18161 = vmatprep.subr.bf16.mxu1 %v21642_v63 }
0x2eeb   :  { %19890 = vmatpush3.bf16.msra.mxu0 %v22570_v33 }
0x2eec   :  { %18162 = vmatpush3.bf16.msra.mxu1 %v20686_v56  ;;  %19891 = vmatprep.subr.bf16.mxu0 %v21640_v19 }
0x2eed   :  { %18167 = vmatprep.subr.bf16.mxu1 %v21642_v63 }
0x2eef   :  { %19893 = vmatpush3.bf16.msra.mxu0 %v22576_v37 }
0x2ef0   :  { %19894 = vmatprep.subr.bf16.mxu0 %v21640_v19 }
0x2ef3   :  { %19896 = vmatpush3.bf16.msra.mxu0 %v22582_v41 }
0x2ef4   :  { %19897 = vmatprep.subr.bf16.mxu0 %v21640_v19 }
0x2fa1   :  { %v7863_v57 = vpop.f32.mrb[116].mxu0  ;;  %v7805_v60 = vpop.f32.mrb[100].mxu1 }
0x2fa2   :  { %v7869_v62 = vpack.c.bf16 %v7863_v57, %v7863_v57  ;;  %v18145_v0 = vpop.f32.mrb[117].mxu0  ;;  %v18139_v22 = vpop.f32.mrb[101].mxu1  ;;  %v7811_v15 = vpack.c.bf16 %v7805_v60, %v7805_v60 }
0x2fa3   :  { %v7866_v5 = vpop.f32.mrb[118].mxu0  ;;  %v7808_v6 = vpop.f32.mrb[102].mxu1 }
0x2fa4   :  { %v18146_v42 = vpop.f32.mrb[119].mxu0  ;;  %18164 = vmatmul.mubr.bf16.vlgmr.msra.gmra.mrb[104].mxu1 %v7869_v62  ;;  %v18140_v44 = vpop.f32.mrb[103].mxu1 }
0x2fa5   :  { %18168 = vmatpush3.bf16.msra.mxu1 %v20687_v58  ;;  %18183 = vmatprep.mubr.msk.bf16.mxu1 %vm21641_vm2, %v21642_v63  ;;  %v7764_v44 = vld [vmem:[#allocation27 + $0x5] sm:$0x1] }
0x2fa6   :  { %18169 = vmatprep.subr.bf16.mxu1 %v21642_v63 }
0x2fa9   :  { %18170 = vmatpush3.bf16.msra.mxu1 %v20688_v47  ;;  %v8097_v7 = vpop.f32.mrb[120].mxu0 }
0x2faa   :  { %18171 = vmatprep.subr.bf16.mxu1 %v21642_v63  ;;  %v18191_v8 = vpop.f32.mrb[121].mxu0  ;;  %v8103_v30 = vpack.c.bf16 %v8097_v7, %v8097_v7 }
0x2fab   :  { %v8100_v31 = vpop.f32.mrb[122].mxu0  ;;  %v7766_v8 = vld [vmem:[#allocation28 + $0x5] sm:$0x1] }
0x2fac   :  { %v18192_v11 = vpop.f32.mrb[123].mxu0 }
0x2fad   :  { %18172 = vmatpush3.bf16.msra.mxu1 %v20689_v50 }
0x2fae   :  { %18173 = vmatprep.subr.bf16.mxu1 %v21642_v63 }
0x2fb1   :  { %18174 = vmatpush3.bf16.msra.mxu1 %v20690_v2 }
0x2fb2   :  { %18175 = vmatprep.subr.bf16.mxu1 %v21642_v63 }
0x2fb5   :  { %18176 = vmatpush3.bf16.msra.mxu1 %v20691_v3 }
0x2fb6   :  { %18177 = vmatprep.subr.bf16.mxu1 %v21642_v63 }
0x2fb9   :  { %18178 = vmatpush3.bf16.msra.mxu1 %v20692_v4 }
0x2fba   :  { %18179 = vmatprep.subr.bf16.mxu1 %v21642_v63 }
0x2fbd   :  { %18180 = vmatpush3.bf16.msra.mxu1 %v20693_v12 }
0x2fbe   :  { %18181 = vmatprep.subr.bf16.mxu1 %v21642_v63 }
0x2fc1   :  { %18182 = vmatpush3.bf16.msra.mxu1 %v20694_v14 }
0x2fc2   :  { %18193 = vmatprep.subr.bf16.mxu1 %v21642_v63 }
0x2fc4   :  { %18184 = vmatmul.mubr.bf16.vlgmr.msra.gmra.mrb[104].mxu1 %v7811_v15 }
0x2fc5   :  { %18194 = vmatpush3.bf16.msra.mxu1 %v20695_v17  ;;  %18209 = vmatprep.mubr.msk.bf16.mxu1 %vm21641_vm2, %v21642_v63 }
0x2fc6   :  { %18195 = vmatprep.subr.bf16.mxu1 %v21642_v63 }
0x2fc9   :  { %18196 = vmatpush3.bf16.msra.mxu1 %v20696_v18 }
0x2fca   :  { %18197 = vmatprep.subr.bf16.mxu1 %v21642_v63 }
0x2fcd   :  { %18198 = vmatpush3.bf16.msra.mxu1 %v20697_v23 }
0x2fce   :  { %18199 = vmatprep.subr.bf16.mxu1 %v21642_v63 }
0x2fd1   :  { %18200 = vmatpush3.bf16.msra.mxu1 %v20698_v25 }
0x2fd2   :  { %18201 = vmatprep.subr.bf16.mxu1 %v21642_v63 }
0x2fd5   :  { %18202 = vmatpush3.bf16.msra.mxu1 %v20699_v27 }
0x2fd6   :  { %18203 = vmatprep.subr.bf16.mxu1 %v21642_v63 }
0x2fd9   :  { %18204 = vmatpush3.bf16.msra.mxu1 %v20700_v39  ;;  %v20703_v39 = vld [vmem:[%s24206_s3 + $0x4c0] sm:$0xff]  }
0x2fda   :  { %18205 = vmatprep.subr.bf16.mxu1 %v21642_v63 }
0x2fdd   :  { %18206 = vmatpush3.bf16.msra.mxu1 %v20701_v45  ;;  %v23347_v45 = vld [vmem:[#allocation25 + $0x4] sm:$0xf] }
0x2fde   :  { %18207 = vmatprep.subr.bf16.mxu1 %v21642_v63 }
0x2fe1   :  { %18208 = vmatpush3.bf16.msra.mxu1 %v20702_v43  ;;  %v20704_v43 = vld [vmem:[%s24206_s3 + $0x4c8] sm:$0xff]  }
0x2fe2   :  { %18322 = vmatprep.subr.bf16.mxu1 %v21642_v63 }
0x2fe4   :  { %18210 = vmatmul.mubr.bf16.vlgmr.msra.gmra.mrb[104].mxu1 %v8103_v30  ;;  %v20705_v30 = vld [vmem:[%s24206_s3 + $0x4d0] sm:$0xff]  }
0x2fe5   :  { %18324 = vmatprep.mubr.msk.bf16.mxu1 %vm21641_vm2, %v21642_v63 }
0x30b7   :  { %v23288_v46 = vpop.f32.mrb[104].mxu1 }
0x30b8   :  { %v8210_v32 = vrot.slane %v23288_v46, 4  ;;  %v18211_v35 = vpop.f32.mrb[105].mxu1 }
0x30b9   :  { %v8206_v36 = vpop.f32.mrb[106].mxu1  ;;  %v20707_v35 = vld [vmem:[%s24206_s3 + $0x4e0] sm:$0xff]  }
0x30ba   :  { %v8211_v38 = vadd.f32 %v8210_v32, %v23288_v46  ;;  %v18212_v40 = vpop.f32.mrb[107].mxu1  ;;  %v20706_v32 = vld [vmem:[%s24206_s3 + $0x4d8] sm:$0xff]   ;;  %v20708_v36 = vld [vmem:[%s24206_s3 + $0x4e8] sm:$0xff]  }
0x30bb   :  { %v20710_v40 = vld [vmem:[%s24206_s3 + $0x4f8] sm:$0xff]  }
0x30bc   :  { %v8212_v48 = vrot.slane %v8211_v38, 2 }
0x30be   :  { %v8213_v49 = vadd.f32 %v8212_v48, %v8211_v38  ;;  %v20709_v38 = vld [vmem:[%s24206_s3 + $0x4f0] sm:$0xff]  }
0x30c0   :  { %v8214_v34 = vrot.slane %v8213_v49, 1 }
0x30c2   :  { %v8215_v28 = vadd.f32 %v8214_v34, %v8213_v49  ;;  %v20711_v49 = vld [vmem:[%s24206_s3 + $0x480] sm:$0xff]  }
0x30c4   :  { %18246 = vmatmul.mubr.f32.vlgmr.msra.gmra.mrb[124].mxu0 %v8215_v28 }
0x30c5   :  { %19899 = vmatpush3.bf16.msra.mxu0 %v22586_v26  ;;  %18256 = vmatprep.mubr.msk.f32.mxu0 %vm21641_vm2, %v21642_v63 }
0x30c6   :  { %19900 = vmatprep.subr.bf16.mxu0 %v21640_v19 }
0x30c9   :  { %19902 = vmatpush3.bf16.msra.mxu0 %v22596_v61 }
0x30ca   :  { %19903 = vmatprep.subr.bf16.mxu0 %v21640_v19 }
0x3197   :  { %v8282_v51 = vpop.f32.mrb[124].mxu0 }
0x3198   :  { %v8286_v52 = vmul.f32 0.03125, %v8282_v51  ;;  %v18247_v53 = vpop.f32.mrb[125].mxu0 }
0x319a   :  { %18257 = vmatmul.mubr.msk.f32.vlgmr.msra.gmra.mrb[126].mxu0 %vm569_vm0, %v8286_v52 }
0x319b   :  { %19905 = vmatpush3.bf16.msra.mxu0 %v22537_v13  ;;  %18291 = vmatprep.mubr.msk.f32.mxu0 %vm21641_vm2, %v21642_v63 }
0x319c   :  { %19906 = vmatprep.subr.bf16.mxu0 %v21640_v19 }
0x319f   :  { %19908 = vmatpush3.bf16.msra.mxu0 %v22543_v16 }
0x31a0   :  { %19909 = vmatprep.subr.bf16.mxu0 %v21640_v19 }
0x31a3   :  { %19911 = vmatpush3.bf16.msra.mxu0 %v22551_v20 }
0x31a4   :  { %19912 = vmatprep.subr.bf16.mxu0 %v21640_v19 }
0x31a7   :  { %19914 = vmatpush3.bf16.msra.mxu0 %v22557_v24 }
0x31a8   :  { %19915 = vmatprep.subr.bf16.mxu0 %v21640_v19 }
0x31ab   :  { %19917 = vmatpush3.bf16.msra.mxu0 %v22563_v29 }
0x31ac   :  { %19918 = vmatprep.subr.bf16.mxu0 %v21640_v19 }
0x31af   :  { %19920 = vmatpush3.bf16.msra.mxu0 %v22570_v33 }
0x31b0   :  { %19921 = vmatprep.subr.bf16.mxu0 %v21640_v19 }
0x31b3   :  { %19923 = vmatpush3.bf16.msra.mxu0 %v22576_v37 }
0x31b4   :  { %19924 = vmatprep.subr.bf16.mxu0 %v21640_v19 }
0x31b7   :  { %19926 = vmatpush3.bf16.msra.mxu0 %v22582_v41 }
0x31b8   :  { %19927 = vmatprep.subr.bf16.mxu0 %v21640_v19 }
0x326d   :  { %v8356_v9 = vpop.f32.mrb[126].mxu0 }
0x326e   :  { %v8363_v10 = vrot.slane %v8356_v9, %v22137_v21  ;;  %v18258_v54 = vpop.f32.mrb[127].mxu0 }
0x3270   :  { %v8364_v1 = vsub.f32 %v23288_v46, %v8363_v10 }
0x3272   :  { %v8365_v55 = vmul.f32 %v8364_v1, %v8364_v1  ;;  %v20712_v1 = vld [vmem:[%s24206_s3 + $0x488] sm:$0xff]  }
0x3274   :  { %v8366_v56 = vrot.slane %v8365_v55, 4 }
0x3276   :  { %v8367_v57 = vadd.f32 %v8366_v56, %v8365_v55  ;;  %v20713_v55 = vld [vmem:[%s24206_s3 + $0x490] sm:$0xff]  }
0x3278   :  { %v8368_v58 = vrot.slane %v8367_v57, 2 }
0x327a   :  { %v8369_v60 = vadd.f32 %v8368_v58, %v8367_v57 }
0x327c   :  { %v8370_v62 = vrot.slane %v8369_v60, 1 }
0x327e   :  { %v8371_v0 = vadd.f32 %v8370_v62, %v8369_v60  ;;  %v20714_v62 = vld [vmem:[%s24206_s3 + $0x498] sm:$0xff]  }
0x3280   :  { %18292 = vmatmul.mubr.f32.vlgmr.msra.gmra.mrb[128].mxu0 %v8371_v0  ;;  %v20715_v0 = vld [vmem:[%s24206_s3 + $0x4a0] sm:$0xff]  }
0x3281   :  { %19929 = vmatpush3.bf16.msra.mxu0 %v22586_v26  ;;  %18302 = vmatprep.mubr.msk.f32.mxu0 %vm21641_vm2, %v21642_v63 }
0x3282   :  { %19930 = vmatprep.subr.bf16.mxu0 %v21640_v19 }
0x3285   :  { %19932 = vmatpush3.bf16.msra.mxu0 %v22596_v61 }
0x3286   :  { %19933 = vmatprep.subr.bf16.mxu0 %v21640_v19 }
0x3353   :  { %v8438_v22 = vpop.f32.mrb[128].mxu0 }
0x3354   :  { %v8442_v5 = vmul.f32 0.03125, %v8438_v22  ;;  %v18293_v6 = vpop.f32.mrb[129].mxu0  ;;  %v20716_v22 = vld [vmem:[%s24206_s3 + $0x4a8] sm:$0xff]  }
0x3355   :  { %v20718_v6 = vld [vmem:[%s24206_s3 + $0x4b8] sm:$0xff]  }
0x3356   :  { %v8443_v42 = vadd.f32 1e-05, %v8442_v5  ;;  %v20717_v5 = vld [vmem:[%s24206_s3 + $0x4b0] sm:$0xff]  }
0x3358   :  { %20897 = vrsqrt.f32 %v8443_v42 }
0x3362   :  { %v20898_v47 = vpop.eup %20897 }
0x3363   :  { %v8445_v50 = vmul.f32 %v20898_v47, %v7764_v44  ;;  %v20719_v44 = vld [vmem:[%s24206_s3 + $0x500] sm:$0xff]   ;;  %v20720_v47 = vld [vmem:[%s24206_s3 + $0x508] sm:$0xff]  }
0x3365   :  { %18303 = vmatmul.mubr.msk.f32.vlgmr.msra.gmra.mrb[130].mxu0 %vm569_vm0, %v8445_v50  ;;  %v8446_v7 = vmul.f32 %v8445_v50, %v8286_v52  ;;  %v20721_v50 = vld [vmem:[%s24206_s3 + $0x510] sm:$0xff]  }
0x3366   :  { %19935 = vmatpush3.bf16.msra.mxu0 %v22586_v26  ;;  %18313 = vmatprep.mubr.msk.f32.mxu0 %vm21641_vm2, %v21642_v63 }
0x3367   :  { %19936 = vmatprep.subr.bf16.mxu0 %v21640_v19  ;;  %v8447_v31 = vsub.f32 %v7766_v8, %v8446_v7  ;;  %v20722_v7 = vld [vmem:[%s24206_s3 + $0x518] sm:$0xff]   ;;  %v20723_v8 = vld [vmem:[%s24206_s3 + $0x520] sm:$0xff]  }
0x336a   :  { %19938 = vmatpush3.bf16.msra.mxu0 %v22596_v61 }
0x336b   :  { %18316 = vmatprep.subr.bf16.mxu0 %v21642_v63 }
0x336d   :  { %18314 = vmatmul.mubr.msk.f32.vlgmr.msra.gmra.mrb[132].mxu0 %vm569_vm0, %v8447_v31  ;;  %v20724_v31 = vld [vmem:[%s24206_s3 + $0x528] sm:$0xff]  }
0x336e   :  { %18318 = vmatprep.mubr.msk.bf16.mxu0 %vm21641_vm2, %v21642_v63 }
0x3438   :  { %v8517_v11 = vpop.f32.mrb[130].mxu0 }
0x3439   :  { %v8597_v2 = vrot.slane %v8517_v11, %v22137_v21  ;;  %v18304_v3 = vpop.f32.mrb[131].mxu0  ;;  %v20725_v11 = vld [vmem:[%s24206_s3 + $0x530] sm:$0xff]  }
0x343b   :  { %v8598_v4 = vmul.f32 %v8597_v2, %v23288_v46  ;;  %v23364_v46 = vld [vmem:[#allocation25 + $0x8] sm:$0xf]  ;;  %v20726_v2 = vld [vmem:[%s24206_s3 + $0x538] sm:$0xff]  }
0x3440   :  { %v8590_v12 = vpop.f32.mrb[132].mxu0 }
0x3441   :  { %v8602_v14 = vrot.slane %v8590_v12, %v22137_v21  ;;  %v18315_v15 = vpop.f32.mrb[133].mxu0 }
0x3443   :  { %v8603_v17 = vadd.f32 %v8602_v14, %v8598_v4 }
0x3445   :  { %v8604_v18 = vmax.f32 %v8603_v17, 0.0 }
0x3447   :  { %v23339_v23 = vadd.f32 %v8604_v18, %v23061_v59  ;;  %v23351_v59 = vld [vmem:[#allocation25] sm:$0xf] }
0x3449   :  { %v8610_v25 = vpack.c.bf16 %v23339_v23, %v23339_v23 }
0x344b   :  { %v8612_v27 = vsel %vm3544_vm5, %v8610_v25, 0 }
0x344c   :  { %18317 = vmatpush3.bf16.msra.mxu0 %v8612_v27  ;;  %18323 = vmatpush3.bf16.msra.mxu1 %v8612_v27 }
0x344d   :  { %18368 = vmatprep.subr.bf16.mxu1 %v21642_v63  ;;  %18328 = vmatprep.subr.bf16.mxu0 %v21642_v63 }
0x344f   :  { %18325 = vmatmul.mubr.msk.bf16.vlgmr.msra.gmra.mrb[108].mxu1 %vm1095_vm3, %v23347_v45  ;;  %18319 = vmatmul.mubr.msk.bf16.vlgmr.msra.gmra.mrb[136].mxu0 %vm1095_vm3, %v23351_v59 }
0x3450   :  { %18369 = vmatpush3.bf16.msra.mxu1 %v8612_v27  ;;  %18370 = vmatprep.mubr.msk.bf16.mxu1 %vm21641_vm2, %v21642_v63 }
0x3451   :  { %18329 = vmatpush3.bf16.msra.mxu0 %v20703_v39  ;;  %18344 = vmatprep.mubr.msk.bf16.mxu0 %vm21641_vm2, %v21642_v63 }
0x3452   :  { %18330 = vmatprep.subr.bf16.mxu0 %v21642_v63  ;;  %19939 = vmatprep.subr.bf16.mxu1 %v21640_v19 }
0x3455   :  { %18331 = vmatpush3.bf16.msra.mxu0 %v20704_v43 }
0x3456   :  { %18332 = vmatprep.subr.bf16.mxu0 %v21642_v63 }
0x3457   :  { %18371 = vmatmul.mubr.msk.bf16.vlgmr.msra.gmra.mrb[112].mxu1 %vm1095_vm3, %v23364_v46 }
0x3458   :  { %19941 = vmatpush3.bf16.msra.mxu1 %v22537_v13  ;;  %18426 = vmatprep.mubr.msk.f32.mxu1 %vm21641_vm2, %v21642_v63 }
0x3459   :  { %18333 = vmatpush3.bf16.msra.mxu0 %v20705_v30  ;;  %19942 = vmatprep.subr.bf16.mxu1 %v21640_v19 }
0x345a   :  { %18334 = vmatprep.subr.bf16.mxu0 %v21642_v63 }
0x345c   :  { %19944 = vmatpush3.bf16.msra.mxu1 %v22543_v16 }
0x345d   :  { %18335 = vmatpush3.bf16.msra.mxu0 %v20706_v32  ;;  %19945 = vmatprep.subr.bf16.mxu1 %v21640_v19 }
0x345e   :  { %18336 = vmatprep.subr.bf16.mxu0 %v21642_v63 }
0x3460   :  { %19947 = vmatpush3.bf16.msra.mxu1 %v22551_v20 }
0x3461   :  { %18337 = vmatpush3.bf16.msra.mxu0 %v20707_v35  ;;  %19948 = vmatprep.subr.bf16.mxu1 %v21640_v19 }
0x3462   :  { %18338 = vmatprep.subr.bf16.mxu0 %v21642_v63 }
0x3464   :  { %19950 = vmatpush3.bf16.msra.mxu1 %v22557_v24 }
0x3465   :  { %18339 = vmatpush3.bf16.msra.mxu0 %v20708_v36  ;;  %19951 = vmatprep.subr.bf16.mxu1 %v21640_v19 }
0x3466   :  { %18340 = vmatprep.subr.bf16.mxu0 %v21642_v63 }
0x3468   :  { %19953 = vmatpush3.bf16.msra.mxu1 %v22563_v29 }
0x3469   :  { %18341 = vmatpush3.bf16.msra.mxu0 %v20709_v38  ;;  %19954 = vmatprep.subr.bf16.mxu1 %v21640_v19 }
0x346a   :  { %18342 = vmatprep.subr.bf16.mxu0 %v21642_v63 }
0x346c   :  { %19956 = vmatpush3.bf16.msra.mxu1 %v22570_v33 }
0x346d   :  { %18343 = vmatpush3.bf16.msra.mxu0 %v20710_v40  ;;  %19957 = vmatprep.subr.bf16.mxu1 %v21640_v19 }
0x346e   :  { %18348 = vmatprep.subr.bf16.mxu0 %v21642_v63 }
0x3470   :  { %19959 = vmatpush3.bf16.msra.mxu1 %v22576_v37 }
0x3471   :  { %19960 = vmatprep.subr.bf16.mxu1 %v21640_v19 }
0x3474   :  { %19962 = vmatpush3.bf16.msra.mxu1 %v22582_v41 }
0x3475   :  { %19963 = vmatprep.subr.bf16.mxu1 %v21640_v19 }
0x3522   :  { %v8706_v48 = vpop.f32.mrb[108].mxu1  ;;  %v8648_v34 = vpop.f32.mrb[136].mxu0 }
0x3523   :  { %v8712_v28 = vpack.c.bf16 %v8706_v48, %v8706_v48  ;;  %v18326_v51 = vpop.f32.mrb[109].mxu1  ;;  %v18320_v52 = vpop.f32.mrb[137].mxu0  ;;  %v8654_v42 = vpack.c.bf16 %v8648_v34, %v8648_v34 }
0x3524   :  { %v8709_v53 = vpop.f32.mrb[110].mxu1  ;;  %v8651_v9 = vpop.f32.mrb[138].mxu0 }
0x3525   :  { %v18327_v10 = vpop.f32.mrb[111].mxu1  ;;  %18345 = vmatmul.mubr.bf16.vlgmr.msra.gmra.mrb[140].mxu0 %v8712_v28  ;;  %v18321_v54 = vpop.f32.mrb[139].mxu0 }
0x3526   :  { %18349 = vmatpush3.bf16.msra.mxu0 %v20711_v49  ;;  %18364 = vmatprep.mubr.msk.bf16.mxu0 %vm21641_vm2, %v21642_v63 }
0x3527   :  { %18350 = vmatprep.subr.bf16.mxu0 %v21642_v63 }
0x352a   :  { %18351 = vmatpush3.bf16.msra.mxu0 %v20712_v1  ;;  %v8940_v56 = vpop.f32.mrb[112].mxu1 }
0x352b   :  { %18352 = vmatprep.subr.bf16.mxu0 %v21642_v63  ;;  %v18372_v57 = vpop.f32.mrb[113].mxu1  ;;  %v8946_v3 = vpack.c.bf16 %v8940_v56, %v8940_v56  ;;  %v8607_v56 = vld [vmem:[#allocation27 + $0x6] sm:$0x1] }
0x352c   :  { %v8943_v58 = vpop.f32.mrb[114].mxu1 }
0x352d   :  { %v18373_v60 = vpop.f32.mrb[115].mxu1 }
0x352e   :  { %18353 = vmatpush3.bf16.msra.mxu0 %v20713_v55 }
0x352f   :  { %18354 = vmatprep.subr.bf16.mxu0 %v21642_v63 }
0x3532   :  { %18355 = vmatpush3.bf16.msra.mxu0 %v20714_v62  ;;  %v8609_v62 = vld [vmem:[#allocation28 + $0x6] sm:$0x1] }
0x3533   :  { %18356 = vmatprep.subr.bf16.mxu0 %v21642_v63 }
0x3536   :  { %18357 = vmatpush3.bf16.msra.mxu0 %v20715_v0 }
0x3537   :  { %18358 = vmatprep.subr.bf16.mxu0 %v21642_v63 }
0x353a   :  { %18359 = vmatpush3.bf16.msra.mxu0 %v20716_v22 }
0x353b   :  { %18360 = vmatprep.subr.bf16.mxu0 %v21642_v63 }
0x353e   :  { %18361 = vmatpush3.bf16.msra.mxu0 %v20717_v5 }
0x353f   :  { %18362 = vmatprep.subr.bf16.mxu0 %v21642_v63 }
0x3542   :  { %18363 = vmatpush3.bf16.msra.mxu0 %v20718_v6 }
0x3543   :  { %18374 = vmatprep.subr.bf16.mxu0 %v21642_v63 }
0x3545   :  { %18365 = vmatmul.mubr.bf16.vlgmr.msra.gmra.mrb[140].mxu0 %v8654_v42 }
0x3546   :  { %18375 = vmatpush3.bf16.msra.mxu0 %v20719_v44  ;;  %18390 = vmatprep.mubr.msk.bf16.mxu0 %vm21641_vm2, %v21642_v63 }
0x3547   :  { %18376 = vmatprep.subr.bf16.mxu0 %v21642_v63 }
0x354a   :  { %18377 = vmatpush3.bf16.msra.mxu0 %v20720_v47 }
0x354b   :  { %18378 = vmatprep.subr.bf16.mxu0 %v21642_v63 }
0x354e   :  { %18379 = vmatpush3.bf16.msra.mxu0 %v20721_v50 }
0x354f   :  { %18380 = vmatprep.subr.bf16.mxu0 %v21642_v63 }
0x3552   :  { %18381 = vmatpush3.bf16.msra.mxu0 %v20722_v7 }
0x3553   :  { %18382 = vmatprep.subr.bf16.mxu0 %v21642_v63 }
0x3556   :  { %18383 = vmatpush3.bf16.msra.mxu0 %v20723_v8 }
0x3557   :  { %18384 = vmatprep.subr.bf16.mxu0 %v21642_v63 }
0x355a   :  { %18385 = vmatpush3.bf16.msra.mxu0 %v20724_v31 }
0x355b   :  { %18386 = vmatprep.subr.bf16.mxu0 %v21642_v63 }
0x355e   :  { %18387 = vmatpush3.bf16.msra.mxu0 %v20725_v11 }
0x355f   :  { %18388 = vmatprep.subr.bf16.mxu0 %v21642_v63 }
0x3562   :  { %18389 = vmatpush3.bf16.msra.mxu0 %v20726_v2 }
0x3563   :  { %18503 = vmatprep.subr.bf16.mxu0 %v21642_v63 }
0x3565   :  { %18391 = vmatmul.mubr.bf16.vlgmr.msra.gmra.mrb[140].mxu0 %v8946_v3  ;;  %v20727_v3 = vld [vmem:[%s24206_s3 + $0x580] sm:$0xff]  }
0x3566   :  { %18505 = vmatprep.mubr.msk.bf16.mxu0 %vm21641_vm2, %v21642_v63 }
0x3638   :  { %v23435_v4 = vpop.f32.mrb[140].mxu0 }
0x3639   :  { %v9053_v12 = vrot.slane %v23435_v4, 4  ;;  %v18392_v14 = vpop.f32.mrb[141].mxu0 }
0x363a   :  { %v9049_v15 = vpop.f32.mrb[142].mxu0  ;;  %v20731_v14 = vld [vmem:[%s24206_s3 + $0x5a0] sm:$0xff]  }
0x363b   :  { %v9054_v17 = vadd.f32 %v9053_v12, %v23435_v4  ;;  %v18393_v18 = vpop.f32.mrb[143].mxu0  ;;  %v20730_v12 = vld [vmem:[%s24206_s3 + $0x598] sm:$0xff]   ;;  %v20732_v15 = vld [vmem:[%s24206_s3 + $0x5a8] sm:$0xff]  }
0x363c   :  { %v20734_v18 = vld [vmem:[%s24206_s3 + $0x5b8] sm:$0xff]  }
0x363d   :  { %v9055_v25 = vrot.slane %v9054_v17, 2 }
0x363f   :  { %v9056_v27 = vadd.f32 %v9055_v25, %v9054_v17  ;;  %v20733_v17 = vld [vmem:[%s24206_s3 + $0x5b0] sm:$0xff]  }
0x3641   :  { %v9057_v39 = vrot.slane %v9056_v27, 1 }
0x3643   :  { %v9058_v43 = vadd.f32 %v9057_v39, %v9056_v27  ;;  %v20735_v27 = vld [vmem:[%s24206_s3 + $0x540] sm:$0xff]  }
0x3645   :  { %18427 = vmatmul.mubr.f32.vlgmr.msra.gmra.mrb[116].mxu1 %v9058_v43 }
0x3646   :  { %19965 = vmatpush3.bf16.msra.mxu1 %v22586_v26  ;;  %18437 = vmatprep.mubr.msk.f32.mxu1 %vm21641_vm2, %v21642_v63 }
0x3647   :  { %19966 = vmatprep.subr.bf16.mxu1 %v21640_v19 }
0x364a   :  { %19968 = vmatpush3.bf16.msra.mxu1 %v22596_v61 }
0x364b   :  { %19969 = vmatprep.subr.bf16.mxu1 %v21640_v19 }
0x3718   :  { %v9125_v30 = vpop.f32.mrb[116].mxu1 }
0x3719   :  { %v9129_v32 = vmul.f32 0.03125, %v9125_v30  ;;  %v18428_v35 = vpop.f32.mrb[117].mxu1 }
0x371b   :  { %18438 = vmatmul.mubr.msk.f32.vlgmr.msra.gmra.mrb[118].mxu1 %vm569_vm0, %v9129_v32 }
0x371c   :  { %19971 = vmatpush3.bf16.msra.mxu1 %v22537_v13  ;;  %18472 = vmatprep.mubr.msk.f32.mxu1 %vm21641_vm2, %v21642_v63 }
0x371d   :  { %19972 = vmatprep.subr.bf16.mxu1 %v21640_v19 }
0x3720   :  { %19974 = vmatpush3.bf16.msra.mxu1 %v22543_v16 }
0x3721   :  { %19975 = vmatprep.subr.bf16.mxu1 %v21640_v19 }
0x3724   :  { %19977 = vmatpush3.bf16.msra.mxu1 %v22551_v20 }
0x3725   :  { %19978 = vmatprep.subr.bf16.mxu1 %v21640_v19 }
0x3728   :  { %19980 = vmatpush3.bf16.msra.mxu1 %v22557_v24 }
0x3729   :  { %19981 = vmatprep.subr.bf16.mxu1 %v21640_v19 }
0x372c   :  { %19983 = vmatpush3.bf16.msra.mxu1 %v22563_v29 }
0x372d   :  { %19984 = vmatprep.subr.bf16.mxu1 %v21640_v19 }
0x3730   :  { %19986 = vmatpush3.bf16.msra.mxu1 %v22570_v33 }
0x3731   :  { %19987 = vmatprep.subr.bf16.mxu1 %v21640_v19 }
0x3734   :  { %19989 = vmatpush3.bf16.msra.mxu1 %v22576_v37 }
0x3735   :  { %19990 = vmatprep.subr.bf16.mxu1 %v21640_v19 }
0x3738   :  { %19992 = vmatpush3.bf16.msra.mxu1 %v22582_v41 }
0x3739   :  { %19993 = vmatprep.subr.bf16.mxu1 %v21640_v19 }
0x37ee   :  { %v9199_v36 = vpop.f32.mrb[118].mxu1 }
0x37ef   :  { %v9206_v38 = vrot.slane %v9199_v36, %v22137_v21  ;;  %v18439_v40 = vpop.f32.mrb[119].mxu1 }
0x37f1   :  { %v9207_v48 = vsub.f32 %v23435_v4, %v9206_v38 }
0x37f3   :  { %v9208_v49 = vmul.f32 %v9207_v48, %v9207_v48  ;;  %v20736_v48 = vld [vmem:[%s24206_s3 + $0x548] sm:$0xff]  }
0x37f5   :  { %v9209_v34 = vrot.slane %v9208_v49, 4 }
0x37f7   :  { %v9210_v28 = vadd.f32 %v9209_v34, %v9208_v49  ;;  %v20737_v49 = vld [vmem:[%s24206_s3 + $0x550] sm:$0xff]  }
0x37f9   :  { %v9211_v51 = vrot.slane %v9210_v28, 2 }
0x37fb   :  { %v9212_v52 = vadd.f32 %v9211_v51, %v9210_v28 }
0x37fd   :  { %v9213_v53 = vrot.slane %v9212_v52, 1 }
0x37ff   :  { %v9214_v9 = vadd.f32 %v9213_v53, %v9212_v52  ;;  %v20738_v53 = vld [vmem:[%s24206_s3 + $0x558] sm:$0xff]  }
0x3801   :  { %18473 = vmatmul.mubr.f32.vlgmr.msra.gmra.mrb[120].mxu1 %v9214_v9  ;;  %v20739_v9 = vld [vmem:[%s24206_s3 + $0x560] sm:$0xff]  }
0x3802   :  { %19995 = vmatpush3.bf16.msra.mxu1 %v22586_v26  ;;  %18483 = vmatprep.mubr.msk.f32.mxu1 %vm21641_vm2, %v21642_v63 }
0x3803   :  { %19996 = vmatprep.subr.bf16.mxu1 %v21640_v19 }
0x3806   :  { %19998 = vmatpush3.bf16.msra.mxu1 %v22596_v61 }
0x3807   :  { %19999 = vmatprep.subr.bf16.mxu1 %v21640_v19 }
0x38d4   :  { %v9281_v10 = vpop.f32.mrb[120].mxu1 }
0x38d5   :  { %v9285_v54 = vmul.f32 0.03125, %v9281_v10  ;;  %v18474_v1 = vpop.f32.mrb[121].mxu1  ;;  %v20740_v10 = vld [vmem:[%s24206_s3 + $0x568] sm:$0xff]  }
0x38d6   :  { %v20742_v1 = vld [vmem:[%s24206_s3 + $0x578] sm:$0xff]  }
0x38d7   :  { %v9286_v55 = vadd.f32 1e-05, %v9285_v54  ;;  %v20741_v54 = vld [vmem:[%s24206_s3 + $0x570] sm:$0xff]  }
0x38d9   :  { %20899 = vrsqrt.f32 %v9286_v55 }
0x38e3   :  { %v20900_v57 = vpop.eup %20899 }
0x38e4   :  { %v9288_v58 = vmul.f32 %v20900_v57, %v8607_v56  ;;  %v20743_v56 = vld [vmem:[%s24206_s3 + $0x5c0] sm:$0xff]   ;;  %v20744_v57 = vld [vmem:[%s24206_s3 + $0x5c8] sm:$0xff]  }
0x38e6   :  { %18484 = vmatmul.mubr.msk.f32.vlgmr.msra.gmra.mrb[122].mxu1 %vm569_vm0, %v9288_v58  ;;  %v9289_v60 = vmul.f32 %v9288_v58, %v9129_v32  ;;  %v20745_v58 = vld [vmem:[%s24206_s3 + $0x5d0] sm:$0xff]  }
0x38e7   :  { %20001 = vmatpush3.bf16.msra.mxu1 %v22586_v26  ;;  %18494 = vmatprep.mubr.msk.f32.mxu1 %vm21641_vm2, %v21642_v63 }
0x38e8   :  { %20002 = vmatprep.subr.bf16.mxu1 %v21640_v19  ;;  %v9290_v0 = vsub.f32 %v8609_v62, %v9289_v60  ;;  %v20746_v60 = vld [vmem:[%s24206_s3 + $0x5d8] sm:$0xff]   ;;  %v20747_v62 = vld [vmem:[%s24206_s3 + $0x5e0] sm:$0xff]  }
0x38eb   :  { %20004 = vmatpush3.bf16.msra.mxu1 %v22596_v61 }
0x38ec   :  { %18497 = vmatprep.subr.bf16.mxu1 %v21642_v63 }
0x38ee   :  { %18495 = vmatmul.mubr.msk.f32.vlgmr.msra.gmra.mrb[124].mxu1 %vm569_vm0, %v9290_v0  ;;  %v20748_v0 = vld [vmem:[%s24206_s3 + $0x5e8] sm:$0xff]  }
0x38ef   :  { %18499 = vmatprep.mubr.msk.bf16.mxu1 %vm21641_vm2, %v21642_v63 }
0x39b9   :  { %v9360_v22 = vpop.f32.mrb[122].mxu1 }
0x39ba   :  { %v9440_v5 = vrot.slane %v9360_v22, %v22137_v21  ;;  %v18485_v6 = vpop.f32.mrb[123].mxu1  ;;  %v20749_v22 = vld [vmem:[%s24206_s3 + $0x5f0] sm:$0xff]  }
0x39bc   :  { %v9441_v42 = vmul.f32 %v9440_v5, %v23435_v4  ;;  %v20729_v4 = vld [vmem:[%s24206_s3 + $0x590] sm:$0xff]   ;;  %v20750_v5 = vld [vmem:[%s24206_s3 + $0x5f8] sm:$0xff]  }
0x39c1   :  { %v9433_v44 = vpop.f32.mrb[124].mxu1 }
0x39c2   :  { %v9445_v47 = vrot.slane %v9433_v44, %v22137_v21  ;;  %v18496_v50 = vpop.f32.mrb[125].mxu1 }
0x39c4   :  { %v9446_v7 = vadd.f32 %v9445_v47, %v9441_v42 }
0x39c6   :  { %v9447_v8 = vmax.f32 %v9446_v7, 0.0 }
0x39c8   :  { %v23486_v31 = vadd.f32 %v9447_v8, %v23339_v23  ;;  %v20728_v23 = vld [vmem:[%s24206_s3 + $0x588] sm:$0xff]  }
0x39ca   :  { %v9453_v11 = vpack.c.bf16 %v23486_v31, %v23486_v31 }
0x39cc   :  { %v9455_v2 = vsel %vm3544_vm5, %v9453_v11, 0 }
0x39cd   :  { %18498 = vmatpush3.bf16.msra.mxu1 %v9455_v2  ;;  %18504 = vmatpush3.bf16.msra.mxu0 %v9455_v2 }
0x39ce   :  { %18549 = vmatprep.subr.bf16.mxu0 %v21642_v63  ;;  %18509 = vmatprep.subr.bf16.mxu1 %v21642_v63 }
0x39d0   :  { %18506 = vmatmul.mubr.msk.bf16.vlgmr.msra.gmra.mrb[144].mxu0 %vm1095_vm3, %v23347_v45  ;;  %18500 = vmatmul.mubr.msk.bf16.vlgmr.msra.gmra.mrb[128].mxu1 %vm1095_vm3, %v23351_v59 }
0x39d1   :  { %18550 = vmatpush3.bf16.msra.mxu0 %v9455_v2  ;;  %18551 = vmatprep.mubr.msk.bf16.mxu0 %vm21641_vm2, %v21642_v63 }
0x39d2   :  { %18510 = vmatpush3.bf16.msra.mxu1 %v20727_v3  ;;  %18525 = vmatprep.mubr.msk.bf16.mxu1 %vm21641_vm2, %v21642_v63 }
0x39d3   :  { %18511 = vmatprep.subr.bf16.mxu1 %v21642_v63  ;;  %20005 = vmatprep.subr.bf16.mxu0 %v21640_v19 }
0x39d6   :  { %18512 = vmatpush3.bf16.msra.mxu1 %v20728_v23 }
0x39d7   :  { %18513 = vmatprep.subr.bf16.mxu1 %v21642_v63 }
0x39d8   :  { %18552 = vmatmul.mubr.msk.bf16.vlgmr.msra.gmra.mrb[148].mxu0 %vm1095_vm3, %v23364_v46 }
0x39d9   :  { %20007 = vmatpush3.bf16.msra.mxu0 %v22537_v13  ;;  %18607 = vmatprep.mubr.msk.f32.mxu0 %vm21641_vm2, %v21642_v63 }
0x39da   :  { %18514 = vmatpush3.bf16.msra.mxu1 %v20729_v4  ;;  %20008 = vmatprep.subr.bf16.mxu0 %v21640_v19 }
0x39db   :  { %18515 = vmatprep.subr.bf16.mxu1 %v21642_v63 }
0x39dd   :  { %20010 = vmatpush3.bf16.msra.mxu0 %v22543_v16 }
0x39de   :  { %18516 = vmatpush3.bf16.msra.mxu1 %v20730_v12  ;;  %20011 = vmatprep.subr.bf16.mxu0 %v21640_v19 }
0x39df   :  { %18517 = vmatprep.subr.bf16.mxu1 %v21642_v63 }
0x39e1   :  { %20013 = vmatpush3.bf16.msra.mxu0 %v22551_v20 }
0x39e2   :  { %18518 = vmatpush3.bf16.msra.mxu1 %v20731_v14  ;;  %20014 = vmatprep.subr.bf16.mxu0 %v21640_v19 }
0x39e3   :  { %18519 = vmatprep.subr.bf16.mxu1 %v21642_v63 }
0x39e5   :  { %20016 = vmatpush3.bf16.msra.mxu0 %v22557_v24 }
0x39e6   :  { %18520 = vmatpush3.bf16.msra.mxu1 %v20732_v15  ;;  %20017 = vmatprep.subr.bf16.mxu0 %v21640_v19 }
0x39e7   :  { %18521 = vmatprep.subr.bf16.mxu1 %v21642_v63 }
0x39e9   :  { %20019 = vmatpush3.bf16.msra.mxu0 %v22563_v29 }
0x39ea   :  { %18522 = vmatpush3.bf16.msra.mxu1 %v20733_v17  ;;  %20020 = vmatprep.subr.bf16.mxu0 %v21640_v19 }
0x39eb   :  { %18523 = vmatprep.subr.bf16.mxu1 %v21642_v63 }
0x39ed   :  { %20022 = vmatpush3.bf16.msra.mxu0 %v22570_v33 }
0x39ee   :  { %18524 = vmatpush3.bf16.msra.mxu1 %v20734_v18  ;;  %20023 = vmatprep.subr.bf16.mxu0 %v21640_v19 }
0x39ef   :  { %18529 = vmatprep.subr.bf16.mxu1 %v21642_v63 }
0x39f1   :  { %20025 = vmatpush3.bf16.msra.mxu0 %v22576_v37 }
0x39f2   :  { %20026 = vmatprep.subr.bf16.mxu0 %v21640_v19 }
0x39f5   :  { %20028 = vmatpush3.bf16.msra.mxu0 %v22582_v41 }
0x39f6   :  { %20029 = vmatprep.subr.bf16.mxu0 %v21640_v19 }
0x3aa3   :  { %v9549_v25 = vpop.f32.mrb[144].mxu0  ;;  %v9491_v39 = vpop.f32.mrb[128].mxu1 }
0x3aa4   :  { %v9555_v43 = vpack.c.bf16 %v9549_v25, %v9549_v25  ;;  %v18507_v30 = vpop.f32.mrb[145].mxu0  ;;  %v18501_v32 = vpop.f32.mrb[129].mxu1  ;;  %v9497_v55 = vpack.c.bf16 %v9491_v39, %v9491_v39 }
0x3aa5   :  { %v9552_v35 = vpop.f32.mrb[146].mxu0  ;;  %v9494_v36 = vpop.f32.mrb[130].mxu1 }
0x3aa6   :  { %v18508_v38 = vpop.f32.mrb[147].mxu0  ;;  %18526 = vmatmul.mubr.bf16.vlgmr.msra.gmra.mrb[132].mxu1 %v9555_v43  ;;  %v18502_v40 = vpop.f32.mrb[131].mxu1 }
0x3aa7   :  { %18530 = vmatpush3.bf16.msra.mxu1 %v20735_v27  ;;  %18545 = vmatprep.mubr.msk.bf16.mxu1 %vm21641_vm2, %v21642_v63 }
0x3aa8   :  { %18531 = vmatprep.subr.bf16.mxu1 %v21642_v63 }
0x3aab   :  { %18532 = vmatpush3.bf16.msra.mxu1 %v20736_v48  ;;  %v9783_v34 = vpop.f32.mrb[148].mxu0 }
0x3aac   :  { %18533 = vmatprep.subr.bf16.mxu1 %v21642_v63  ;;  %v18553_v28 = vpop.f32.mrb[149].mxu0  ;;  %v9789_v6 = vpack.c.bf16 %v9783_v34, %v9783_v34  ;;  %v9450_v34 = vld [vmem:[#allocation27 + $0x7] sm:$0x1] }
0x3aad   :  { %v9786_v51 = vpop.f32.mrb[150].mxu0 }
0x3aae   :  { %v18554_v52 = vpop.f32.mrb[151].mxu0 }
0x3aaf   :  { %18534 = vmatpush3.bf16.msra.mxu1 %v20737_v49 }
0x3ab0   :  { %18535 = vmatprep.subr.bf16.mxu1 %v21642_v63 }
0x3ab3   :  { %18536 = vmatpush3.bf16.msra.mxu1 %v20738_v53  ;;  %v9452_v53 = vld [vmem:[#allocation28 + $0x7] sm:$0x1] }
0x3ab4   :  { %18537 = vmatprep.subr.bf16.mxu1 %v21642_v63 }
0x3ab7   :  { %18538 = vmatpush3.bf16.msra.mxu1 %v20739_v9 }
0x3ab8   :  { %18539 = vmatprep.subr.bf16.mxu1 %v21642_v63 }
0x3abb   :  { %18540 = vmatpush3.bf16.msra.mxu1 %v20740_v10 }
0x3abc   :  { %18541 = vmatprep.subr.bf16.mxu1 %v21642_v63 }
0x3abf   :  { %18542 = vmatpush3.bf16.msra.mxu1 %v20741_v54 }
0x3ac0   :  { %18543 = vmatprep.subr.bf16.mxu1 %v21642_v63 }
0x3ac3   :  { %18544 = vmatpush3.bf16.msra.mxu1 %v20742_v1 }
0x3ac4   :  { %18555 = vmatprep.subr.bf16.mxu1 %v21642_v63 }
0x3ac6   :  { %18546 = vmatmul.mubr.bf16.vlgmr.msra.gmra.mrb[132].mxu1 %v9497_v55 }
0x3ac7   :  { %18556 = vmatpush3.bf16.msra.mxu1 %v20743_v56  ;;  %18571 = vmatprep.mubr.msk.bf16.mxu1 %vm21641_vm2, %v21642_v63 }
0x3ac8   :  { %18557 = vmatprep.subr.bf16.mxu1 %v21642_v63 }
0x3acb   :  { %18558 = vmatpush3.bf16.msra.mxu1 %v20744_v57 }
0x3acc   :  { %18559 = vmatprep.subr.bf16.mxu1 %v21642_v63 }
0x3acf   :  { %18560 = vmatpush3.bf16.msra.mxu1 %v20745_v58 }
0x3ad0   :  { %18561 = vmatprep.subr.bf16.mxu1 %v21642_v63 }
0x3ad3   :  { %18562 = vmatpush3.bf16.msra.mxu1 %v20746_v60 }
0x3ad4   :  { %18563 = vmatprep.subr.bf16.mxu1 %v21642_v63 }
0x3ad7   :  { %18564 = vmatpush3.bf16.msra.mxu1 %v20747_v62 }
0x3ad8   :  { %18565 = vmatprep.subr.bf16.mxu1 %v21642_v63 }
0x3adb   :  { %18566 = vmatpush3.bf16.msra.mxu1 %v20748_v0 }
0x3adc   :  { %18567 = vmatprep.subr.bf16.mxu1 %v21642_v63 }
0x3adf   :  { %18568 = vmatpush3.bf16.msra.mxu1 %v20749_v22 }
0x3ae0   :  { %18569 = vmatprep.subr.bf16.mxu1 %v21642_v63 }
0x3ae3   :  { %18570 = vmatpush3.bf16.msra.mxu1 %v20750_v5 }
0x3ae4   :  { %18684 = vmatprep.subr.bf16.mxu1 %v21642_v63 }
0x3ae6   :  { %18572 = vmatmul.mubr.bf16.vlgmr.msra.gmra.mrb[132].mxu1 %v9789_v6  ;;  %v20751_v6 = vld [vmem:[%s24206_s3 + $0x640] sm:$0xff]  }
0x3ae7   :  { %18686 = vmatprep.mubr.msk.bf16.mxu1 %vm21641_vm2, %v21642_v63 }
0x3bb9   :  { %v23576_v42 = vpop.f32.mrb[132].mxu1 }
0x3bba   :  { %v9896_v44 = vrot.slane %v23576_v42, 4  ;;  %v18573_v47 = vpop.f32.mrb[133].mxu1 }
0x3bbb   :  { %v9892_v50 = vpop.f32.mrb[134].mxu1  ;;  %v20757_v47 = vld [vmem:[%s24206_s3 + $0x670] sm:$0xff]  }
0x3bbc   :  { %v9897_v7 = vadd.f32 %v9896_v44, %v23576_v42  ;;  %v18574_v8 = vpop.f32.mrb[135].mxu1  ;;  %v20755_v44 = vld [vmem:[%s24206_s3 + $0x660] sm:$0xff]   ;;  %v20758_v50 = vld [vmem:[%s24206_s3 + $0x678] sm:$0xff]  }
0x3bbd   :  { %v20759_v8 = vld [vmem:[%s24206_s3 + $0x600] sm:$0xff]  }
0x3bbe   :  { %v9898_v11 = vrot.slane %v9897_v7, 2 }
0x3bc0   :  { %v9899_v2 = vadd.f32 %v9898_v11, %v9897_v7 }
0x3bc2   :  { %v9900_v3 = vrot.slane %v9899_v2, 1 }
0x3bc4   :  { %v9901_v23 = vadd.f32 %v9900_v3, %v9899_v2 }
0x3bc6   :  { %18608 = vmatmul.mubr.f32.vlgmr.msra.gmra.mrb[134].mxu0 %v9901_v23 }
0x3bc7   :  { %20031 = vmatpush3.bf16.msra.mxu0 %v22586_v26  ;;  %18618 = vmatprep.mubr.msk.f32.mxu0 %vm21641_vm2, %v21642_v63 }
0x3bc8   :  { %20032 = vmatprep.subr.bf16.mxu0 %v21640_v19 }
0x3bcb   :  { %20034 = vmatpush3.bf16.msra.mxu0 %v22596_v61 }
0x3bcc   :  { %20035 = vmatprep.subr.bf16.mxu0 %v21640_v19 }
0x3c99   :  { %v9968_v4 = vpop.f32.mrb[134].mxu0 }
0x3c9a   :  { %v9972_v12 = vmul.f32 0.03125, %v9968_v4  ;;  %v18609_v14 = vpop.f32.mrb[135].mxu0 }
0x3c9c   :  { %18619 = vmatmul.mubr.msk.f32.vlgmr.msra.gmra.mrb[152].mxu0 %vm569_vm0, %v9972_v12 }
0x3c9d   :  { %20037 = vmatpush3.bf16.msra.mxu0 %v22537_v13  ;;  %18653 = vmatprep.mubr.msk.f32.mxu0 %vm21641_vm2, %v21642_v63 }
0x3c9e   :  { %20038 = vmatprep.subr.bf16.mxu0 %v21640_v19 }
0x3ca1   :  { %20040 = vmatpush3.bf16.msra.mxu0 %v22543_v16 }
0x3ca2   :  { %20041 = vmatprep.subr.bf16.mxu0 %v21640_v19 }
0x3ca5   :  { %20043 = vmatpush3.bf16.msra.mxu0 %v22551_v20 }
0x3ca6   :  { %20044 = vmatprep.subr.bf16.mxu0 %v21640_v19 }
0x3ca9   :  { %20046 = vmatpush3.bf16.msra.mxu0 %v22557_v24 }
0x3caa   :  { %20047 = vmatprep.subr.bf16.mxu0 %v21640_v19 }
0x3cad   :  { %20049 = vmatpush3.bf16.msra.mxu0 %v22563_v29 }
0x3cae   :  { %20050 = vmatprep.subr.bf16.mxu0 %v21640_v19 }
0x3cb1   :  { %20052 = vmatpush3.bf16.msra.mxu0 %v22570_v33 }
0x3cb2   :  { %20053 = vmatprep.subr.bf16.mxu0 %v21640_v19 }
0x3cb5   :  { %20055 = vmatpush3.bf16.msra.mxu0 %v22576_v37 }
0x3cb6   :  { %20056 = vmatprep.subr.bf16.mxu0 %v21640_v19 }
0x3cb9   :  { %20058 = vmatpush3.bf16.msra.mxu0 %v22582_v41 }
0x3cba   :  { %20059 = vmatprep.subr.bf16.mxu0 %v21640_v19 }
0x3d6f   :  { %v10042_v15 = vpop.f32.mrb[152].mxu0 }
0x3d70   :  { %v10049_v17 = vrot.slane %v10042_v15, %v22137_v21  ;;  %v18620_v18 = vpop.f32.mrb[153].mxu0 }
0x3d71   :  { %v20761_v18 = vld [vmem:[%s24206_s3 + $0x610] sm:$0xff]  }
0x3d72   :  { %v10050_v25 = vsub.f32 %v23576_v42, %v10049_v17  ;;  %v20760_v17 = vld [vmem:[%s24206_s3 + $0x608] sm:$0xff]  }
0x3d74   :  { %v10051_v27 = vmul.f32 %v10050_v25, %v10050_v25 }
0x3d76   :  { %v10052_v39 = vrot.slane %v10051_v27, 4 }
0x3d78   :  { %v10053_v43 = vadd.f32 %v10052_v39, %v10051_v27 }
0x3d7a   :  { %v10054_v30 = vrot.slane %v10053_v43, 2 }
0x3d7c   :  { %v10055_v32 = vadd.f32 %v10054_v30, %v10053_v43  ;;  %v20762_v30 = vld [vmem:[%s24206_s3 + $0x618] sm:$0xff]  }
0x3d7e   :  { %v10056_v35 = vrot.slane %v10055_v32, 1 }
0x3d80   :  { %v10057_v36 = vadd.f32 %v10056_v35, %v10055_v32  ;;  %v20763_v32 = vld [vmem:[%s24206_s3 + $0x620] sm:$0xff]   ;;  %v20764_v35 = vld [vmem:[%s24206_s3 + $0x628] sm:$0xff]  }
0x3d82   :  { %18654 = vmatmul.mubr.f32.vlgmr.msra.gmra.mrb[154].mxu0 %v10057_v36  ;;  %v20765_v36 = vld [vmem:[%s24206_s3 + $0x630] sm:$0xff]  }
0x3d83   :  { %20061 = vmatpush3.bf16.msra.mxu0 %v22586_v26  ;;  %18664 = vmatprep.mubr.msk.f32.mxu0 %vm21641_vm2, %v21642_v63 }
0x3d84   :  { %20062 = vmatprep.subr.bf16.mxu0 %v21640_v19 }
0x3d87   :  { %20064 = vmatpush3.bf16.msra.mxu0 %v22596_v61 }
0x3d88   :  { %20065 = vmatprep.subr.bf16.mxu0 %v21640_v19 }
0x3e55   :  { %v10124_v38 = vpop.f32.mrb[154].mxu0 }
0x3e56   :  { %v10128_v40 = vmul.f32 0.03125, %v10124_v38  ;;  %v18655_v48 = vpop.f32.mrb[155].mxu0  ;;  %v20766_v38 = vld [vmem:[%s24206_s3 + $0x638] sm:$0xff]  }
0x3e57   :  { %v20767_v48 = vld [vmem:[%s24206_s3 + $0x680] sm:$0xff]  }
0x3e58   :  { %v10129_v49 = vadd.f32 1e-05, %v10128_v40 }
0x3e5a   :  { %20901 = vrsqrt.f32 %v10129_v49  ;;  %v20768_v49 = vld [vmem:[%s24206_s3 + $0x688] sm:$0xff]  }
0x3e64   :  { %v20902_v28 = vpop.eup %20901 }
0x3e65   :  { %v10131_v51 = vmul.f32 %v20902_v28, %v9450_v34  ;;  %v20769_v34 = vld [vmem:[%s24206_s3 + $0x690] sm:$0xff]   ;;  %v20770_v28 = vld [vmem:[%s24206_s3 + $0x698] sm:$0xff]  }
0x3e67   :  { %18665 = vmatmul.mubr.msk.f32.vlgmr.msra.gmra.mrb[156].mxu0 %vm569_vm0, %v10131_v51  ;;  %v10132_v52 = vmul.f32 %v10131_v51, %v9972_v12  ;;  %v20771_v51 = vld [vmem:[%s24206_s3 + $0x6a0] sm:$0xff]  }
0x3e68   :  { %20067 = vmatpush3.bf16.msra.mxu0 %v22586_v26  ;;  %18675 = vmatprep.mubr.msk.f32.mxu0 %vm21641_vm2, %v21642_v63 }
0x3e69   :  { %20068 = vmatprep.subr.bf16.mxu0 %v21640_v19  ;;  %v10133_v9 = vsub.f32 %v9452_v53, %v10132_v52  ;;  %v20772_v52 = vld [vmem:[%s24206_s3 + $0x6a8] sm:$0xff]   ;;  %v20773_v53 = vld [vmem:[%s24206_s3 + $0x6b0] sm:$0xff]  }
0x3e6c   :  { %20070 = vmatpush3.bf16.msra.mxu0 %v22596_v61 }
0x3e6d   :  { %18678 = vmatprep.subr.bf16.mxu0 %v21642_v63 }
0x3e6f   :  { %18676 = vmatmul.mubr.msk.f32.vlgmr.msra.gmra.mrb[158].mxu0 %vm569_vm0, %v10133_v9  ;;  %v20774_v9 = vld [vmem:[%s24206_s3 + $0x6b8] sm:$0xff]  }
0x3e70   :  { %18680 = vmatprep.mubr.msk.bf16.mxu0 %vm21641_vm2, %v21642_v63 }
0x3f3a   :  { %v10203_v10 = vpop.f32.mrb[156].mxu0 }
0x3f3b   :  { %v10283_v54 = vrot.slane %v10203_v10, %v22137_v21  ;;  %v18666_v1 = vpop.f32.mrb[157].mxu0 }
0x3f3d   :  { %v10284_v55 = vmul.f32 %v10283_v54, %v23576_v42  ;;  %v20752_v42 = vld [vmem:[%s24206_s3 + $0x648] sm:$0xff]  }
0x3f42   :  { %v10276_v56 = vpop.f32.mrb[158].mxu0 }
0x3f43   :  { %v10288_v57 = vrot.slane %v10276_v56, %v22137_v21  ;;  %v18677_v58 = vpop.f32.mrb[159].mxu0 }
0x3f45   :  { %v10289_v60 = vadd.f32 %v10288_v57, %v10284_v55 }
0x3f47   :  { %v10290_v62 = vmax.f32 %v10289_v60, 0.0 }
0x3f49   :  { %v10291_v0 = vadd.f32 %v10290_v62, %v23486_v31 }
0x3f4b   :  { %v10296_v22 = vpack.c.bf16 %v10291_v0, %v10291_v0 }
0x3f4d   :  { %v10298_v5 = vsel %vm3544_vm5, %v10296_v22, 0 }
0x3f4e   :  { %18679 = vmatpush3.bf16.msra.mxu0 %v10298_v5  ;;  %18685 = vmatpush3.bf16.msra.mxu1 %v10298_v5 }
0x3f4f   :  { %18730 = vmatprep.subr.bf16.mxu1 %v21642_v63  ;;  %18690 = vmatprep.subr.bf16.mxu0 %v21642_v63 }
0x3f51   :  { %18687 = vmatmul.mubr.msk.bf16.vlgmr.msra.gmra.mrb[136].mxu1 %vm1095_vm3, %v23347_v45  ;;  %18681 = vmatmul.mubr.msk.bf16.vlgmr.msra.gmra.mrb[160].mxu0 %vm1095_vm3, %v23351_v59  ;;  %v20753_v45 = vld [vmem:[%s24206_s3 + $0x650] sm:$0xff]   ;;  %v20754_v59 = vld [vmem:[%s24206_s3 + $0x658] sm:$0xff]  }
0x3f52   :  { %18731 = vmatpush3.bf16.msra.mxu1 %v10298_v5  ;;  %18732 = vmatprep.mubr.msk.bf16.mxu1 %vm21641_vm2, %v21642_v63 }
0x3f53   :  { %18691 = vmatpush3.bf16.msra.mxu0 %v20751_v6  ;;  %18706 = vmatprep.mubr.msk.bf16.mxu0 %vm21641_vm2, %v21642_v63 }
0x3f54   :  { %18692 = vmatprep.subr.bf16.mxu0 %v21642_v63  ;;  %20071 = vmatprep.subr.bf16.mxu1 %v21640_v19 }
0x3f57   :  { %18693 = vmatpush3.bf16.msra.mxu0 %v20752_v42 }
0x3f58   :  { %18694 = vmatprep.subr.bf16.mxu0 %v21642_v63 }
0x3f59   :  { %18733 = vmatmul.mubr.msk.bf16.vlgmr.msra.gmra.mrb[140].mxu1 %vm1095_vm3, %v23364_v46  ;;  %v20756_v46 = vld [vmem:[%s24206_s3 + $0x668] sm:$0xff]  }
0x3f5a   :  { %20073 = vmatpush3.bf16.msra.mxu1 %v22537_v13  ;;  %18788 = vmatprep.mubr.msk.f32.mxu1 %vm21641_vm2, %v21642_v63 }
0x3f5b   :  { %18695 = vmatpush3.bf16.msra.mxu0 %v20753_v45  ;;  %20074 = vmatprep.subr.bf16.mxu1 %v21640_v19 }
0x3f5c   :  { %18696 = vmatprep.subr.bf16.mxu0 %v21642_v63 }
0x3f5e   :  { %20076 = vmatpush3.bf16.msra.mxu1 %v22543_v16 }
0x3f5f   :  { %18697 = vmatpush3.bf16.msra.mxu0 %v20754_v59  ;;  %20077 = vmatprep.subr.bf16.mxu1 %v21640_v19 }
0x3f60   :  { %18698 = vmatprep.subr.bf16.mxu0 %v21642_v63 }
0x3f62   :  { %20079 = vmatpush3.bf16.msra.mxu1 %v22551_v20 }
0x3f63   :  { %18699 = vmatpush3.bf16.msra.mxu0 %v20755_v44  ;;  %20080 = vmatprep.subr.bf16.mxu1 %v21640_v19 }
0x3f64   :  { %18700 = vmatprep.subr.bf16.mxu0 %v21642_v63 }
0x3f66   :  { %20082 = vmatpush3.bf16.msra.mxu1 %v22557_v24 }
0x3f67   :  { %18701 = vmatpush3.bf16.msra.mxu0 %v20756_v46  ;;  %20083 = vmatprep.subr.bf16.mxu1 %v21640_v19 }
0x3f68   :  { %18702 = vmatprep.subr.bf16.mxu0 %v21642_v63 }
0x3f6a   :  { %20085 = vmatpush3.bf16.msra.mxu1 %v22563_v29 }
0x3f6b   :  { %18703 = vmatpush3.bf16.msra.mxu0 %v20757_v47  ;;  %20086 = vmatprep.subr.bf16.mxu1 %v21640_v19 }
0x3f6c   :  { %18704 = vmatprep.subr.bf16.mxu0 %v21642_v63 }
0x3f6e   :  { %20088 = vmatpush3.bf16.msra.mxu1 %v22570_v33 }
0x3f6f   :  { %18705 = vmatpush3.bf16.msra.mxu0 %v20758_v50  ;;  %20089 = vmatprep.subr.bf16.mxu1 %v21640_v19 }
0x3f70   :  { %18710 = vmatprep.subr.bf16.mxu0 %v21642_v63 }
0x3f72   :  { %20091 = vmatpush3.bf16.msra.mxu1 %v22576_v37 }
0x3f73   :  { %20092 = vmatprep.subr.bf16.mxu1 %v21640_v19 }
0x3f76   :  { %20094 = vmatpush3.bf16.msra.mxu1 %v22582_v41 }
0x3f77   :  { %20095 = vmatprep.subr.bf16.mxu1 %v21640_v19 }
0x4024   :  { %v10392_v7 = vpop.f32.mrb[136].mxu1  ;;  %v10334_v11 = vpop.f32.mrb[160].mxu0 }
0x4025   :  { %v10398_v2 = vpack.c.bf16 %v10392_v7, %v10392_v7  ;;  %v18688_v3 = vpop.f32.mrb[137].mxu1  ;;  %v18682_v23 = vpop.f32.mrb[161].mxu0  ;;  %v10340_v40 = vpack.c.bf16 %v10334_v11, %v10334_v11 }
0x4026   :  { %v10395_v4 = vpop.f32.mrb[138].mxu1  ;;  %v10337_v12 = vpop.f32.mrb[162].mxu0  ;;  %v10295_v23 = vld [vmem:[#allocation28 + $0x8] sm:$0x1] }
0x4027   :  { %v18689_v14 = vpop.f32.mrb[139].mxu1  ;;  %18707 = vmatmul.mubr.bf16.vlgmr.msra.gmra.mrb[164].mxu0 %v10398_v2  ;;  %v18683_v15 = vpop.f32.mrb[163].mxu0 }
0x4028   :  { %18711 = vmatpush3.bf16.msra.mxu0 %v20759_v8  ;;  %18726 = vmatprep.mubr.msk.bf16.mxu0 %vm21641_vm2, %v21642_v63  ;;  %v10293_v8 = vld [vmem:[#allocation27 + $0x8] sm:$0x1] }
0x4029   :  { %18712 = vmatprep.subr.bf16.mxu0 %v21642_v63 }
0x402c   :  { %18713 = vmatpush3.bf16.msra.mxu0 %v20760_v17  ;;  %v10626_v25 = vpop.f32.mrb[140].mxu1 }
0x402d   :  { %18714 = vmatprep.subr.bf16.mxu0 %v21642_v63  ;;  %v18734_v27 = vpop.f32.mrb[141].mxu1  ;;  %v10632_v10 = vpack.c.bf16 %v10626_v25, %v10626_v25 }
0x402e   :  { %v10629_v39 = vpop.f32.mrb[142].mxu1 }
0x402f   :  { %v18735_v43 = vpop.f32.mrb[143].mxu1 }
0x4030   :  { %18715 = vmatpush3.bf16.msra.mxu0 %v20761_v18 }
0x4031   :  { %18716 = vmatprep.subr.bf16.mxu0 %v21642_v63 }
0x4034   :  { %18717 = vmatpush3.bf16.msra.mxu0 %v20762_v30 }
0x4035   :  { %18718 = vmatprep.subr.bf16.mxu0 %v21642_v63 }
0x4038   :  { %18719 = vmatpush3.bf16.msra.mxu0 %v20763_v32  ;;  %v20775_v32 = vld [vmem:[%s24208_s27 + $0x8] sm:$0xff]  }
0x4039   :  { %18720 = vmatprep.subr.bf16.mxu0 %v21642_v63 }
0x403c   :  { %18721 = vmatpush3.bf16.msra.mxu0 %v20764_v35  ;;  %v20777_v35 = vld [vmem:[%s24208_s27] sm:$0xff]  }
0x403d   :  { %18722 = vmatprep.subr.bf16.mxu0 %v21642_v63 }
0x4040   :  { %18723 = vmatpush3.bf16.msra.mxu0 %v20765_v36  ;;  %v20779_v36 = vld [vmem:[#allocation31 + $0x40] sm:$0xff]  }
0x4041   :  { %18724 = vmatprep.subr.bf16.mxu0 %v21642_v63 }
0x4044   :  { %18725 = vmatpush3.bf16.msra.mxu0 %v20766_v38  ;;  %v20776_v38 = vld [vmem:[%s24208_s27 + $0x10] sm:$0xff]  }
0x4045   :  { %18736 = vmatprep.subr.bf16.mxu0 %v21642_v63 }
0x4047   :  { %18727 = vmatmul.mubr.bf16.vlgmr.msra.gmra.mrb[164].mxu0 %v10340_v40  ;;  %v20781_v40 = vld [vmem:[#allocation31 + $0x50] sm:$0xff]  }
0x4048   :  { %18737 = vmatpush3.bf16.msra.mxu0 %v20767_v48  ;;  %18752 = vmatprep.mubr.msk.bf16.mxu0 %vm21641_vm2, %v21642_v63  ;;  %v20782_v48 = vld [vmem:[#allocation31 + $0x58] sm:$0xff]  }
0x4049   :  { %18738 = vmatprep.subr.bf16.mxu0 %v21642_v63 }
0x404c   :  { %18739 = vmatpush3.bf16.msra.mxu0 %v20768_v49  ;;  %v20778_v49 = vld [vmem:[%s24208_s27 + $0x18] sm:$0xff]  }
0x404d   :  { %18740 = vmatprep.subr.bf16.mxu0 %v21642_v63 }
0x4050   :  { %18741 = vmatpush3.bf16.msra.mxu0 %v20769_v34  ;;  %v20783_v34 = vld [vmem:[#allocation31 + $0x60] sm:$0xff]  }
0x4051   :  { %18742 = vmatprep.subr.bf16.mxu0 %v21642_v63 }
0x4054   :  { %18743 = vmatpush3.bf16.msra.mxu0 %v20770_v28  ;;  %v20784_v28 = vld [vmem:[#allocation31 + $0x68] sm:$0xff]  }
0x4055   :  { %18744 = vmatprep.subr.bf16.mxu0 %v21642_v63 }
0x4058   :  { %18745 = vmatpush3.bf16.msra.mxu0 %v20771_v51  ;;  %v20785_v51 = vld [vmem:[#allocation31 + $0x70] sm:$0xff]  }
0x4059   :  { %18746 = vmatprep.subr.bf16.mxu0 %v21642_v63 }
0x405c   :  { %18747 = vmatpush3.bf16.msra.mxu0 %v20772_v52  ;;  %v20786_v52 = vld [vmem:[#allocation31 + $0x78] sm:$0xff]  }
0x405d   :  { %18748 = vmatprep.subr.bf16.mxu0 %v21642_v63 }
0x4060   :  { %18749 = vmatpush3.bf16.msra.mxu0 %v20773_v53  ;;  %v11137_v53 = vld [vmem:[%s24209_s10] sm:$0xff] }
0x4061   :  { %18750 = vmatprep.subr.bf16.mxu0 %v21642_v63 }
0x4064   :  { %18751 = vmatpush3.bf16.msra.mxu0 %v20774_v9  ;;  %v11138_v9 = vld [vmem:[%s24209_s10 + $0x8] sm:$0xff] }
0x4065   :  { %18865 = vmatprep.subr.bf16.mxu0 %v21642_v63 }
0x4067   :  { %18753 = vmatmul.mubr.bf16.vlgmr.msra.gmra.mrb[164].mxu0 %v10632_v10  ;;  %v11139_v10 = vld [vmem:[%s24209_s10 + $0x10] sm:$0xff] }
0x4068   :  { %18867 = vmatprep.mubr.msk.bf16.mxu0 %vm21641_vm2, %v21642_v63 }
0x413a   :  { %v23713_v54 = vpop.f32.mrb[164].mxu0 }
0x413b   :  { %v10739_v1 = vrot.slane %v23713_v54, 4  ;;  %v18754_v55 = vpop.f32.mrb[165].mxu0 }
0x413c   :  { %v10735_v56 = vpop.f32.mrb[166].mxu0 }
0x413d   :  { %v10740_v57 = vadd.f32 %v10739_v1, %v23713_v54  ;;  %v18755_v58 = vpop.f32.mrb[167].mxu0  ;;  %v11140_v1 = vld [vmem:[%s24209_s10 + $0x18] sm:$0xff]  ;;  %v11141_v56 = vld [vmem:[%s24209_s10 + $0x20] sm:$0xff] }
0x413e   :  { %v23800_v55 = vpack.c.bf16 %v11140_v1, %v11139_v10  ;;  %v11150_v10 = vld [vmem:[%s24209_s10 + $0x68] sm:$0xff] }
0x413f   :  { %v10741_v60 = vrot.slane %v10740_v57, 2 }
0x4141   :  { %v10742_v62 = vadd.f32 %v10741_v60, %v10740_v57  ;;  %v11142_v57 = vld [vmem:[%s24209_s10 + $0x28] sm:$0xff]  ;;  %v11143_v60 = vld [vmem:[%s24209_s10 + $0x30] sm:$0xff] }
0x4142   :  { %v23806_v58 = vpack.c.bf16 %v11142_v57, %v11141_v56  ;;  %v11151_v56 = vld [vmem:[%s24209_s10 + $0x70] sm:$0xff]  ;;  %v11152_v57 = vld [vmem:[%s24209_s10 + $0x78] sm:$0xff] }
0x4143   :  { %v10743_v0 = vrot.slane %v10742_v62, 1 }
0x4145   :  { %v10744_v22 = vadd.f32 %v10743_v0, %v10742_v62  ;;  %v11144_v62 = vld [vmem:[%s24209_s10 + $0x38] sm:$0xff] }
0x4146   :  { %v23812_v0 = vpack.c.bf16 %v11144_v62, %v11143_v60  ;;  %v20159_v60 = vpack.c.bf16 %v11152_v57, %v11151_v56  ;;  %v20815_v56 = vld [vmem:[%s24211_s14 + $0x10] sm:$0xff]  }
0x4147   :  { %18789 = vmatmul.mubr.f32.vlgmr.msra.gmra.mrb[126].mxu1 %v10744_v22  ;;  %v20817_v57 = vld [vmem:[%s24211_s14 + $0x30] sm:$0xff]  }
0x4148   :  { %20097 = vmatpush3.bf16.msra.mxu1 %v22586_v26  ;;  %18799 = vmatprep.mubr.msk.f32.mxu1 %vm21641_vm2, %v21642_v63 }
0x4149   :  { %20098 = vmatprep.subr.bf16.mxu1 %v21640_v19 }
0x414c   :  { %20100 = vmatpush3.bf16.msra.mxu1 %v22596_v61 }
0x414d   :  { %20101 = vmatprep.subr.bf16.mxu1 %v21640_v19 }
0x421a   :  { %v10811_v5 = vpop.f32.mrb[126].mxu1 }
0x421b   :  { %v10815_v6 = vmul.f32 0.03125, %v10811_v5  ;;  %v18790_v42 = vpop.f32.mrb[127].mxu1 }
0x421d   :  { %18800 = vmatmul.mubr.msk.f32.vlgmr.msra.gmra.mrb[144].mxu1 %vm569_vm0, %v10815_v6 }
0x421e   :  { %20103 = vmatpush3.bf16.msra.mxu1 %v22537_v13  ;;  %18834 = vmatprep.mubr.msk.f32.mxu1 %vm21641_vm2, %v21642_v63 }
0x421f   :  { %20104 = vmatprep.subr.bf16.mxu1 %v21640_v19 }
0x4222   :  { %20106 = vmatpush3.bf16.msra.mxu1 %v22543_v16 }
0x4223   :  { %20107 = vmatprep.subr.bf16.mxu1 %v21640_v19 }
0x4226   :  { %20109 = vmatpush3.bf16.msra.mxu1 %v22551_v20 }
0x4227   :  { %20110 = vmatprep.subr.bf16.mxu1 %v21640_v19 }
0x422a   :  { %20112 = vmatpush3.bf16.msra.mxu1 %v22557_v24 }
0x422b   :  { %20113 = vmatprep.subr.bf16.mxu1 %v21640_v19 }
0x422e   :  { %20115 = vmatpush3.bf16.msra.mxu1 %v22563_v29 }
0x422f   :  { %20116 = vmatprep.subr.bf16.mxu1 %v21640_v19 }
0x4232   :  { %20118 = vmatpush3.bf16.msra.mxu1 %v22570_v33 }
0x4233   :  { %20119 = vmatprep.subr.bf16.mxu1 %v21640_v19 }
0x4236   :  { %20121 = vmatpush3.bf16.msra.mxu1 %v22576_v37 }
0x4237   :  { %20122 = vmatprep.subr.bf16.mxu1 %v21640_v19 }
0x423a   :  { %20124 = vmatpush3.bf16.msra.mxu1 %v22582_v41 }
0x423b   :  { %20125 = vmatprep.subr.bf16.mxu1 %v21640_v19 }
0x42f0   :  { %v10885_v13 = vpop.f32.mrb[144].mxu1 }
0x42f1   :  { %v10892_v16 = vrot.slane %v10885_v13, %v22137_v21  ;;  %v18801_v20 = vpop.f32.mrb[145].mxu1 }
0x42f3   :  { %v10893_v24 = vsub.f32 %v23713_v54, %v10892_v16  ;;  %v20787_v16 = vld [vmem:[#allocation31] sm:$0xff]  }
0x42f5   :  { %v10894_v29 = vmul.f32 %v10893_v24, %v10893_v24 }
0x42f7   :  { %v10895_v45 = vrot.slane %v10894_v29, 4 }
0x42f9   :  { %v10896_v59 = vadd.f32 %v10895_v45, %v10894_v29 }
0x42fb   :  { %v10897_v33 = vrot.slane %v10896_v59, 2 }
0x42fd   :  { %v10898_v44 = vadd.f32 %v10897_v33, %v10896_v59  ;;  %v20788_v33 = vld [vmem:[#allocation31 + $0x8] sm:$0xff]  }
0x42ff   :  { %v10899_v46 = vrot.slane %v10898_v44, 1 }
0x4301   :  { %v10900_v47 = vadd.f32 %v10899_v46, %v10898_v44 }
0x4303   :  { %18835 = vmatmul.mubr.f32.vlgmr.msra.gmra.mrb[146].mxu1 %v10900_v47  ;;  %v20789_v47 = vld [vmem:[#allocation31 + $0x10] sm:$0xff]  }
0x4304   :  { %20127 = vmatpush3.bf16.msra.mxu1 %v22586_v26  ;;  %18845 = vmatprep.mubr.msk.f32.mxu1 %vm21641_vm2, %v21642_v63 }
0x4305   :  { %20128 = vmatprep.subr.bf16.mxu1 %v21640_v19 }
0x4308   :  { %20130 = vmatpush3.bf16.msra.mxu1 %v22596_v61 }
0x4309   :  { %20131 = vmatprep.subr.bf16.mxu1 %v21640_v19 }
0x43d6   :  { %v10967_v37 = vpop.f32.mrb[146].mxu1 }
0x43d7   :  { %v10971_v41 = vmul.f32 0.03125, %v10967_v37  ;;  %v18836_v50 = vpop.f32.mrb[147].mxu1 }
0x43d9   :  { %v10972_v7 = vadd.f32 1e-05, %v10971_v41 }
0x43db   :  { %20903 = vrsqrt.f32 %v10972_v7  ;;  %v20790_v7 = vld [vmem:[#allocation31 + $0x18] sm:$0xff]  }
0x43e5   :  { %v20904_v11 = vpop.eup %20903 }
0x43e6   :  { %v10974_v2 = vmul.f32 %v20904_v11, %v10293_v8 }
0x43e8   :  { %18846 = vmatmul.mubr.msk.f32.vlgmr.msra.gmra.mrb[148].mxu1 %vm569_vm0, %v10974_v2  ;;  %v10975_v3 = vmul.f32 %v10974_v2, %v10815_v6  ;;  %v20791_v2 = vld [vmem:[#allocation31 + $0x20] sm:$0xff]  }
0x43e9   :  { %20133 = vmatpush3.bf16.msra.mxu1 %v22586_v26  ;;  %18856 = vmatprep.mubr.msk.f32.mxu1 %vm21641_vm2, %v21642_v63 }
0x43ea   :  { %20134 = vmatprep.subr.bf16.mxu1 %v21640_v19  ;;  %v10976_v4 = vsub.f32 %v10295_v23, %v10975_v3 }
0x43ed   :  { %20136 = vmatpush3.bf16.msra.mxu1 %v22596_v61 }
0x43ee   :  { %18859 = vmatprep.subr.bf16.mxu1 %v21642_v63 }
0x43f0   :  { %18857 = vmatmul.mubr.msk.f32.vlgmr.msra.gmra.mrb[150].mxu1 %vm569_vm0, %v10976_v4 }
0x43f1   :  { %18861 = vmatprep.mubr.msk.bf16.mxu1 %vm21641_vm2, %v21642_v63 }
0x44bb   :  { %v11046_v26 = vpop.f32.mrb[148].mxu1 }
0x44bc   :  { %v11126_v12 = vrot.slane %v11046_v26, %v22137_v21  ;;  %v18847_v14 = vpop.f32.mrb[149].mxu1  ;;  %v20792_v26 = vld [vmem:[#allocation31 + $0x28] sm:$0xff]  }
0x44bd   :  { %v20794_v14 = vld [vmem:[#allocation31 + $0x38] sm:$0xff]  }
0x44be   :  { %v11127_v15 = vmul.f32 %v11126_v12, %v23713_v54  ;;  %v23796_v54 = vpack.c.bf16 %v11138_v9, %v11137_v53  ;;  %v20793_v12 = vld [vmem:[#allocation31 + $0x30] sm:$0xff]  }
0x44bf   :  { %v11149_v9 = vld [vmem:[%s24209_s10 + $0x60] sm:$0xff] }
0x44c0   :  { %v20156_v1 = vpack.c.bf16 %v11150_v10, %v11149_v9  ;;  %v20812_v10 = vld [vmem:[%s24211_s14 + $0x8] sm:$0xff]  }
0x44c3   :  { %v11119_v17 = vpop.f32.mrb[150].mxu1 }
0x44c4   :  { %v11131_v18 = vrot.slane %v11119_v17, %v22137_v21  ;;  %v18858_v61 = vpop.f32.mrb[151].mxu1  ;;  %v20796_v17 = vld [vmem:[#allocation31 + $0x88] sm:$0xff]  }
0x44c5   :  { %v20798_v61 = vld [vmem:[#allocation31 + $0x98] sm:$0xff]  }
0x44c6   :  { %v11132_v25 = vadd.f32 %v11131_v18, %v11127_v15  ;;  %v20795_v15 = vld [vmem:[#allocation31 + $0x80] sm:$0xff]   ;;  %v20797_v18 = vld [vmem:[#allocation31 + $0x90] sm:$0xff]  }
0x44c8   :  { %v11133_v27 = vmax.f32 %v11132_v25, 0.0  ;;  %v20799_v25 = vld [vmem:[#allocation31 + $0xa0] sm:$0xff]  }
0x44ca   :  { %v11134_v39 = vadd.f32 %v11133_v27, %v23486_v31  ;;  %v20780_v31 = vld [vmem:[#allocation31 + $0x48] sm:$0xff]  }
0x44cb   :  { %v20800_v27 = vld [vmem:[#allocation31 + $0xa8] sm:$0xff]  }
0x44cc   :  { %v11155_v43 = vpack.c.bf16 %v11134_v39, %v11134_v39  ;;  %v20801_v39 = vld [vmem:[#allocation31 + $0xb0] sm:$0xff]  }
0x44ce   :  { %v11167_v30 = vsel %vm3544_vm5, %v11155_v43, 0  ;;  %v20802_v43 = vld [vmem:[#allocation31 + $0xb8] sm:$0xff]  }
0x44cf   :  { %18860 = vmatpush3.bf16.msra.mxu1 %v11167_v30  ;;  %18866 = vmatpush3.bf16.msra.mxu0 %v11167_v30 }
0x44d0   :  { %18911 = vmatprep.subr.bf16.mxu0 %v21642_v63  ;;  %18871 = vmatprep.subr.bf16.mxu1 %v21642_v63 }
0x44d2   :  { %18868 = vmatmul.mubr.msk.bf16.vlgmr.msra.gmra.mrb[168].mxu0 %vm1095_vm3, %v20775_v32  ;;  %18862 = vmatmul.mubr.msk.bf16.vlgmr.msra.gmra.mrb[152].mxu1 %vm1095_vm3, %v20777_v35  ;;  %v20804_v32 = vld [vmem:[#allocation31 + $0xc8] sm:$0xff]   ;;  %v20805_v35 = vld [vmem:[#allocation31 + $0xd0] sm:$0xff]  }
0x44d3   :  { %18912 = vmatpush3.bf16.msra.mxu0 %v11167_v30  ;;  %18913 = vmatprep.mubr.msk.bf16.mxu0 %vm21641_vm2, %v21642_v63 }
0x44d4   :  { %18937 = vmatprep.subr.bf16.mxu0 %v21642_v63  ;;  %18872 = vmatpush3.bf16.msra.mxu1 %v20779_v36  ;;  %v20806_v36 = vld [vmem:[#allocation31 + $0xd8] sm:$0xff]  }
0x44d5   :  { %18873 = vmatprep.subr.bf16.mxu1 %v21642_v63  ;;  %18887 = vmatprep.mubr.msk.bf16.mxu1 %vm21641_vm2, %v21642_v63 }
0x44d8   :  { %18874 = vmatpush3.bf16.msra.mxu1 %v20780_v31  ;;  %v20807_v31 = vld [vmem:[#allocation31 + $0xe0] sm:$0xff]  }
0x44d9   :  { %18875 = vmatprep.subr.bf16.mxu1 %v21642_v63 }
0x44da   :  { %18914 = vmatmul.mubr.msk.bf16.vlgmr.msra.gmra.mrb[172].mxu0 %vm1095_vm3, %v20776_v38  ;;  %v20808_v38 = vld [vmem:[#allocation31 + $0xe8] sm:$0xff]  }
0x44db   :  { %18938 = vmatpush3.bf16.msra.mxu0 %v11167_v30  ;;  %18939 = vmatprep.mubr.msk.bf16.mxu0 %vm21641_vm2, %v21642_v63  ;;  %v20803_v30 = vld [vmem:[#allocation31 + $0xc0] sm:$0xff]  }
0x44dc   :  { %18876 = vmatpush3.bf16.msra.mxu1 %v20781_v40  ;;  %20137 = vmatprep.subr.bf16.mxu0 %v21640_v19  ;;  %v20809_v40 = vld [vmem:[#allocation31 + $0xf0] sm:$0xff]  }
0x44dd   :  { %18877 = vmatprep.subr.bf16.mxu1 %v21642_v63 }
0x44e0   :  { %18878 = vmatpush3.bf16.msra.mxu1 %v20782_v48  ;;  %v20810_v48 = vld [vmem:[#allocation31 + $0xf8] sm:$0xff]  }
0x44e1   :  { %18879 = vmatprep.subr.bf16.mxu1 %v21642_v63 }
0x44e2   :  { %18940 = vmatmul.mubr.msk.bf16.vlgmr.msra.gmra.mrb[176].mxu0 %vm1095_vm3, %v20778_v49  ;;  %v11145_v49 = vld [vmem:[%s24209_s10 + $0x40] sm:$0xff] }
0x44e3   :  { %18995 = vmatprep.mubr.msk.f32.mxu0 %vm21641_vm2, %v21642_v63  ;;  %20139 = vmatpush3.bf16.msra.mxu0 %v23796_v54 }
0x44e4   :  { %18880 = vmatpush3.bf16.msra.mxu1 %v20783_v34  ;;  %20140 = vmatprep.subr.bf16.mxu0 %v21640_v19  ;;  %v11146_v34 = vld [vmem:[%s24209_s10 + $0x48] sm:$0xff] }
0x44e5   :  { %18881 = vmatprep.subr.bf16.mxu1 %v21642_v63 }
0x44e7   :  { %20142 = vmatpush3.bf16.msra.mxu0 %v23800_v55 }
0x44e8   :  { %18882 = vmatpush3.bf16.msra.mxu1 %v20784_v28  ;;  %20143 = vmatprep.subr.bf16.mxu0 %v21640_v19  ;;  %v20150_v28 = vpack.c.bf16 %v11146_v34, %v11145_v49 }
0x44e9   :  { %18883 = vmatprep.subr.bf16.mxu1 %v21642_v63 }
0x44eb   :  { %20145 = vmatpush3.bf16.msra.mxu0 %v23806_v58 }
0x44ec   :  { %18884 = vmatpush3.bf16.msra.mxu1 %v20785_v51  ;;  %20146 = vmatprep.subr.bf16.mxu0 %v21640_v19  ;;  %v11147_v51 = vld [vmem:[%s24209_s10 + $0x50] sm:$0xff] }
0x44ed   :  { %18885 = vmatprep.subr.bf16.mxu1 %v21642_v63 }
0x44ef   :  { %20148 = vmatpush3.bf16.msra.mxu0 %v23812_v0 }
0x44f0   :  { %18886 = vmatpush3.bf16.msra.mxu1 %v20786_v52  ;;  %20149 = vmatprep.subr.bf16.mxu0 %v21640_v19  ;;  %v11148_v52 = vld [vmem:[%s24209_s10 + $0x58] sm:$0xff] }
0x44f1   :  { %18891 = vmatprep.subr.bf16.mxu1 %v21642_v63  ;;  %v20153_v53 = vpack.c.bf16 %v11148_v52, %v11147_v51 }
0x44f3   :  { %20151 = vmatpush3.bf16.msra.mxu0 %v20150_v28 }
0x44f4   :  { %20152 = vmatprep.subr.bf16.mxu0 %v21640_v19 }
0x44f7   :  { %20154 = vmatpush3.bf16.msra.mxu0 %v20153_v53 }
0x44f8   :  { %20155 = vmatprep.subr.bf16.mxu0 %v21640_v19 }
0x44fb   :  { %20157 = vmatpush3.bf16.msra.mxu0 %v20156_v1 }
0x44fc   :  { %20158 = vmatprep.subr.bf16.mxu0 %v21640_v19 }
0x44ff   :  { %20160 = vmatpush3.bf16.msra.mxu0 %v20159_v60 }
0x4500   :  { %20161 = vmatprep.subr.bf16.mxu0 %v21640_v19 }
0x45a5   :  { %v11272_v22 = vpop.f32.mrb[168].mxu0  ;;  %v11203_v5 = vpop.f32.mrb[152].mxu1 }
0x45a6   :  { %v18869_v6 = vpop.f32.mrb[169].mxu0  ;;  %v18863_v42 = vpop.f32.mrb[153].mxu1 }
0x45a7   :  { %v11275_v13 = vpop.f32.mrb[170].mxu0  ;;  %v11206_v20 = vpop.f32.mrb[154].mxu1 }
0x45a8   :  { %v11279_v24 = vpack.c.bf16 %v11275_v13, %v11272_v22  ;;  %v18870_v29 = vpop.f32.mrb[171].mxu0  ;;  %v11210_v45 = vpack.c.bf16 %v11206_v20, %v11203_v5  ;;  %v18864_v59 = vpop.f32.mrb[155].mxu1 }
0x45a9   :  { %v11153_v59 = vld [vmem:[%s24210_s15] sm:$0xff] }
0x45aa   :  { %18888 = vmatmul.mubr.bf16.vlgmr.msra.gmra.mrb[156].mxu1 %v11279_v24 }
0x45ab   :  { %18892 = vmatpush3.bf16.msra.mxu1 %v20787_v16  ;;  %18907 = vmatprep.mubr.msk.bf16.mxu1 %vm21641_vm2, %v21642_v63 }
0x45ac   :  { %18893 = vmatprep.subr.bf16.mxu1 %v21642_v63 }
0x45ad   :  { %v11520_v44 = vpop.f32.mrb[172].mxu0 }
0x45ae   :  { %v18915_v46 = vpop.f32.mrb[173].mxu0 }
0x45af   :  { %18894 = vmatpush3.bf16.msra.mxu1 %v20788_v33  ;;  %v11523_v37 = vpop.f32.mrb[174].mxu0  ;;  %v11154_v33 = vld [vmem:[%s24210_s15 + $0x8] sm:$0xff] }
0x45b0   :  { %18895 = vmatprep.subr.bf16.mxu1 %v21642_v63  ;;  %v11527_v41 = vpack.c.bf16 %v11523_v37, %v11520_v44  ;;  %v18916_v50 = vpop.f32.mrb[175].mxu0  ;;  %v20162_v44 = vpack.c.bf16 %v11154_v33, %v11153_v59  ;;  %v12202_v59 = vld [vmem:[%s24212_s11 + $0x8] sm:$0xff]  ;;  %v12203_v33 = vld [vmem:[%s24212_s11 + $0x10] sm:$0xff] }
0x45b3   :  { %18896 = vmatpush3.bf16.msra.mxu1 %v20789_v47 }
0x45b4   :  { %18897 = vmatprep.subr.bf16.mxu1 %v21642_v63 }
0x45b5   :  { %v23822_v8 = vpop.f32.mrb[176].mxu0 }
0x45b6   :  { %v18941_v11 = vpop.f32.mrb[177].mxu0 }
0x45b7   :  { %18898 = vmatpush3.bf16.msra.mxu1 %v20790_v7  ;;  %v23824_v3 = vpop.f32.mrb[178].mxu0 }
0x45b8   :  { %18899 = vmatprep.subr.bf16.mxu1 %v21642_v63  ;;  %v11688_v23 = vpack.c.bf16 %v23824_v3, %v23822_v8  ;;  %v18942_v4 = vpop.f32.mrb[179].mxu0 }
0x45bb   :  { %18900 = vmatpush3.bf16.msra.mxu1 %v20791_v2 }
0x45bc   :  { %18901 = vmatprep.subr.bf16.mxu1 %v21642_v63 }
0x45bf   :  { %18902 = vmatpush3.bf16.msra.mxu1 %v20792_v26 }
0x45c0   :  { %18903 = vmatprep.subr.bf16.mxu1 %v21642_v63 }
0x45c3   :  { %18904 = vmatpush3.bf16.msra.mxu1 %v20793_v12 }
0x45c4   :  { %18905 = vmatprep.subr.bf16.mxu1 %v21642_v63 }
0x45c7   :  { %18906 = vmatpush3.bf16.msra.mxu1 %v20794_v14 }
0x45c8   :  { %18917 = vmatprep.subr.bf16.mxu1 %v21642_v63 }
0x45ca   :  { %18908 = vmatmul.mubr.bf16.vlgmr.msra.gmra.mrb[156].mxu1 %v11210_v45 }
0x45cb   :  { %18918 = vmatpush3.bf16.msra.mxu1 %v20795_v15  ;;  %18933 = vmatprep.mubr.msk.bf16.mxu1 %vm21641_vm2, %v21642_v63 }
0x45cc   :  { %18919 = vmatprep.subr.bf16.mxu1 %v21642_v63 }
0x45cf   :  { %18920 = vmatpush3.bf16.msra.mxu1 %v20796_v17 }
0x45d0   :  { %18921 = vmatprep.subr.bf16.mxu1 %v21642_v63 }
0x45d3   :  { %18922 = vmatpush3.bf16.msra.mxu1 %v20797_v18  ;;  %v11135_v18 = vld [vmem:[#allocation33] sm:$0x1] }
0x45d4   :  { %18923 = vmatprep.subr.bf16.mxu1 %v21642_v63 }
0x45d7   :  { %18924 = vmatpush3.bf16.msra.mxu1 %v20798_v61 }
0x45d8   :  { %18925 = vmatprep.subr.bf16.mxu1 %v21642_v63 }
0x45db   :  { %18926 = vmatpush3.bf16.msra.mxu1 %v20799_v25 }
0x45dc   :  { %18927 = vmatprep.subr.bf16.mxu1 %v21642_v63 }
0x45df   :  { %18928 = vmatpush3.bf16.msra.mxu1 %v20800_v27  ;;  %v11136_v27 = vld [vmem:[#allocation34] sm:$0x1] }
0x45e0   :  { %18929 = vmatprep.subr.bf16.mxu1 %v21642_v63 }
0x45e3   :  { %18930 = vmatpush3.bf16.msra.mxu1 %v20801_v39 }
0x45e4   :  { %18931 = vmatprep.subr.bf16.mxu1 %v21642_v63 }
0x45e7   :  { %18932 = vmatpush3.bf16.msra.mxu1 %v20802_v43 }
0x45e8   :  { %18943 = vmatprep.subr.bf16.mxu1 %v21642_v63 }
0x45ea   :  { %18934 = vmatmul.mubr.bf16.vlgmr.msra.gmra.mrb[156].mxu1 %v11527_v41 }
0x45eb   :  { %18944 = vmatpush3.bf16.msra.mxu1 %v20803_v30  ;;  %18959 = vmatprep.mubr.msk.bf16.mxu1 %vm21641_vm2, %v21642_v63  ;;  %v20811_v30 = vld [vmem:[%s24211_s14] sm:$0xff]  }
0x45ec   :  { %18945 = vmatprep.subr.bf16.mxu1 %v21642_v63 }
0x45ef   :  { %18946 = vmatpush3.bf16.msra.mxu1 %v20804_v32  ;;  %v20813_v32 = vld [vmem:[%s24211_s14 + $0x20] sm:$0xff]  }
0x45f0   :  { %18947 = vmatprep.subr.bf16.mxu1 %v21642_v63 }
0x45f3   :  { %18948 = vmatpush3.bf16.msra.mxu1 %v20805_v35 }
0x45f4   :  { %18949 = vmatprep.subr.bf16.mxu1 %v21642_v63 }
0x45f7   :  { %18950 = vmatpush3.bf16.msra.mxu1 %v20806_v36 }
0x45f8   :  { %18951 = vmatprep.subr.bf16.mxu1 %v21642_v63 }
0x45fb   :  { %18952 = vmatpush3.bf16.msra.mxu1 %v20807_v31 }
0x45fc   :  { %18953 = vmatprep.subr.bf16.mxu1 %v21642_v63 }
0x45ff   :  { %18954 = vmatpush3.bf16.msra.mxu1 %v20808_v38 }
0x4600   :  { %18955 = vmatprep.subr.bf16.mxu1 %v21642_v63 }
0x4603   :  { %18956 = vmatpush3.bf16.msra.mxu1 %v20809_v40 }
0x4604   :  { %18957 = vmatprep.subr.bf16.mxu1 %v21642_v63 }
0x4607   :  { %18958 = vmatpush3.bf16.msra.mxu1 %v20810_v48 }
0x460a   :  { %18960 = vmatmul.mubr.bf16.vlgmr.msra.gmra.mrb[156].mxu1 %v11688_v23 }
0x460b   :  { %19108 = vmatprep.mubr.msk.bf16.mxu1 %vm2170_vm4, %v20813_v32 }
0x46dd   :  { %v23867_v62 = vpop.f32.mrb[156].mxu1 }
0x46de   :  { %v18961_v22 = vpop.f32.mrb[157].mxu1 }
0x46df   :  { %v23869_v5 = vpop.f32.mrb[158].mxu1  ;;  %v20818_v22 = vld [vmem:[%s24211_s14 + $0x38] sm:$0xff]  }
0x46e0   :  { %v11797_v6 = vadd.f32 %v23869_v5, %v23867_v62  ;;  %v18962_v42 = vpop.f32.mrb[159].mxu1 }
0x46e1   :  { %v20822_v42 = vld [vmem:[#allocation36 + $0x58] sm:$0xff]  }
0x46e2   :  { %v11798_v13 = vrot.slane %v11797_v6, 4 }
0x46e4   :  { %v11799_v16 = vadd.f32 %v11798_v13, %v11797_v6  ;;  %v20821_v6 = vld [vmem:[#allocation36 + $0x50] sm:$0xff]   ;;  %v20823_v13 = vld [vmem:[#allocation36 + $0x60] sm:$0xff]  }
0x46e6   :  { %v11800_v20 = vrot.slane %v11799_v16, 2 }
0x46e8   :  { %v11801_v24 = vadd.f32 %v11800_v20, %v11799_v16  ;;  %v20824_v16 = vld [vmem:[#allocation36 + $0x68] sm:$0xff]   ;;  %v20825_v20 = vld [vmem:[#allocation36 + $0x70] sm:$0xff]  }
0x46ea   :  { %v11802_v29 = vrot.slane %v11801_v24, 1 }
0x46ec   :  { %v11803_v45 = vadd.f32 %v11802_v29, %v11801_v24  ;;  %v20826_v24 = vld [vmem:[#allocation36 + $0x78] sm:$0xff]   ;;  %v20827_v29 = vld [vmem:[#allocation36] sm:$0xff]  }
0x46ee   :  { %18996 = vmatmul.mubr.f32.vlgmr.msra.gmra.mrb[180].mxu0 %v11803_v45  ;;  %v12201_v45 = vld [vmem:[%s24212_s11] sm:$0xff] }
0x46ef   :  { %19002 = vmatprep.mubr.msk.f32.mxu0 %vm21641_vm2, %v21642_v63  ;;  %20163 = vmatpush3.bf16.msra.mxu0 %v20162_v44 }
0x46f0   :  { %20164 = vmatprep.subr.bf16.mxu0 %v21640_v19 }
0x47c1   :  { %v11870_v46 = vpop.f32.mrb[180].mxu0 }
0x47c2   :  { %v11874_v47 = vmul.f32 0.0078125, %v11870_v46  ;;  %v18997_v37 = vpop.f32.mrb[181].mxu0  ;;  %v12204_v46 = vld [vmem:[%s24212_s11 + $0x18] sm:$0xff] }
0x47c3   :  { %v12205_v37 = vld [vmem:[%s24212_s11 + $0x20] sm:$0xff] }
0x47c4   :  { %19003 = vmatmul.mubr.msk.f32.vlgmr.msra.gmra.mrb[182].mxu0 %vm2170_vm4, %v11874_v47 }
0x47c5   :  { %20166 = vmatpush3.bf16.msra.mxu0 %v23796_v54  ;;  %19037 = vmatprep.mubr.msk.f32.mxu0 %vm21641_vm2, %v21642_v63 }
0x47c6   :  { %20167 = vmatprep.subr.bf16.mxu0 %v21640_v19 }
0x47c9   :  { %20169 = vmatpush3.bf16.msra.mxu0 %v23800_v55 }
0x47ca   :  { %20170 = vmatprep.subr.bf16.mxu0 %v21640_v19 }
0x47cd   :  { %20172 = vmatpush3.bf16.msra.mxu0 %v23806_v58 }
0x47ce   :  { %20173 = vmatprep.subr.bf16.mxu0 %v21640_v19 }
0x47d1   :  { %20175 = vmatpush3.bf16.msra.mxu0 %v23812_v0 }
0x47d2   :  { %20176 = vmatprep.subr.bf16.mxu0 %v21640_v19 }
0x47d5   :  { %20178 = vmatpush3.bf16.msra.mxu0 %v20150_v28 }
0x47d6   :  { %20179 = vmatprep.subr.bf16.mxu0 %v21640_v19 }
0x47d9   :  { %20181 = vmatpush3.bf16.msra.mxu0 %v20153_v53 }
0x47da   :  { %20182 = vmatprep.subr.bf16.mxu0 %v21640_v19 }
0x47dd   :  { %20184 = vmatpush3.bf16.msra.mxu0 %v20156_v1  ;;  %v20814_v1 = vld [vmem:[%s24211_s14 + $0x28] sm:$0xff]  }
0x47de   :  { %20185 = vmatprep.subr.bf16.mxu0 %v21640_v19 }
0x47e1   :  { %20187 = vmatpush3.bf16.msra.mxu0 %v20159_v60  ;;  %v20819_v60 = vld [vmem:[#allocation36 + $0x40] sm:$0xff]  }
0x47e2   :  { %20188 = vmatprep.subr.bf16.mxu0 %v21640_v19 }
0x4897   :  { %v11944_v54 = vpop.f32.mrb[182].mxu0 }
0x4898   :  { %v11951_v55 = vrot.slane %v11944_v54, %v22137_v21  ;;  %v19004_v58 = vpop.f32.mrb[183].mxu0  ;;  %v12206_v54 = vld [vmem:[%s24212_s11 + $0x28] sm:$0xff] }
0x489a   :  { %v11952_v0 = vsub.f32 %v23867_v62, %v11951_v55  ;;  %v11953_v41 = vsub.f32 %v23869_v5, %v11951_v55  ;;  %v23939_v55 = vpack.c.bf16 %v12206_v54, %v12205_v37  ;;  %v12213_v37 = vld [vmem:[%s24212_s11 + $0x60] sm:$0xff]  ;;  %v12214_v54 = vld [vmem:[%s24212_s11 + $0x68] sm:$0xff] }
0x489c   :  { %v11954_v50 = vmul.f32 %v11952_v0, %v11952_v0  ;;  %v11955_v7 = vmul.f32 %v11953_v41, %v11953_v41 }
0x489e   :  { %v11956_v8 = vadd.f32 %v11955_v7, %v11954_v50 }
0x48a0   :  { %v11957_v11 = vrot.slane %v11956_v8, 4 }
0x48a2   :  { %v11958_v2 = vadd.f32 %v11957_v11, %v11956_v8 }
0x48a4   :  { %v11959_v3 = vrot.slane %v11958_v2, 2 }
0x48a6   :  { %v11960_v23 = vadd.f32 %v11959_v3, %v11958_v2 }
0x48a8   :  { %v11961_v4 = vrot.slane %v11960_v23, 1 }
0x48aa   :  { %v11962_v26 = vadd.f32 %v11961_v4, %v11960_v23 }
0x48ac   :  { %19038 = vmatmul.mubr.f32.vlgmr.msra.gmra.mrb[184].mxu0 %v11962_v26 }
0x48ad   :  { %20190 = vmatpush3.bf16.msra.mxu0 %v20162_v44  ;;  %19044 = vmatprep.mubr.msk.f32.mxu0 %vm21641_vm2, %v21642_v63 }
0x48ae   :  { %20191 = vmatprep.subr.bf16.mxu0 %v21640_v19 }
0x497f   :  { %v12029_v12 = vpop.f32.mrb[184].mxu0 }
0x4980   :  { %v12033_v14 = vmul.f32 0.0078125, %v12029_v12  ;;  %v19039_v15 = vpop.f32.mrb[185].mxu0 }
0x4982   :  { %v12034_v17 = vadd.f32 1e-05, %v12033_v14 }
0x4984   :  { %20905 = vrsqrt.f32 %v12034_v17 }
0x498e   :  { %v20906_v61 = vpop.eup %20905 }
0x498f   :  { %v12036_v25 = vmul.f32 %v20906_v61, %v11135_v18 }
0x4991   :  { %19045 = vmatmul.mubr.msk.f32.vlgmr.msra.gmra.mrb[186].mxu0 %vm2170_vm4, %v12036_v25  ;;  %v12037_v39 = vmul.f32 %v12036_v25, %v11874_v47  ;;  %v23933_v47 = vpack.c.bf16 %v12204_v46, %v12203_v33  ;;  %v12212_v33 = vld [vmem:[%s24212_s11 + $0x58] sm:$0xff] }
0x4992   :  { %20193 = vmatpush3.bf16.msra.mxu0 %v20162_v44  ;;  %19051 = vmatprep.mubr.msk.f32.mxu0 %vm21641_vm2, %v21642_v63  ;;  %v23929_v44 = vpack.c.bf16 %v12202_v59, %v12201_v45  ;;  %v12211_v59 = vld [vmem:[%s24212_s11 + $0x50] sm:$0xff] }
0x4993   :  { %v12038_v43 = vsub.f32 %v11136_v27, %v12037_v39  ;;  %v20210_v46 = vpack.c.bf16 %v12212_v33, %v12211_v59  ;;  %v20861_v59 = vld [vmem:[%s24214_s13 + $0x60] sm:$0xff]  }
0x4995   :  { %19052 = vmatmul.mubr.msk.f32.vlgmr.msra.gmra.mrb[188].mxu0 %vm2170_vm4, %v12038_v43 }
0x4996   :  { %19056 = vmatprep.mubr.msk.bf16.mxu0 %vm2170_vm4, %v20811_v30 }
0x4a64   :  { %v12108_v35 = vpop.f32.mrb[186].mxu0 }
0x4a65   :  { %v12188_v36 = vrot.slane %v12108_v35, %v22137_v21  ;;  %v19046_v31 = vpop.f32.mrb[187].mxu0  ;;  %v20828_v35 = vld [vmem:[#allocation36 + $0x8] sm:$0xff]  }
0x4a66   :  { %v20830_v31 = vld [vmem:[#allocation36 + $0x18] sm:$0xff]  }
0x4a67   :  { %v12189_v38 = vmul.f32 %v12188_v36, %v23867_v62  ;;  %v12190_v40 = vmul.f32 %v12188_v36, %v23869_v5  ;;  %v20816_v62 = vld [vmem:[%s24211_s14 + $0x18] sm:$0xff]   ;;  %v20829_v36 = vld [vmem:[#allocation36 + $0x10] sm:$0xff]  }
0x4a68   :  { %v12181_v48 = vpop.f32.mrb[188].mxu0  ;;  %v20820_v5 = vld [vmem:[#allocation36 + $0x48] sm:$0xff]  }
0x4a69   :  { %v12194_v49 = vrot.slane %v12181_v48, %v22137_v21  ;;  %v19053_v34 = vpop.f32.mrb[189].mxu0  ;;  %v20833_v48 = vld [vmem:[#allocation36 + $0x30] sm:$0xff]  }
0x4a6a   :  { %v20835_v34 = vld [vmem:[#allocation36 + $0x80] sm:$0xff]  }
0x4a6b   :  { %v12195_v28 = vadd.f32 %v12194_v49, %v12189_v38  ;;  %v12196_v51 = vadd.f32 %v12194_v49, %v12190_v40  ;;  %v20831_v38 = vld [vmem:[#allocation36 + $0x20] sm:$0xff]   ;;  %v20832_v40 = vld [vmem:[#allocation36 + $0x28] sm:$0xff]   ;;  %v20834_v49 = vld [vmem:[#allocation36 + $0x38] sm:$0xff]  }
0x4a6d   :  { %v12197_v52 = vmax.f32 %v12195_v28, 0.0  ;;  %v12198_v53 = vmax.f32 %v12196_v51, 0.0  ;;  %v20836_v28 = vld [vmem:[#allocation36 + $0x88] sm:$0xff]   ;;  %v20837_v51 = vld [vmem:[#allocation36 + $0x90] sm:$0xff]  }
0x4a6f   :  { %v12218_v9 = vpack.c.bf16 %v12198_v53, %v12197_v52  ;;  %v20838_v52 = vld [vmem:[#allocation36 + $0x98] sm:$0xff]   ;;  %v20839_v53 = vld [vmem:[#allocation36 + $0xa0] sm:$0xff]  }
0x4a71   :  { %19054 = vmatprep.subr.bf16.mxu0 %v12218_v9  ;;  %19106 = vmatprep.subr.bf16.mxu1 %v12218_v9 }
0x4a72   :  { %19055 = vmatpush3.bf16.msra.mxu0 %v12218_v9  ;;  %19107 = vmatpush3.bf16.msra.mxu1 %v12218_v9 }
0x4a73   :  { %19060 = vmatprep.subr.bf16.mxu0 %v12218_v9  ;;  %19132 = vmatprep.subr.bf16.mxu1 %v12218_v9 }
0x4a75   :  { %19057 = vmatmul.mubr.msk.bf16.vlgmr.msra.gmra.mrb[192].mxu0 %vm2170_vm4, %v20812_v10  ;;  %19109 = vmatmul.mubr.msk.bf16.vlgmr.msra.gmra.mrb[160].mxu1 %vm2170_vm4, %v20814_v1  ;;  %v20841_v10 = vld [vmem:[#allocation36 + $0xb0] sm:$0xff]   ;;  %v20842_v1 = vld [vmem:[#allocation36 + $0xb8] sm:$0xff]  }
0x4a76   :  { %19061 = vmatpush3.bf16.msra.mxu0 %v12218_v9  ;;  %19133 = vmatpush3.bf16.msra.mxu1 %v12218_v9  ;;  %v20840_v9 = vld [vmem:[#allocation36 + $0xa8] sm:$0xff]  }
0x4a77   :  { %19062 = vmatprep.mubr.msk.bf16.mxu0 %vm2170_vm4, %v20815_v56  ;;  %19134 = vmatprep.mubr.msk.bf16.mxu1 %vm2170_vm4, %v20817_v57  ;;  %v20843_v56 = vld [vmem:[#allocation36 + $0xc0] sm:$0xff]   ;;  %v20844_v57 = vld [vmem:[#allocation36 + $0xc8] sm:$0xff]  }
0x4a78   :  { %19066 = vmatprep.subr.bf16.mxu0 %v20819_v60  ;;  %20194 = vmatprep.subr.bf16.mxu1 %v21640_v19 }
0x4a7d   :  { %19063 = vmatmul.mubr.msk.bf16.vlgmr.msra.gmra.mrb[196].mxu0 %vm2170_vm4, %v20816_v62  ;;  %19135 = vmatmul.mubr.msk.bf16.vlgmr.msra.gmra.mrb[164].mxu1 %vm2170_vm4, %v20818_v22  ;;  %v20846_v62 = vld [vmem:[#allocation36 + $0xd8] sm:$0xff]   ;;  %v20847_v22 = vld [vmem:[#allocation36 + $0xe0] sm:$0xff]  }
0x4a7e   :  { %19067 = vmatpush3.bf16.msra.mxu0 %v20819_v60  ;;  %19190 = vmatprep.mubr.msk.f32.mxu1 %vm21641_vm2, %v21642_v63  ;;  %v20845_v60 = vld [vmem:[#allocation36 + $0xd0] sm:$0xff]  }
0x4a7f   :  { %19068 = vmatprep.subr.bf16.mxu0 %v20820_v5  ;;  %20196 = vmatpush3.bf16.msra.mxu1 %v23929_v44 }
0x4a80   :  { %20197 = vmatprep.subr.bf16.mxu1 %v21640_v19 }
0x4a82   :  { %19069 = vmatpush3.bf16.msra.mxu0 %v20820_v5  ;;  %v20848_v5 = vld [vmem:[#allocation36 + $0xe8] sm:$0xff]  }
0x4a83   :  { %19070 = vmatprep.subr.bf16.mxu0 %v20821_v6  ;;  %20199 = vmatpush3.bf16.msra.mxu1 %v23933_v47 }
0x4a84   :  { %20200 = vmatprep.subr.bf16.mxu1 %v21640_v19 }
0x4a86   :  { %19071 = vmatpush3.bf16.msra.mxu0 %v20821_v6  ;;  %v20849_v6 = vld [vmem:[#allocation36 + $0xf0] sm:$0xff]  }
0x4a87   :  { %19072 = vmatprep.subr.bf16.mxu0 %v20822_v42  ;;  %20202 = vmatpush3.bf16.msra.mxu1 %v23939_v55 }
0x4a88   :  { %20203 = vmatprep.subr.bf16.mxu1 %v21640_v19 }
0x4a8a   :  { %19073 = vmatpush3.bf16.msra.mxu0 %v20822_v42  ;;  %v20850_v42 = vld [vmem:[#allocation36 + $0xf8] sm:$0xff]  }
0x4a8b   :  { %19074 = vmatprep.subr.bf16.mxu0 %v20823_v13 }
0x4a8e   :  { %19075 = vmatpush3.bf16.msra.mxu0 %v20823_v13  ;;  %v12207_v13 = vld [vmem:[%s24212_s11 + $0x30] sm:$0xff] }
0x4a8f   :  { %19076 = vmatprep.subr.bf16.mxu0 %v20824_v16 }
0x4a92   :  { %19077 = vmatpush3.bf16.msra.mxu0 %v20824_v16  ;;  %v12208_v16 = vld [vmem:[%s24212_s11 + $0x38] sm:$0xff] }
0x4a93   :  { %19078 = vmatprep.subr.bf16.mxu0 %v20825_v20 }
0x4a96   :  { %19079 = vmatpush3.bf16.msra.mxu0 %v20825_v20  ;;  %v20204_v20 = vpack.c.bf16 %v12208_v16, %v12207_v13  ;;  %v20851_v16 = vld [vmem:[%s24213_s5] sm:$0xff]  }
0x4a97   :  { %19080 = vmatprep.subr.bf16.mxu0 %v20826_v24 }
0x4a98   :  { %20205 = vmatpush3.bf16.msra.mxu1 %v20204_v20 }
0x4a99   :  { %20206 = vmatprep.subr.bf16.mxu1 %v21640_v19 }
0x4a9a   :  { %19081 = vmatpush3.bf16.msra.mxu0 %v20826_v24  ;;  %v12209_v24 = vld [vmem:[%s24212_s11 + $0x40] sm:$0xff] }
0x4a9b   :  { %19086 = vmatprep.subr.bf16.mxu0 %v20827_v29 }
0x4b48   :  { %v19058_v58 = vpop.f32.mrb[192].mxu0  ;;  %v23944_v0 = vpop.f32.mrb[160].mxu1 }
0x4b49   :  { %v12273_v41 = vpop.f32.mrb[193].mxu0  ;;  %v12644_v50 = vpop.f32.mrb[161].mxu1 }
0x4b4a   :  { %v19059_v7 = vpop.f32.mrb[194].mxu0  ;;  %v23946_v8 = vpop.f32.mrb[162].mxu1 }
0x4b4b   :  { %v12289_v11 = vpack.c.bf16 %v19059_v7, %v19058_v58  ;;  %v12276_v2 = vpop.f32.mrb[195].mxu0  ;;  %v12660_v3 = vpack.c.bf16 %v23946_v8, %v23944_v0  ;;  %v12647_v23 = vpop.f32.mrb[163].mxu1  ;;  %v12215_v58 = vld [vmem:[%s24212_s11 + $0x70] sm:$0xff]  ;;  %v20213_v0 = vpack.c.bf16 %v12214_v54, %v12213_v37 }
0x4b4c   :  { %v12288_v4 = vpack.c.bf16 %v12276_v2, %v12273_v41  ;;  %v12659_v26 = vpack.c.bf16 %v12647_v23, %v12644_v50  ;;  %v12216_v41 = vld [vmem:[%s24212_s11 + $0x78] sm:$0xff] }
0x4b4d   :  { %v20216_v50 = vpack.c.bf16 %v12216_v41, %v12215_v58 }
0x4b50   :  { %v19064_v12 = vpop.f32.mrb[196].mxu0  ;;  %v23950_v14 = vpop.f32.mrb[164].mxu1 }
0x4b51   :  { %v12361_v15 = vpop.f32.mrb[197].mxu0  ;;  %v23952_v17 = vpop.f32.mrb[165].mxu1 }
0x4b52   :  { %v19065_v18 = vpop.f32.mrb[198].mxu0  ;;  %v23954_v61 = vpop.f32.mrb[166].mxu1 }
0x4b53   :  { %v12377_v25 = vpack.c.bf16 %v19065_v18, %v19064_v12  ;;  %v12364_v27 = vpop.f32.mrb[199].mxu0  ;;  %v12850_v39 = vpack.c.bf16 %v23954_v61, %v23950_v14  ;;  %v12837_v43 = vpop.f32.mrb[167].mxu1  ;;  %v12217_v61 = vld [vmem:[#allocation40] sm:$0xff] }
0x4b54   :  { %v12376_v30 = vpack.c.bf16 %v12364_v27, %v12361_v15  ;;  %v12849_v32 = vpack.c.bf16 %v12837_v43, %v23952_v17 }
0x4b56   :  { %19082 = vmatprep.mubr.bf16.mxu0 %v12376_v30 }
0x4b57   :  { %19083 = vmatmul.mubr.bf16.vlgmr.msra.gmra.mrb[200].mxu0 %v12377_v25 }
0x4b58   :  { %19087 = vmatpush3.bf16.msra.mxu0 %v20827_v29  ;;  %19102 = vmatprep.mubr.bf16.mxu0 %v12288_v4  ;;  %v12210_v29 = vld [vmem:[%s24212_s11 + $0x48] sm:$0xff] }
0x4b59   :  { %19088 = vmatprep.subr.bf16.mxu0 %v20828_v35  ;;  %v20207_v45 = vpack.c.bf16 %v12210_v29, %v12209_v24  ;;  %v20858_v24 = vld [vmem:[%s24214_s13 + $0x48] sm:$0xff]   ;;  %v20859_v29 = vld [vmem:[%s24214_s13 + $0x50] sm:$0xff]  }
0x4b5b   :  { %20208 = vmatpush3.bf16.msra.mxu1 %v20207_v45 }
0x4b5c   :  { %19089 = vmatpush3.bf16.msra.mxu0 %v20828_v35  ;;  %20209 = vmatprep.subr.bf16.mxu1 %v21640_v19 }
0x4b5d   :  { %19090 = vmatprep.subr.bf16.mxu0 %v20829_v36 }
0x4b5f   :  { %20211 = vmatpush3.bf16.msra.mxu1 %v20210_v46 }
0x4b60   :  { %19091 = vmatpush3.bf16.msra.mxu0 %v20829_v36  ;;  %20212 = vmatprep.subr.bf16.mxu1 %v21640_v19 }
0x4b61   :  { %19092 = vmatprep.subr.bf16.mxu0 %v20830_v31 }
0x4b63   :  { %20214 = vmatpush3.bf16.msra.mxu1 %v20213_v0 }
0x4b64   :  { %19093 = vmatpush3.bf16.msra.mxu0 %v20830_v31  ;;  %20215 = vmatprep.subr.bf16.mxu1 %v21640_v19 }
0x4b65   :  { %19094 = vmatprep.subr.bf16.mxu0 %v20831_v38 }
0x4b67   :  { %20217 = vmatpush3.bf16.msra.mxu1 %v20216_v50 }
0x4b68   :  { %19095 = vmatpush3.bf16.msra.mxu0 %v20831_v38  ;;  %19193 = vmatprep.subr.mxu1 %v21642_v63 }
0x4b69   :  { %19096 = vmatprep.subr.bf16.mxu0 %v20832_v40 }
0x4b6c   :  { %19097 = vmatpush3.bf16.msra.mxu0 %v20832_v40 }
0x4b6d   :  { %19098 = vmatprep.subr.bf16.mxu0 %v20833_v48 }
0x4b70   :  { %19099 = vmatpush3.bf16.msra.mxu0 %v20833_v48 }
0x4b71   :  { %19100 = vmatprep.subr.bf16.mxu0 %v20834_v49 }
0x4b74   :  { %19101 = vmatpush3.bf16.msra.mxu0 %v20834_v49 }
0x4b75   :  { %19112 = vmatprep.subr.bf16.mxu0 %v20835_v34 }
0x4b77   :  { %19103 = vmatmul.mubr.bf16.vlgmr.msra.gmra.mrb[200].mxu0 %v12289_v11 }
0x4b78   :  { %19113 = vmatpush3.bf16.msra.mxu0 %v20835_v34  ;;  %19128 = vmatprep.mubr.bf16.mxu0 %v12659_v26 }
0x4b79   :  { %19114 = vmatprep.subr.bf16.mxu0 %v20836_v28 }
0x4b7c   :  { %19115 = vmatpush3.bf16.msra.mxu0 %v20836_v28 }
0x4b7d   :  { %19116 = vmatprep.subr.bf16.mxu0 %v20837_v51 }
0x4b80   :  { %19117 = vmatpush3.bf16.msra.mxu0 %v20837_v51 }
0x4b81   :  { %19118 = vmatprep.subr.bf16.mxu0 %v20838_v52 }
0x4b84   :  { %19119 = vmatpush3.bf16.msra.mxu0 %v20838_v52 }
0x4b85   :  { %19120 = vmatprep.subr.bf16.mxu0 %v20839_v53 }
0x4b88   :  { %19121 = vmatpush3.bf16.msra.mxu0 %v20839_v53 }
0x4b89   :  { %19122 = vmatprep.subr.bf16.mxu0 %v20840_v9 }
0x4b8c   :  { %19123 = vmatpush3.bf16.msra.mxu0 %v20840_v9 }
0x4b8d   :  { %19124 = vmatprep.subr.bf16.mxu0 %v20841_v10 }
0x4b90   :  { %19125 = vmatpush3.bf16.msra.mxu0 %v20841_v10 }
0x4b91   :  { %19126 = vmatprep.subr.bf16.mxu0 %v20842_v1 }
0x4b94   :  { %19127 = vmatpush3.bf16.msra.mxu0 %v20842_v1 }
0x4b95   :  { %19138 = vmatprep.subr.bf16.mxu0 %v20843_v56 }
0x4b97   :  { %19129 = vmatmul.mubr.bf16.vlgmr.msra.gmra.mrb[200].mxu0 %v12660_v3 }
0x4b98   :  { %19139 = vmatpush3.bf16.msra.mxu0 %v20843_v56  ;;  %19154 = vmatprep.mubr.bf16.mxu0 %v12849_v32 }
0x4b99   :  { %19140 = vmatprep.subr.bf16.mxu0 %v20844_v57 }
0x4b9c   :  { %19141 = vmatpush3.bf16.msra.mxu0 %v20844_v57 }
0x4b9d   :  { %19142 = vmatprep.subr.bf16.mxu0 %v20845_v60 }
0x4ba0   :  { %19143 = vmatpush3.bf16.msra.mxu0 %v20845_v60 }
0x4ba1   :  { %19144 = vmatprep.subr.bf16.mxu0 %v20846_v62 }
0x4ba4   :  { %19145 = vmatpush3.bf16.msra.mxu0 %v20846_v62  ;;  %v12199_v62 = vld [vmem:[#allocation37] sm:$0x1] }
0x4ba5   :  { %19146 = vmatprep.subr.bf16.mxu0 %v20847_v22 }
0x4ba8   :  { %19147 = vmatpush3.bf16.msra.mxu0 %v20847_v22 }
0x4ba9   :  { %19148 = vmatprep.subr.bf16.mxu0 %v20848_v5 }
0x4bac   :  { %19149 = vmatpush3.bf16.msra.mxu0 %v20848_v5 }
0x4bad   :  { %19150 = vmatprep.subr.bf16.mxu0 %v20849_v6 }
0x4bb0   :  { %19151 = vmatpush3.bf16.msra.mxu0 %v20849_v6  ;;  %v12200_v6 = vld [vmem:[#allocation39] sm:$0x1] }
0x4bb1   :  { %19152 = vmatprep.subr.bf16.mxu0 %v20850_v42 }
0x4bb4   :  { %19153 = vmatpush3.bf16.msra.mxu0 %v20850_v42 }
0x4bb7   :  { %19155 = vmatmul.mubr.bf16.vlgmr.msra.gmra.mrb[200].mxu0 %v12850_v39 }
0x4c8a   :  { %v23980_v7 = vpop.f32.mrb[200].mxu0 }
0x4c8b   :  { %v23982_v8 = vpop.f32.mrb[201].mxu0 }
0x4c8c   :  { %v23984_v11 = vpop.f32.mrb[202].mxu0 }
0x4c8d   :  { %v23986_v2 = vpop.f32.mrb[203].mxu0 }
0x4c8e   :  { %v12969_v3 = vadd.f32 %v23986_v2, %v23982_v8 }
0x4c90   :  { %v12970_v23 = vadd.f32 %v23980_v7, %v12969_v3 }
0x4c92   :  { %v12971_v4 = vadd.f32 %v23984_v11, %v12970_v23 }
0x4c94   :  { %v12972_v26 = vrot.slane %v12971_v4, 4 }
0x4c96   :  { %v12973_v12 = vadd.f32 %v12972_v26, %v12971_v4 }
0x4c98   :  { %v12974_v14 = vrot.slane %v12973_v12, 2 }
0x4c9a   :  { %v12975_v15 = vadd.f32 %v12974_v14, %v12973_v12 }
0x4c9c   :  { %v12976_v17 = vrot.slane %v12975_v15, 1 }
0x4c9e   :  { %v12977_v18 = vadd.f32 %v12976_v17, %v12975_v15 }
0x4ca0   :  { %19191 = vmatmul.mubr.f32.vlgmr.msra.gmra.mrb[168].mxu1 %v12977_v18 }
0x4ca1   :  { %19195 = vmatprep.mubr.msk.f32.mxu1 %vm21641_vm2, %v21642_v63  ;;  %19194 = vmatpush3.msra.mxu1 %v12217_v61 }
0x4ca2   :  { %20218 = vmatprep.subr.bf16.mxu1 %v21640_v19 }
0x4d73   :  { %v13044_v25 = vpop.f32.mrb[168].mxu1 }
0x4d74   :  { %v13048_v27 = vmul.f32 0.001953125, %v13044_v25  ;;  %v19192_v39 = vpop.f32.mrb[169].mxu1  ;;  %v20854_v25 = vld [vmem:[%s24213_s5 + $0x18] sm:$0xff]  }
0x4d75   :  { %v20856_v39 = vld [vmem:[%s24213_s5 + $0x28] sm:$0xff]  }
0x4d76   :  { %19196 = vmatmul.mubr.msk.f32.vlgmr.msra.gmra.mrb[170].mxu1 %vm1095_vm3, %v13048_v27 }
0x4d77   :  { %20220 = vmatpush3.bf16.msra.mxu1 %v23929_v44  ;;  %19230 = vmatprep.mubr.msk.f32.mxu1 %vm21641_vm2, %v21642_v63 }
0x4d78   :  { %20221 = vmatprep.subr.bf16.mxu1 %v21640_v19 }
0x4d7b   :  { %20223 = vmatpush3.bf16.msra.mxu1 %v23933_v47 }
0x4d7c   :  { %20224 = vmatprep.subr.bf16.mxu1 %v21640_v19 }
0x4d7f   :  { %20226 = vmatpush3.bf16.msra.mxu1 %v23939_v55 }
0x4d80   :  { %20227 = vmatprep.subr.bf16.mxu1 %v21640_v19 }
0x4d83   :  { %20229 = vmatpush3.bf16.msra.mxu1 %v20204_v20  ;;  %v20857_v20 = vld [vmem:[%s24214_s13 + $0x40] sm:$0xff]  }
0x4d84   :  { %20230 = vmatprep.subr.bf16.mxu1 %v21640_v19  ;;  %19259 = vmatprep.subr.bf16.mxu0 %v20857_v20 }
0x4d85   :  { %19260 = vmatpush3.bf16.msra.mxu0 %v20857_v20  ;;  %v20875_v20 = vld [vmem:[%s24214_s13 + $0x90] sm:$0xff]  }
0x4d86   :  { %19261 = vmatprep.subr.bf16.mxu0 %v20858_v24 }
0x4d87   :  { %20232 = vmatpush3.bf16.msra.mxu1 %v20207_v45  ;;  %v20860_v45 = vld [vmem:[%s24214_s13 + $0x58] sm:$0xff]  }
0x4d88   :  { %20233 = vmatprep.subr.bf16.mxu1 %v21640_v19 }
0x4d89   :  { %19262 = vmatpush3.bf16.msra.mxu0 %v20858_v24  ;;  %v20876_v24 = vld [vmem:[%s24214_s13 + $0x98] sm:$0xff]  }
0x4d8a   :  { %19263 = vmatprep.subr.bf16.mxu0 %v20859_v29 }
0x4d8b   :  { %20235 = vmatpush3.bf16.msra.mxu1 %v20210_v46 }
0x4d8c   :  { %20236 = vmatprep.subr.bf16.mxu1 %v21640_v19 }
0x4d8d   :  { %19264 = vmatpush3.bf16.msra.mxu0 %v20859_v29  ;;  %v20877_v29 = vld [vmem:[%s24214_s13 + $0xa0] sm:$0xff]  }
0x4d8e   :  { %19265 = vmatprep.subr.bf16.mxu0 %v20860_v45 }
0x4d8f   :  { %20238 = vmatpush3.bf16.msra.mxu1 %v20213_v0 }
0x4d90   :  { %20239 = vmatprep.subr.bf16.mxu1 %v21640_v19 }
0x4d91   :  { %19266 = vmatpush3.bf16.msra.mxu0 %v20860_v45  ;;  %v20878_v45 = vld [vmem:[%s24214_s13 + $0xa8] sm:$0xff]  }
0x4d92   :  { %19267 = vmatprep.subr.bf16.mxu0 %v20861_v59 }
0x4d93   :  { %20241 = vmatpush3.bf16.msra.mxu1 %v20216_v50 }
0x4d94   :  { %19233 = vmatprep.subr.mxu1 %v21642_v63 }
0x4d95   :  { %19268 = vmatpush3.bf16.msra.mxu0 %v20861_v59  ;;  %v20879_v59 = vld [vmem:[%s24214_s13 + $0xb0] sm:$0xff]  }
0x4e49   :  { %v13118_v44 = vpop.f32.mrb[170].mxu1 }
0x4e4a   :  { %v13125_v47 = vrot.slane %v13118_v44, %v22137_v21  ;;  %v19197_v55 = vpop.f32.mrb[171].mxu1  ;;  %v20862_v44 = vld [vmem:[%s24214_s13 + $0x68] sm:$0xff]  }
0x4e4b   :  { %19269 = vmatprep.subr.bf16.mxu0 %v20862_v44  ;;  %v20864_v55 = vld [vmem:[%s24214_s13 + $0x78] sm:$0xff]  }
0x4e4c   :  { %v13126_v43 = vsub.f32 %v23982_v8, %v13125_v47  ;;  %v13127_v30 = vsub.f32 %v23986_v2, %v13125_v47  ;;  %v13128_v32 = vsub.f32 %v23980_v7, %v13125_v47  ;;  %v13129_v35 = vsub.f32 %v23984_v11, %v13125_v47  ;;  %19270 = vmatpush3.bf16.msra.mxu0 %v20862_v44  ;;  %v20863_v47 = vld [vmem:[%s24214_s13 + $0x70] sm:$0xff]  }
0x4e4d   :  { %19271 = vmatprep.subr.bf16.mxu0 %v20863_v47 }
0x4e4e   :  { %v13130_v36 = vmul.f32 %v13126_v43, %v13126_v43  ;;  %v13131_v31 = vmul.f32 %v13127_v30, %v13127_v30  ;;  %v13132_v38 = vmul.f32 %v13128_v32, %v13128_v32  ;;  %v13133_v48 = vmul.f32 %v13129_v35, %v13129_v35  ;;  %v20865_v43 = vld [vmem:[%s24214_s13] sm:$0xff]  }
0x4e50   :  { %v13134_v40 = vadd.f32 %v13131_v31, %v13130_v36  ;;  %19272 = vmatpush3.bf16.msra.mxu0 %v20863_v47 }
0x4e51   :  { %19273 = vmatprep.subr.bf16.mxu0 %v20864_v55 }
0x4e52   :  { %v13135_v49 = vadd.f32 %v13134_v40, %v13132_v38 }
0x4e54   :  { %v13136_v34 = vadd.f32 %v13135_v49, %v13133_v48  ;;  %19274 = vmatpush3.bf16.msra.mxu0 %v20864_v55  ;;  %v13393_v55 = vld [vmem:[%s21861_s19] sm:$0x7] }
0x4e55   :  { %19279 = vmatprep.subr.bf16.mxu0 %v20865_v43 }
0x4e56   :  { %v13137_v28 = vrot.slane %v13136_v34, 4 }
0x4e58   :  { %v13138_v51 = vadd.f32 %v13137_v28, %v13136_v34 }
0x4e5a   :  { %v13139_v52 = vrot.slane %v13138_v51, 2 }
0x4e5c   :  { %v13140_v53 = vadd.f32 %v13139_v52, %v13138_v51  ;;  %v20866_v52 = vld [vmem:[%s24214_s13 + $0x8] sm:$0xff]  }
0x4e5e   :  { %v13141_v9 = vrot.slane %v13140_v53, 1 }
0x4e60   :  { %v13142_v10 = vadd.f32 %v13141_v9, %v13140_v53  ;;  %v20867_v9 = vld [vmem:[%s24214_s13 + $0x10] sm:$0xff]  }
0x4e62   :  { %19231 = vmatmul.mubr.f32.vlgmr.msra.gmra.mrb[172].mxu1 %v13142_v10 }
0x4e63   :  { %19234 = vmatpush3.msra.mxu1 %v12217_v61  ;;  %19235 = vmatprep.mubr.msk.f32.mxu1 %vm21641_vm2, %v21642_v63 }
0x4e64   :  { %19238 = vmatprep.subr.mxu1 %v21642_v63 }
0x4f35   :  { %v13209_v1 = vpop.f32.mrb[172].mxu1 }
0x4f36   :  { %v13213_v56 = vmul.f32 0.001953125, %v13209_v1  ;;  %v19232_v57 = vpop.f32.mrb[173].mxu1 }
0x4f38   :  { %v13214_v60 = vadd.f32 1e-05, %v13213_v56 }
0x4f3a   :  { %20907 = vrsqrt.f32 %v13214_v60 }
0x4f44   :  { %v20908_v22 = vpop.eup %20907 }
0x4f45   :  { %v13216_v5 = vmul.f32 %v20908_v22, %v12199_v62  ;;  %v20868_v62 = vld [vmem:[%s24214_s13 + $0x18] sm:$0xff]   ;;  %v20869_v22 = vld [vmem:[%s24214_s13 + $0x20] sm:$0xff]  }
0x4f47   :  { %19236 = vmatmul.mubr.msk.f32.vlgmr.msra.gmra.mrb[174].mxu1 %vm1095_vm3, %v13216_v5  ;;  %v13217_v42 = vmul.f32 %v13216_v5, %v13048_v27  ;;  %v20855_v27 = vld [vmem:[%s24213_s5 + $0x20] sm:$0xff]   ;;  %v20870_v5 = vld [vmem:[%s24214_s13 + $0x28] sm:$0xff]  }
0x4f48   :  { %19239 = vmatpush3.msra.mxu1 %v12217_v61  ;;  %19240 = vmatprep.mubr.msk.f32.mxu1 %vm21641_vm2, %v21642_v63  ;;  %v20853_v61 = vld [vmem:[%s24213_s5 + $0x10] sm:$0xff]  }
0x4f49   :  { %v13218_v13 = vsub.f32 %v12200_v6, %v13217_v42  ;;  %v20871_v6 = vld [vmem:[%s24214_s13 + $0x30] sm:$0xff]   ;;  %v20872_v42 = vld [vmem:[%s24214_s13 + $0x38] sm:$0xff]  }
0x4f4b   :  { %19241 = vmatmul.mubr.msk.f32.vlgmr.msra.gmra.mrb[176].mxu1 %vm1095_vm3, %v13218_v13  ;;  %v20873_v13 = vld [vmem:[%s24214_s13 + $0x80] sm:$0xff]  }
0x4f4c   :  { %19247 = vmatprep.mubr.msk.bf16.mxu1 %vm569_vm0, %v20851_v16  ;;  %v20874_v16 = vld [vmem:[%s24214_s13 + $0x88] sm:$0xff]  }
0x501a   :  { %v13288_v33 = vpop.f32.mrb[174].mxu1 }
0x501b   :  { %v13368_v46 = vrot.slane %v13288_v33, %v22137_v21  ;;  %v19237_v37 = vpop.f32.mrb[175].mxu1  ;;  %v20880_v33 = vld [vmem:[%s24214_s13 + $0xb8] sm:$0xff]  }
0x501c   :  { %v13388_v37 = vld [vmem:[%s21856_s29 + $0x8] sm:$0xff] }
0x501d   :  { %v13369_v54 = vmul.f32 %v13368_v46, %v23982_v8  ;;  %v13370_v58 = vmul.f32 %v13368_v46, %v23986_v2  ;;  %v13371_v0 = vmul.f32 %v23980_v7, %v13368_v46  ;;  %v13372_v41 = vmul.f32 %v23984_v11, %v13368_v46  ;;  %v20852_v11 = vld [vmem:[%s24213_s5 + $0x8] sm:$0xff]   ;;  %v13387_v46 = vld [vmem:[%s21856_s29] sm:$0xff] }
0x501e   :  { %v13361_v50 = vpop.f32.mrb[176].mxu1 }
0x501f   :  { %v13376_v3 = vrot.slane %v13361_v50, %v22137_v21  ;;  %v19242_v23 = vpop.f32.mrb[177].mxu1  ;;  %v13391_v50 = vld [vmem:[%s21856_s29 + $0x20] sm:$0xff] }
0x5021   :  { %v13377_v4 = vadd.f32 %v13376_v3, %v13369_v54  ;;  %v13378_v26 = vadd.f32 %v13376_v3, %v13370_v58  ;;  %v13379_v12 = vadd.f32 %v13376_v3, %v13371_v0  ;;  %v13380_v14 = vadd.f32 %v13376_v3, %v13372_v41  ;;  %v13389_v58 = vld [vmem:[%s21856_s29 + $0x10] sm:$0xff]  ;;  %v13390_v0 = vld [vmem:[%s21856_s29 + $0x18] sm:$0xff]  ;;  %v13392_v3 = vld [vmem:[%s21856_s29 + $0x28] sm:$0xff] }
0x5022   :  { %v20243_v54 = vpack.c.bf16 %v13388_v37, %v13387_v46  ;;  %v20246_v41 = vpack.c.bf16 %v13390_v0, %v13389_v58  ;;  %v20249_v23 = vpack.c.bf16 %v13392_v3, %v13391_v50 }
0x5023   :  { %v13381_v15 = vmax.f32 %v13377_v4, 0.0  ;;  %v13382_v17 = vmax.f32 %v13378_v26, 0.0  ;;  %v13383_v8 = vmax.f32 %v13379_v12, 0.0  ;;  %v13384_v18 = vmax.f32 %v13380_v14, 0.0 }
0x5025   :  { %v13394_v2 = vpack.c.bf16 %v13382_v17, %v13381_v15  ;;  %v13395_v7 = vpack.c.bf16 %v13384_v18, %v13383_v8 }
0x5027   :  { %19243 = vmatprep.subr.bf16.mxu1 %v13394_v2 }
0x5028   :  { %19244 = vmatpush3.bf16.msra.mxu1 %v13394_v2 }
0x5029   :  { %19245 = vmatprep.subr.bf16.mxu1 %v13395_v7 }
0x502c   :  { %19246 = vmatpush3.bf16.msra.mxu1 %v13395_v7 }
0x502d   :  { %19251 = vmatprep.subr.bf16.mxu1 %v13394_v2 }
0x502f   :  { %19248 = vmatmul.mubr.msk.bf16.vlgmr.msra.gmra.mrb[180].mxu1 %vm569_vm0, %v20852_v11 }
0x5030   :  { %19252 = vmatpush3.bf16.msra.mxu1 %v13394_v2  ;;  %19255 = vmatprep.mubr.msk.bf16.mxu1 %vm569_vm0, %v20853_v61 }
0x5031   :  { %19253 = vmatprep.subr.bf16.mxu1 %v13395_v7 }
0x5034   :  { %19254 = vmatpush3.bf16.msra.mxu1 %v13395_v7 }
0x5035   :  { %19299 = vmatprep.subr.bf16.mxu1 %v13394_v2 }
0x5037   :  { %19256 = vmatmul.mubr.msk.bf16.vlgmr.msra.gmra.mrb[184].mxu1 %vm569_vm0, %v20854_v25 }
0x5038   :  { %19300 = vmatpush3.bf16.msra.mxu1 %v13394_v2  ;;  %19303 = vmatprep.mubr.msk.bf16.mxu1 %vm569_vm0, %v20855_v27 }
0x5039   :  { %19301 = vmatprep.subr.bf16.mxu1 %v13395_v7 }
0x503c   :  { %19302 = vmatpush3.bf16.msra.mxu1 %v13395_v7 }
0x503d   :  { %20242 = vmatprep.subr.bf16.mxu1 %v21640_v19 }
0x503f   :  { %19304 = vmatmul.mubr.msk.bf16.vlgmr.msra.gmra.mrb[188].mxu1 %vm569_vm0, %v20856_v39 }
0x5040   :  { %19339 = vmatprep.mubr.msk.f32.mxu1 %vm21641_vm2, %v21642_v63  ;;  %20244 = vmatpush3.bf16.msra.mxu1 %v20243_v54 }
0x5041   :  { %20245 = vmatprep.subr.bf16.mxu1 %v21640_v19 }
0x5044   :  { %20247 = vmatpush3.bf16.msra.mxu1 %v20246_v41 }
0x5045   :  { %20248 = vmatprep.subr.bf16.mxu1 %v21640_v19 }
0x5048   :  { %20250 = vmatpush3.bf16.msra.mxu1 %v20249_v23 }
0x5049   :  { %19342 = vmatprep.subr.mxu1 %v21642_v63 }
0x5102   :  { %v19249_v30 = vpop.f32.mrb[180].mxu1 }
0x5103   :  { %v13450_v32 = vpop.f32.mrb[181].mxu1 }
0x5104   :  { %v19250_v35 = vpop.f32.mrb[182].mxu1 }
0x5105   :  { %v13466_v36 = vpack.c.bf16 %v19250_v35, %v19249_v30  ;;  %v13453_v31 = vpop.f32.mrb[183].mxu1 }
0x5106   :  { %v13465_v38 = vpack.c.bf16 %v13453_v31, %v13450_v32 }
0x510a   :  { %v19257_v40 = vpop.f32.mrb[184].mxu1 }
0x510b   :  { %v13538_v48 = vpop.f32.mrb[185].mxu1 }
0x510c   :  { %v19258_v49 = vpop.f32.mrb[186].mxu1 }
0x510d   :  { %v13554_v34 = vpack.c.bf16 %v19258_v49, %v19257_v40  ;;  %v13541_v28 = vpop.f32.mrb[187].mxu1 }
0x510e   :  { %v13553_v51 = vpack.c.bf16 %v13541_v28, %v13538_v48 }
0x5110   :  { %19275 = vmatprep.mubr.bf16.mxu0 %v13553_v51 }
0x5111   :  { %19276 = vmatmul.mubr.bf16.vlgmr.msra.gmra.mrb[204].mxu0 %v13554_v34 }
0x5112   :  { %19280 = vmatpush3.bf16.msra.mxu0 %v20865_v43  ;;  %19295 = vmatprep.mubr.bf16.mxu0 %v13465_v38  ;;  %v19305_v53 = vpop.f32.mrb[188].mxu1 }
0x5113   :  { %19281 = vmatprep.subr.bf16.mxu0 %v20866_v52  ;;  %v13821_v10 = vpop.f32.mrb[189].mxu1 }
0x5114   :  { %v19306_v1 = vpop.f32.mrb[190].mxu1 }
0x5115   :  { %v13837_v56 = vpack.c.bf16 %v19306_v1, %v19305_v53  ;;  %v13824_v57 = vpop.f32.mrb[191].mxu1 }
0x5116   :  { %19282 = vmatpush3.bf16.msra.mxu0 %v20866_v52  ;;  %v13836_v60 = vpack.c.bf16 %v13824_v57, %v13821_v10 }
0x5117   :  { %19283 = vmatprep.subr.bf16.mxu0 %v20867_v9 }
0x511a   :  { %19284 = vmatpush3.bf16.msra.mxu0 %v20867_v9 }
0x511b   :  { %19285 = vmatprep.subr.bf16.mxu0 %v20868_v62 }
0x511e   :  { %19286 = vmatpush3.bf16.msra.mxu0 %v20868_v62 }
0x511f   :  { %19287 = vmatprep.subr.bf16.mxu0 %v20869_v22 }
0x5122   :  { %19288 = vmatpush3.bf16.msra.mxu0 %v20869_v22 }
0x5123   :  { %19289 = vmatprep.subr.bf16.mxu0 %v20870_v5 }
0x5126   :  { %19290 = vmatpush3.bf16.msra.mxu0 %v20870_v5 }
0x5127   :  { %19291 = vmatprep.subr.bf16.mxu0 %v20871_v6 }
0x512a   :  { %19292 = vmatpush3.bf16.msra.mxu0 %v20871_v6 }
0x512b   :  { %19293 = vmatprep.subr.bf16.mxu0 %v20872_v42 }
0x512e   :  { %19294 = vmatpush3.bf16.msra.mxu0 %v20872_v42 }
0x512f   :  { %19307 = vmatprep.subr.bf16.mxu0 %v20873_v13 }
0x5131   :  { %19296 = vmatmul.mubr.bf16.vlgmr.msra.gmra.mrb[204].mxu0 %v13466_v36 }
0x5132   :  { %19308 = vmatpush3.bf16.msra.mxu0 %v20873_v13  ;;  %19323 = vmatprep.mubr.bf16.mxu0 %v13836_v60 }
0x5133   :  { %19309 = vmatprep.subr.bf16.mxu0 %v20874_v16 }
0x5136   :  { %19310 = vmatpush3.bf16.msra.mxu0 %v20874_v16 }
0x5137   :  { %19311 = vmatprep.subr.bf16.mxu0 %v20875_v20 }
0x513a   :  { %19312 = vmatpush3.bf16.msra.mxu0 %v20875_v20 }
0x513b   :  { %19313 = vmatprep.subr.bf16.mxu0 %v20876_v24 }
0x513e   :  { %19314 = vmatpush3.bf16.msra.mxu0 %v20876_v24 }
0x513f   :  { %19315 = vmatprep.subr.bf16.mxu0 %v20877_v29 }
0x5142   :  { %19316 = vmatpush3.bf16.msra.mxu0 %v20877_v29  ;;  %v13385_v29 = vld [vmem:[#allocation42] sm:$0x1] }
0x5143   :  { %19317 = vmatprep.subr.bf16.mxu0 %v20878_v45 }
0x5146   :  { %19318 = vmatpush3.bf16.msra.mxu0 %v20878_v45 }
0x5147   :  { %19319 = vmatprep.subr.bf16.mxu0 %v20879_v59 }
0x514a   :  { %19320 = vmatpush3.bf16.msra.mxu0 %v20879_v59 }
0x514b   :  { %19321 = vmatprep.subr.bf16.mxu0 %v20880_v33 }
0x514e   :  { %19322 = vmatpush3.bf16.msra.mxu0 %v20880_v33  ;;  %v13386_v33 = vld [vmem:[#allocation43] sm:$0x1] }
0x5151   :  { %19324 = vmatmul.mubr.bf16.vlgmr.msra.gmra.mrb[204].mxu0 %v13837_v56 }
0x5224   :  { %v24075_v4 = vpop.f32.mrb[204].mxu0 }
0x5225   :  { %v24077_v26 = vpop.f32.mrb[205].mxu0  ;;  %v13959_v18 = vsel %vm730_vm1, %v24075_v4, 0.0 }
0x5226   :  { %v24079_v12 = vpop.f32.mrb[206].mxu0  ;;  %v13956_v15 = vsel %vm730_vm1, %v24077_v26, 0.0 }
0x5227   :  { %v24081_v14 = vpop.f32.mrb[207].mxu0  ;;  %v13961_v7 = vsel %vm730_vm1, %v24079_v12, 0.0 }
0x5228   :  { %v13957_v17 = vsel %vm730_vm1, %v24081_v14, 0.0 }
0x5229   :  { %v13958_v8 = vadd.f32 %v13957_v17, %v13956_v15 }
0x522b   :  { %v13960_v2 = vadd.f32 %v13959_v18, %v13958_v8 }
0x522d   :  { %v13962_v11 = vadd.f32 %v13961_v7, %v13960_v2 }
0x522f   :  { %v13963_v61 = vrot.slane %v13962_v11, 4 }
0x5231   :  { %v13964_v25 = vadd.f32 %v13963_v61, %v13962_v11 }
0x5233   :  { %v13965_v27 = vrot.slane %v13964_v25, 2 }
0x5235   :  { %v13966_v39 = vadd.f32 %v13965_v27, %v13964_v25 }
0x5237   :  { %v13967_v44 = vrot.slane %v13966_v39, 1 }
0x5239   :  { %v13968_v47 = vadd.f32 %v13967_v44, %v13966_v39 }
0x523b   :  { %19340 = vmatmul.mubr.msk.f32.vlgmr.msra.gmra.mrb[178].mxu1 %vm730_vm1, %v13968_v47 }
0x523c   :  { %19344 = vmatprep.mubr.msk.f32.mxu1 %vm21641_vm2, %v21642_v63  ;;  %19343 = vmatpush3.msk.msra.mxu1 %vm14047_vm6, %v13393_v55 }
0x523d   :  { %20251 = vmatprep.subr.bf16.mxu1 %v21640_v19 }
0x530e   :  { %v14038_v43 = vpop.f32.mrb[178].mxu1 }
0x530f   :  { %v14042_v30 = vmul.f32 0.001953125, %v14038_v43  ;;  %v19341_v32 = vpop.f32.mrb[179].mxu1 }
0x5311   :  { %19345 = vmatmul.mubr.msk.f32.vlgmr.msra.gmra.mrb[192].mxu1 %vm14043_vm7, %v14042_v30 }
0x5312   :  { %20253 = vmatpush3.bf16.msra.mxu1 %v20243_v54  ;;  %19359 = vmatprep.mubr.msk.f32.mxu1 %vm21641_vm2, %v21642_v63 }
0x5313   :  { %20254 = vmatprep.subr.bf16.mxu1 %v21640_v19 }
0x5316   :  { %20256 = vmatpush3.bf16.msra.mxu1 %v20246_v41 }
0x5317   :  { %20257 = vmatprep.subr.bf16.mxu1 %v21640_v19 }
0x531a   :  { %20259 = vmatpush3.bf16.msra.mxu1 %v20249_v23 }
0x531b   :  { %19362 = vmatprep.subr.mxu1 %v21642_v63 }
0x53e4   :  { %v14117_v35 = vpop.f32.mrb[192].mxu1 }
0x53e5   :  { %v14124_v36 = vrot.slane %v14117_v35, %v22137_v21  ;;  %v19346_v31 = vpop.f32.mrb[193].mxu1 }
0x53e7   :  { %v14125_v38 = vsub.f32 %v24077_v26, %v14124_v36  ;;  %v14126_v40 = vsub.f32 %v24081_v14, %v14124_v36  ;;  %v14127_v48 = vsub.f32 %v24075_v4, %v14124_v36  ;;  %v14128_v49 = vsub.f32 %v24079_v12, %v14124_v36 }
0x53e9   :  { %v14129_v34 = vmul.f32 %v14125_v38, %v14125_v38  ;;  %v14130_v28 = vmul.f32 %v14126_v40, %v14126_v40  ;;  %v14131_v51 = vmul.f32 %v14127_v48, %v14127_v48  ;;  %v14132_v52 = vmul.f32 %v14128_v49, %v14128_v49 }
0x53eb   :  { %v14133_v19 = vsel %vm730_vm1, %v14129_v34, 0.0  ;;  %v14134_v53 = vsel %vm730_vm1, %v14130_v28, 0.0  ;;  %v14136_v10 = vsel %vm730_vm1, %v14131_v51, 0.0  ;;  %v14138_v56 = vsel %vm730_vm1, %v14132_v52, 0.0 }
0x53ec   :  { %v14135_v9 = vadd.f32 %v14134_v53, %v14133_v19 }
0x53ee   :  { %v14137_v1 = vadd.f32 %v14136_v10, %v14135_v9 }
0x53f0   :  { %v14139_v57 = vadd.f32 %v14138_v56, %v14137_v1 }
0x53f2   :  { %v14140_v60 = vrot.slane %v14139_v57, 4 }
0x53f4   :  { %v14141_v62 = vadd.f32 %v14140_v60, %v14139_v57 }
0x53f6   :  { %v14142_v22 = vrot.slane %v14141_v62, 2 }
0x53f8   :  { %v14143_v5 = vadd.f32 %v14142_v22, %v14141_v62 }
0x53fa   :  { %v14144_v6 = vrot.slane %v14143_v5, 1 }
0x53fc   :  { %v14145_v42 = vadd.f32 %v14144_v6, %v14143_v5 }
0x53fe   :  { %19360 = vmatmul.mubr.msk.f32.vlgmr.msra.gmra.mrb[194].mxu1 %vm730_vm1, %v14145_v42 }
0x53ff   :  { %19363 = vmatpush3.msk.msra.mxu1 %vm14047_vm6, %v13393_v55  ;;  %19364 = vmatprep.mubr.msk.f32.mxu1 %vm21641_vm2, %v21642_v63 }
0x5400   :  { %19367 = vmatprep.subr.mxu1 %v21642_v63 }
0x54d1   :  { %v14215_v13 = vpop.f32.mrb[194].mxu1 }
0x54d2   :  { %v14219_v16 = vmul.f32 0.001953125, %v14215_v13  ;;  %v19361_v20 = vpop.f32.mrb[195].mxu1 }
0x54d4   :  { %v14220_v24 = vadd.f32 1e-05, %v14219_v16 }
0x54d6   :  { %20909 = vrsqrt.f32 %v14220_v24 }
0x54e0   :  { %v20910_v45 = vpop.eup %20909 }
0x54e1   :  { %v14222_v59 = vmul.f32 %v20910_v45, %v13385_v29 }
0x54e3   :  { %19365 = vmatmul.mubr.msk.f32.vlgmr.msra.gmra.mrb[196].mxu1 %vm14043_vm7, %v14222_v59  ;;  %v14223_v46 = vmul.f32 %v14222_v59, %v14042_v30 }
0x54e4   :  { %19368 = vmatpush3.msk.msra.mxu1 %vm14047_vm6, %v13393_v55  ;;  %19369 = vmatprep.mubr.msk.f32.mxu1 %vm21641_vm2, %v21642_v63 }
0x54e5   :  { %v14224_v37 = vsub.f32 %v13386_v33, %v14223_v46 }
0x54e7   :  { %19370 = vmatmul.mubr.msk.f32.vlgmr.msra.gmra.mrb[198].mxu1 %vm14043_vm7, %v14224_v37 }
0x55b6   :  { %v14294_v54 = vpop.f32.mrb[196].mxu1 }
0x55b7   :  { %v14374_v58 = vrot.slane %v14294_v54, %v22137_v21  ;;  %v19366_v0 = vpop.f32.mrb[197].mxu1 }
0x55b9   :  { %v14375_v41 = vmul.f32 %v14374_v58, %v24077_v26  ;;  %v14376_v50 = vmul.f32 %v14374_v58, %v24081_v14  ;;  %v14377_v3 = vmul.f32 %v24075_v4, %v14374_v58  ;;  %v14378_v23 = vmul.f32 %v24079_v12, %v14374_v58 }
0x55ba   :  { %v14367_v63 = vpop.f32.mrb[198].mxu1 }
0x55bb   :  { %v14382_v15 = vrot.slane %v14367_v63, %v22137_v21  ;;  %v19371_v17 = vpop.f32.mrb[199].mxu1 }
0x55bd   :  { %v14383_v8 = vadd.f32 %v14382_v15, %v14375_v41  ;;  %v14384_v18 = vadd.f32 %v14382_v15, %v14376_v50  ;;  %v14385_v2 = vadd.f32 %v14382_v15, %v14377_v3  ;;  %v14386_v7 = vadd.f32 %v14382_v15, %v14378_v23 }
0x55bf   :  { %v14387_v11 = vmax.f32 %v14383_v8, 0.0  ;;  %v14388_v61 = vmax.f32 %v14384_v18, 0.0  ;;  %v14389_v26 = vmax.f32 %v14385_v2, 0.0  ;;  %v14390_v25 = vmax.f32 %v14386_v7, 0.0 }
0x55c1   :  { %14391 = vst.msk [vmem:[%s21866_s20] sm:$0xff] %vm730_vm1, %v14387_v11  ;;  %14392 = vst.msk [vmem:[%s21866_s20 + $0x8] sm:$0xff] %vm730_vm1, %v14388_v61 }
0x55c2   :  { %14393 = vst.msk [vmem:[%s21866_s20 + $0x10] sm:$0xff] %vm730_vm1, %v14389_v26  ;;  %14394 = vst.msk [vmem:[%s21866_s20 + $0x18] sm:$0xff] %vm730_vm1, %v14390_v25 }
0x55c3   :  { %14399 = vsyncpa [#allocation3], 1 }
0x55c4   :  { %14400 = vsyncpa [#allocation5], 1 }
0x55c5   :  { %14401 = vsyncpa [#allocation8], 1 }
0x55c6   :  { %14402 = vsyncpa [#allocation11], 1 }
0x55c7   :  { %14403 = vsyncpa [#allocation14], 1 }
0x55c8   :  { %14404 = vsyncpa [#allocation17], 1 }
0x55c9   :  { %14405 = vsyncpa [#allocation20], 1 }
0x55ca   :  { %14406 = vsyncpa [#allocation23], 1 }
0x55cb   :  { %14407 = vsyncpa [#allocation26], 1 }
0x55cc   :  { %14408 = vsyncpa [#allocation29], 1 }
0x55cd   :  { %14409 = vsyncpa [#allocation32], 1 }
0x55ce   :  { %14410 = vsyncpa [#allocation35], 1 }
0x55cf   :  { %14411 = vsyncpa [#allocation38], 1 }
0x55d0   :  { %14412 = vsyncpa [#allocation41], 1 }
0x55d1   :  { %14413 = vsyncpa [#allocation44], 1 }

</bundles_post_ra>
